<compile_context>
chip_gen: v6e
topology: v6e:2x2x1
jax: 0.10.0
libtpu: 0.0.40
codegen_flags: <defaults>
</compile_context>

<pallas_src>
import functools

import jax
import jax.numpy as jnp
from jax.experimental import pallas as pl
from jax.experimental.pallas import tpu as pltpu

_INV_SQRT2 = 0.7071067811865476
MIN_NUM_PATCHES = 16


# ----------------------------- in-kernel helpers -----------------------------

def _layer_norm_f32(x, g, b, eps):
    mu = jnp.mean(x, axis=-1, keepdims=True)
    var = jnp.mean(jnp.square(x - mu), axis=-1, keepdims=True)
    return (x - mu) * jax.lax.rsqrt(var + eps) * g + b


def _erf_f32(x):
    # Abramowitz & Stegun 7.1.26 polynomial, |err| <= 1.5e-7 (f32-exact).
    ax = jnp.abs(x)
    t = 1.0 / (1.0 + 0.3275911 * ax)
    poly = t * (0.254829592 +
                t * (-0.284496736 +
                     t * (1.421413741 +
                          t * (-1.453152027 + t * 1.061405429))))
    y = 1.0 - poly * jnp.exp(-ax * ax)
    return jnp.where(x >= 0.0, y, -y)


def _gelu_exact_f32(x):
    # matches torch.nn.GELU() default (exact erf form)
    return 0.5 * x * (1.0 + _erf_f32(x * _INV_SQRT2))


# --------------------------- fused whole-forward kernel -----------------------

def _fused_vit_kernel(patch_ref, base_ref, pw_ref,
                      ln1g_ref, ln1b_ref, qkvw_ref, outw_ref, outb_ref,
                      ln2g_ref, ln2b_ref, ff1w_ref, ff1b_ref,
                      ff2w_ref, ff2b_ref,
                      hlng_ref, hlnb_ref, hw_ref, hb_ref,
                      o_ref, *, depth, heads, dim_head, scale, eps):
    inner_dim = heads * dim_head

    # ---- patch embedding + cls token + positional embedding ----
    # patch_ref row 0 is zeros (cls slot); base = concat(cls, patch_bias)+pos.
    p = patch_ref[0].astype(jnp.bfloat16)                         # (N, patch_dim)
    x = jnp.dot(p, pw_ref[...],
                preferred_element_type=jnp.float32) + base_ref[0]  # (N, dim) f32

    for l in range(depth):                                         # static unroll
        # ---- Residual(PreNorm(Attention)) ----
        xn = _layer_norm_f32(x, ln1g_ref[l], ln1b_ref[l], eps).astype(jnp.bfloat16)
        qkv = jnp.dot(xn, qkvw_ref[l],
                      preferred_element_type=jnp.float32)          # (N, 3*inner)
        q = qkv[:, :inner_dim] * scale                             # fold scale into q
        k = qkv[:, inner_dim:2 * inner_dim]
        v = qkv[:, 2 * inner_dim:3 * inner_dim]

        head_outs = []
        for h in range(heads):                                     # static unroll
            s0 = h * dim_head
            qh = q[:, s0:s0 + dim_head].astype(jnp.bfloat16)       # (N, dh)
            kh = k[:, s0:s0 + dim_head].astype(jnp.bfloat16)
            vh = v[:, s0:s0 + dim_head].astype(jnp.bfloat16)
            # q @ k^T without an explicit transpose: contract last dims.
            dots = jax.lax.dot_general(
                qh, kh, (((1,), (1,)), ((), ())),
                preferred_element_type=jnp.float32)                # (N, N) f32
            dots = dots - jnp.max(dots, axis=-1, keepdims=True)
            e = jnp.exp(dots)
            attn = e / jnp.sum(e, axis=-1, keepdims=True)          # exact divide
            head_outs.append(
                jnp.dot(attn.astype(jnp.bfloat16), vh,
                        preferred_element_type=jnp.float32))       # (N, dh)

        o_cat = jnp.concatenate(head_outs, axis=-1).astype(jnp.bfloat16)  # (N, inner)
        x = x + jnp.dot(o_cat, outw_ref[l],
                        preferred_element_type=jnp.float32) + outb_ref[l]

        # ---- Residual(PreNorm(FeedForward)) ----
        xn = _layer_norm_f32(x, ln2g_ref[l], ln2b_ref[l], eps).astype(jnp.bfloat16)
        h1 = jnp.dot(xn, ff1w_ref[l],
                     preferred_element_type=jnp.float32) + ff1b_ref[l]
        h1 = _gelu_exact_f32(h1).astype(jnp.bfloat16)
        x = x + jnp.dot(h1, ff2w_ref[l],
                        preferred_element_type=jnp.float32) + ff2b_ref[l]

    # ---- mlp_head(LayerNorm, Linear) on the cls token ----
    cls = x[0:1, :]                                                # (1, dim)
    cls_n = _layer_norm_f32(cls, hlng_ref[...], hlnb_ref[...], eps).astype(jnp.bfloat16)
    y = jnp.dot(cls_n, hw_ref[...],
                preferred_element_type=jnp.float32) + hb_ref[...]  # (1, num_classes)
    o_ref[0] = y.astype(o_ref.dtype)


# ------------------------------- model glue -----------------------------------

def patchify(img, p):
    # rearrange 'b c (h p1) (w p2) -> b (h w) (p1 p2 c)'
    B, C, H, W = img.shape
    h, w = H // p, W // p
    x = img.reshape(B, C, h, p, w, p)
    x = jnp.transpose(x, (0, 2, 4, 3, 5, 1))                       # b h w p1 p2 c
    return x.reshape(B, h * w, p * p * C)


def init_params(key, *, patch_dim, dim, depth, heads, dim_head, mlp_dim,
                num_patches, num_classes):
    inner_dim = heads * dim_head
    keys = iter(jax.random.split(key, 16))

    def w(shape, scale=0.02):
        # matmul weights stored bf16 (matmuls run bf16 with f32 accumulation)
        return (scale * jax.random.normal(next(keys), shape)).astype(jnp.bfloat16)

    return {
        "pos_embedding": jax.random.normal(next(keys), (1, num_patches + 1, dim),
                                           dtype=jnp.float32),
        "cls_token": jax.random.normal(next(keys), (1, 1, dim), dtype=jnp.float32),
        "patch_w": w((patch_dim, dim)),
        "patch_b": jnp.zeros((1, dim), jnp.float32),
        # per-layer weights stacked on a leading depth axis.
        # qkv column order matches to_qkv(x).chunk(3) + 'b n (h d) -> b h n d'.
        "ln1_g": jnp.ones((depth, 1, dim), jnp.float32),
        "ln1_b": jnp.zeros((depth, 1, dim), jnp.float32),
        "qkv_w": w((depth, dim, 3 * inner_dim)),       # to_qkv has bias=False
        "out_w": w((depth, inner_dim, dim)),
        "out_b": jnp.zeros((depth, 1, dim), jnp.float32),
        "ln2_g": jnp.ones((depth, 1, dim), jnp.float32),
        "ln2_b": jnp.zeros((depth, 1, dim), jnp.float32),
        "ff1_w": w((depth, dim, mlp_dim)),
        "ff1_b": jnp.zeros((depth, 1, mlp_dim), jnp.float32),
        "ff2_w": w((depth, mlp_dim, dim)),
        "ff2_b": jnp.zeros((depth, 1, dim), jnp.float32),
        "head_ln_g": jnp.ones((1, dim), jnp.float32),
        "head_ln_b": jnp.zeros((1, dim), jnp.float32),
        "head_w": w((dim, num_classes)),
        "head_b": jnp.zeros((1, num_classes), jnp.float32),
    }


def discriminator_forward(img, params, *, patch_size, depth, heads, dim_head):
    dim = params["cls_token"].shape[-1]
    num_classes = params["head_w"].shape[-1]
    mlp_dim = params["ff1_w"].shape[-1]
    inner_dim = heads * dim_head
    scale = float(dim) ** (-0.5)              # matches the reference: dim ** -0.5

    patches = patchify(img, patch_size)                            # (B, n, patch_dim)
    B, n, patch_dim = patches.shape
    N = n + 1
    # leading zero row = cls slot (so the patch matmul covers all N rows)
    patches = jnp.pad(patches, ((0, 0), (1, 0), (0, 0)))           # (B, N, patch_dim)

    # base[0]   = cls_token + pos[0]
    # base[1:]  = patch_bias + pos[1:]
    pos = params["pos_embedding"][:, :N]
    base = jnp.concatenate(
        [params["cls_token"],
         jnp.broadcast_to(params["patch_b"][None], (1, n, dim))], axis=1) + pos

    kernel = functools.partial(_fused_vit_kernel, depth=depth, heads=heads,
                               dim_head=dim_head, scale=scale, eps=1e-5)

    def full2(shape):
        return pl.BlockSpec(shape, lambda i: (0, 0))

    def full3(shape):
        return pl.BlockSpec(shape, lambda i: (0, 0, 0))

    out = pl.pallas_call(
        kernel,
        out_shape=jax.ShapeDtypeStruct((B, 1, num_classes), jnp.float32),
        grid=(B,),
        in_specs=[
            pl.BlockSpec((1, N, patch_dim), lambda i: (i, 0, 0)),   # patches
            full3((1, N, dim)),                                     # base (cls/bias/pos)
            full2((patch_dim, dim)),                                # patch_w
            full3((depth, 1, dim)), full3((depth, 1, dim)),         # ln1 g/b
            full3((depth, dim, 3 * inner_dim)),                     # qkv_w
            full3((depth, inner_dim, dim)),                         # out_w
            full3((depth, 1, dim)),                                 # out_b
            full3((depth, 1, dim)), full3((depth, 1, dim)),         # ln2 g/b
            full3((depth, dim, mlp_dim)), full3((depth, 1, mlp_dim)),  # ff1
            full3((depth, mlp_dim, dim)), full3((depth, 1, dim)),   # ff2
            full2((1, dim)), full2((1, dim)),                       # head LN g/b
            full2((dim, num_classes)), full2((1, num_classes)),     # head w/b
        ],
        out_specs=pl.BlockSpec((1, 1, num_classes), lambda i: (i, 0, 0)),
        compiler_params=pltpu.CompilerParams(dimension_semantics=("parallel",)),
    )(patches, base, params["patch_w"],
      params["ln1_g"], params["ln1_b"], params["qkv_w"], params["out_w"],
      params["out_b"], params["ln2_g"], params["ln2_b"], params["ff1_w"],
      params["ff1_b"], params["ff2_w"], params["ff2_b"],
      params["head_ln_g"], params["head_ln_b"], params["head_w"],
      params["head_b"])
    return out[:, 0, :]                                             # (B, num_classes)


# ---------------------------------- main --------------------------------------

if __name__ == "__main__":
    image_size = 16
    patch_size = 2
    channels = 3
    dim = 32
    depth = 2
    heads = 4
    dim_head = 8
    mlp_dim = 64
    num_classes = 2
    batch = 2

    num_patches = (image_size // patch_size) ** 2
    patch_dim = channels * patch_size ** 2
    assert image_size % patch_size == 0
    assert num_patches > MIN_NUM_PATCHES

    key = jax.random.PRNGKey(0)
    k_img, k_par = jax.random.split(key)
    img = jax.random.normal(k_img, (batch, channels, image_size, image_size),
                            dtype=jnp.float32)
    params = init_params(k_par, patch_dim=patch_dim, dim=dim, depth=depth,
                         heads=heads, dim_head=dim_head, mlp_dim=mlp_dim,
                         num_patches=num_patches, num_classes=num_classes)

    fwd = jax.jit(functools.partial(discriminator_forward,
                                    patch_size=patch_size, depth=depth,
                                    heads=heads, dim_head=dim_head))
    logits = jax.block_until_ready(fwd(img, params))
    assert logits.shape == (batch, num_classes)
    assert bool(jnp.isfinite(logits).all())
    print("KERNEL_OK")
</pallas_src>

<mosaic_0001>
module attributes {stable_mosaic.version = 11 : i64} {
  func.func @_fused_vit_kernel(%arg0: i32, %arg1: memref<1x65x12xf32, #tpu.memory_space<vmem>>, %arg2: memref<1x65x32xf32, #tpu.memory_space<vmem>>, %arg3: memref<12x32xbf16, #tpu.memory_space<vmem>>, %arg4: memref<2x1x32xf32, #tpu.memory_space<vmem>>, %arg5: memref<2x1x32xf32, #tpu.memory_space<vmem>>, %arg6: memref<2x32x96xbf16, #tpu.memory_space<vmem>>, %arg7: memref<2x32x32xbf16, #tpu.memory_space<vmem>>, %arg8: memref<2x1x32xf32, #tpu.memory_space<vmem>>, %arg9: memref<2x1x32xf32, #tpu.memory_space<vmem>>, %arg10: memref<2x1x32xf32, #tpu.memory_space<vmem>>, %arg11: memref<2x32x64xbf16, #tpu.memory_space<vmem>>, %arg12: memref<2x1x64xf32, #tpu.memory_space<vmem>>, %arg13: memref<2x64x32xbf16, #tpu.memory_space<vmem>>, %arg14: memref<2x1x32xf32, #tpu.memory_space<vmem>>, %arg15: memref<1x32xf32, #tpu.memory_space<vmem>>, %arg16: memref<1x32xf32, #tpu.memory_space<vmem>>, %arg17: memref<32x2xbf16, #tpu.memory_space<vmem>>, %arg18: memref<1x2xf32, #tpu.memory_space<vmem>>, %arg19: memref<1x1x2xf32, #tpu.memory_space<vmem>>) attributes {dimension_semantics = [#tpu.dimension_semantics<parallel>], iteration_bounds = array<i64: 2>, scalar_prefetch = 0 : i64, scratch_operands = 0 : i64, tpu.core_type = #tpu.core_type<tc>, window_params = [{transform_indices = @transform_0, window_bounds = array<i64: 1, 65, 12>}, {pipeline_mode = #tpu.pipeline_mode<synchronous>, transform_indices = @transform_1, window_bounds = array<i64: 1, 65, 32>}, {pipeline_mode = #tpu.pipeline_mode<synchronous>, transform_indices = @transform_2, window_bounds = array<i64: 12, 32>}, {pipeline_mode = #tpu.pipeline_mode<synchronous>, transform_indices = @transform_3, window_bounds = array<i64: 2, 1, 32>}, {pipeline_mode = #tpu.pipeline_mode<synchronous>, transform_indices = @transform_4, window_bounds = array<i64: 2, 1, 32>}, {pipeline_mode = #tpu.pipeline_mode<synchronous>, transform_indices = @transform_5, window_bounds = array<i64: 2, 32, 96>}, {pipeline_mode = #tpu.pipeline_mode<synchronous>, transform_indices = @transform_6, window_bounds = array<i64: 2, 32, 32>}, {pipeline_mode = #tpu.pipeline_mode<synchronous>, transform_indices = @transform_7, window_bounds = array<i64: 2, 1, 32>}, {pipeline_mode = #tpu.pipeline_mode<synchronous>, transform_indices = @transform_8, window_bounds = array<i64: 2, 1, 32>}, {pipeline_mode = #tpu.pipeline_mode<synchronous>, transform_indices = @transform_9, window_bounds = array<i64: 2, 1, 32>}, {pipeline_mode = #tpu.pipeline_mode<synchronous>, transform_indices = @transform_10, window_bounds = array<i64: 2, 32, 64>}, {pipeline_mode = #tpu.pipeline_mode<synchronous>, transform_indices = @transform_11, window_bounds = array<i64: 2, 1, 64>}, {pipeline_mode = #tpu.pipeline_mode<synchronous>, transform_indices = @transform_12, window_bounds = array<i64: 2, 64, 32>}, {pipeline_mode = #tpu.pipeline_mode<synchronous>, transform_indices = @transform_13, window_bounds = array<i64: 2, 1, 32>}, {pipeline_mode = #tpu.pipeline_mode<synchronous>, transform_indices = @transform_14, window_bounds = array<i64: 1, 32>}, {pipeline_mode = #tpu.pipeline_mode<synchronous>, transform_indices = @transform_15, window_bounds = array<i64: 1, 32>}, {pipeline_mode = #tpu.pipeline_mode<synchronous>, transform_indices = @transform_16, window_bounds = array<i64: 32, 2>}, {pipeline_mode = #tpu.pipeline_mode<synchronous>, transform_indices = @transform_17, window_bounds = array<i64: 1, 2>}, {transform_indices = @transform_18, window_bounds = array<i64: 1, 1, 2>}]} {
    %c0 = arith.constant 0 : index
    %c0_0 = arith.constant 0 : index
    %c0_1 = arith.constant 0 : index
    %0 = vector.load %arg1[%c0, %c0_0, %c0_1] : memref<1x65x12xf32, #tpu.memory_space<vmem>>, vector<1x65x12xf32>
    %1 = vector.shape_cast %0 : vector<1x65x12xf32> to vector<65x12xf32>
    %2 = arith.truncf %1 : vector<65x12xf32> to vector<65x12xbf16>
    %c0_2 = arith.constant 0 : index
    %c0_3 = arith.constant 0 : index
    %3 = vector.load %arg3[%c0_2, %c0_3] : memref<12x32xbf16, #tpu.memory_space<vmem>>, vector<12x32xbf16>
    %cst = arith.constant dense<0.000000e+00> : vector<65x32xf32>
    %4 = tpu.matmul %2, %3, %cst {dimension_numbers = #tpu.dot_dimension_numbers<[1], [0], [0], [1], [0, 0, 1, 1], [], []>} : vector<65x12xbf16>, vector<12x32xbf16>, vector<65x32xf32> -> vector<65x32xf32>
    %c0_4 = arith.constant 0 : index
    %c0_5 = arith.constant 0 : index
    %c0_6 = arith.constant 0 : index
    %5 = vector.load %arg2[%c0_4, %c0_5, %c0_6] : memref<1x65x32xf32, #tpu.memory_space<vmem>>, vector<1x65x32xf32>
    %6 = vector.shape_cast %5 : vector<1x65x32xf32> to vector<65x32xf32>
    %7 = arith.addf %4, %6 : vector<65x32xf32>
    %c0_7 = arith.constant 0 : index
    %c0_8 = arith.constant 0 : index
    %c0_9 = arith.constant 0 : index
    %8 = vector.load %arg4[%c0_7, %c0_8, %c0_9] : memref<2x1x32xf32, #tpu.memory_space<vmem>>, vector<1x1x32xf32>
    %9 = vector.shape_cast %8 : vector<1x1x32xf32> to vector<1x32xf32>
    %c0_10 = arith.constant 0 : index
    %c0_11 = arith.constant 0 : index
    %c0_12 = arith.constant 0 : index
    %10 = vector.load %arg5[%c0_10, %c0_11, %c0_12] : memref<2x1x32xf32, #tpu.memory_space<vmem>>, vector<1x1x32xf32>
    %11 = vector.shape_cast %10 : vector<1x1x32xf32> to vector<1x32xf32>
    %cst_13 = arith.constant dense<0.000000e+00> : vector<65xf32>
    %12 = vector.multi_reduction <add>, %7, %cst_13 [1] : vector<65x32xf32> to vector<65xf32>
    %13 = vector.shape_cast %12 : vector<65xf32> to vector<65x1xf32>
    %cst_14 = arith.constant 3.200000e+01 : f32
    %14 = vector.broadcast %cst_14 : f32 to vector<65x1xf32>
    %15 = arith.divf %13, %14 : vector<65x1xf32>
    %16 = vector.broadcast %15 : vector<65x1xf32> to vector<65x32xf32>
    %17 = arith.subf %7, %16 : vector<65x32xf32>
    %18 = arith.mulf %17, %17 : vector<65x32xf32>
    %cst_15 = arith.constant dense<0.000000e+00> : vector<65xf32>
    %19 = vector.multi_reduction <add>, %18, %cst_15 [1] : vector<65x32xf32> to vector<65xf32>
    %20 = vector.shape_cast %19 : vector<65xf32> to vector<65x1xf32>
    %cst_16 = arith.constant 3.200000e+01 : f32
    %21 = vector.broadcast %cst_16 : f32 to vector<65x1xf32>
    %22 = arith.divf %20, %21 : vector<65x1xf32>
    %23 = vector.broadcast %15 : vector<65x1xf32> to vector<65x32xf32>
    %24 = arith.subf %7, %23 : vector<65x32xf32>
    %cst_17 = arith.constant 9.99999974E-6 : f32
    %25 = vector.broadcast %cst_17 : f32 to vector<65x1xf32>
    %26 = arith.addf %22, %25 : vector<65x1xf32>
    %27 = math.rsqrt %26 : vector<65x1xf32>
    %28 = vector.broadcast %27 : vector<65x1xf32> to vector<65x32xf32>
    %29 = arith.mulf %24, %28 : vector<65x32xf32>
    %30 = vector.broadcast %9 : vector<1x32xf32> to vector<65x32xf32>
    %31 = arith.mulf %29, %30 : vector<65x32xf32>
    %32 = vector.broadcast %11 : vector<1x32xf32> to vector<65x32xf32>
    %33 = arith.addf %31, %32 : vector<65x32xf32>
    %34 = arith.truncf %33 : vector<65x32xf32> to vector<65x32xbf16>
    %c0_18 = arith.constant 0 : index
    %c0_19 = arith.constant 0 : index
    %c0_20 = arith.constant 0 : index
    %35 = vector.load %arg6[%c0_18, %c0_19, %c0_20] : memref<2x32x96xbf16, #tpu.memory_space<vmem>>, vector<1x32x96xbf16>
    %36 = vector.shape_cast %35 : vector<1x32x96xbf16> to vector<32x96xbf16>
    %cst_21 = arith.constant dense<0.000000e+00> : vector<65x96xf32>
    %37 = tpu.matmul %34, %36, %cst_21 {dimension_numbers = #tpu.dot_dimension_numbers<[1], [0], [0], [1], [0, 0, 1, 1], [], []>} : vector<65x32xbf16>, vector<32x96xbf16>, vector<65x96xf32> -> vector<65x96xf32>
    %38 = vector.extract_strided_slice %37 {offsets = [0, 0], sizes = [65, 32], strides = [1, 1]} : vector<65x96xf32> to vector<65x32xf32>
    %cst_22 = arith.constant 0.176776692 : f32
    %39 = vector.broadcast %cst_22 : f32 to vector<65x32xf32>
    %40 = arith.mulf %38, %39 : vector<65x32xf32>
    %41 = vector.extract_strided_slice %37 {offsets = [0, 32], sizes = [65, 32], strides = [1, 1]} : vector<65x96xf32> to vector<65x32xf32>
    %42 = vector.extract_strided_slice %37 {offsets = [0, 64], sizes = [65, 32], strides = [1, 1]} : vector<65x96xf32> to vector<65x32xf32>
    %43 = vector.extract_strided_slice %40 {offsets = [0, 0], sizes = [65, 8], strides = [1, 1]} : vector<65x32xf32> to vector<65x8xf32>
    %44 = arith.truncf %43 : vector<65x8xf32> to vector<65x8xbf16>
    %45 = vector.extract_strided_slice %41 {offsets = [0, 0], sizes = [65, 8], strides = [1, 1]} : vector<65x32xf32> to vector<65x8xf32>
    %46 = arith.truncf %45 : vector<65x8xf32> to vector<65x8xbf16>
    %47 = vector.extract_strided_slice %42 {offsets = [0, 0], sizes = [65, 8], strides = [1, 1]} : vector<65x32xf32> to vector<65x8xf32>
    %48 = arith.truncf %47 : vector<65x8xf32> to vector<65x8xbf16>
    %cst_23 = arith.constant dense<0.000000e+00> : vector<65x65xf32>
    %49 = tpu.matmul %44, %46, %cst_23 {dimension_numbers = #tpu.dot_dimension_numbers<[1], [1], [0], [0], [0, 0, 1, 0], [], []>} : vector<65x8xbf16>, vector<65x8xbf16>, vector<65x65xf32> -> vector<65x65xf32>
    %cst_24 = arith.constant dense<0xFF800000> : vector<65xf32>
    %50 = vector.multi_reduction <maximumf>, %49, %cst_24 [1] : vector<65x65xf32> to vector<65xf32>
    %51 = vector.shape_cast %50 : vector<65xf32> to vector<65x1xf32>
    %52 = vector.broadcast %51 : vector<65x1xf32> to vector<65x65xf32>
    %53 = arith.subf %49, %52 : vector<65x65xf32>
    %54 = math.exp %53 : vector<65x65xf32>
    %cst_25 = arith.constant dense<0.000000e+00> : vector<65xf32>
    %55 = vector.multi_reduction <add>, %54, %cst_25 [1] : vector<65x65xf32> to vector<65xf32>
    %56 = vector.shape_cast %55 : vector<65xf32> to vector<65x1xf32>
    %57 = vector.broadcast %56 : vector<65x1xf32> to vector<65x65xf32>
    %58 = arith.divf %54, %57 : vector<65x65xf32>
    %59 = arith.truncf %58 : vector<65x65xf32> to vector<65x65xbf16>
    %cst_26 = arith.constant dense<0.000000e+00> : vector<65x8xf32>
    %60 = tpu.matmul %59, %48, %cst_26 {dimension_numbers = #tpu.dot_dimension_numbers<[1], [0], [0], [1], [0, 0, 1, 1], [], []>} : vector<65x65xbf16>, vector<65x8xbf16>, vector<65x8xf32> -> vector<65x8xf32>
    %61 = vector.extract_strided_slice %40 {offsets = [0, 8], sizes = [65, 8], strides = [1, 1]} : vector<65x32xf32> to vector<65x8xf32>
    %62 = arith.truncf %61 : vector<65x8xf32> to vector<65x8xbf16>
    %63 = vector.extract_strided_slice %41 {offsets = [0, 8], sizes = [65, 8], strides = [1, 1]} : vector<65x32xf32> to vector<65x8xf32>
    %64 = arith.truncf %63 : vector<65x8xf32> to vector<65x8xbf16>
    %65 = vector.extract_strided_slice %42 {offsets = [0, 8], sizes = [65, 8], strides = [1, 1]} : vector<65x32xf32> to vector<65x8xf32>
    %66 = arith.truncf %65 : vector<65x8xf32> to vector<65x8xbf16>
    %cst_27 = arith.constant dense<0.000000e+00> : vector<65x65xf32>
    %67 = tpu.matmul %62, %64, %cst_27 {dimension_numbers = #tpu.dot_dimension_numbers<[1], [1], [0], [0], [0, 0, 1, 0], [], []>} : vector<65x8xbf16>, vector<65x8xbf16>, vector<65x65xf32> -> vector<65x65xf32>
    %cst_28 = arith.constant dense<0xFF800000> : vector<65xf32>
    %68 = vector.multi_reduction <maximumf>, %67, %cst_28 [1] : vector<65x65xf32> to vector<65xf32>
    %69 = vector.shape_cast %68 : vector<65xf32> to vector<65x1xf32>
    %70 = vector.broadcast %69 : vector<65x1xf32> to vector<65x65xf32>
    %71 = arith.subf %67, %70 : vector<65x65xf32>
    %72 = math.exp %71 : vector<65x65xf32>
    %cst_29 = arith.constant dense<0.000000e+00> : vector<65xf32>
    %73 = vector.multi_reduction <add>, %72, %cst_29 [1] : vector<65x65xf32> to vector<65xf32>
    %74 = vector.shape_cast %73 : vector<65xf32> to vector<65x1xf32>
    %75 = vector.broadcast %74 : vector<65x1xf32> to vector<65x65xf32>
    %76 = arith.divf %72, %75 : vector<65x65xf32>
    %77 = arith.truncf %76 : vector<65x65xf32> to vector<65x65xbf16>
    %cst_30 = arith.constant dense<0.000000e+00> : vector<65x8xf32>
    %78 = tpu.matmul %77, %66, %cst_30 {dimension_numbers = #tpu.dot_dimension_numbers<[1], [0], [0], [1], [0, 0, 1, 1], [], []>} : vector<65x65xbf16>, vector<65x8xbf16>, vector<65x8xf32> -> vector<65x8xf32>
    %79 = vector.extract_strided_slice %40 {offsets = [0, 16], sizes = [65, 8], strides = [1, 1]} : vector<65x32xf32> to vector<65x8xf32>
    %80 = arith.truncf %79 : vector<65x8xf32> to vector<65x8xbf16>
    %81 = vector.extract_strided_slice %41 {offsets = [0, 16], sizes = [65, 8], strides = [1, 1]} : vector<65x32xf32> to vector<65x8xf32>
    %82 = arith.truncf %81 : vector<65x8xf32> to vector<65x8xbf16>
    %83 = vector.extract_strided_slice %42 {offsets = [0, 16], sizes = [65, 8], strides = [1, 1]} : vector<65x32xf32> to vector<65x8xf32>
    %84 = arith.truncf %83 : vector<65x8xf32> to vector<65x8xbf16>
    %cst_31 = arith.constant dense<0.000000e+00> : vector<65x65xf32>
    %85 = tpu.matmul %80, %82, %cst_31 {dimension_numbers = #tpu.dot_dimension_numbers<[1], [1], [0], [0], [0, 0, 1, 0], [], []>} : vector<65x8xbf16>, vector<65x8xbf16>, vector<65x65xf32> -> vector<65x65xf32>
    %cst_32 = arith.constant dense<0xFF800000> : vector<65xf32>
    %86 = vector.multi_reduction <maximumf>, %85, %cst_32 [1] : vector<65x65xf32> to vector<65xf32>
    %87 = vector.shape_cast %86 : vector<65xf32> to vector<65x1xf32>
    %88 = vector.broadcast %87 : vector<65x1xf32> to vector<65x65xf32>
    %89 = arith.subf %85, %88 : vector<65x65xf32>
    %90 = math.exp %89 : vector<65x65xf32>
    %cst_33 = arith.constant dense<0.000000e+00> : vector<65xf32>
    %91 = vector.multi_reduction <add>, %90, %cst_33 [1] : vector<65x65xf32> to vector<65xf32>
    %92 = vector.shape_cast %91 : vector<65xf32> to vector<65x1xf32>
    %93 = vector.broadcast %92 : vector<65x1xf32> to vector<65x65xf32>
    %94 = arith.divf %90, %93 : vector<65x65xf32>
    %95 = arith.truncf %94 : vector<65x65xf32> to vector<65x65xbf16>
    %cst_34 = arith.constant dense<0.000000e+00> : vector<65x8xf32>
    %96 = tpu.matmul %95, %84, %cst_34 {dimension_numbers = #tpu.dot_dimension_numbers<[1], [0], [0], [1], [0, 0, 1, 1], [], []>} : vector<65x65xbf16>, vector<65x8xbf16>, vector<65x8xf32> -> vector<65x8xf32>
    %97 = vector.extract_strided_slice %40 {offsets = [0, 24], sizes = [65, 8], strides = [1, 1]} : vector<65x32xf32> to vector<65x8xf32>
    %98 = arith.truncf %97 : vector<65x8xf32> to vector<65x8xbf16>
    %99 = vector.extract_strided_slice %41 {offsets = [0, 24], sizes = [65, 8], strides = [1, 1]} : vector<65x32xf32> to vector<65x8xf32>
    %100 = arith.truncf %99 : vector<65x8xf32> to vector<65x8xbf16>
    %101 = vector.extract_strided_slice %42 {offsets = [0, 24], sizes = [65, 8], strides = [1, 1]} : vector<65x32xf32> to vector<65x8xf32>
    %102 = arith.truncf %101 : vector<65x8xf32> to vector<65x8xbf16>
    %cst_35 = arith.constant dense<0.000000e+00> : vector<65x65xf32>
    %103 = tpu.matmul %98, %100, %cst_35 {dimension_numbers = #tpu.dot_dimension_numbers<[1], [1], [0], [0], [0, 0, 1, 0], [], []>} : vector<65x8xbf16>, vector<65x8xbf16>, vector<65x65xf32> -> vector<65x65xf32>
    %cst_36 = arith.constant dense<0xFF800000> : vector<65xf32>
    %104 = vector.multi_reduction <maximumf>, %103, %cst_36 [1] : vector<65x65xf32> to vector<65xf32>
    %105 = vector.shape_cast %104 : vector<65xf32> to vector<65x1xf32>
    %106 = vector.broadcast %105 : vector<65x1xf32> to vector<65x65xf32>
    %107 = arith.subf %103, %106 : vector<65x65xf32>
    %108 = math.exp %107 : vector<65x65xf32>
    %cst_37 = arith.constant dense<0.000000e+00> : vector<65xf32>
    %109 = vector.multi_reduction <add>, %108, %cst_37 [1] : vector<65x65xf32> to vector<65xf32>
    %110 = vector.shape_cast %109 : vector<65xf32> to vector<65x1xf32>
    %111 = vector.broadcast %110 : vector<65x1xf32> to vector<65x65xf32>
    %112 = arith.divf %108, %111 : vector<65x65xf32>
    %113 = arith.truncf %112 : vector<65x65xf32> to vector<65x65xbf16>
    %cst_38 = arith.constant dense<0.000000e+00> : vector<65x8xf32>
    %114 = tpu.matmul %113, %102, %cst_38 {dimension_numbers = #tpu.dot_dimension_numbers<[1], [0], [0], [1], [0, 0, 1, 1], [], []>} : vector<65x65xbf16>, vector<65x8xbf16>, vector<65x8xf32> -> vector<65x8xf32>
    %115 = tpu.concatenate %60, %78, %96, %114 in 1 : vector<65x8xf32>, vector<65x8xf32>, vector<65x8xf32>, vector<65x8xf32> -> vector<65x32xf32>
    %116 = arith.truncf %115 : vector<65x32xf32> to vector<65x32xbf16>
    %c0_39 = arith.constant 0 : index
    %c0_40 = arith.constant 0 : index
    %c0_41 = arith.constant 0 : index
    %117 = vector.load %arg7[%c0_39, %c0_40, %c0_41] : memref<2x32x32xbf16, #tpu.memory_space<vmem>>, vector<1x32x32xbf16>
    %118 = vector.shape_cast %117 : vector<1x32x32xbf16> to vector<32x32xbf16>
    %cst_42 = arith.constant dense<0.000000e+00> : vector<65x32xf32>
    %119 = tpu.matmul %116, %118, %cst_42 {dimension_numbers = #tpu.dot_dimension_numbers<[1], [0], [0], [1], [0, 0, 1, 1], [], []>} : vector<65x32xbf16>, vector<32x32xbf16>, vector<65x32xf32> -> vector<65x32xf32>
    %120 = arith.addf %7, %119 : vector<65x32xf32>
    %c0_43 = arith.constant 0 : index
    %c0_44 = arith.constant 0 : index
    %c0_45 = arith.constant 0 : index
    %121 = vector.load %arg8[%c0_43, %c0_44, %c0_45] : memref<2x1x32xf32, #tpu.memory_space<vmem>>, vector<1x1x32xf32>
    %122 = vector.shape_cast %121 : vector<1x1x32xf32> to vector<1x32xf32>
    %123 = vector.broadcast %122 : vector<1x32xf32> to vector<65x32xf32>
    %124 = arith.addf %120, %123 : vector<65x32xf32>
    %c0_46 = arith.constant 0 : index
    %c0_47 = arith.constant 0 : index
    %c0_48 = arith.constant 0 : index
    %125 = vector.load %arg9[%c0_46, %c0_47, %c0_48] : memref<2x1x32xf32, #tpu.memory_space<vmem>>, vector<1x1x32xf32>
    %126 = vector.shape_cast %125 : vector<1x1x32xf32> to vector<1x32xf32>
    %c0_49 = arith.constant 0 : index
    %c0_50 = arith.constant 0 : index
    %c0_51 = arith.constant 0 : index
    %127 = vector.load %arg10[%c0_49, %c0_50, %c0_51] : memref<2x1x32xf32, #tpu.memory_space<vmem>>, vector<1x1x32xf32>
    %128 = vector.shape_cast %127 : vector<1x1x32xf32> to vector<1x32xf32>
    %cst_52 = arith.constant dense<0.000000e+00> : vector<65xf32>
    %129 = vector.multi_reduction <add>, %124, %cst_52 [1] : vector<65x32xf32> to vector<65xf32>
    %130 = vector.shape_cast %129 : vector<65xf32> to vector<65x1xf32>
    %cst_53 = arith.constant 3.200000e+01 : f32
    %131 = vector.broadcast %cst_53 : f32 to vector<65x1xf32>
    %132 = arith.divf %130, %131 : vector<65x1xf32>
    %133 = vector.broadcast %132 : vector<65x1xf32> to vector<65x32xf32>
    %134 = arith.subf %124, %133 : vector<65x32xf32>
    %135 = arith.mulf %134, %134 : vector<65x32xf32>
    %cst_54 = arith.constant dense<0.000000e+00> : vector<65xf32>
    %136 = vector.multi_reduction <add>, %135, %cst_54 [1] : vector<65x32xf32> to vector<65xf32>
    %137 = vector.shape_cast %136 : vector<65xf32> to vector<65x1xf32>
    %cst_55 = arith.constant 3.200000e+01 : f32
    %138 = vector.broadcast %cst_55 : f32 to vector<65x1xf32>
    %139 = arith.divf %137, %138 : vector<65x1xf32>
    %140 = vector.broadcast %132 : vector<65x1xf32> to vector<65x32xf32>
    %141 = arith.subf %124, %140 : vector<65x32xf32>
    %cst_56 = arith.constant 9.99999974E-6 : f32
    %142 = vector.broadcast %cst_56 : f32 to vector<65x1xf32>
    %143 = arith.addf %139, %142 : vector<65x1xf32>
    %144 = math.rsqrt %143 : vector<65x1xf32>
    %145 = vector.broadcast %144 : vector<65x1xf32> to vector<65x32xf32>
    %146 = arith.mulf %141, %145 : vector<65x32xf32>
    %147 = vector.broadcast %126 : vector<1x32xf32> to vector<65x32xf32>
    %148 = arith.mulf %146, %147 : vector<65x32xf32>
    %149 = vector.broadcast %128 : vector<1x32xf32> to vector<65x32xf32>
    %150 = arith.addf %148, %149 : vector<65x32xf32>
    %151 = arith.truncf %150 : vector<65x32xf32> to vector<65x32xbf16>
    %c0_57 = arith.constant 0 : index
    %c0_58 = arith.constant 0 : index
    %c0_59 = arith.constant 0 : index
    %152 = vector.load %arg11[%c0_57, %c0_58, %c0_59] : memref<2x32x64xbf16, #tpu.memory_space<vmem>>, vector<1x32x64xbf16>
    %153 = vector.shape_cast %152 : vector<1x32x64xbf16> to vector<32x64xbf16>
    %cst_60 = arith.constant dense<0.000000e+00> : vector<65x64xf32>
    %154 = tpu.matmul %151, %153, %cst_60 {dimension_numbers = #tpu.dot_dimension_numbers<[1], [0], [0], [1], [0, 0, 1, 1], [], []>} : vector<65x32xbf16>, vector<32x64xbf16>, vector<65x64xf32> -> vector<65x64xf32>
    %c0_61 = arith.constant 0 : index
    %c0_62 = arith.constant 0 : index
    %c0_63 = arith.constant 0 : index
    %155 = vector.load %arg12[%c0_61, %c0_62, %c0_63] : memref<2x1x64xf32, #tpu.memory_space<vmem>>, vector<1x1x64xf32>
    %156 = vector.shape_cast %155 : vector<1x1x64xf32> to vector<1x64xf32>
    %157 = vector.broadcast %156 : vector<1x64xf32> to vector<65x64xf32>
    %158 = arith.addf %154, %157 : vector<65x64xf32>
    %cst_64 = arith.constant 5.000000e-01 : f32
    %159 = vector.broadcast %cst_64 : f32 to vector<65x64xf32>
    %160 = arith.mulf %159, %158 : vector<65x64xf32>
    %cst_65 = arith.constant 0.707106769 : f32
    %161 = vector.broadcast %cst_65 : f32 to vector<65x64xf32>
    %162 = arith.mulf %158, %161 : vector<65x64xf32>
    %163 = math.absf %162 : vector<65x64xf32>
    %cst_66 = arith.constant 0.327591091 : f32
    %164 = vector.broadcast %cst_66 : f32 to vector<65x64xf32>
    %165 = arith.mulf %164, %163 : vector<65x64xf32>
    %cst_67 = arith.constant 1.000000e+00 : f32
    %166 = vector.broadcast %cst_67 : f32 to vector<65x64xf32>
    %167 = arith.addf %166, %165 : vector<65x64xf32>
    %cst_68 = arith.constant 1.000000e+00 : f32
    %168 = vector.broadcast %cst_68 : f32 to vector<65x64xf32>
    %169 = arith.divf %168, %167 : vector<65x64xf32>
    %cst_69 = arith.constant 1.06140542 : f32
    %170 = vector.broadcast %cst_69 : f32 to vector<65x64xf32>
    %171 = arith.mulf %169, %170 : vector<65x64xf32>
    %cst_70 = arith.constant -1.45315206 : f32
    %172 = vector.broadcast %cst_70 : f32 to vector<65x64xf32>
    %173 = arith.addf %172, %171 : vector<65x64xf32>
    %174 = arith.mulf %169, %173 : vector<65x64xf32>
    %cst_71 = arith.constant 1.42141378 : f32
    %175 = vector.broadcast %cst_71 : f32 to vector<65x64xf32>
    %176 = arith.addf %175, %174 : vector<65x64xf32>
    %177 = arith.mulf %169, %176 : vector<65x64xf32>
    %cst_72 = arith.constant -0.284496725 : f32
    %178 = vector.broadcast %cst_72 : f32 to vector<65x64xf32>
    %179 = arith.addf %178, %177 : vector<65x64xf32>
    %180 = arith.mulf %169, %179 : vector<65x64xf32>
    %cst_73 = arith.constant 0.254829586 : f32
    %181 = vector.broadcast %cst_73 : f32 to vector<65x64xf32>
    %182 = arith.addf %181, %180 : vector<65x64xf32>
    %183 = arith.mulf %169, %182 : vector<65x64xf32>
    %cst_74 = arith.constant 0.000000e+00 : f32
    %184 = vector.broadcast %cst_74 : f32 to vector<65x64xf32>
    %185 = arith.subf %184, %163 : vector<65x64xf32>
    %186 = arith.mulf %185, %163 : vector<65x64xf32>
    %187 = math.exp %186 : vector<65x64xf32>
    %188 = arith.mulf %183, %187 : vector<65x64xf32>
    %cst_75 = arith.constant 1.000000e+00 : f32
    %189 = vector.broadcast %cst_75 : f32 to vector<65x64xf32>
    %190 = arith.subf %189, %188 : vector<65x64xf32>
    %cst_76 = arith.constant 0.000000e+00 : f32
    %191 = vector.broadcast %cst_76 : f32 to vector<65x64xf32>
    %192 = arith.cmpf oge, %162, %191 : vector<65x64xf32>
    %cst_77 = arith.constant 0.000000e+00 : f32
    %193 = vector.broadcast %cst_77 : f32 to vector<65x64xf32>
    %194 = arith.subf %193, %190 : vector<65x64xf32>
    %195 = arith.select %192, %190, %194 : vector<65x64xi1>, vector<65x64xf32>
    %cst_78 = arith.constant 1.000000e+00 : f32
    %196 = vector.broadcast %cst_78 : f32 to vector<65x64xf32>
    %197 = arith.addf %196, %195 : vector<65x64xf32>
    %198 = arith.mulf %160, %197 : vector<65x64xf32>
    %199 = arith.truncf %198 : vector<65x64xf32> to vector<65x64xbf16>
    %c0_79 = arith.constant 0 : index
    %c0_80 = arith.constant 0 : index
    %c0_81 = arith.constant 0 : index
    %200 = vector.load %arg13[%c0_79, %c0_80, %c0_81] : memref<2x64x32xbf16, #tpu.memory_space<vmem>>, vector<1x64x32xbf16>
    %201 = vector.shape_cast %200 : vector<1x64x32xbf16> to vector<64x32xbf16>
    %cst_82 = arith.constant dense<0.000000e+00> : vector<65x32xf32>
    %202 = tpu.matmul %199, %201, %cst_82 {dimension_numbers = #tpu.dot_dimension_numbers<[1], [0], [0], [1], [0, 0, 1, 1], [], []>} : vector<65x64xbf16>, vector<64x32xbf16>, vector<65x32xf32> -> vector<65x32xf32>
    %203 = arith.addf %124, %202 : vector<65x32xf32>
    %c0_83 = arith.constant 0 : index
    %c0_84 = arith.constant 0 : index
    %c0_85 = arith.constant 0 : index
    %204 = vector.load %arg14[%c0_83, %c0_84, %c0_85] : memref<2x1x32xf32, #tpu.memory_space<vmem>>, vector<1x1x32xf32>
    %205 = vector.shape_cast %204 : vector<1x1x32xf32> to vector<1x32xf32>
    %206 = vector.broadcast %205 : vector<1x32xf32> to vector<65x32xf32>
    %207 = arith.addf %203, %206 : vector<65x32xf32>
    %c1 = arith.constant 1 : index
    %c0_86 = arith.constant 0 : index
    %c0_87 = arith.constant 0 : index
    %208 = vector.load %arg4[%c1, %c0_86, %c0_87] : memref<2x1x32xf32, #tpu.memory_space<vmem>>, vector<1x1x32xf32>
    %209 = vector.shape_cast %208 : vector<1x1x32xf32> to vector<1x32xf32>
    %c1_88 = arith.constant 1 : index
    %c0_89 = arith.constant 0 : index
    %c0_90 = arith.constant 0 : index
    %210 = vector.load %arg5[%c1_88, %c0_89, %c0_90] : memref<2x1x32xf32, #tpu.memory_space<vmem>>, vector<1x1x32xf32>
    %211 = vector.shape_cast %210 : vector<1x1x32xf32> to vector<1x32xf32>
    %cst_91 = arith.constant dense<0.000000e+00> : vector<65xf32>
    %212 = vector.multi_reduction <add>, %207, %cst_91 [1] : vector<65x32xf32> to vector<65xf32>
    %213 = vector.shape_cast %212 : vector<65xf32> to vector<65x1xf32>
    %cst_92 = arith.constant 3.200000e+01 : f32
    %214 = vector.broadcast %cst_92 : f32 to vector<65x1xf32>
    %215 = arith.divf %213, %214 : vector<65x1xf32>
    %216 = vector.broadcast %215 : vector<65x1xf32> to vector<65x32xf32>
    %217 = arith.subf %207, %216 : vector<65x32xf32>
    %218 = arith.mulf %217, %217 : vector<65x32xf32>
    %cst_93 = arith.constant dense<0.000000e+00> : vector<65xf32>
    %219 = vector.multi_reduction <add>, %218, %cst_93 [1] : vector<65x32xf32> to vector<65xf32>
    %220 = vector.shape_cast %219 : vector<65xf32> to vector<65x1xf32>
    %cst_94 = arith.constant 3.200000e+01 : f32
    %221 = vector.broadcast %cst_94 : f32 to vector<65x1xf32>
    %222 = arith.divf %220, %221 : vector<65x1xf32>
    %223 = vector.broadcast %215 : vector<65x1xf32> to vector<65x32xf32>
    %224 = arith.subf %207, %223 : vector<65x32xf32>
    %cst_95 = arith.constant 9.99999974E-6 : f32
    %225 = vector.broadcast %cst_95 : f32 to vector<65x1xf32>
    %226 = arith.addf %222, %225 : vector<65x1xf32>
    %227 = math.rsqrt %226 : vector<65x1xf32>
    %228 = vector.broadcast %227 : vector<65x1xf32> to vector<65x32xf32>
    %229 = arith.mulf %224, %228 : vector<65x32xf32>
    %230 = vector.broadcast %209 : vector<1x32xf32> to vector<65x32xf32>
    %231 = arith.mulf %229, %230 : vector<65x32xf32>
    %232 = vector.broadcast %211 : vector<1x32xf32> to vector<65x32xf32>
    %233 = arith.addf %231, %232 : vector<65x32xf32>
    %234 = arith.truncf %233 : vector<65x32xf32> to vector<65x32xbf16>
    %c1_96 = arith.constant 1 : index
    %c0_97 = arith.constant 0 : index
    %c0_98 = arith.constant 0 : index
    %235 = vector.load %arg6[%c1_96, %c0_97, %c0_98] : memref<2x32x96xbf16, #tpu.memory_space<vmem>>, vector<1x32x96xbf16>
    %236 = vector.shape_cast %235 : vector<1x32x96xbf16> to vector<32x96xbf16>
    %cst_99 = arith.constant dense<0.000000e+00> : vector<65x96xf32>
    %237 = tpu.matmul %234, %236, %cst_99 {dimension_numbers = #tpu.dot_dimension_numbers<[1], [0], [0], [1], [0, 0, 1, 1], [], []>} : vector<65x32xbf16>, vector<32x96xbf16>, vector<65x96xf32> -> vector<65x96xf32>
    %238 = vector.extract_strided_slice %237 {offsets = [0, 0], sizes = [65, 32], strides = [1, 1]} : vector<65x96xf32> to vector<65x32xf32>
    %cst_100 = arith.constant 0.176776692 : f32
    %239 = vector.broadcast %cst_100 : f32 to vector<65x32xf32>
    %240 = arith.mulf %238, %239 : vector<65x32xf32>
    %241 = vector.extract_strided_slice %237 {offsets = [0, 32], sizes = [65, 32], strides = [1, 1]} : vector<65x96xf32> to vector<65x32xf32>
    %242 = vector.extract_strided_slice %237 {offsets = [0, 64], sizes = [65, 32], strides = [1, 1]} : vector<65x96xf32> to vector<65x32xf32>
    %243 = vector.extract_strided_slice %240 {offsets = [0, 0], sizes = [65, 8], strides = [1, 1]} : vector<65x32xf32> to vector<65x8xf32>
    %244 = arith.truncf %243 : vector<65x8xf32> to vector<65x8xbf16>
    %245 = vector.extract_strided_slice %241 {offsets = [0, 0], sizes = [65, 8], strides = [1, 1]} : vector<65x32xf32> to vector<65x8xf32>
    %246 = arith.truncf %245 : vector<65x8xf32> to vector<65x8xbf16>
    %247 = vector.extract_strided_slice %242 {offsets = [0, 0], sizes = [65, 8], strides = [1, 1]} : vector<65x32xf32> to vector<65x8xf32>
    %248 = arith.truncf %247 : vector<65x8xf32> to vector<65x8xbf16>
    %cst_101 = arith.constant dense<0.000000e+00> : vector<65x65xf32>
    %249 = tpu.matmul %244, %246, %cst_101 {dimension_numbers = #tpu.dot_dimension_numbers<[1], [1], [0], [0], [0, 0, 1, 0], [], []>} : vector<65x8xbf16>, vector<65x8xbf16>, vector<65x65xf32> -> vector<65x65xf32>
    %cst_102 = arith.constant dense<0xFF800000> : vector<65xf32>
    %250 = vector.multi_reduction <maximumf>, %249, %cst_102 [1] : vector<65x65xf32> to vector<65xf32>
    %251 = vector.shape_cast %250 : vector<65xf32> to vector<65x1xf32>
    %252 = vector.broadcast %251 : vector<65x1xf32> to vector<65x65xf32>
    %253 = arith.subf %249, %252 : vector<65x65xf32>
    %254 = math.exp %253 : vector<65x65xf32>
    %cst_103 = arith.constant dense<0.000000e+00> : vector<65xf32>
    %255 = vector.multi_reduction <add>, %254, %cst_103 [1] : vector<65x65xf32> to vector<65xf32>
    %256 = vector.shape_cast %255 : vector<65xf32> to vector<65x1xf32>
    %257 = vector.broadcast %256 : vector<65x1xf32> to vector<65x65xf32>
    %258 = arith.divf %254, %257 : vector<65x65xf32>
    %259 = arith.truncf %258 : vector<65x65xf32> to vector<65x65xbf16>
    %cst_104 = arith.constant dense<0.000000e+00> : vector<65x8xf32>
    %260 = tpu.matmul %259, %248, %cst_104 {dimension_numbers = #tpu.dot_dimension_numbers<[1], [0], [0], [1], [0, 0, 1, 1], [], []>} : vector<65x65xbf16>, vector<65x8xbf16>, vector<65x8xf32> -> vector<65x8xf32>
    %261 = vector.extract_strided_slice %240 {offsets = [0, 8], sizes = [65, 8], strides = [1, 1]} : vector<65x32xf32> to vector<65x8xf32>
    %262 = arith.truncf %261 : vector<65x8xf32> to vector<65x8xbf16>
    %263 = vector.extract_strided_slice %241 {offsets = [0, 8], sizes = [65, 8], strides = [1, 1]} : vector<65x32xf32> to vector<65x8xf32>
    %264 = arith.truncf %263 : vector<65x8xf32> to vector<65x8xbf16>
    %265 = vector.extract_strided_slice %242 {offsets = [0, 8], sizes = [65, 8], strides = [1, 1]} : vector<65x32xf32> to vector<65x8xf32>
    %266 = arith.truncf %265 : vector<65x8xf32> to vector<65x8xbf16>
    %cst_105 = arith.constant dense<0.000000e+00> : vector<65x65xf32>
    %267 = tpu.matmul %262, %264, %cst_105 {dimension_numbers = #tpu.dot_dimension_numbers<[1], [1], [0], [0], [0, 0, 1, 0], [], []>} : vector<65x8xbf16>, vector<65x8xbf16>, vector<65x65xf32> -> vector<65x65xf32>
    %cst_106 = arith.constant dense<0xFF800000> : vector<65xf32>
    %268 = vector.multi_reduction <maximumf>, %267, %cst_106 [1] : vector<65x65xf32> to vector<65xf32>
    %269 = vector.shape_cast %268 : vector<65xf32> to vector<65x1xf32>
    %270 = vector.broadcast %269 : vector<65x1xf32> to vector<65x65xf32>
    %271 = arith.subf %267, %270 : vector<65x65xf32>
    %272 = math.exp %271 : vector<65x65xf32>
    %cst_107 = arith.constant dense<0.000000e+00> : vector<65xf32>
    %273 = vector.multi_reduction <add>, %272, %cst_107 [1] : vector<65x65xf32> to vector<65xf32>
    %274 = vector.shape_cast %273 : vector<65xf32> to vector<65x1xf32>
    %275 = vector.broadcast %274 : vector<65x1xf32> to vector<65x65xf32>
    %276 = arith.divf %272, %275 : vector<65x65xf32>
    %277 = arith.truncf %276 : vector<65x65xf32> to vector<65x65xbf16>
    %cst_108 = arith.constant dense<0.000000e+00> : vector<65x8xf32>
    %278 = tpu.matmul %277, %266, %cst_108 {dimension_numbers = #tpu.dot_dimension_numbers<[1], [0], [0], [1], [0, 0, 1, 1], [], []>} : vector<65x65xbf16>, vector<65x8xbf16>, vector<65x8xf32> -> vector<65x8xf32>
    %279 = vector.extract_strided_slice %240 {offsets = [0, 16], sizes = [65, 8], strides = [1, 1]} : vector<65x32xf32> to vector<65x8xf32>
    %280 = arith.truncf %279 : vector<65x8xf32> to vector<65x8xbf16>
    %281 = vector.extract_strided_slice %241 {offsets = [0, 16], sizes = [65, 8], strides = [1, 1]} : vector<65x32xf32> to vector<65x8xf32>
    %282 = arith.truncf %281 : vector<65x8xf32> to vector<65x8xbf16>
    %283 = vector.extract_strided_slice %242 {offsets = [0, 16], sizes = [65, 8], strides = [1, 1]} : vector<65x32xf32> to vector<65x8xf32>
    %284 = arith.truncf %283 : vector<65x8xf32> to vector<65x8xbf16>
    %cst_109 = arith.constant dense<0.000000e+00> : vector<65x65xf32>
    %285 = tpu.matmul %280, %282, %cst_109 {dimension_numbers = #tpu.dot_dimension_numbers<[1], [1], [0], [0], [0, 0, 1, 0], [], []>} : vector<65x8xbf16>, vector<65x8xbf16>, vector<65x65xf32> -> vector<65x65xf32>
    %cst_110 = arith.constant dense<0xFF800000> : vector<65xf32>
    %286 = vector.multi_reduction <maximumf>, %285, %cst_110 [1] : vector<65x65xf32> to vector<65xf32>
    %287 = vector.shape_cast %286 : vector<65xf32> to vector<65x1xf32>
    %288 = vector.broadcast %287 : vector<65x1xf32> to vector<65x65xf32>
    %289 = arith.subf %285, %288 : vector<65x65xf32>
    %290 = math.exp %289 : vector<65x65xf32>
    %cst_111 = arith.constant dense<0.000000e+00> : vector<65xf32>
    %291 = vector.multi_reduction <add>, %290, %cst_111 [1] : vector<65x65xf32> to vector<65xf32>
    %292 = vector.shape_cast %291 : vector<65xf32> to vector<65x1xf32>
    %293 = vector.broadcast %292 : vector<65x1xf32> to vector<65x65xf32>
    %294 = arith.divf %290, %293 : vector<65x65xf32>
    %295 = arith.truncf %294 : vector<65x65xf32> to vector<65x65xbf16>
    %cst_112 = arith.constant dense<0.000000e+00> : vector<65x8xf32>
    %296 = tpu.matmul %295, %284, %cst_112 {dimension_numbers = #tpu.dot_dimension_numbers<[1], [0], [0], [1], [0, 0, 1, 1], [], []>} : vector<65x65xbf16>, vector<65x8xbf16>, vector<65x8xf32> -> vector<65x8xf32>
    %297 = vector.extract_strided_slice %240 {offsets = [0, 24], sizes = [65, 8], strides = [1, 1]} : vector<65x32xf32> to vector<65x8xf32>
    %298 = arith.truncf %297 : vector<65x8xf32> to vector<65x8xbf16>
    %299 = vector.extract_strided_slice %241 {offsets = [0, 24], sizes = [65, 8], strides = [1, 1]} : vector<65x32xf32> to vector<65x8xf32>
    %300 = arith.truncf %299 : vector<65x8xf32> to vector<65x8xbf16>
    %301 = vector.extract_strided_slice %242 {offsets = [0, 24], sizes = [65, 8], strides = [1, 1]} : vector<65x32xf32> to vector<65x8xf32>
    %302 = arith.truncf %301 : vector<65x8xf32> to vector<65x8xbf16>
    %cst_113 = arith.constant dense<0.000000e+00> : vector<65x65xf32>
    %303 = tpu.matmul %298, %300, %cst_113 {dimension_numbers = #tpu.dot_dimension_numbers<[1], [1], [0], [0], [0, 0, 1, 0], [], []>} : vector<65x8xbf16>, vector<65x8xbf16>, vector<65x65xf32> -> vector<65x65xf32>
    %cst_114 = arith.constant dense<0xFF800000> : vector<65xf32>
    %304 = vector.multi_reduction <maximumf>, %303, %cst_114 [1] : vector<65x65xf32> to vector<65xf32>
    %305 = vector.shape_cast %304 : vector<65xf32> to vector<65x1xf32>
    %306 = vector.broadcast %305 : vector<65x1xf32> to vector<65x65xf32>
    %307 = arith.subf %303, %306 : vector<65x65xf32>
    %308 = math.exp %307 : vector<65x65xf32>
    %cst_115 = arith.constant dense<0.000000e+00> : vector<65xf32>
    %309 = vector.multi_reduction <add>, %308, %cst_115 [1] : vector<65x65xf32> to vector<65xf32>
    %310 = vector.shape_cast %309 : vector<65xf32> to vector<65x1xf32>
    %311 = vector.broadcast %310 : vector<65x1xf32> to vector<65x65xf32>
    %312 = arith.divf %308, %311 : vector<65x65xf32>
    %313 = arith.truncf %312 : vector<65x65xf32> to vector<65x65xbf16>
    %cst_116 = arith.constant dense<0.000000e+00> : vector<65x8xf32>
    %314 = tpu.matmul %313, %302, %cst_116 {dimension_numbers = #tpu.dot_dimension_numbers<[1], [0], [0], [1], [0, 0, 1, 1], [], []>} : vector<65x65xbf16>, vector<65x8xbf16>, vector<65x8xf32> -> vector<65x8xf32>
    %315 = tpu.concatenate %260, %278, %296, %314 in 1 : vector<65x8xf32>, vector<65x8xf32>, vector<65x8xf32>, vector<65x8xf32> -> vector<65x32xf32>
    %316 = arith.truncf %315 : vector<65x32xf32> to vector<65x32xbf16>
    %c1_117 = arith.constant 1 : index
    %c0_118 = arith.constant 0 : index
    %c0_119 = arith.constant 0 : index
    %317 = vector.load %arg7[%c1_117, %c0_118, %c0_119] : memref<2x32x32xbf16, #tpu.memory_space<vmem>>, vector<1x32x32xbf16>
    %318 = vector.shape_cast %317 : vector<1x32x32xbf16> to vector<32x32xbf16>
    %cst_120 = arith.constant dense<0.000000e+00> : vector<65x32xf32>
    %319 = tpu.matmul %316, %318, %cst_120 {dimension_numbers = #tpu.dot_dimension_numbers<[1], [0], [0], [1], [0, 0, 1, 1], [], []>} : vector<65x32xbf16>, vector<32x32xbf16>, vector<65x32xf32> -> vector<65x32xf32>
    %320 = arith.addf %207, %319 : vector<65x32xf32>
    %c1_121 = arith.constant 1 : index
    %c0_122 = arith.constant 0 : index
    %c0_123 = arith.constant 0 : index
    %321 = vector.load %arg8[%c1_121, %c0_122, %c0_123] : memref<2x1x32xf32, #tpu.memory_space<vmem>>, vector<1x1x32xf32>
    %322 = vector.shape_cast %321 : vector<1x1x32xf32> to vector<1x32xf32>
    %323 = vector.broadcast %322 : vector<1x32xf32> to vector<65x32xf32>
    %324 = arith.addf %320, %323 : vector<65x32xf32>
    %c1_124 = arith.constant 1 : index
    %c0_125 = arith.constant 0 : index
    %c0_126 = arith.constant 0 : index
    %325 = vector.load %arg9[%c1_124, %c0_125, %c0_126] : memref<2x1x32xf32, #tpu.memory_space<vmem>>, vector<1x1x32xf32>
    %326 = vector.shape_cast %325 : vector<1x1x32xf32> to vector<1x32xf32>
    %c1_127 = arith.constant 1 : index
    %c0_128 = arith.constant 0 : index
    %c0_129 = arith.constant 0 : index
    %327 = vector.load %arg10[%c1_127, %c0_128, %c0_129] : memref<2x1x32xf32, #tpu.memory_space<vmem>>, vector<1x1x32xf32>
    %328 = vector.shape_cast %327 : vector<1x1x32xf32> to vector<1x32xf32>
    %cst_130 = arith.constant dense<0.000000e+00> : vector<65xf32>
    %329 = vector.multi_reduction <add>, %324, %cst_130 [1] : vector<65x32xf32> to vector<65xf32>
    %330 = vector.shape_cast %329 : vector<65xf32> to vector<65x1xf32>
    %cst_131 = arith.constant 3.200000e+01 : f32
    %331 = vector.broadcast %cst_131 : f32 to vector<65x1xf32>
    %332 = arith.divf %330, %331 : vector<65x1xf32>
    %333 = vector.broadcast %332 : vector<65x1xf32> to vector<65x32xf32>
    %334 = arith.subf %324, %333 : vector<65x32xf32>
    %335 = arith.mulf %334, %334 : vector<65x32xf32>
    %cst_132 = arith.constant dense<0.000000e+00> : vector<65xf32>
    %336 = vector.multi_reduction <add>, %335, %cst_132 [1] : vector<65x32xf32> to vector<65xf32>
    %337 = vector.shape_cast %336 : vector<65xf32> to vector<65x1xf32>
    %cst_133 = arith.constant 3.200000e+01 : f32
    %338 = vector.broadcast %cst_133 : f32 to vector<65x1xf32>
    %339 = arith.divf %337, %338 : vector<65x1xf32>
    %340 = vector.broadcast %332 : vector<65x1xf32> to vector<65x32xf32>
    %341 = arith.subf %324, %340 : vector<65x32xf32>
    %cst_134 = arith.constant 9.99999974E-6 : f32
    %342 = vector.broadcast %cst_134 : f32 to vector<65x1xf32>
    %343 = arith.addf %339, %342 : vector<65x1xf32>
    %344 = math.rsqrt %343 : vector<65x1xf32>
    %345 = vector.broadcast %344 : vector<65x1xf32> to vector<65x32xf32>
    %346 = arith.mulf %341, %345 : vector<65x32xf32>
    %347 = vector.broadcast %326 : vector<1x32xf32> to vector<65x32xf32>
    %348 = arith.mulf %346, %347 : vector<65x32xf32>
    %349 = vector.broadcast %328 : vector<1x32xf32> to vector<65x32xf32>
    %350 = arith.addf %348, %349 : vector<65x32xf32>
    %351 = arith.truncf %350 : vector<65x32xf32> to vector<65x32xbf16>
    %c1_135 = arith.constant 1 : index
    %c0_136 = arith.constant 0 : index
    %c0_137 = arith.constant 0 : index
    %352 = vector.load %arg11[%c1_135, %c0_136, %c0_137] : memref<2x32x64xbf16, #tpu.memory_space<vmem>>, vector<1x32x64xbf16>
    %353 = vector.shape_cast %352 : vector<1x32x64xbf16> to vector<32x64xbf16>
    %cst_138 = arith.constant dense<0.000000e+00> : vector<65x64xf32>
    %354 = tpu.matmul %351, %353, %cst_138 {dimension_numbers = #tpu.dot_dimension_numbers<[1], [0], [0], [1], [0, 0, 1, 1], [], []>} : vector<65x32xbf16>, vector<32x64xbf16>, vector<65x64xf32> -> vector<65x64xf32>
    %c1_139 = arith.constant 1 : index
    %c0_140 = arith.constant 0 : index
    %c0_141 = arith.constant 0 : index
    %355 = vector.load %arg12[%c1_139, %c0_140, %c0_141] : memref<2x1x64xf32, #tpu.memory_space<vmem>>, vector<1x1x64xf32>
    %356 = vector.shape_cast %355 : vector<1x1x64xf32> to vector<1x64xf32>
    %357 = vector.broadcast %356 : vector<1x64xf32> to vector<65x64xf32>
    %358 = arith.addf %354, %357 : vector<65x64xf32>
    %cst_142 = arith.constant 5.000000e-01 : f32
    %359 = vector.broadcast %cst_142 : f32 to vector<65x64xf32>
    %360 = arith.mulf %359, %358 : vector<65x64xf32>
    %cst_143 = arith.constant 0.707106769 : f32
    %361 = vector.broadcast %cst_143 : f32 to vector<65x64xf32>
    %362 = arith.mulf %358, %361 : vector<65x64xf32>
    %363 = math.absf %362 : vector<65x64xf32>
    %cst_144 = arith.constant 0.327591091 : f32
    %364 = vector.broadcast %cst_144 : f32 to vector<65x64xf32>
    %365 = arith.mulf %364, %363 : vector<65x64xf32>
    %cst_145 = arith.constant 1.000000e+00 : f32
    %366 = vector.broadcast %cst_145 : f32 to vector<65x64xf32>
    %367 = arith.addf %366, %365 : vector<65x64xf32>
    %cst_146 = arith.constant 1.000000e+00 : f32
    %368 = vector.broadcast %cst_146 : f32 to vector<65x64xf32>
    %369 = arith.divf %368, %367 : vector<65x64xf32>
    %cst_147 = arith.constant 1.06140542 : f32
    %370 = vector.broadcast %cst_147 : f32 to vector<65x64xf32>
    %371 = arith.mulf %369, %370 : vector<65x64xf32>
    %cst_148 = arith.constant -1.45315206 : f32
    %372 = vector.broadcast %cst_148 : f32 to vector<65x64xf32>
    %373 = arith.addf %372, %371 : vector<65x64xf32>
    %374 = arith.mulf %369, %373 : vector<65x64xf32>
    %cst_149 = arith.constant 1.42141378 : f32
    %375 = vector.broadcast %cst_149 : f32 to vector<65x64xf32>
    %376 = arith.addf %375, %374 : vector<65x64xf32>
    %377 = arith.mulf %369, %376 : vector<65x64xf32>
    %cst_150 = arith.constant -0.284496725 : f32
    %378 = vector.broadcast %cst_150 : f32 to vector<65x64xf32>
    %379 = arith.addf %378, %377 : vector<65x64xf32>
    %380 = arith.mulf %369, %379 : vector<65x64xf32>
    %cst_151 = arith.constant 0.254829586 : f32
    %381 = vector.broadcast %cst_151 : f32 to vector<65x64xf32>
    %382 = arith.addf %381, %380 : vector<65x64xf32>
    %383 = arith.mulf %369, %382 : vector<65x64xf32>
    %cst_152 = arith.constant 0.000000e+00 : f32
    %384 = vector.broadcast %cst_152 : f32 to vector<65x64xf32>
    %385 = arith.subf %384, %363 : vector<65x64xf32>
    %386 = arith.mulf %385, %363 : vector<65x64xf32>
    %387 = math.exp %386 : vector<65x64xf32>
    %388 = arith.mulf %383, %387 : vector<65x64xf32>
    %cst_153 = arith.constant 1.000000e+00 : f32
    %389 = vector.broadcast %cst_153 : f32 to vector<65x64xf32>
    %390 = arith.subf %389, %388 : vector<65x64xf32>
    %cst_154 = arith.constant 0.000000e+00 : f32
    %391 = vector.broadcast %cst_154 : f32 to vector<65x64xf32>
    %392 = arith.cmpf oge, %362, %391 : vector<65x64xf32>
    %cst_155 = arith.constant 0.000000e+00 : f32
    %393 = vector.broadcast %cst_155 : f32 to vector<65x64xf32>
    %394 = arith.subf %393, %390 : vector<65x64xf32>
    %395 = arith.select %392, %390, %394 : vector<65x64xi1>, vector<65x64xf32>
    %cst_156 = arith.constant 1.000000e+00 : f32
    %396 = vector.broadcast %cst_156 : f32 to vector<65x64xf32>
    %397 = arith.addf %396, %395 : vector<65x64xf32>
    %398 = arith.mulf %360, %397 : vector<65x64xf32>
    %399 = arith.truncf %398 : vector<65x64xf32> to vector<65x64xbf16>
    %c1_157 = arith.constant 1 : index
    %c0_158 = arith.constant 0 : index
    %c0_159 = arith.constant 0 : index
    %400 = vector.load %arg13[%c1_157, %c0_158, %c0_159] : memref<2x64x32xbf16, #tpu.memory_space<vmem>>, vector<1x64x32xbf16>
    %401 = vector.shape_cast %400 : vector<1x64x32xbf16> to vector<64x32xbf16>
    %cst_160 = arith.constant dense<0.000000e+00> : vector<65x32xf32>
    %402 = tpu.matmul %399, %401, %cst_160 {dimension_numbers = #tpu.dot_dimension_numbers<[1], [0], [0], [1], [0, 0, 1, 1], [], []>} : vector<65x64xbf16>, vector<64x32xbf16>, vector<65x32xf32> -> vector<65x32xf32>
    %403 = arith.addf %324, %402 : vector<65x32xf32>
    %c1_161 = arith.constant 1 : index
    %c0_162 = arith.constant 0 : index
    %c0_163 = arith.constant 0 : index
    %404 = vector.load %arg14[%c1_161, %c0_162, %c0_163] : memref<2x1x32xf32, #tpu.memory_space<vmem>>, vector<1x1x32xf32>
    %405 = vector.shape_cast %404 : vector<1x1x32xf32> to vector<1x32xf32>
    %406 = vector.broadcast %405 : vector<1x32xf32> to vector<65x32xf32>
    %407 = arith.addf %403, %406 : vector<65x32xf32>
    %408 = vector.extract_strided_slice %407 {offsets = [0, 0], sizes = [1, 32], strides = [1, 1]} : vector<65x32xf32> to vector<1x32xf32>
    %c0_164 = arith.constant 0 : index
    %c0_165 = arith.constant 0 : index
    %409 = vector.load %arg15[%c0_164, %c0_165] : memref<1x32xf32, #tpu.memory_space<vmem>>, vector<1x32xf32>
    %c0_166 = arith.constant 0 : index
    %c0_167 = arith.constant 0 : index
    %410 = vector.load %arg16[%c0_166, %c0_167] : memref<1x32xf32, #tpu.memory_space<vmem>>, vector<1x32xf32>
    %cst_168 = arith.constant dense<0.000000e+00> : vector<1xf32>
    %411 = vector.multi_reduction <add>, %408, %cst_168 [1] : vector<1x32xf32> to vector<1xf32>
    %412 = vector.shape_cast %411 : vector<1xf32> to vector<1x1xf32>
    %cst_169 = arith.constant 3.200000e+01 : f32
    %413 = vector.broadcast %cst_169 : f32 to vector<1x1xf32>
    %414 = arith.divf %412, %413 : vector<1x1xf32>
    %415 = vector.broadcast %414 : vector<1x1xf32> to vector<1x32xf32>
    %416 = arith.subf %408, %415 : vector<1x32xf32>
    %417 = arith.mulf %416, %416 : vector<1x32xf32>
    %cst_170 = arith.constant dense<0.000000e+00> : vector<1xf32>
    %418 = vector.multi_reduction <add>, %417, %cst_170 [1] : vector<1x32xf32> to vector<1xf32>
    %419 = vector.shape_cast %418 : vector<1xf32> to vector<1x1xf32>
    %cst_171 = arith.constant 3.200000e+01 : f32
    %420 = vector.broadcast %cst_171 : f32 to vector<1x1xf32>
    %421 = arith.divf %419, %420 : vector<1x1xf32>
    %422 = vector.broadcast %414 : vector<1x1xf32> to vector<1x32xf32>
    %423 = arith.subf %408, %422 : vector<1x32xf32>
    %cst_172 = arith.constant 9.99999974E-6 : f32
    %424 = vector.broadcast %cst_172 : f32 to vector<1x1xf32>
    %425 = arith.addf %421, %424 : vector<1x1xf32>
    %426 = math.rsqrt %425 : vector<1x1xf32>
    %427 = vector.broadcast %426 : vector<1x1xf32> to vector<1x32xf32>
    %428 = arith.mulf %423, %427 : vector<1x32xf32>
    %429 = arith.mulf %428, %409 : vector<1x32xf32>
    %430 = arith.addf %429, %410 : vector<1x32xf32>
    %431 = arith.truncf %430 : vector<1x32xf32> to vector<1x32xbf16>
    %c0_173 = arith.constant 0 : index
    %c0_174 = arith.constant 0 : index
    %432 = vector.load %arg17[%c0_173, %c0_174] : memref<32x2xbf16, #tpu.memory_space<vmem>>, vector<32x2xbf16>
    %cst_175 = arith.constant dense<0.000000e+00> : vector<1x2xf32>
    %433 = tpu.matmul %431, %432, %cst_175 {dimension_numbers = #tpu.dot_dimension_numbers<[1], [0], [0], [1], [0, 0, 1, 1], [], []>} : vector<1x32xbf16>, vector<32x2xbf16>, vector<1x2xf32> -> vector<1x2xf32>
    %c0_176 = arith.constant 0 : index
    %c0_177 = arith.constant 0 : index
    %434 = vector.load %arg18[%c0_176, %c0_177] : memref<1x2xf32, #tpu.memory_space<vmem>>, vector<1x2xf32>
    %435 = arith.addf %433, %434 : vector<1x2xf32>
    %c0_178 = arith.constant 0 : index
    %c0_179 = arith.constant 0 : index
    %c0_180 = arith.constant 0 : index
    %436 = vector.load %arg19[%c0_178, %c0_179, %c0_180] : memref<1x1x2xf32, #tpu.memory_space<vmem>>, vector<1x1x2xf32>
    %437 = vector.shape_cast %436 : vector<1x1x2xf32> to vector<1x2xf32>
    %438 = vector.shape_cast %435 : vector<1x2xf32> to vector<1x1x2xf32>
    tpu.vector_store %arg19[%c0_178, %c0_179, %c0_180], %438 {strides = array<i32>} : memref<1x1x2xf32, #tpu.memory_space<vmem>>, vector<1x1x2xf32>,
    return
  }
  func.func @transform_0(%arg0: i32) -> (i32, i32, i32) {
    %c0_i32 = arith.constant 0 : i32
    %c0_i32_0 = arith.constant 0 : i32
    %c0_i32_1 = arith.constant 0 : i32
    return %arg0, %c0_i32, %c0_i32_0 : i32, i32, i32
  }
  func.func @transform_1(%arg0: i32) -> (i32, i32, i32) {
    %c0_i32 = arith.constant 0 : i32
    %c0_i32_0 = arith.constant 0 : i32
    %c0_i32_1 = arith.constant 0 : i32
    %c0_i32_2 = arith.constant 0 : i32
    return %c0_i32, %c0_i32_0, %c0_i32_1 : i32, i32, i32
  }
  func.func @transform_2(%arg0: i32) -> (i32, i32) {
    %c0_i32 = arith.constant 0 : i32
    %c0_i32_0 = arith.constant 0 : i32
    %c0_i32_1 = arith.constant 0 : i32
    return %c0_i32, %c0_i32_0 : i32, i32
  }
  func.func @transform_3(%arg0: i32) -> (i32, i32, i32) {
    %c0_i32 = arith.constant 0 : i32
    %c0_i32_0 = arith.constant 0 : i32
    %c0_i32_1 = arith.constant 0 : i32
    %c0_i32_2 = arith.constant 0 : i32
    return %c0_i32, %c0_i32_0, %c0_i32_1 : i32, i32, i32
  }
  func.func @transform_4(%arg0: i32) -> (i32, i32, i32) {
    %c0_i32 = arith.constant 0 : i32
    %c0_i32_0 = arith.constant 0 : i32
    %c0_i32_1 = arith.constant 0 : i32
    %c0_i32_2 = arith.constant 0 : i32
    return %c0_i32, %c0_i32_0, %c0_i32_1 : i32, i32, i32
  }
  func.func @transform_5(%arg0: i32) -> (i32, i32, i32) {
    %c0_i32 = arith.constant 0 : i32
    %c0_i32_0 = arith.constant 0 : i32
    %c0_i32_1 = arith.constant 0 : i32
    %c0_i32_2 = arith.constant 0 : i32
    return %c0_i32, %c0_i32_0, %c0_i32_1 : i32, i32, i32
  }
  func.func @transform_6(%arg0: i32) -> (i32, i32, i32) {
    %c0_i32 = arith.constant 0 : i32
    %c0_i32_0 = arith.constant 0 : i32
    %c0_i32_1 = arith.constant 0 : i32
    %c0_i32_2 = arith.constant 0 : i32
    return %c0_i32, %c0_i32_0, %c0_i32_1 : i32, i32, i32
  }
  func.func @transform_7(%arg0: i32) -> (i32, i32, i32) {
    %c0_i32 = arith.constant 0 : i32
    %c0_i32_0 = arith.constant 0 : i32
    %c0_i32_1 = arith.constant 0 : i32
    %c0_i32_2 = arith.constant 0 : i32
    return %c0_i32, %c0_i32_0, %c0_i32_1 : i32, i32, i32
  }
  func.func @transform_8(%arg0: i32) -> (i32, i32, i32) {
    %c0_i32 = arith.constant 0 : i32
    %c0_i32_0 = arith.constant 0 : i32
    %c0_i32_1 = arith.constant 0 : i32
    %c0_i32_2 = arith.constant 0 : i32
    return %c0_i32, %c0_i32_0, %c0_i32_1 : i32, i32, i32
  }
  func.func @transform_9(%arg0: i32) -> (i32, i32, i32) {
    %c0_i32 = arith.constant 0 : i32
    %c0_i32_0 = arith.constant 0 : i32
    %c0_i32_1 = arith.constant 0 : i32
    %c0_i32_2 = arith.constant 0 : i32
    return %c0_i32, %c0_i32_0, %c0_i32_1 : i32, i32, i32
  }
  func.func @transform_10(%arg0: i32) -> (i32, i32, i32) {
    %c0_i32 = arith.constant 0 : i32
    %c0_i32_0 = arith.constant 0 : i32
    %c0_i32_1 = arith.constant 0 : i32
    %c0_i32_2 = arith.constant 0 : i32
    return %c0_i32, %c0_i32_0, %c0_i32_1 : i32, i32, i32
  }
  func.func @transform_11(%arg0: i32) -> (i32, i32, i32) {
    %c0_i32 = arith.constant 0 : i32
    %c0_i32_0 = arith.constant 0 : i32
    %c0_i32_1 = arith.constant 0 : i32
    %c0_i32_2 = arith.constant 0 : i32
    return %c0_i32, %c0_i32_0, %c0_i32_1 : i32, i32, i32
  }
  func.func @transform_12(%arg0: i32) -> (i32, i32, i32) {
    %c0_i32 = arith.constant 0 : i32
    %c0_i32_0 = arith.constant 0 : i32
    %c0_i32_1 = arith.constant 0 : i32
    %c0_i32_2 = arith.constant 0 : i32
    return %c0_i32, %c0_i32_0, %c0_i32_1 : i32, i32, i32
  }
  func.func @transform_13(%arg0: i32) -> (i32, i32, i32) {
    %c0_i32 = arith.constant 0 : i32
    %c0_i32_0 = arith.constant 0 : i32
    %c0_i32_1 = arith.constant 0 : i32
    %c0_i32_2 = arith.constant 0 : i32
    return %c0_i32, %c0_i32_0, %c0_i32_1 : i32, i32, i32
  }
  func.func @transform_14(%arg0: i32) -> (i32, i32) {
    %c0_i32 = arith.constant 0 : i32
    %c0_i32_0 = arith.constant 0 : i32
    %c0_i32_1 = arith.constant 0 : i32
    return %c0_i32, %c0_i32_0 : i32, i32
  }
  func.func @transform_15(%arg0: i32) -> (i32, i32) {
    %c0_i32 = arith.constant 0 : i32
    %c0_i32_0 = arith.constant 0 : i32
    %c0_i32_1 = arith.constant 0 : i32
    return %c0_i32, %c0_i32_0 : i32, i32
  }
  func.func @transform_16(%arg0: i32) -> (i32, i32) {
    %c0_i32 = arith.constant 0 : i32
    %c0_i32_0 = arith.constant 0 : i32
    %c0_i32_1 = arith.constant 0 : i32
    return %c0_i32, %c0_i32_0 : i32, i32
  }
  func.func @transform_17(%arg0: i32) -> (i32, i32) {
    %c0_i32 = arith.constant 0 : i32
    %c0_i32_0 = arith.constant 0 : i32
    %c0_i32_1 = arith.constant 0 : i32
    return %c0_i32, %c0_i32_0 : i32, i32
  }
  func.func @transform_18(%arg0: i32) -> (i32, i32, i32) {
    %c0_i32 = arith.constant 0 : i32
    %c0_i32_0 = arith.constant 0 : i32
    %c0_i32_1 = arith.constant 0 : i32
    return %arg0, %c0_i32, %c0_i32_0 : i32, i32, i32
  }
}

</mosaic_0001>

<bundles_post_ra>
// kernel: discriminator_forward.1
= control target key start
LH: loop header
LB: loop body
LE: loop exit
PB: predicated region body
PF: predicated region fallthrough
CT: control target
= control target key end

     0   :  { %s10730_s0 = inlined_call_operand.vmem [shape: f32[2,65,12], index: 0, kind: input, shape index: {}]   ;;  %s10731_s1 = inlined_call_operand.vmem [shape: f32[1,65,32], index: 1, kind: input, shape index: {}]   ;;  %s10732_s2 = inlined_call_operand.vmem [shape: bf16[12,32], index: 2, kind: input, shape index: {}]   ;;  %s10733_s3 = inlined_call_operand.vmem [shape: f32[2,1,32], index: 3, kind: input, shape index: {}]   ;;  %s10734_s4 = inlined_call_operand.vmem [shape: f32[2,1,32], index: 4, kind: input, shape index: {}]   ;;  %s10735_s5 = inlined_call_operand.vmem [shape: bf16[2,32,96], index: 5, kind: input, shape index: {}]   ;;  %s10736_s6 = inlined_call_operand.vmem [shape: bf16[2,32,32], index: 6, kind: input, shape index: {}]   ;;  %s10737_s7 = inlined_call_operand.vmem [shape: f32[2,1,32], index: 7, kind: input, shape index: {}]   ;;  %s10738_s8 = inlined_call_operand.vmem [shape: f32[2,1,32], index: 8, kind: input, shape index: {}]   ;;  %s10739_s9 = inlined_call_operand.vmem [shape: f32[2,1,32], index: 9, kind: input, shape index: {}]   ;;  %s10740_s10 = inlined_call_operand.vmem [shape: bf16[2,32,64], index: 10, kind: input, shape index: {}]   ;;  %s10741_s11 = inlined_call_operand.vmem [shape: f32[2,1,64], index: 11, kind: input, shape index: {}]   ;;  %s10742_s12 = inlined_call_operand.vmem [shape: bf16[2,64,32], index: 12, kind: input, shape index: {}]   ;;  %s10743_s13 = inlined_call_operand.vmem [shape: f32[2,1,32], index: 13, kind: input, shape index: {}]   ;;  %s10744_s14 = inlined_call_operand.vmem [shape: f32[1,32], index: 14, kind: input, shape index: {}]   ;;  %s10745_s15 = inlined_call_operand.vmem [shape: f32[1,32], index: 15, kind: input, shape index: {}]   ;;  %s10746_s16 = inlined_call_operand.vmem [shape: bf16[32,2], index: 16, kind: input, shape index: {}]   ;;  %s10747_s17 = inlined_call_operand.vmem [shape: f32[1,2], index: 17, kind: input, shape index: {}]   ;;  %s10748_s18 = inlined_call_operand.hbm [shape: f32[2,1,2], index: 18, kind: output, shape index: {}]  }
   0x1   :  { %10807 = sst [smem:[#allocation23_spill]] %s10730_s0 }
   0x2   :  { %10808 = sst [smem:[#allocation24_spill]] %s10731_s1 }
   0x3   :  { %10809 = sst [smem:[#allocation25_spill]] %s10732_s2 }
   0x4   :  { %10810 = sst [smem:[#allocation26_spill]] %s10733_s3 }
   0x5   :  { %10811 = sst [smem:[#allocation27_spill]] %s10734_s4 }
   0x6   :  { %10812 = sst [smem:[#allocation28_spill]] %s10735_s5 }
   0x7   :  { %10813 = sst [smem:[#allocation29_spill]] %s10736_s6 }
   0x8   :  { %23 = vsyncpa [#allocation3], 0 }
   0x9   :  { %25 = vsyncpa [#allocation3 + $0x1], 0  ;;  %s7833_s27 = smov 0   ;;  %s7835_s28 = smov 0  }
   0xa   :  { %s7837_s29 = smov 0   ;;  %s7839_s30 = smov 0  }
   0xb LB: > { %s7854_s0 = sadd.s32 4294967295, %s7718_s30   ;;  %s5883_s19 = sadd.s32 4294967294, %s7718_s30   ;;  %s7718_s30 = sphi %s7839_s30, %s10905_s30   ;;  %s7714_s29 = sphi %s7837_s29, %s10904_s29   ;;  %s7710_s28 = sphi %s7835_s28, %s10903_s28   ;;  %s7706_s27 = sphi %s7833_s27, %s10902_s27  }
   0xc   : > { %s7858_s1 = sadd.s32 1, %s7718_s30   ;;  %s421_s20 = sadd.s32 1, %s7714_s29 }
   0xd   : > { %s418_s21 = ssub.s32 %s7718_s30, %s7858_s1  ;;  %p431_p0 = scmp.ne.s32.totalorder %s7714_s29, %s7710_s28 }
   0xe   : > { %p419_p1 = scmp.eq.s32.totalorder %s418_s21, 0  ;;  %p432_p2 = scmp.eq.s32.totalorder %s7854_s0, 1 }
   0xf   : > { %p437_p3 = scmp.ne.s32.totalorder %s7710_s28, %s7706_s27  ;;  %p438_p4 = scmp.eq.s32.totalorder %s5883_s19, 1 }
  0x10   : > { %s7869_s22 = scalar_select %p419_p1, %s7714_s29, %s421_s20  }
  0x11   : > { %p7871_p5 = por %p432_p2, %p431_p0  ;;  %p7875_p6 = por %p438_p4, %p437_p3 }
  0x12   : > { %10814 = sst [smem:[#allocation5_spill]] %s7869_s22  ;;  %p5886_p7 = scmp.ge.s32.totalorder %s7718_s30, 1 }
  0x13   : > { %p515_p8 = scmp.lt.s32.totalorder %s7718_s30, 3 }
  0x15   : > { %p516_p9 = pnand %p5886_p7, %p515_p8 }
  0x17   : > { %519 = sbr.rel (%p516_p9) target bundleno = 6173 (0x181d), region = 92 }
  0x1c   : > { %vm620_vm0 = vcmask 1045504   ;;  %v10760_v0 = vmov 0.0   ;;  %s10817_s26 = sld [smem:[#allocation25_spill]]  ;;  %p568_p10 = scmp.lt.s32.totalorder %s7854_s0, 1  ;;  %vm7721_vm1 = vmmov 0   ;;  %vm604_vm2 = vcmask 97280  }
  0x1d   : > { %6310 = vmatprep.subr.bf16.mxu0 %v10760_v0  ;;  %6332 = vmatprep.subr.bf16.mxu1 %v10760_v0  ;;  %s10818_s24 = sld [smem:[#allocation23_spill]]  ;;  %vm698_vm3 = vcmask 261120   ;;  %vm723_vm4 = vcmask 253952   ;;  %s10782_s21 = smov 88   ;;  %vm990_vm5 = vcmask 64512   ;;  %vm1228_vm6 = vcmask 1040384  }
  0x1e   : > { %6312 = vmatprep.mubr.msk.bf16.mxu0 %vm7721_vm1, %v10760_v0  ;;  %6336 = vmatprep.mubr.msk.bf16.mxu1 %vm7721_vm1, %v10760_v0  ;;  %s569_s19 = scalar_select %p568_p10, %s7854_s0, 1  ;;  %vm1093_vm7 = vcmask 531456   ;;  %vm1118_vm8 = vcmask 524288   ;;  %vm2418_vm9 = vcmask 130048   ;;  %vm2428_vm10 = vcmask 195584  }
  0x1f   : > { %s10829_s5 = sld [smem:[#allocation28_spill]]  ;;  %s10752_s22 = smov 112   ;;  %vm3115_vm14 = vcmask 523264  }
  0x20   : > { %s7024_s20 = smul.u32 72, %s569_s19  ;;  %s10819_s19 = sld [smem:[#allocation24_spill]] }
  0x21   : > { %s10830_s3 = sld [smem:[#allocation26_spill]] }
  0x22   : > { %v7201_v1 = vld [vmem:[%s10817_s26] sm:$0x3f]   ;;  %s10831_s4 = sld [smem:[#allocation27_spill]]  ;;  %s10754_s26 = smov 72  }
  0x23   : > { %v622_v2 = vsel %vm620_vm0, %v7201_v1, 0  ;;  %s572_s25 = scalar_lea.vmem %s10818_s24, %s7024_s20  ;;  %s10790_s20 = smov 96  }
  0x24   : > { %6311 = vmatpush3.bf16.msra.mxu0 %v622_v2  ;;  %v574_v3 = vld [vmem:[%s572_s25] sm:$0xff]  ;;  %v575_v4 = vld [vmem:[%s572_s25 + $0x8] sm:$0xff]  ;;  %v576_v6 = vld [vmem:[%s572_s25 + $0x10] sm:$0xff]  ;;  %s10780_s24 = smov 120   ;;  %s10849_s6 = sld [smem:[#allocation29_spill]] }
  0x25   : > { %6356 = vmatprep.subr.bf16.mxu0 %v10760_v0  ;;  %v583_v5 = vpack.c.bf16 %v575_v4, %v574_v3  ;;  %v577_v7 = vld [vmem:[%s572_s25 + $0x18] sm:$0xff]  ;;  %v578_v9 = vld [vmem:[%s572_s25 + $0x20] sm:$0xff]  ;;  %v579_v10 = vld [vmem:[%s572_s25 + $0x28] sm:$0xff] }
  0x26   : > { %v584_v8 = vpack.c.bf16 %v577_v7, %v576_v6  ;;  %v585_v11 = vpack.c.bf16 %v579_v10, %v578_v9  ;;  %v580_v12 = vld [vmem:[%s572_s25 + $0x30] sm:$0xff]  ;;  %v581_v13 = vld [vmem:[%s572_s25 + $0x38] sm:$0xff]  ;;  %v582_v15 = vld [vmem:[%s572_s25 + $0x40] sm:$0x1]  ;;  %s10750_s25 = smov 80  }
  0x27   : > { %6313 = vmatmul.mubr.msk.bf16.vlgmr.msra.gmra.mxu0 %vm604_vm2, %v583_v5  ;;  %v586_v14 = vpack.c.bf16 %v581_v13, %v580_v12  ;;  %v587_v16 = vpack.c.bf16 %v582_v15, %v582_v15  ;;  %v590_v17 = vld [vmem:[%s10819_s19] sm:$0xff]  ;;  %v591_v21 = vld [vmem:[%s10819_s19 + $0x8] sm:$0xff]  ;;  %v592_v26 = vld [vmem:[%s10819_s19 + $0x10] sm:$0xff] }
  0x28   : > { %6316 = vmatprep.mubr.msk.bf16.mxu0 %vm7721_vm1, %v10760_v0  ;;  %v593_v31 = vld [vmem:[%s10819_s19 + $0x18] sm:$0xff]  ;;  %v594_v36 = vld [vmem:[%s10819_s19 + $0x20] sm:$0xff]  ;;  %v595_v41 = vld [vmem:[%s10819_s19 + $0x28] sm:$0xff] }
  0x29   : > { %v596_v46 = vld [vmem:[%s10819_s19 + $0x30] sm:$0xff]  ;;  %v597_v51 = vld [vmem:[%s10819_s19 + $0x38] sm:$0xff]  ;;  %v598_v56 = vld [vmem:[%s10819_s19 + $0x40] sm:$0x1]  ;;  %s10873_s19 = smov 112  }
  0x2f   : > { %6317 = vmatmul.mubr.msk.bf16.gmra.mxu0 %vm604_vm2, %v584_v8 }
  0x30   : > { %6320 = vmatprep.mubr.msk.bf16.mxu0 %vm7721_vm1, %v10760_v0 }
  0x37   : > { %6321 = vmatmul.mubr.msk.bf16.gmra.mxu0 %vm604_vm2, %v585_v11 }
  0x38   : > { %6324 = vmatprep.mubr.msk.bf16.mxu0 %vm7721_vm1, %v10760_v0 }
  0x3f   : > { %6325 = vmatmul.mubr.msk.bf16.gmra.mxu0 %vm604_vm2, %v586_v14 }
  0x40   : > { %6328 = vmatprep.mubr.msk.bf16.mxu0 %vm7721_vm1, %v10760_v0 }
  0x47   : > { %6329 = vmatmul.mubr.msk.bf16.gmra.mxu0 %vm604_vm2, %v587_v16 }
  0x48   : > { %6366 = vmatprep.mubr.msk.bf16.mxu0 %vm7721_vm1, %v10760_v0 }
  0xe7   : > { %v658_v18 = vpop.f32.mrf.mxu0 }
  0xe8   : > { %v7914_v19 = vadd.f32 %v658_v18, %v590_v17 }
  0xe9   : > { %v6314_v20 = vpop.f32.mrf.mxu0 }
  0xea   : > { %10820 = vst [vmem:[#allocation6_spill] sm:$0xff] %v7914_v19  ;;  %v699_v22 = vsel %vm698_vm3, %v7914_v19, 0.0 }
  0xeb   : > { %700 = vadd.xlane.f32.xlu0 %v699_v22  ;;  %v661_v23 = vpop.f32.mrf.mxu0 }
  0xec   : > { %v7921_v24 = vadd.f32 %v661_v23, %v591_v21 }
  0xed   : > { %v6315_v25 = vpop.f32.mrf.mxu0 }
  0xee   : > { %10821 = vst [vmem:[#allocation7_spill] sm:$0xff] %v7921_v24  ;;  %v702_v27 = vsel %vm698_vm3, %v7921_v24, 0.0 }
  0xef   : > { %703 = vadd.xlane.f32.xlu0 %v702_v27  ;;  %v666_v28 = vpop.f32.mrf.mxu0 }
  0xf0   : > { %v7928_v29 = vadd.f32 %v666_v28, %v592_v26 }
  0xf1   : > { %v6318_v30 = vpop.f32.mrf.mxu0 }
  0xf2   : > { %10822 = vst [vmem:[#allocation8_spill] sm:$0xff] %v7928_v29  ;;  %v705_v32 = vsel %vm698_vm3, %v7928_v29, 0.0 }
  0xf3   : > { %706 = vadd.xlane.f32.xlu1 %v705_v32  ;;  %v669_v33 = vpop.f32.mrf.mxu0 }
  0xf4   : > { %v7935_v34 = vadd.f32 %v669_v33, %v593_v31 }
  0xf5   : > { %v6319_v35 = vpop.f32.mrf.mxu0 }
  0xf6   : > { %10823 = vst [vmem:[#allocation9_spill] sm:$0xff] %v7935_v34  ;;  %v708_v37 = vsel %vm698_vm3, %v7935_v34, 0.0 }
  0xf7   : > { %709 = vadd.xlane.f32.xlu1 %v708_v37  ;;  %v674_v38 = vpop.f32.mrf.mxu0 }
  0xf8   : > { %v7942_v39 = vadd.f32 %v674_v38, %v594_v36 }
  0xf9   : > { %v6322_v40 = vpop.f32.mrf.mxu0 }
  0xfa   : > { %10824 = vst [vmem:[#allocation10_spill] sm:$0xff] %v7942_v39  ;;  %v711_v42 = vsel %vm698_vm3, %v7942_v39, 0.0 }
  0xfb   : > { %712 = vadd.xlane.f32.xlu0 %v711_v42  ;;  %v677_v43 = vpop.f32.mrf.mxu0 }
  0xfc   : > { %v7949_v44 = vadd.f32 %v677_v43, %v595_v41 }
  0xfd   : > { %v6323_v45 = vpop.f32.mrf.mxu0 }
  0xfe   : > { %10825 = vst [vmem:[#allocation11_spill] sm:$0xff] %v7949_v44  ;;  %v714_v47 = vsel %vm698_vm3, %v7949_v44, 0.0 }
  0xff   : > { %715 = vadd.xlane.f32.xlu1 %v714_v47  ;;  %v682_v48 = vpop.f32.mrf.mxu0 }
 0x100   : > { %v7956_v49 = vadd.f32 %v682_v48, %v596_v46 }
 0x101   : > { %v6326_v50 = vpop.f32.mrf.mxu0 }
 0x102   : > { %10826 = vst [vmem:[#allocation12_spill] sm:$0xff] %v7956_v49  ;;  %v717_v52 = vsel %vm698_vm3, %v7956_v49, 0.0 }
 0x103   : > { %718 = vadd.xlane.f32.xlu0 %v717_v52  ;;  %v685_v53 = vpop.f32.mrf.mxu0 }
 0x104   : > { %v7963_v54 = vadd.f32 %v685_v53, %v597_v51  ;;  %v7202_v53 = vld [vmem:[%s10829_s5 + $0x8] sm:$0xff]  }
 0x105   : > { %v6327_v55 = vpop.f32.mrf.mxu0  ;;  %6333 = vmatpush3.bf16.msra.mxu1 %v7202_v53 }
 0x106   : > { %10827 = vst [vmem:[#allocation13_spill] sm:$0xff] %v7963_v54  ;;  %v720_v57 = vsel %vm698_vm3, %v7963_v54, 0.0  ;;  %6334 = vmatprep.subr.bf16.mxu1 %v10760_v0  ;;  %v7203_v55 = vld [vmem:[%s10829_s5] sm:$0xff]  }
 0x107   : > { %721 = vadd.xlane.f32.xlu1 %v720_v57  ;;  %v690_v58 = vpop.f32.mrf.mxu0 }
 0x108   : > { %v7970_v59 = vadd.f32 %v690_v58, %v598_v56 }
 0x109   : > { %v6330_v60 = vpop.f32.mrf.mxu0  ;;  %6335 = vmatpush3.bf16.msra.mxu1 %v7203_v55 }
 0x10a   : > { %10828 = vst [vmem:[#allocation14_spill] sm:$0xff] %v7970_v59  ;;  %v724_v61 = vsel %vm723_vm4, %v7970_v59, 0.0  ;;  %6386 = vmatprep.subr.bf16.mxu1 %v10760_v0 }
 0x10b   : > { %725 = vadd.xlane.f32.xlu0 %v724_v61  ;;  %v693_v62 = vpop.f32.mrf.mxu0 }
 0x10d   : > { %v6331_v63 = vpop.f32.mrf.mxu0 }
 0x174   : > { %v701_v1 = vpop.xlane.xlu0 %700 }
 0x175   : > { %v728_v2 = vmul.f32 0.03125, %v701_v1 }
 0x177   : > { %v7975_v3 = vsub.f32 %v7914_v19, %v728_v2 }
 0x178   : > { %v704_v4 = vpop.xlane.xlu0 %703 }
 0x179   : > { %v729_v5 = vmul.f32 0.03125, %v704_v4  ;;  %v746_v6 = vmul.f32 %v7975_v3, %v7975_v3 }
 0x17b   : > { %v7980_v7 = vsub.f32 %v7921_v24, %v729_v5  ;;  %v755_v8 = vsel %vm698_vm3, %v746_v6, 0.0 }
 0x17c   : > { %v707_v9 = vpop.xlane.xlu1 %706  ;;  %756 = vadd.xlane.f32.xlu1 %v755_v8 }
 0x17d   : > { %v730_v10 = vmul.f32 0.03125, %v707_v9  ;;  %v747_v11 = vmul.f32 %v7980_v7, %v7980_v7 }
 0x17f   : > { %v7986_v12 = vsub.f32 %v7928_v29, %v730_v10  ;;  %v758_v13 = vsel %vm698_vm3, %v747_v11, 0.0 }
 0x180   : > { %v710_v14 = vpop.xlane.xlu1 %709  ;;  %759 = vadd.xlane.f32.xlu0 %v758_v13 }
 0x181   : > { %v731_v15 = vmul.f32 0.03125, %v710_v14  ;;  %v748_v16 = vmul.f32 %v7986_v12, %v7986_v12 }
 0x183   : > { %v7992_v17 = vsub.f32 %v7935_v34, %v731_v15  ;;  %v761_v18 = vsel %vm698_vm3, %v748_v16, 0.0  ;;  %v5894_v15 = vld [vmem:[%s10830_s3] ss:$0 sm:$0xff] }
 0x184   : > { %v713_v20 = vpop.xlane.xlu0 %712  ;;  %762 = vadd.xlane.f32.xlu1 %v761_v18 }
 0x185   : > { %v732_v21 = vmul.f32 0.03125, %v713_v20  ;;  %v749_v22 = vmul.f32 %v7992_v17, %v7992_v17 }
 0x187   : > { %v7998_v23 = vsub.f32 %v7942_v39, %v732_v21  ;;  %v764_v25 = vsel %vm698_vm3, %v749_v22, 0.0 }
 0x188   : > { %v716_v26 = vpop.xlane.xlu1 %715  ;;  %765 = vadd.xlane.f32.xlu0 %v764_v25 }
 0x189   : > { %v733_v27 = vmul.f32 0.03125, %v716_v26  ;;  %v750_v28 = vmul.f32 %v7998_v23, %v7998_v23  ;;  %v5895_v26 = vld [vmem:[%s10831_s4] ss:$0 sm:$0xff] }
 0x18b   : > { %v8004_v30 = vsub.f32 %v7949_v44, %v733_v27  ;;  %v767_v31 = vsel %vm698_vm3, %v750_v28, 0.0 }
 0x18c   : > { %v719_v32 = vpop.xlane.xlu0 %718  ;;  %768 = vadd.xlane.f32.xlu1 %v767_v31 }
 0x18d   : > { %v734_v33 = vmul.f32 0.03125, %v719_v32  ;;  %v751_v35 = vmul.f32 %v8004_v30, %v8004_v30 }
 0x18f   : > { %v8010_v36 = vsub.f32 %v7956_v49, %v734_v33  ;;  %v770_v37 = vsel %vm698_vm3, %v751_v35, 0.0 }
 0x190   : > { %v722_v38 = vpop.xlane.xlu1 %721  ;;  %771 = vadd.xlane.f32.xlu0 %v770_v37 }
 0x191   : > { %v735_v40 = vmul.f32 0.03125, %v722_v38  ;;  %v752_v41 = vmul.f32 %v8010_v36, %v8010_v36 }
 0x193   : > { %v8016_v42 = vsub.f32 %v7963_v54, %v735_v40  ;;  %v773_v43 = vsel %vm698_vm3, %v752_v41, 0.0 }
 0x194   : > { %774 = vadd.xlane.f32.xlu1 %v773_v43  ;;  %v726_v45 = vpop.xlane.xlu0 %725 }
 0x195   : > { %v736_v46 = vmul.f32 0.03125, %v726_v45  ;;  %v753_v47 = vmul.f32 %v8016_v42, %v8016_v42 }
 0x197   : > { %v8022_v48 = vsub.f32 %v7970_v59, %v736_v46  ;;  %v776_v50 = vsel %vm698_vm3, %v753_v47, 0.0 }
 0x198   : > { %777 = vadd.xlane.f32.xlu0 %v776_v50 }
 0x199   : > { %v754_v51 = vmul.f32 %v8022_v48, %v8022_v48 }
 0x19b   : > { %v779_v52 = vsel %vm723_vm4, %v754_v51, 0.0 }
 0x19c   : > { %780 = vadd.xlane.f32.xlu1 %v779_v52 }
 0x205   : > { %v757_v56 = vpop.xlane.xlu1 %756 }
 0x206   : > { %v782_v57 = vmul.f32 0.03125, %v757_v56 }
 0x208   : > { %v791_v58 = vadd.f32 1e-05, %v782_v57 }
 0x209   : > { %v760_v60 = vpop.xlane.xlu0 %759 }
 0x20a   : > { %7224 = vrsqrt.f32 %v791_v58  ;;  %v783_v61 = vmul.f32 0.03125, %v760_v60 }
 0x20c   : > { %v792_v62 = vadd.f32 1e-05, %v783_v61 }
 0x20d   : > { %v763_v63 = vpop.xlane.xlu1 %762 }
 0x20e   : > { %7226 = vrsqrt.f32 %v792_v62  ;;  %v784_v1 = vmul.f32 0.03125, %v763_v63 }
 0x210   : > { %v793_v2 = vadd.f32 1e-05, %v784_v1 }
 0x211   : > { %v766_v4 = vpop.xlane.xlu0 %765 }
 0x212   : > { %7228 = vrsqrt.f32 %v793_v2  ;;  %v785_v5 = vmul.f32 0.03125, %v766_v4 }
 0x214   : > { %v794_v6 = vadd.f32 1e-05, %v785_v5 }
 0x215   : > { %v769_v8 = vpop.xlane.xlu1 %768 }
 0x216   : > { %7230 = vrsqrt.f32 %v794_v6  ;;  %v786_v9 = vmul.f32 0.03125, %v769_v8 }
 0x217   : > { %v7225_v10 = vpop.eup %7224 }
 0x218   : > { %v795_v11 = vadd.f32 1e-05, %v786_v9  ;;  %v809_v13 = vmul.f32 %v7225_v10, %v7975_v3 }
 0x219   : > { %v772_v14 = vpop.xlane.xlu0 %771 }
 0x21a   : > { %7232 = vrsqrt.f32 %v795_v11  ;;  %v787_v16 = vmul.f32 0.03125, %v772_v14  ;;  %v824_v22 = vmul.f32 %v5894_v15, %v809_v13 }
 0x21b   : > { %v7227_v18 = vpop.eup %7226 }
 0x21c   : > { %v796_v20 = vadd.f32 1e-05, %v787_v16  ;;  %v810_v21 = vmul.f32 %v7227_v18, %v7980_v7  ;;  %v839_v32 = vadd.f32 %v5895_v26, %v824_v22 }
 0x21d   : > { %v775_v25 = vpop.xlane.xlu1 %774 }
 0x21e   : > { %7234 = vrsqrt.f32 %v796_v20  ;;  %v788_v27 = vmul.f32 0.03125, %v775_v25  ;;  %v825_v3 = vmul.f32 %v5894_v15, %v810_v21 }
 0x21f   : > { %v7229_v28 = vpop.eup %7228 }
 0x220   : > { %v797_v31 = vadd.f32 1e-05, %v788_v27  ;;  %v840_v33 = vadd.f32 %v5895_v26, %v825_v3  ;;  %v811_v35 = vmul.f32 %v7229_v28, %v7986_v12 }
 0x221   : > { %v778_v37 = vpop.xlane.xlu0 %777 }
 0x222   : > { %7236 = vrsqrt.f32 %v797_v31  ;;  %v789_v38 = vmul.f32 0.03125, %v778_v37  ;;  %v848_v40 = vpack.c.bf16 %v840_v33, %v839_v32  ;;  %v826_v45 = vmul.f32 %v5894_v15, %v811_v35 }
 0x223   : > { %v7231_v7 = vpop.eup %7230 }
 0x224   : > { %v798_v41 = vadd.f32 1e-05, %v789_v38  ;;  %6337 = vmatmul.mubr.msk.bf16.vlgmr.msra.gmra.mxu1 %vm698_vm3, %v848_v40  ;;  %v812_v43 = vmul.f32 %v7231_v7, %v7992_v17  ;;  %v841_v52 = vadd.f32 %v5895_v26, %v826_v45 }
 0x225   : > { %v781_v46 = vpop.xlane.xlu1 %780  ;;  %6340 = vmatprep.mubr.msk.bf16.mxu1 %vm7721_vm1, %v10760_v0 }
 0x226   : > { %7238 = vrsqrt.f32 %v798_v41  ;;  %v790_v47 = vmul.f32 0.03125, %v781_v46  ;;  %v827_v50 = vmul.f32 %v5894_v15, %v812_v43 }
 0x227   : > { %v7233_v51 = vpop.eup %7232 }
 0x228   : > { %v799_v12 = vadd.f32 1e-05, %v790_v47  ;;  %v842_v53 = vadd.f32 %v5895_v26, %v827_v50  ;;  %v813_v55 = vmul.f32 %v7233_v51, %v7998_v23 }
 0x22a   : > { %7240 = vrsqrt.f32 %v799_v12  ;;  %v849_v56 = vpack.c.bf16 %v842_v53, %v841_v52  ;;  %v828_v58 = vmul.f32 %v5894_v15, %v813_v55 }
 0x22b   : > { %v7235_v57 = vpop.eup %7234 }
 0x22c   : > { %6341 = vmatmul.mubr.msk.bf16.gmra.mxu1 %vm698_vm3, %v849_v56  ;;  %v814_v17 = vmul.f32 %v7235_v57, %v8004_v30  ;;  %v843_v62 = vadd.f32 %v5895_v26, %v828_v58 }
 0x22d   : > { %6344 = vmatprep.mubr.msk.bf16.mxu1 %vm7721_vm1, %v10760_v0 }
 0x22e   : > { %v829_v60 = vmul.f32 %v5894_v15, %v814_v17 }
 0x22f   : > { %v7237_v61 = vpop.eup %7236 }
 0x230   : > { %v844_v63 = vadd.f32 %v5895_v26, %v829_v60  ;;  %v815_v1 = vmul.f32 %v7237_v61, %v8010_v36 }
 0x232   : > { %v850_v2 = vpack.c.bf16 %v844_v63, %v843_v62  ;;  %v830_v5 = vmul.f32 %v5894_v15, %v815_v1 }
 0x233   : > { %v7239_v4 = vpop.eup %7238 }
 0x234   : > { %6345 = vmatmul.mubr.msk.bf16.gmra.mxu1 %vm698_vm3, %v850_v2  ;;  %v816_v23 = vmul.f32 %v7239_v4, %v8016_v42  ;;  %v845_v8 = vadd.f32 %v5895_v26, %v830_v5 }
 0x235   : > { %6348 = vmatprep.mubr.msk.bf16.mxu1 %vm7721_vm1, %v10760_v0 }
 0x236   : > { %v831_v30 = vmul.f32 %v5894_v15, %v816_v23 }
 0x237   : > { %v7241_v6 = vpop.eup %7240 }
 0x238   : > { %v846_v9 = vadd.f32 %v5895_v26, %v831_v30  ;;  %v817_v10 = vmul.f32 %v7241_v6, %v8022_v48 }
 0x23a   : > { %v851_v11 = vpack.c.bf16 %v846_v9, %v845_v8  ;;  %v832_v13 = vmul.f32 %v5894_v15, %v817_v10 }
 0x23c   : > { %6349 = vmatmul.mubr.msk.bf16.gmra.mxu1 %vm698_vm3, %v851_v11  ;;  %v847_v36 = vadd.f32 %v5895_v26, %v832_v13 }
 0x23d   : > { %6352 = vmatprep.mubr.msk.bf16.mxu1 %vm7721_vm1, %v10760_v0 }
 0x23e   : > { %v852_v14 = vpack.c.bf16 %v847_v36, %v847_v36 }
 0x244   : > { %6353 = vmatmul.mubr.msk.bf16.gmra.mxu1 %vm698_vm3, %v852_v14 }
 0x245   : > { %6396 = vmatprep.mubr.msk.bf16.mxu1 %vm7721_vm1, %v10760_v0 }
 0x2e4   : > { %v918_v42 = vpop.f32.mrf.mxu1 }
 0x2e5   : > { %v956_v50 = vmul.f32 0.17677669, %v918_v42 }
 0x2e6   : > { %v6338_v16 = vpop.f32.mrf.mxu1 }
 0x2e8   : > { %v921_v18 = vpop.f32.mrf.mxu1 }
 0x2e9   : > { %v8078_v43 = vpack.c.bf16 %v921_v18, %v918_v42  ;;  %v957_v47 = vmul.f32 0.17677669, %v921_v18 }
 0x2ea   : > { %v6339_v20 = vpop.f32.mrf.mxu1 }
 0x2eb   : > { %v8094_v51 = vpack.c.bf16 %v957_v47, %v956_v50 }
 0x2ec   : > { %v926_v21 = vpop.f32.mrf.mxu1 }
 0x2ed   : > { %v958_v52 = vmul.f32 0.17677669, %v926_v21 }
 0x2ee   : > { %v6342_v48 = vpop.f32.mrf.mxu1 }
 0x2f0   : > { %v929_v22 = vpop.f32.mrf.mxu1 }
 0x2f1   : > { %v8080_v45 = vpack.c.bf16 %v929_v22, %v926_v21  ;;  %v959_v12 = vmul.f32 0.17677669, %v929_v22 }
 0x2f2   : > { %v6343_v15 = vpop.f32.mrf.mxu1 }
 0x2f3   : > { %v8100_v53 = vpack.c.bf16 %v959_v12, %v958_v52 }
 0x2f4   : > { %v934_v25 = vpop.f32.mrf.mxu1 }
 0x2f5   : > { %v960_v56 = vmul.f32 0.17677669, %v934_v25 }
 0x2f6   : > { %v6346_v27 = vpop.f32.mrf.mxu1 }
 0x2f8   : > { %v937_v3 = vpop.f32.mrf.mxu1 }
 0x2f9   : > { %v8070_v38 = vpack.c.bf16 %v937_v3, %v934_v25  ;;  %v961_v55 = vmul.f32 0.17677669, %v937_v3 }
 0x2fa   : > { %v6347_v28 = vpop.f32.mrf.mxu1 }
 0x2fb   : > { %v8106_v57 = vpack.c.bf16 %v961_v55, %v960_v56 }
 0x2fc   : > { %v942_v31 = vpop.f32.mrf.mxu1 }
 0x2fd   : > { %v962_v58 = vmul.f32 0.17677669, %v942_v31 }
 0x2fe   : > { %v6350_v26 = vpop.f32.mrf.mxu1 }
 0x300   : > { %v945_v32 = vpop.f32.mrf.mxu1 }
 0x301   : > { %v8066_v33 = vpack.c.bf16 %v945_v32, %v942_v31  ;;  %v963_v17 = vmul.f32 0.17677669, %v945_v32 }
 0x302   : > { %v6351_v35 = vpop.f32.mrf.mxu1 }
 0x303   : > { %986 = vrot.lane.b32.xlu1 %v8066_v33, %s10790_s20  ;;  %v8112_v60 = vpack.c.bf16 %v963_v17, %v962_v58 }
 0x304   : > { %v950_v37 = vpop.f32.mrf.mxu1 }
 0x305   : > { %v8072_v40 = vpack.c.bf16 %v950_v37, %v950_v37  ;;  %v964_v61 = vmul.f32 0.17677669, %v950_v37 }
 0x306   : > { %v6354_v7 = vpop.f32.mrf.mxu1 }
 0x307   : > { %984 = vrot.lane.b32.xlu1 %v8070_v38, %s10790_s20  ;;  %988 = vrot.lane.b32.xlu0 %v8072_v40, %s10790_s20  ;;  %v8118_v62 = vpack.c.bf16 %v964_v61, %v964_v61 }
 0x308   : > { %v953_v41 = vpop.f32.mrf.mxu1 }
 0x30a   : > { %v6355_v46 = vpop.f32.mrf.mxu1 }
 0x30b   : > { %982 = vrot.lane.b32.xlu1 %v8080_v45, %s10790_s20  ;;  %980 = vrot.lane.b32.xlu0 %v8078_v43, %s10790_s20  ;;  %s10874_s20 = smov 72  }
 0x30f   : > { %1329 = vrot.lane.b32.xlu1 %v8072_v40, %s10782_s21  ;;  %1327 = vrot.lane.b32.xlu0 %v8066_v33, %s10782_s21 }
 0x313   : > { %1325 = vrot.lane.b32.xlu1 %v8070_v38, %s10782_s21  ;;  %1323 = vrot.lane.b32.xlu0 %v8080_v45, %s10782_s21 }
 0x317   : > { %1321 = vrot.lane.b32.xlu1 %v8078_v43, %s10782_s21  ;;  %1311 = vrot.lane.b32.xlu0 %v8094_v51, %s10780_s24  ;;  %s10784_s21 = smov 24  }
 0x31b   : > { %1659 = vrot.lane.b32.xlu1 %v8072_v40, %s10750_s25  ;;  %1313 = vrot.lane.b32.xlu0 %v8100_v53, %s10780_s24 }
 0x31f   : > { %1657 = vrot.lane.b32.xlu1 %v8066_v33, %s10750_s25  ;;  %1315 = vrot.lane.b32.xlu0 %v8106_v57, %s10780_s24 }
 0x323   : > { %1655 = vrot.lane.b32.xlu1 %v8070_v38, %s10750_s25  ;;  %1317 = vrot.lane.b32.xlu0 %v8112_v60, %s10780_s24 }
 0x327   : > { %1653 = vrot.lane.b32.xlu1 %v8080_v45, %s10750_s25  ;;  %1319 = vrot.lane.b32.xlu0 %v8118_v62, %s10780_s24  ;;  %s10872_s24 = smov 80  }
 0x32b   : > { %1651 = vrot.lane.b32.xlu1 %v8078_v43, %s10750_s25  ;;  %1641 = vrot.lane.b32.xlu0 %v8094_v51, %s10752_s22  ;;  %s10756_s25 = smov 104  }
 0x32f   : > { %1989 = vrot.lane.b32.xlu1 %v8072_v40, %s10754_s26  ;;  %1643 = vrot.lane.b32.xlu0 %v8100_v53, %s10752_s22 }
 0x333   : > { %1987 = vrot.lane.b32.xlu1 %v8066_v33, %s10754_s26  ;;  %1645 = vrot.lane.b32.xlu0 %v8106_v57, %s10752_s22 }
 0x337   : > { %1985 = vrot.lane.b32.xlu1 %v8070_v38, %s10754_s26  ;;  %1647 = vrot.lane.b32.xlu0 %v8112_v60, %s10752_s22 }
 0x33b   : > { %1983 = vrot.lane.b32.xlu1 %v8080_v45, %s10754_s26  ;;  %1649 = vrot.lane.b32.xlu0 %v8118_v62, %s10752_s22  ;;  %s10778_s22 = smov 64  }
 0x33f   : > { %1981 = vrot.lane.b32.xlu1 %v8078_v43, %s10754_s26  ;;  %1971 = vrot.lane.b32.xlu0 %v8094_v51, %s10756_s25  ;;  %s10758_s26 = smov 56  }
 0x343   : > { %1973 = vrot.lane.b32.xlu1 %v8100_v53, %s10756_s25  ;;  %1975 = vrot.lane.b32.xlu0 %v8106_v57, %s10756_s25 }
 0x347   : > { %1977 = vrot.lane.b32.xlu1 %v8112_v60, %s10756_s25  ;;  %1979 = vrot.lane.b32.xlu0 %v8118_v62, %s10756_s25  ;;  %s10776_s25 = smov 48  }
 0x34b   : > { %1207 = vrot.lane.b32.xlu1 %v8072_v40, %s10778_s22  ;;  %1205 = vrot.lane.b32.xlu0 %v8066_v33, %s10778_s22 }
 0x34f   : > { %1203 = vrot.lane.b32.xlu1 %v8070_v38, %s10778_s22  ;;  %1201 = vrot.lane.b32.xlu0 %v8080_v45, %s10778_s22 }
 0x353   : > { %1545 = vrot.lane.b32.xlu1 %v8072_v40, %s10758_s26  ;;  %1199 = vrot.lane.b32.xlu0 %v8078_v43, %s10778_s22  ;;  %s10868_s22 = smov 96  }
 0x357   : > { %1541 = vrot.lane.b32.xlu1 %v8070_v38, %s10758_s26  ;;  %1543 = vrot.lane.b32.xlu0 %v8066_v33, %s10758_s26 }
 0x35b   : > { %1537 = vrot.lane.b32.xlu1 %v8078_v43, %s10758_s26  ;;  %1539 = vrot.lane.b32.xlu0 %v8080_v45, %s10758_s26  ;;  %s10774_s26 = smov 40  }
 0x35f   : > { %1871 = vrot.lane.b32.xlu1 %v8070_v38, %s10776_s25  ;;  %1875 = vrot.lane.b32.xlu0 %v8072_v40, %s10776_s25 }
 0x363   : > { %1869 = vrot.lane.b32.xlu1 %v8080_v45, %s10776_s25  ;;  %1873 = vrot.lane.b32.xlu0 %v8066_v33, %s10776_s25 }
 0x375   : > { %v987_v63 = vpop.permute.xlu1 %986 }
 0x376   : > { %v1016_v8 = vsel %vm990_vm5, %v987_v63, 0 }
 0x379   : > { %v985_v1 = vpop.permute.xlu1 %984  ;;  %v989_v2 = vpop.permute.xlu0 %988 }
 0x37a   : > { %v1019_v4 = vsel %vm990_vm5, %v989_v2, 0  ;;  %v1013_v36 = vsel %vm990_vm5, %v985_v1, 0 }
 0x37b   : > { %6357 = vmatpush3.bf16.xpose.msra.mxu0 %v1019_v4 }
 0x37c   : > { %6358 = vmatprep.subr.bf16.mxu0 %v10760_v0 }
 0x37d   : > { %v983_v23 = vpop.permute.xlu1 %982  ;;  %v981_v5 = vpop.permute.xlu0 %980 }
 0x37e   : > { %v1010_v20 = vsel %vm990_vm5, %v983_v23, 0  ;;  %v1007_v25 = vsel %vm990_vm5, %v981_v5, 0 }
 0x381   : > { %v1330_v30 = vpop.permute.xlu1 %1329  ;;  %v1328_v6 = vpop.permute.xlu0 %1327 }
 0x382   : > { %v1359_v26 = vsel %vm990_vm5, %v1330_v30, 0  ;;  %v1356_v41 = vsel %vm990_vm5, %v1328_v6, 0 }
 0x383   : > { %6359 = vmatpush3.bf16.xpose.msra.mxu0 %v1016_v8 }
 0x384   : > { %6360 = vmatprep.subr.bf16.mxu0 %v10760_v0 }
 0x385   : > { %v1326_v9 = vpop.permute.xlu1 %1325  ;;  %v1324_v10 = vpop.permute.xlu0 %1323 }
 0x386   : > { %v1353_v12 = vsel %vm990_vm5, %v1326_v9, 0  ;;  %v1350_v56 = vsel %vm990_vm5, %v1324_v10, 0 }
 0x389   : > { %v1322_v11 = vpop.permute.xlu1 %1321  ;;  %v8188_v13 = vpop.permute.xlu0 %1311 }
 0x38a   : > { %v1347_v1 = vsel %vm990_vm5, %v1322_v11, 0 }
 0x38b   : > { %6361 = vmatpush3.bf16.xpose.msra.mxu0 %v1013_v36 }
 0x38c   : > { %6362 = vmatprep.subr.bf16.mxu0 %v10760_v0 }
 0x38d   : > { %v8192_v14 = vpop.permute.xlu1 %1659  ;;  %v8194_v42 = vpop.permute.xlu0 %1313 }
 0x38e   : > { %v1689_v23 = vsel %vm990_vm5, %v8192_v14, 0 }
 0x391   : > { %v8196_v16 = vpop.permute.xlu1 %1657  ;;  %v8198_v18 = vpop.permute.xlu0 %1315 }
 0x392   : > { %v1686_v5 = vsel %vm990_vm5, %v8196_v16, 0 }
 0x393   : > { %6363 = vmatpush3.bf16.xpose.msra.mxu0 %v1010_v20 }
 0x394   : > { %6364 = vmatprep.subr.bf16.mxu0 %v10760_v0 }
 0x395   : > { %v8202_v21 = vpop.permute.xlu1 %1655  ;;  %v8204_v48 = vpop.permute.xlu0 %1317 }
 0x396   : > { %v1683_v30 = vsel %vm990_vm5, %v8202_v21, 0 }
 0x399   : > { %v8206_v22 = vpop.permute.xlu1 %1653  ;;  %v8208_v15 = vpop.permute.xlu0 %1319 }
 0x39a   : > { %v1680_v6 = vsel %vm990_vm5, %v8206_v22, 0 }
 0x39b   : > { %6365 = vmatpush3.bf16.xpose.msra.mxu0 %v1007_v25 }
 0x39c   : > { %6416 = vmatprep.subr.bf16.mxu0 %v10760_v0 }
 0x39d   : > { %v8212_v27 = vpop.permute.xlu1 %1651  ;;  %v8214_v3 = vpop.permute.xlu0 %1641 }
 0x39e   : > { %v1677_v8 = vsel %vm990_vm5, %v8212_v27, 0 }
 0x3a1   : > { %v8216_v28 = vpop.permute.xlu1 %1989  ;;  %v8218_v31 = vpop.permute.xlu0 %1643 }
 0x3a2   : > { %6367 = vmatmul.mubr.msk.bf16.vlgmr.msra.gmra.mxu0 %vm990_vm5, %v8094_v51  ;;  %v2019_v9 = vsel %vm990_vm5, %v8216_v28, 0 }
 0x3a3   : > { %6417 = vmatpush3.bf16.xpose.msra.mxu0 %v1359_v26  ;;  %6370 = vmatprep.mubr.msk.bf16.mxu0 %vm7721_vm1, %v10760_v0 }
 0x3a4   : > { %6418 = vmatprep.subr.bf16.mxu0 %v10760_v0 }
 0x3a5   : > { %v8226_v32 = vpop.permute.xlu1 %1987  ;;  %v8228_v35 = vpop.permute.xlu0 %1645 }
 0x3a6   : > { %v2016_v10 = vsel %vm990_vm5, %v8226_v32, 0 }
 0x3a9   : > { %v8230_v37 = vpop.permute.xlu1 %1985  ;;  %v8232_v7 = vpop.permute.xlu0 %1647 }
 0x3aa   : > { %6371 = vmatmul.mubr.msk.bf16.gmra.mxu0 %vm990_vm5, %v8100_v53  ;;  %v2013_v11 = vsel %vm990_vm5, %v8230_v37, 0 }
 0x3ab   : > { %6419 = vmatpush3.bf16.xpose.msra.mxu0 %v1356_v41  ;;  %6374 = vmatprep.mubr.msk.bf16.mxu0 %vm7721_vm1, %v10760_v0 }
 0x3ac   : > { %6420 = vmatprep.subr.bf16.mxu0 %v10760_v0 }
 0x3ad   : > { %v8240_v46 = vpop.permute.xlu1 %1983  ;;  %v8242_v47 = vpop.permute.xlu0 %1649 }
 0x3b1   : > { %v8244_v50 = vpop.permute.xlu1 %1981  ;;  %v8246_v51 = vpop.permute.xlu0 %1971 }
 0x3b2   : > { %6375 = vmatmul.mubr.msk.bf16.gmra.mxu0 %vm990_vm5, %v8106_v57  ;;  %v7732_v57 = vmov 0   ;;  %v2007_v36 = vsel %vm990_vm5, %v8244_v50, 0 }
 0x3b3   : > { %6421 = vmatpush3.bf16.xpose.msra.mxu0 %v1353_v12  ;;  %6378 = vmatprep.mubr.msk.bf16.mxu0 %vm7721_vm1, %v10760_v0  ;;  %v8263_v17 = vsel %vm1228_vm6, 65535, %v7732_v57 }
 0x3b4   : > { %6422 = vmatprep.subr.bf16.mxu0 %v10760_v0 }
 0x3b5   : > { %v8254_v52 = vpop.permute.xlu1 %1973  ;;  %v8256_v53 = vpop.permute.xlu0 %1975 }
 0x3b9   : > { %v8258_v55 = vpop.permute.xlu1 %1977  ;;  %v8268_v58 = vpop.permute.xlu0 %1979 }
 0x3ba   : > { %6379 = vmatmul.mubr.msk.bf16.gmra.mxu0 %vm990_vm5, %v8112_v60 }
 0x3bb   : > { %6423 = vmatpush3.bf16.xpose.msra.mxu0 %v1350_v56  ;;  %6382 = vmatprep.mubr.msk.bf16.mxu0 %vm7721_vm1, %v10760_v0 }
 0x3bc   : > { %6424 = vmatprep.subr.bf16.mxu0 %v10760_v0 }
 0x3bd   : > { %v1208_v61 = vpop.permute.xlu1 %1207  ;;  %v1206_v60 = vpop.permute.xlu0 %1205 }
 0x3be   : > { %v1232_v63 = vand.u32 %v8263_v17, %v1208_v61 }
 0x3c0   : > { %6387 = vmatpush3.bf16.msra.mxu1 %v1232_v63 }
 0x3c1   : > { %6388 = vmatprep.subr.bf16.mxu1 %v10760_v0  ;;  %v1204_v2 = vpop.permute.xlu1 %1203  ;;  %v1202_v4 = vpop.permute.xlu0 %1201 }
 0x3c2   : > { %6383 = vmatmul.mubr.msk.bf16.gmra.mxu0 %vm990_vm5, %v8118_v62 }
 0x3c3   : > { %6425 = vmatpush3.bf16.xpose.msra.mxu0 %v1347_v1  ;;  %6426 = vmatprep.mubr.msk.bf16.mxu0 %vm7721_vm1, %v10760_v0 }
 0x3c4   : > { %6389 = vmatpush3.bf16.msra.mxu1 %v1206_v60  ;;  %6476 = vmatprep.subr.bf16.mxu0 %v10760_v0 }
 0x3c5   : > { %6390 = vmatprep.subr.bf16.mxu1 %v10760_v0  ;;  %v1200_v62 = vpop.permute.xlu0 %1199 }
 0x3c8   : > { %6391 = vmatpush3.bf16.msra.mxu1 %v1204_v2 }
 0x3c9   : > { %6392 = vmatprep.subr.bf16.mxu1 %v10760_v0 }
 0x3ca   : > { %6427 = vmatmul.mubr.msk.bf16.vlgmr.msra.gmra.mxu0 %vm990_vm5, %v8188_v13  ;;  %v2010_v13 = vsel %vm990_vm5, %v8240_v46, 0 }
 0x3cb   : > { %6477 = vmatpush3.bf16.xpose.msra.mxu0 %v1689_v23  ;;  %6430 = vmatprep.mubr.msk.bf16.mxu0 %vm7721_vm1, %v10760_v0 }
 0x3cc   : > { %6393 = vmatpush3.bf16.msra.mxu1 %v1202_v4  ;;  %6478 = vmatprep.subr.bf16.mxu0 %v10760_v0 }
 0x3cd   : > { %6394 = vmatprep.subr.bf16.mxu1 %v10760_v0 }
 0x3d0   : > { %6395 = vmatpush3.bf16.msra.mxu1 %v1200_v62 }
 0x3d1   : > { %6446 = vmatprep.subr.bf16.mxu1 %v10760_v0 }
 0x3d2   : > { %6431 = vmatmul.mubr.msk.bf16.gmra.mxu0 %vm990_vm5, %v8194_v42 }
 0x3d3   : > { %6479 = vmatpush3.bf16.xpose.msra.mxu0 %v1686_v5  ;;  %6434 = vmatprep.mubr.msk.bf16.mxu0 %vm7721_vm1, %v10760_v0 }
 0x3d4   : > { %6480 = vmatprep.subr.bf16.mxu0 %v10760_v0 }
 0x3da   : > { %6435 = vmatmul.mubr.msk.bf16.gmra.mxu0 %vm990_vm5, %v8198_v18 }
 0x3db   : > { %6481 = vmatpush3.bf16.xpose.msra.mxu0 %v1683_v30  ;;  %6438 = vmatprep.mubr.msk.bf16.mxu0 %vm7721_vm1, %v10760_v0 }
 0x3dc   : > { %6482 = vmatprep.subr.bf16.mxu0 %v10760_v0 }
 0x3e2   : > { %6439 = vmatmul.mubr.msk.bf16.gmra.mxu0 %vm990_vm5, %v8204_v48 }
 0x3e3   : > { %6483 = vmatpush3.bf16.xpose.msra.mxu0 %v1680_v6  ;;  %6442 = vmatprep.mubr.msk.bf16.mxu0 %vm7721_vm1, %v10760_v0 }
 0x3e4   : > { %6484 = vmatprep.subr.bf16.mxu0 %v10760_v0 }
 0x3ea   : > { %6443 = vmatmul.mubr.msk.bf16.gmra.mxu0 %vm990_vm5, %v8208_v15 }
 0x3eb   : > { %6485 = vmatpush3.bf16.xpose.msra.mxu0 %v1677_v8  ;;  %6486 = vmatprep.mubr.msk.bf16.mxu0 %vm7721_vm1, %v10760_v0 }
 0x3ec   : > { %6536 = vmatprep.subr.bf16.mxu0 %v10760_v0 }
 0x3f2   : > { %6487 = vmatmul.mubr.msk.bf16.vlgmr.msra.gmra.mxu0 %vm990_vm5, %v8214_v3 }
 0x3f3   : > { %6537 = vmatpush3.bf16.xpose.msra.mxu0 %v2019_v9  ;;  %6490 = vmatprep.mubr.msk.bf16.mxu0 %vm7721_vm1, %v10760_v0 }
 0x3f4   : > { %6538 = vmatprep.subr.bf16.mxu0 %v10760_v0 }
 0x3fa   : > { %6491 = vmatmul.mubr.msk.bf16.gmra.mxu0 %vm990_vm5, %v8218_v31 }
 0x3fb   : > { %6539 = vmatpush3.bf16.xpose.msra.mxu0 %v2016_v10  ;;  %6494 = vmatprep.mubr.msk.bf16.mxu0 %vm7721_vm1, %v10760_v0 }
 0x3fc   : > { %6540 = vmatprep.subr.bf16.mxu0 %v10760_v0 }
 0x402   : > { %6495 = vmatmul.mubr.msk.bf16.gmra.mxu0 %vm990_vm5, %v8228_v35 }
 0x403   : > { %6541 = vmatpush3.bf16.xpose.msra.mxu0 %v2013_v11  ;;  %6498 = vmatprep.mubr.msk.bf16.mxu0 %vm7721_vm1, %v10760_v0 }
 0x404   : > { %6542 = vmatprep.subr.bf16.mxu0 %v10760_v0 }
 0x40a   : > { %6499 = vmatmul.mubr.msk.bf16.gmra.mxu0 %vm990_vm5, %v8232_v7 }
 0x40b   : > { %6543 = vmatpush3.bf16.xpose.msra.mxu0 %v2010_v13  ;;  %6502 = vmatprep.mubr.msk.bf16.mxu0 %vm7721_vm1, %v10760_v0 }
 0x40c   : > { %6544 = vmatprep.subr.bf16.mxu0 %v10760_v0 }
 0x412   : > { %6503 = vmatmul.mubr.msk.bf16.gmra.mxu0 %vm990_vm5, %v8242_v47 }
 0x413   : > { %6545 = vmatpush3.bf16.xpose.msra.mxu0 %v2007_v36  ;;  %6546 = vmatprep.mubr.msk.bf16.mxu0 %vm7721_vm1, %v10760_v0 }
 0x414   : > { %6596 = vmatprep.subr.bf16.mxu0 %v10760_v0 }
 0x41a   : > { %6547 = vmatmul.mubr.msk.bf16.vlgmr.msra.gmra.mxu0 %vm990_vm5, %v8246_v51 }
 0x41b   : > { %6550 = vmatprep.mubr.msk.bf16.mxu0 %vm7721_vm1, %v10760_v0 }
 0x422   : > { %6551 = vmatmul.mubr.msk.bf16.gmra.mxu0 %vm990_vm5, %v8254_v52 }
 0x423   : > { %6554 = vmatprep.mubr.msk.bf16.mxu0 %vm7721_vm1, %v10760_v0 }
 0x42a   : > { %6555 = vmatmul.mubr.msk.bf16.gmra.mxu0 %vm990_vm5, %v8256_v53 }
 0x42b   : > { %6558 = vmatprep.mubr.msk.bf16.mxu0 %vm7721_vm1, %v10760_v0 }
 0x432   : > { %6559 = vmatmul.mubr.msk.bf16.gmra.mxu0 %vm990_vm5, %v8258_v55 }
 0x433   : > { %6562 = vmatprep.mubr.msk.bf16.mxu0 %vm7721_vm1, %v10760_v0 }
 0x43a   : > { %6563 = vmatmul.mubr.msk.bf16.gmra.mxu0 %vm990_vm5, %v8268_v58 }
 0x43b   : > { %6600 = vmatprep.mubr.msk.bf16.mxu0 %vm7721_vm1, %v10760_v0 }
 0x462   : > { %v8372_v14 = vpop.f32.mrf.mxu0 }
 0x463   : > { %v1094_v42 = vsel %vm1093_vm7, %v8372_v14, -inf }
 0x464   : > { %1095 = vmax.xlane.f32.xlu1 %v1094_v42  ;;  %v6368_v16 = vpop.f32.mrf.mxu0 }
 0x466   : > { %v8376_v18 = vpop.f32.mrf.mxu0 }
 0x467   : > { %v1097_v20 = vsel %vm1093_vm7, %v8376_v18, -inf }
 0x468   : > { %1098 = vmax.xlane.f32.xlu0 %v1097_v20  ;;  %v6369_v21 = vpop.f32.mrf.mxu0 }
 0x46a   : > { %v8380_v48 = vpop.f32.mrf.mxu0 }
 0x46b   : > { %v1100_v22 = vsel %vm1093_vm7, %v8380_v48, -inf }
 0x46c   : > { %1101 = vmax.xlane.f32.xlu0 %v1100_v22  ;;  %v6372_v15 = vpop.f32.mrf.mxu0 }
 0x46e   : > { %v8384_v25 = vpop.f32.mrf.mxu0 }
 0x46f   : > { %v1103_v27 = vsel %vm1093_vm7, %v8384_v25, -inf }
 0x470   : > { %1104 = vmax.xlane.f32.xlu0 %v1103_v27  ;;  %v6373_v3 = vpop.f32.mrf.mxu0 }
 0x472   : > { %v8388_v28 = vpop.f32.mrf.mxu0 }
 0x473   : > { %v1106_v31 = vsel %vm1093_vm7, %v8388_v28, -inf }
 0x474   : > { %1107 = vmax.xlane.f32.xlu1 %v1106_v31  ;;  %v6376_v26 = vpop.f32.mrf.mxu0 }
 0x476   : > { %v8392_v32 = vpop.f32.mrf.mxu0 }
 0x477   : > { %v1109_v35 = vsel %vm1093_vm7, %v8392_v32, -inf }
 0x478   : > { %1110 = vmax.xlane.f32.xlu0 %v1109_v35  ;;  %v6377_v37 = vpop.f32.mrf.mxu0 }
 0x47a   : > { %v8396_v7 = vpop.f32.mrf.mxu0 }
 0x47b   : > { %v1112_v41 = vsel %vm1093_vm7, %v8396_v7, -inf }
 0x47c   : > { %1113 = vmax.xlane.f32.xlu1 %v1112_v41  ;;  %v6380_v46 = vpop.f32.mrf.mxu0 }
 0x47e   : > { %v8400_v47 = vpop.f32.mrf.mxu0 }
 0x47f   : > { %v1115_v50 = vsel %vm1093_vm7, %v8400_v47, -inf }
 0x480   : > { %1116 = vmax.xlane.f32.xlu0 %v1115_v50  ;;  %v6381_v51 = vpop.f32.mrf.mxu0 }
 0x482   : > { %v8404_v12 = vpop.f32.mrf.mxu0 }
 0x483   : > { %v1119_v36 = vsel %vm1118_vm8, %v8404_v12, -inf }
 0x484   : > { %v6384_v52 = vpop.f32.mrf.mxu0 }
 0x486   : > { %v1090_v53 = vpop.f32.mrf.mxu0 }
 0x488   : > { %v6385_v55 = vpop.f32.mrf.mxu0 }
 0x48a   : > { %v8406_v56 = vpop.f32.mrf.mxu0 }
 0x48b   : > { %v1433_v20 = vsel %vm1093_vm7, %v8406_v56, -inf }
 0x48c   : > { %v6428_v57 = vpop.f32.mrf.mxu0 }
 0x48d   : > { %2205 = vrot.lane.b32.xlu1 %v8072_v40, %s10774_s26 }
 0x48e   : > { %v8410_v58 = vpop.f32.mrf.mxu0 }
 0x48f   : > { %v1436_v21 = vsel %vm1093_vm7, %v8410_v58, -inf }
 0x490   : > { %v6429_v61 = vpop.f32.mrf.mxu0 }
 0x492   : > { %v8412_v63 = vpop.f32.mrf.mxu0 }
 0x493   : > { %v1439_v27 = vsel %vm1093_vm7, %v8412_v63, -inf }
 0x494   : > { %v6432_v1 = vpop.f32.mrf.mxu0 }
 0x496   : > { %1867 = vrot.lane.b32.xlu0 %v8078_v43, %s10776_s25  ;;  %v8416_v60 = vpop.f32.mrf.mxu0  ;;  %s10786_s25 = smov 16  }
 0x497   : > { %v1442_v3 = vsel %vm1093_vm7, %v8416_v60, -inf }
 0x498   : > { %v6433_v2 = vpop.f32.mrf.mxu0 }
 0x49a   : > { %v8418_v4 = vpop.f32.mrf.mxu0 }
 0x49b   : > { %v1445_v35 = vsel %vm1093_vm7, %v8418_v4, -inf }
 0x49c   : > { %v6436_v23 = vpop.f32.mrf.mxu0 }
 0x49e   : > { %v8420_v62 = vpop.f32.mrf.mxu0 }
 0x49f   : > { %v1448_v37 = vsel %vm1093_vm7, %v8420_v62, -inf }
 0x4a0   : > { %v6437_v5 = vpop.f32.mrf.mxu0 }
 0x4a2   : > { %v8422_v30 = vpop.f32.mrf.mxu0 }
 0x4a3   : > { %v1451_v50 = vsel %vm1093_vm7, %v8422_v30, -inf }
 0x4a4   : > { %v6440_v40 = vpop.f32.mrf.mxu0 }
 0x4a6   : > { %v8424_v6 = vpop.f32.mrf.mxu0 }
 0x4a7   : > { %v1454_v51 = vsel %vm1093_vm7, %v8424_v6, -inf }
 0x4a8   : > { %v6441_v8 = vpop.f32.mrf.mxu0 }
 0x4aa   : > { %v8426_v9 = vpop.f32.mrf.mxu0 }
 0x4ab   : > { %v1457_v55 = vsel %vm1118_vm8, %v8426_v9, -inf }
 0x4ac   : > { %v6444_v10 = vpop.f32.mrf.mxu0 }
 0x4ae   : > { %v1430_v11 = vpop.f32.mrf.mxu0 }
 0x4b0   : > { %v6445_v13 = vpop.f32.mrf.mxu0 }
 0x4b1   : > { %1120 = vmax.xlane.f32.xlu1 %v1119_v36 }
 0x4b2   : > { %v8430_v42 = vpop.f32.mrf.mxu0 }
 0x4b3   : > { %v1763_v57 = vsel %vm1093_vm7, %v8430_v42, -inf }
 0x4b4   : > { %v6488_v16 = vpop.f32.mrf.mxu0 }
 0x4b5   : > { %1434 = vmax.xlane.f32.xlu0 %v1433_v20  ;;  %1437 = vmax.xlane.f32.xlu1 %v1436_v21  ;;  %v8478_v20 = vpop.permute.xlu1 %1545 }
 0x4b6   : > { %v8436_v22 = vpop.f32.mrf.mxu0 }
 0x4b7   : > { %v1766_v2 = vsel %vm1093_vm7, %v8436_v22, -inf }
 0x4b8   : > { %v6489_v15 = vpop.f32.mrf.mxu0 }
 0x4b9   : > { %1440 = vmax.xlane.f32.xlu0 %v1439_v27  ;;  %1443 = vmax.xlane.f32.xlu1 %v1442_v3 }
 0x4ba   : > { %v8442_v31 = vpop.f32.mrf.mxu0 }
 0x4bb   : > { %v1769_v23 = vsel %vm1093_vm7, %v8442_v31, -inf }
 0x4bc   : > { %v6492_v26 = vpop.f32.mrf.mxu0 }
 0x4bd   : > { %1446 = vmax.xlane.f32.xlu0 %v1445_v35  ;;  %1449 = vmax.xlane.f32.xlu1 %v1448_v37  ;;  %v8486_v35 = vpop.permute.xlu1 %1541 }
 0x4be   : > { %v8448_v41 = vpop.f32.mrf.mxu0 }
 0x4bf   : > { %v1772_v8 = vsel %vm1093_vm7, %v8448_v41, -inf }
 0x4c0   : > { %v6493_v46 = vpop.f32.mrf.mxu0 }
 0x4c1   : > { %1452 = vmax.xlane.f32.xlu0 %v1451_v50  ;;  %1455 = vmax.xlane.f32.xlu1 %v1454_v51  ;;  %v8490_v50 = vpop.permute.xlu0 %1543 }
 0x4c2   : > { %v8454_v52 = vpop.f32.mrf.mxu0 }
 0x4c3   : > { %v1775_v10 = vsel %vm1093_vm7, %v8454_v52, -inf }
 0x4c4   : > { %v6496_v53 = vpop.f32.mrf.mxu0 }
 0x4c5   : > { %1458 = vmax.xlane.f32.xlu0 %v1457_v55  ;;  %1764 = vmax.xlane.f32.xlu1 %v1763_v57  ;;  %v8494_v55 = vpop.permute.xlu1 %1537 }
 0x4c6   : > { %v8460_v61 = vpop.f32.mrf.mxu0 }
 0x4c7   : > { %v1778_v36 = vsel %vm1093_vm7, %v8460_v61, -inf }
 0x4c8   : > { %v6497_v1 = vpop.f32.mrf.mxu0 }
 0x4c9   : > { %1767 = vmax.xlane.f32.xlu0 %v1766_v2  ;;  %1770 = vmax.xlane.f32.xlu1 %v1769_v23  ;;  %v8500_v23 = vpop.permute.xlu0 %1539 }
 0x4ca   : > { %v8466_v5 = vpop.f32.mrf.mxu0 }
 0x4cb   : > { %v1781_v16 = vsel %vm1093_vm7, %v8466_v5, -inf }
 0x4cc   : > { %v6500_v40 = vpop.f32.mrf.mxu0 }
 0x4cd   : > { %1773 = vmax.xlane.f32.xlu0 %v1772_v8  ;;  %1776 = vmax.xlane.f32.xlu1 %v1775_v10  ;;  %v8504_v8 = vpop.permute.xlu1 %1871 }
 0x4ce   : > { %v8472_v11 = vpop.f32.mrf.mxu0  ;;  %10832 = vst [vmem:[#allocation15_spill] sm:$0xff] %v8504_v8 }
 0x4cf   : > { %v1784_v3 = vsel %vm1093_vm7, %v8472_v11, -inf }
 0x4d0   : > { %v6501_v13 = vpop.f32.mrf.mxu0 }
 0x4d1   : > { %1779 = vmax.xlane.f32.xlu0 %v1778_v36  ;;  %1782 = vmax.xlane.f32.xlu1 %v1781_v16  ;;  %v8510_v16 = vpop.permute.xlu0 %1875 }
 0x4d2   : > { %v8480_v21 = vpop.f32.mrf.mxu0 }
 0x4d3   : > { %v1787_v15 = vsel %vm1118_vm8, %v8480_v21, -inf }
 0x4d4   : > { %v6504_v27 = vpop.f32.mrf.mxu0 }
 0x4d5   : > { %1785 = vmax.xlane.f32.xlu0 %v1784_v3  ;;  %1788 = vmax.xlane.f32.xlu1 %v1787_v15  ;;  %v8514_v3 = vpop.permute.xlu1 %1869 }
 0x4d6   : > { %v1760_v26 = vpop.f32.mrf.mxu0  ;;  %10833 = vst [vmem:[#allocation16_spill] sm:$0xff] %v8514_v3 }
 0x4d8   : > { %v6505_v37 = vpop.f32.mrf.mxu0 }
 0x4da   : > { %v8488_v46 = vpop.f32.mrf.mxu0 }
 0x4db   : > { %v2093_v51 = vsel %vm1093_vm7, %v8488_v46, -inf }
 0x4dc   : > { %2094 = vmax.xlane.f32.xlu1 %v2093_v51  ;;  %v6548_v53 = vpop.f32.mrf.mxu0 }
 0x4dd   : > { %v8520_v53 = vpop.permute.xlu0 %1873 }
 0x4de   : > { %v8496_v57 = vpop.f32.mrf.mxu0  ;;  %10834 = vst [vmem:[#allocation17_spill] sm:$0xff] %v8520_v53 }
 0x4df   : > { %v2096_v1 = vsel %vm1093_vm7, %v8496_v57, -inf }
 0x4e0   : > { %2097 = vmax.xlane.f32.xlu1 %v2096_v1  ;;  %v6549_v2 = vpop.f32.mrf.mxu0 }
 0x4e2   : > { %v8502_v40 = vpop.f32.mrf.mxu0 }
 0x4e3   : > { %v2099_v10 = vsel %vm1093_vm7, %v8502_v40, -inf }
 0x4e4   : > { %2100 = vmax.xlane.f32.xlu1 %v2099_v10  ;;  %v6552_v13 = vpop.f32.mrf.mxu0 }
 0x4e6   : > { %v8508_v36 = vpop.f32.mrf.mxu0 }
 0x4e7   : > { %v2102_v15 = vsel %vm1093_vm7, %v8508_v36, -inf }
 0x4e8   : > { %2103 = vmax.xlane.f32.xlu1 %v2102_v15  ;;  %v6553_v27 = vpop.f32.mrf.mxu0 }
 0x4ea   : > { %v8516_v26 = vpop.f32.mrf.mxu0 }
 0x4eb   : > { %v2105_v37 = vsel %vm1093_vm7, %v8516_v26, -inf }
 0x4ec   : > { %2106 = vmax.xlane.f32.xlu1 %v2105_v37  ;;  %v6556_v51 = vpop.f32.mrf.mxu0 }
 0x4ed   : > { %v1096_v1 = vpop.xlane.xlu1 %1095 }
 0x4ee   : > { %v1122_v2 = vsub.f32 %v8372_v14, %v1096_v1  ;;  %v8523_v10 = vpop.f32.mrf.mxu0 }
 0x4ef   : > { %v2108_v13 = vsel %vm1093_vm7, %v8523_v10, -inf }
 0x4f0   : > { %v1131_v15 = vmul.f32 1.442695, %v1122_v2  ;;  %2109 = vmax.xlane.f32.xlu1 %v2108_v13  ;;  %v6557_v27 = vpop.f32.mrf.mxu0 }
 0x4f1   : > { %v1099_v0 = vpop.xlane.xlu0 %1098 }
 0x4f2   : > { %7242 = vpow2.f32 %v1131_v15  ;;  %v1123_v54 = vsub.f32 %v8376_v18, %v1099_v0  ;;  %v8528_v59 = vpop.f32.mrf.mxu0 }
 0x4f3   : > { %v2111_v37 = vsel %vm1093_vm7, %v8528_v59, -inf }
 0x4f4   : > { %v1133_v51 = vmul.f32 1.442695, %v1123_v54  ;;  %2112 = vmax.xlane.f32.xlu1 %v2111_v37  ;;  %v6560_v14 = vpop.f32.mrf.mxu0 }
 0x4f5   : > { %v1102_v1 = vpop.xlane.xlu0 %1101 }
 0x4f6   : > { %7244 = vpow2.f32 %v1133_v51  ;;  %v1124_v49 = vsub.f32 %v8380_v48, %v1102_v1  ;;  %v8533_v44 = vpop.f32.mrf.mxu0 }
 0x4f7   : > { %v2114_v2 = vsel %vm1093_vm7, %v8533_v44, -inf }
 0x4f8   : > { %v1135_v13 = vmul.f32 1.442695, %v1124_v49  ;;  %2115 = vmax.xlane.f32.xlu0 %v2114_v2  ;;  %v6561_v0 = vpop.f32.mrf.mxu0 }
 0x4f9   : > { %v1105_v18 = vpop.xlane.xlu0 %1104 }
 0x4fa   : > { %7246 = vpow2.f32 %v1135_v13  ;;  %v1125_v15 = vsub.f32 %v8384_v25, %v1105_v18  ;;  %v8538_v27 = vpop.f32.mrf.mxu0 }
 0x4fb   : > { %v2117_v54 = vsel %vm1118_vm8, %v8538_v27, -inf }
 0x4fc   : > { %v1137_v37 = vmul.f32 1.442695, %v1125_v15  ;;  %2118 = vmax.xlane.f32.xlu0 %v2117_v54  ;;  %v6564_v48 = vpop.f32.mrf.mxu0 }
 0x4fd   : > { %v1108_v51 = vpop.xlane.xlu1 %1107 }
 0x4fe   : > { %7248 = vpow2.f32 %v1137_v37  ;;  %v1126_v14 = vsub.f32 %v8388_v28, %v1108_v51  ;;  %v2090_v1 = vpop.f32.mrf.mxu0 }
 0x4ff   : > { %v8543_v49 = vpop.eup %7242 }
 0x500   : > { %v1139_v2 = vmul.f32 1.442695, %v1126_v14  ;;  %v6565_v0 = vpop.f32.mrf.mxu0  ;;  %v1149_v25 = vsel %vm1093_vm7, %v8543_v49, 0.0 }
 0x501   : > { %v1111_v13 = vpop.xlane.xlu0 %1110  ;;  %1150 = vadd.xlane.f32.xlu1 %v1149_v25 }
 0x502   : > { %7250 = vpow2.f32 %v1139_v2  ;;  %v1127_v18 = vsub.f32 %v8392_v32, %v1111_v13 }
 0x503   : > { %v8548_v15 = vpop.eup %7244 }
 0x504   : > { %v1141_v54 = vmul.f32 1.442695, %v1127_v18  ;;  %v1152_v37 = vsel %vm1093_vm7, %v8548_v15, 0.0 }
 0x505   : > { %v1114_v28 = vpop.xlane.xlu1 %1113  ;;  %1153 = vadd.xlane.f32.xlu0 %v1152_v37 }
 0x506   : > { %7252 = vpow2.f32 %v1141_v54  ;;  %v1128_v48 = vsub.f32 %v8396_v7, %v1114_v28 }
 0x507   : > { %v8553_v51 = vpop.eup %7246 }
 0x508   : > { %v1143_v14 = vmul.f32 1.442695, %v1128_v48  ;;  %v1155_v1 = vsel %vm1093_vm7, %v8553_v51, 0.0 }
 0x509   : > { %v1117_v2 = vpop.xlane.xlu0 %1116  ;;  %1156 = vadd.xlane.f32.xlu1 %v1155_v1  ;;  %v8578_v1 = vpop.permute.xlu1 %2205 }
 0x50a   : > { %7254 = vpow2.f32 %v1143_v14  ;;  %v1129_v32 = vsub.f32 %v8400_v47, %v1117_v2  ;;  %10835 = vst [vmem:[#allocation18_spill] sm:$0xff] %v8578_v1 }
 0x50b   : > { %v8558_v0 = vpop.eup %7248 }
 0x50c   : > { %v1145_v25 = vmul.f32 1.442695, %v1129_v32  ;;  %v1158_v13 = vsel %vm1093_vm7, %v8558_v0, 0.0 }
 0x50d   : > { %1159 = vadd.xlane.f32.xlu0 %v1158_v13  ;;  %v8580_v2 = vpop.permute.xlu0 %1867 }
 0x50e   : > { %7256 = vpow2.f32 %v1145_v25  ;;  %10836 = vst [vmem:[#allocation19_spill] sm:$0xff] %v8580_v2 }
 0x50f   : > { %v8562_v7 = vpop.eup %7250 }
 0x510   : > { %v1161_v18 = vsel %vm1093_vm7, %v8562_v7, 0.0 }
 0x511   : > { %1162 = vadd.xlane.f32.xlu1 %v1161_v18 }
 0x513   : > { %v8566_v54 = vpop.eup %7252 }
 0x514   : > { %v1164_v37 = vsel %vm1093_vm7, %v8566_v54, 0.0 }
 0x515   : > { %1165 = vadd.xlane.f32.xlu0 %v1164_v37 }
 0x517   : > { %v8570_v47 = vpop.eup %7254 }
 0x518   : > { %v1167_v28 = vsel %vm1093_vm7, %v8570_v47, 0.0 }
 0x519   : > { %1168 = vadd.xlane.f32.xlu0 %v1167_v28 }
 0x51b   : > { %v8574_v48 = vpop.eup %7256 }
 0x51c   : > { %v1170_v14 = vsel %vm1093_vm7, %v8574_v48, 0.0 }
 0x51d   : > { %1171 = vadd.xlane.f32.xlu1 %v1170_v14 }
 0x53a   : > { %v1121_v32 = vpop.xlane.xlu1 %1120 }
 0x53b   : > { %v1130_v25 = vsub.f32 %v8404_v12, %v1121_v32 }
 0x53d   : > { %v1147_v13 = vmul.f32 1.442695, %v1130_v25 }
 0x53e   : > { %v1435_v18 = vpop.xlane.xlu0 %1434  ;;  %v1438_v37 = vpop.xlane.xlu1 %1437 }
 0x53f   : > { %7258 = vpow2.f32 %v1147_v13  ;;  %v1460_v39 = vsub.f32 %v8406_v56, %v1435_v18  ;;  %v1461_v28 = vsub.f32 %v8410_v58, %v1438_v37 }
 0x541   : > { %v1469_v34 = vmul.f32 1.442695, %v1460_v39  ;;  %v1471_v29 = vmul.f32 1.442695, %v1461_v28 }
 0x542   : > { %v1441_v24 = vpop.xlane.xlu0 %1440  ;;  %v1444_v19 = vpop.xlane.xlu1 %1443 }
 0x543   : > { %7260 = vpow2.f32 %v1469_v34  ;;  %v1462_v14 = vsub.f32 %v8412_v63, %v1441_v24  ;;  %v1463_v1 = vsub.f32 %v8416_v60, %v1444_v19 }
 0x544   : > { %7262 = vpow2.f32 %v1471_v29 }
 0x545   : > { %v1473_v2 = vmul.f32 1.442695, %v1462_v14  ;;  %v1475_v12 = vmul.f32 1.442695, %v1463_v1 }
 0x546   : > { %v1447_v32 = vpop.xlane.xlu0 %1446  ;;  %v1450_v25 = vpop.xlane.xlu1 %1449 }
 0x547   : > { %7264 = vpow2.f32 %v1473_v2  ;;  %v1464_v13 = vsub.f32 %v8418_v4, %v1447_v32  ;;  %v1465_v39 = vsub.f32 %v8420_v62, %v1450_v25 }
 0x548   : > { %7266 = vpow2.f32 %v1475_v12 }
 0x549   : > { %v1477_v56 = vmul.f32 1.442695, %v1464_v13  ;;  %v1479_v24 = vmul.f32 1.442695, %v1465_v39 }
 0x54a   : > { %v1453_v58 = vpop.xlane.xlu0 %1452  ;;  %v1456_v18 = vpop.xlane.xlu1 %1455 }
 0x54b   : > { %7268 = vpow2.f32 %v1477_v56  ;;  %v1466_v19 = vsub.f32 %v8422_v30, %v1453_v58 }
 0x54c   : > { %v8589_v37 = vpop.eup %7258  ;;  %7270 = vpow2.f32 %v1479_v24 }
 0x54d   : > { %v1173_v29 = vsel %vm1118_vm8, %v8589_v37, 0.0  ;;  %v1481_v4 = vmul.f32 1.442695, %v1466_v19 }
 0x54e   : > { %v1765_v34 = vpop.xlane.xlu1 %1764  ;;  %1174 = vadd.xlane.f32.xlu1 %v1173_v29 }
 0x54f   : > { %7272 = vpow2.f32 %v1481_v4 }
 0x550   : > { %v8594_v63 = vpop.eup %7260 }
 0x551   : > { %v8596_v60 = vpop.eup %7262  ;;  %v1487_v62 = vsel %vm1093_vm7, %v8594_v63, 0.0 }
 0x552   : > { %v1771_v1 = vpop.xlane.xlu1 %1770  ;;  %1488 = vadd.xlane.f32.xlu1 %v1487_v62  ;;  %v1490_v2 = vsel %vm1093_vm7, %v8596_v60, 0.0  ;;  %v1459_v62 = vpop.xlane.xlu0 %1458 }
 0x553   : > { %1491 = vadd.xlane.f32.xlu0 %v1490_v2 }
 0x554   : > { %v8602_v30 = vpop.eup %7264 }
 0x555   : > { %v1493_v28 = vsel %vm1093_vm7, %v8602_v30, 0.0  ;;  %v8606_v14 = vpop.eup %7266 }
 0x556   : > { %v1777_v12 = vpop.xlane.xlu1 %1776  ;;  %1494 = vadd.xlane.f32.xlu1 %v1493_v28  ;;  %v1496_v32 = vsel %vm1093_vm7, %v8606_v14, 0.0  ;;  %v1768_v28 = vpop.xlane.xlu0 %1767 }
 0x558   : > { %v8610_v25 = vpop.eup %7268 }
 0x559   : > { %10837 = vst [vmem:[#allocation20_spill] sm:$0xff] %v8610_v25  ;;  %v1499_v56 = vsel %vm1093_vm7, %v8610_v25, 0.0  ;;  %v8616_v39 = vpop.eup %7270 }
 0x55a   : > { %1497 = vadd.xlane.f32.xlu1 %v1496_v32  ;;  %v8612_v13 = vpop.xlane.xlu1 %1782  ;;  %10838 = vst [vmem:[#allocation21_spill] sm:$0xff] %v8616_v39  ;;  %v1502_v24 = vsel %vm1093_vm7, %v8616_v39, 0.0  ;;  %v1774_v25 = vpop.xlane.xlu0 %1773 }
 0x55c   : > { %v8622_v19 = vpop.eup %7272 }
 0x55d   : > { %10839 = vst [vmem:[#allocation22_spill] sm:$0xff] %v8622_v19  ;;  %v1505_v4 = vsel %vm1093_vm7, %v8622_v19, 0.0 }
 0x55e   : > { %1500 = vadd.xlane.f32.xlu1 %v1499_v56  ;;  %v8618_v58 = vpop.xlane.xlu1 %1788  ;;  %v1467_v56 = vsub.f32 %v8424_v6, %v1456_v18  ;;  %v1791_v6 = vsub.f32 %v8436_v22, %v1768_v28 }
 0x560   : > { %v1483_v3 = vmul.f32 1.442695, %v1467_v56  ;;  %v1801_v18 = vmul.f32 1.442695, %v1791_v6 }
 0x562   : > { %1503 = vadd.xlane.f32.xlu1 %v1502_v24  ;;  %v1468_v24 = vsub.f32 %v8426_v9, %v1459_v62  ;;  %7274 = vpow2.f32 %v1483_v3  ;;  %v1793_v9 = vsub.f32 %v8448_v41, %v1774_v25  ;;  %v1792_v3 = vsub.f32 %v8442_v31, %v1771_v1 }
 0x564   : > { %v1485_v19 = vmul.f32 1.442695, %v1468_v24 }
 0x565   : > { %v8624_v29 = vpop.xlane.xlu1 %2094 }
 0x566   : > { %1506 = vadd.xlane.f32.xlu1 %v1505_v4  ;;  %v1790_v4 = vsub.f32 %v8430_v42, %v1765_v34  ;;  %7276 = vpow2.f32 %v1485_v19  ;;  %v1805_v42 = vmul.f32 1.442695, %v1793_v9  ;;  %v1794_v34 = vsub.f32 %v8454_v52, %v1777_v12 }
 0x567   : > { %v1796_v52 = vsub.f32 %v8466_v5, %v8612_v13 }
 0x568   : > { %v1799_v53 = vmul.f32 1.442695, %v1790_v4  ;;  %v1803_v4 = vmul.f32 1.442695, %v1792_v3  ;;  %v1807_v41 = vmul.f32 1.442695, %v1794_v34 }
 0x569   : > { %2203 = vrot.lane.b32.xlu0 %v8066_v33, %s10774_s26  ;;  %v8630_v2 = vpop.xlane.xlu1 %2097  ;;  %v1780_v33 = vpop.xlane.xlu0 %1779  ;;  %v1811_v5 = vmul.f32 1.442695, %v1796_v52 }
 0x56a   : > { %7278 = vpow2.f32 %v1799_v53  ;;  %v1795_v24 = vsub.f32 %v8460_v61, %v1780_v33 }
 0x56b   : > { %7280 = vpow2.f32 %v1801_v18  ;;  %v2120_v18 = vsub.f32 %v8488_v46, %v8624_v29  ;;  %v2121_v46 = vsub.f32 %v8496_v57, %v8630_v2 }
 0x56c   : > { %7282 = vpow2.f32 %v1805_v42  ;;  %v1809_v25 = vmul.f32 1.442695, %v1795_v24 }
 0x56d   : > { %v8632_v32 = vpop.xlane.xlu1 %2100  ;;  %v1786_v62 = vpop.xlane.xlu0 %1785  ;;  %7284 = vpow2.f32 %v1803_v4  ;;  %v2129_v3 = vmul.f32 1.442695, %v2120_v18  ;;  %v2131_v34 = vmul.f32 1.442695, %v2121_v46 }
 0x56e   : > { %v1797_v22 = vsub.f32 %v8472_v11, %v1786_v62  ;;  %7286 = vpow2.f32 %v1807_v41  ;;  %v1798_v11 = vsub.f32 %v8480_v21, %v8618_v58  ;;  %v2122_v24 = vsub.f32 %v8502_v40, %v8632_v32 }
 0x56f   : > { %7288 = vpow2.f32 %v1809_v25 }
 0x570   : > { %v1813_v61 = vmul.f32 1.442695, %v1797_v22  ;;  %v1815_v62 = vmul.f32 1.442695, %v1798_v11  ;;  %v2133_v25 = vmul.f32 1.442695, %v2122_v24 }
 0x571   : > { %v8636_v39 = vpop.xlane.xlu1 %2103 }
 0x572   : > { %v2123_v52 = vsub.f32 %v8508_v36, %v8636_v39 }
 0x575   : > { %v8641_v8 = vpop.xlane.xlu1 %2106 }
 0x576   : > { %v2124_v36 = vsub.f32 %v8516_v26, %v8641_v8 }
 0x577   : > { %2201 = vrot.lane.b32.xlu1 %v8070_v38, %s10774_s26  ;;  %v8647_v38 = vpop.eup %7274 }
 0x578   : > { %v1508_v31 = vsel %vm1093_vm7, %v8647_v38, 0.0  ;;  %v8657_v1 = vpop.eup %7276  ;;  %v2137_v26 = vmul.f32 1.442695, %v2124_v36 }
 0x579   : > { %v2110_v56 = vpop.xlane.xlu1 %2109  ;;  %v1511_v33 = vsel %vm1118_vm8, %v8657_v1, 0.0  ;;  %v8667_v6 = vpop.eup %7278 }
 0x57a   : > { %v2125_v13 = vsub.f32 %v8523_v10, %v2110_v56  ;;  %v1817_v21 = vsel %vm1093_vm7, %v8667_v6, 0.0  ;;  %v8674_v58 = vpop.eup %7280 }
 0x57b   : > { %v1820_v10 = vsel %vm1093_vm7, %v8674_v58, 0.0  ;;  %v8680_v56 = vpop.eup %7282 }
 0x57c   : > { %v2139_v29 = vmul.f32 1.442695, %v2125_v13  ;;  %v8684_v22 = vpop.eup %7284  ;;  %v1826_v57 = vsel %vm1093_vm7, %v8680_v56, 0.0 }
 0x57d   : > { %v8653_v53 = vpop.xlane.xlu1 %2112  ;;  %v8688_v2 = vpop.eup %7286  ;;  %v1823_v32 = vsel %vm1093_vm7, %v8684_v22, 0.0 }
 0x57e   : > { %v8690_v41 = vpop.eup %7288  ;;  %v2126_v46 = vsub.f32 %v8528_v59, %v8653_v53 }
 0x57f   : > { %v1832_v13 = vsel %vm1093_vm7, %v8690_v41, 0.0 }
 0x581   : > { %v8650_v19 = vpop.xlane.xlu0 %2115 }
 0x585   : > { %v8661_v12 = vpop.xlane.xlu0 %2118 }
 0x588   : > { %1509 = vadd.xlane.f32.xlu0 %v1508_v31 }
 0x58a   : > { %v1151_v28 = vpop.xlane.xlu1 %1150 }
 0x58b   : > { %7290 = vrcp.f32 %v1151_v28  ;;  %v1829_v28 = vsel %vm1093_vm7, %v8688_v2, 0.0 }
 0x58c   : > { %1512 = vadd.xlane.f32.xlu0 %v1511_v33  ;;  %7292 = vpow2.f32 %v1813_v61 }
 0x58e   : > { %v1154_v9 = vpop.xlane.xlu0 %1153 }
 0x58f   : > { %7294 = vrcp.f32 %v1154_v9 }
 0x590   : > { %1818 = vadd.xlane.f32.xlu0 %v1817_v21  ;;  %7296 = vpow2.f32 %v1811_v5  ;;  %v2135_v5 = vmul.f32 1.442695, %v2123_v52 }
 0x591   : > { %7298 = vpow2.f32 %v1815_v62 }
 0x592   : > { %v1157_v42 = vpop.xlane.xlu1 %1156  ;;  %7300 = vpow2.f32 %v2129_v3 }
 0x593   : > { %7302 = vrcp.f32 %v1157_v42 }
 0x594   : > { %1821 = vadd.xlane.f32.xlu0 %v1820_v10  ;;  %7304 = vpow2.f32 %v2139_v29  ;;  %v10840_v10 = vmov 0.0  }
 0x596   : > { %v1160_v4 = vpop.xlane.xlu0 %1159 }
 0x597   : > { %7306 = vrcp.f32 %v1160_v4  ;;  %v2141_v4 = vmul.f32 1.442695, %v2126_v46 }
 0x598   : > { %1827 = vadd.xlane.f32.xlu0 %v1826_v57  ;;  %v7291_v31 = vpop.eup %7290  ;;  %7308 = vpow2.f32 %v2131_v34 }
 0x599   : > { %v8696_v61 = vpop.eup %7292  ;;  %v1177_v33 = vmul.f32 %v7291_v31, %v8543_v49 }
 0x59a   : > { %v1163_v40 = vpop.xlane.xlu1 %1162  ;;  %v1838_v62 = vsel %vm1093_vm7, %v8696_v61, 0.0 }
 0x59b   : > { %1824 = vadd.xlane.f32.xlu1 %v1823_v32  ;;  %7310 = vrcp.f32 %v1163_v40 }
 0x59c   : > { %v7295_v11 = vpop.eup %7294  ;;  %1830 = vadd.xlane.f32.xlu0 %v1829_v28  ;;  %7312 = vpow2.f32 %v2133_v25 }
 0x59d   : > { %v1179_v18 = vmul.f32 %v7295_v11, %v8548_v15  ;;  %v8706_v9 = vpop.eup %7296  ;;  %v1567_v15 = vand.u32 %v8478_v20, %v8263_v17 }
 0x59e   : > { %v1166_v39 = vpop.xlane.xlu0 %1165  ;;  %v8710_v21 = vpop.eup %7298  ;;  %v1835_v42 = vsel %vm1093_vm7, %v8706_v9, 0.0 }
 0x59f   : > { %7314 = vrcp.f32 %v1166_v39  ;;  %1833 = vadd.xlane.f32.xlu1 %v1832_v13  ;;  %v1194_v49 = vpack.c.bf16 %v1179_v18, %v1177_v33  ;;  %v8714_v3 = vpop.eup %7300  ;;  %v1841_v34 = vsel %vm1118_vm8, %v8710_v21, 0.0 }
 0x5a0   : > { %1839 = vadd.xlane.f32.xlu0 %v1838_v62  ;;  %v7303_v8 = vpop.eup %7302  ;;  %7316 = vpow2.f32 %v2135_v5  ;;  %v2147_v31 = vsel %vm1093_vm7, %v8714_v3, 0.0 }
 0x5a1   : > { %6397 = vmatmul.mubr.msk.bf16.vlgmr.msra.gmra.mxu1 %vm1093_vm7, %v1194_v49  ;;  %v8723_v20 = vpop.eup %7304  ;;  %v1181_v59 = vmul.f32 %v7303_v8, %v8553_v51 }
 0x5a2   : > { %6447 = vmatpush3.bf16.msra.mxu1 %v1567_v15  ;;  %v1169_v29 = vpop.xlane.xlu0 %1168  ;;  %6400 = vmatprep.mubr.msk.bf16.mxu1 %vm7721_vm1, %v10840_v10  ;;  %v2162_v52 = vsel %vm1093_vm7, %v8723_v20, 0.0  ;;  %v2128_v15 = vsub.f32 %v8538_v27, %v8661_v12 }
 0x5a3   : > { %1836 = vadd.xlane.f32.xlu1 %v1835_v42  ;;  %6448 = vmatprep.subr.bf16.mxu1 %v10840_v10  ;;  %7318 = vrcp.f32 %v1169_v29 }
 0x5a4   : > { %v7307_v24 = vpop.eup %7306  ;;  %1842 = vadd.xlane.f32.xlu0 %v1841_v34  ;;  %7320 = vpow2.f32 %v2137_v26  ;;  %v2145_v8 = vmul.f32 1.442695, %v2128_v15 }
 0x5a5   : > { %v1183_v53 = vmul.f32 %v7307_v24, %v8558_v0  ;;  %v8733_v25 = vpop.eup %7308 }
 0x5a6   : > { %6449 = vmatpush3.bf16.msra.mxu1 %v8490_v50  ;;  %v1172_v57 = vpop.xlane.xlu1 %1171  ;;  %v2150_v50 = vsel %vm1093_vm7, %v8733_v25, 0.0 }
 0x5a7   : > { %7322 = vrcp.f32 %v1172_v57  ;;  %2148 = vadd.xlane.f32.xlu1 %v2147_v31  ;;  %6450 = vmatprep.subr.bf16.mxu1 %v10840_v10  ;;  %v1195_v51 = vpack.c.bf16 %v1183_v53, %v1181_v59 }
 0x5a8   : > { %2163 = vadd.xlane.f32.xlu0 %v2162_v52  ;;  %v7311_v0 = vpop.eup %7310  ;;  %7324 = vpow2.f32 %v2141_v4 }
 0x5a9   : > { %6401 = vmatmul.mubr.msk.bf16.gmra.mxu1 %vm1093_vm7, %v1195_v51  ;;  %v8744_v40 = vpop.eup %7312  ;;  %v1185_v28 = vmul.f32 %v7311_v0, %v8562_v7 }
 0x5aa   : > { %6451 = vmatpush3.bf16.msra.mxu1 %v8486_v35  ;;  %6404 = vmatprep.mubr.msk.bf16.mxu1 %vm7721_vm1, %v10840_v10  ;;  %v2153_v35 = vsel %vm1093_vm7, %v8744_v40, 0.0 }
 0x5ab   : > { %2151 = vadd.xlane.f32.xlu1 %v2150_v50  ;;  %6452 = vmatprep.subr.bf16.mxu1 %v10840_v10 }
 0x5ac   : > { %v7315_v32 = vpop.eup %7314 }
 0x5ad   : > { %v1187_v11 = vmul.f32 %v7315_v32, %v8566_v54  ;;  %v8752_v33 = vpop.eup %7316  ;;  %v10841_v32 = vld [vmem:[#allocation17_spill] sm:$0xff] }
 0x5ae   : > { %6453 = vmatpush3.bf16.msra.mxu1 %v8500_v23  ;;  %v2156_v7 = vsel %vm1093_vm7, %v8752_v33, 0.0 }
 0x5af   : > { %2154 = vadd.xlane.f32.xlu1 %v2153_v35  ;;  %6454 = vmatprep.subr.bf16.mxu1 %v10840_v10  ;;  %v1196_v18 = vpack.c.bf16 %v1187_v11, %v1185_v28  ;;  %v10842_v35 = vld [vmem:[#allocation15_spill] sm:$0xff] }
 0x5b0   : > { %v7319_v5 = vpop.eup %7318 }
 0x5b1   : > { %6405 = vmatmul.mubr.msk.bf16.gmra.mxu1 %vm1093_vm7, %v1196_v18  ;;  %v8761_v23 = vpop.eup %7320  ;;  %v1189_v36 = vmul.f32 %v7319_v5, %v8570_v47  ;;  %v2127_v47 = vsub.f32 %v8533_v44, %v8650_v19  ;;  %v10843_v18 = vld [vmem:[#allocation21_spill] sm:$0xff]  ;;  %v10844_v5 = vld [vmem:[#allocation20_spill] sm:$0xff] }
 0x5b2   : > { %6455 = vmatpush3.bf16.msra.mxu1 %v8494_v55  ;;  %6408 = vmatprep.mubr.msk.bf16.mxu1 %vm7721_vm1, %v10840_v10  ;;  %v2159_v13 = vsel %vm1093_vm7, %v8761_v23, 0.0 }
 0x5b3   : > { %2157 = vadd.xlane.f32.xlu1 %v2156_v7  ;;  %6506 = vmatprep.subr.bf16.mxu1 %v10840_v10  ;;  %v10845_v7 = vld [vmem:[#allocation16_spill] sm:$0xff] }
 0x5b4   : > { %v7323_v54 = vpop.eup %7322 }
 0x5b5   : > { %v1191_v39 = vmul.f32 %v7323_v54, %v8574_v48  ;;  %v8768_v55 = vpop.eup %7324  ;;  %v2143_v48 = vmul.f32 1.442695, %v2127_v47 }
 0x5b6   : > { %v2165_v49 = vsel %vm1093_vm7, %v8768_v55, 0.0 }
 0x5b7   : > { %2160 = vadd.xlane.f32.xlu1 %v2159_v13  ;;  %v1197_v62 = vpack.c.bf16 %v1191_v39, %v1189_v36  ;;  %7326 = vpow2.f32 %v2143_v48  ;;  %v10846_v36 = vld [vmem:[#allocation19_spill] sm:$0xff] }
 0x5b8   : > { %7328 = vpow2.f32 %v2145_v8 }
 0x5b9   : > { %6409 = vmatmul.mubr.msk.bf16.gmra.mxu1 %vm1093_vm7, %v1197_v62 }
 0x5ba   : > { %6412 = vmatprep.mubr.msk.bf16.mxu1 %vm7721_vm1, %v10840_v10 }
 0x5bb   : > { %2166 = vadd.xlane.f32.xlu1 %v2165_v49 }
 0x5be   : > { %2199 = vrot.lane.b32.xlu0 %v8080_v45, %s10774_s26 }
 0x5c4   : > { %v8783_v46 = vpop.eup %7326 }
 0x5c5   : > { %v2168_v44 = vsel %vm1093_vm7, %v8783_v46, 0.0  ;;  %v8787_v19 = vpop.eup %7328 }
 0x5c6   : > { %v2171_v12 = vsel %vm1118_vm8, %v8787_v19, 0.0 }
 0x5cc   : > { %2197 = vrot.lane.b32.xlu1 %v8078_v43, %s10774_s26  ;;  %s10788_s26 = smov 8  }
 0x5d7   : > { %v1175_v26 = vpop.xlane.xlu1 %1174 }
 0x5d8   : > { %7330 = vrcp.f32 %v1175_v26 }
 0x5db   : > { %v1489_v29 = vpop.xlane.xlu1 %1488 }
 0x5dc   : > { %7332 = vrcp.f32 %v1489_v29  ;;  %v1492_v45 = vpop.xlane.xlu0 %1491  ;;  %v10847_v29 = vld [vmem:[#allocation22_spill] sm:$0xff] }
 0x5dd   : > { %7334 = vrcp.f32 %v1492_v45  ;;  %2169 = vadd.xlane.f32.xlu0 %v2168_v44 }
 0x5df   : > { %v1495_v27 = vpop.xlane.xlu1 %1494 }
 0x5e0   : > { %v2204_v39 = vpop.permute.xlu0 %2203 }
 0x5e1   : > { %2172 = vadd.xlane.f32.xlu0 %v2171_v12 }
 0x5e3   : > { %v1498_v43 = vpop.xlane.xlu1 %1497 }
 0x5e4   : > { %7336 = vrcp.f32 %v1498_v43 }
 0x5e5   : > { %v7331_v42 = vpop.eup %7330  ;;  %7338 = vrcp.f32 %v1495_v27 }
 0x5e6   : > { %v1193_v34 = vmul.f32 %v7331_v42, %v8589_v37  ;;  %v1897_v37 = vand.u32 %v8510_v16, %v8263_v17 }
 0x5e7   : > { %v1501_v24 = vpop.xlane.xlu1 %1500 }
 0x5e8   : > { %v1198_v59 = vpack.c.bf16 %v1193_v34, %v1193_v34 }
 0x5e9   : > { %v7333_v53 = vpop.eup %7332 }
 0x5ea   : > { %v7335_v4 = vpop.eup %7334  ;;  %6413 = vmatmul.mubr.msk.bf16.gmra.mxu1 %vm1093_vm7, %v1198_v59  ;;  %v1515_v31 = vmul.f32 %v7333_v53, %v8594_v63 }
 0x5eb   : > { %v1504_v57 = vpop.xlane.xlu1 %1503  ;;  %6456 = vmatprep.mubr.msk.bf16.mxu1 %vm7721_vm1, %v10840_v10  ;;  %v1517_v52 = vmul.f32 %v7335_v4, %v8596_v60 }
 0x5ec   : > { %7340 = vrcp.f32 %v1504_v57 }
 0x5ed   : > { %7342 = vrcp.f32 %v1501_v24  ;;  %v1532_v51 = vpack.c.bf16 %v1517_v52, %v1515_v31 }
 0x5ef   : > { %v1507_v13 = vpop.xlane.xlu1 %1506 }
 0x5f0   : > { %7344 = vrcp.f32 %v1507_v13 }
 0x5f1   : > { %v7337_v0 = vpop.eup %7336 }
 0x5f2   : > { %6457 = vmatmul.mubr.msk.bf16.vlgmr.msra.gmra.mxu1 %vm1093_vm7, %v1532_v51  ;;  %v7339_v50 = vpop.eup %7338  ;;  %v1521_v63 = vmul.f32 %v7337_v0, %v8606_v14 }
 0x5f3   : > { %6507 = vmatpush3.bf16.msra.mxu1 %v1897_v37  ;;  %6460 = vmatprep.mubr.msk.bf16.mxu1 %vm7721_vm1, %v10840_v10  ;;  %v1519_v60 = vmul.f32 %v7339_v50, %v8602_v30  ;;  %v2202_v26 = vpop.permute.xlu1 %2201  ;;  %v10848_v50 = vld [vmem:[#allocation18_spill] sm:$0xff] }
 0x5f4   : > { %6508 = vmatprep.subr.bf16.mxu1 %v10840_v10 }
 0x5f5   : > { %v1533_v28 = vpack.c.bf16 %v1521_v63, %v1519_v60  ;;  %v2227_v63 = vand.u32 %v10848_v50, %v8263_v17 }
 0x5f7   : > { %6509 = vmatpush3.bf16.msra.mxu1 %v10841_v32 }
 0x5f8   : > { %6510 = vmatprep.subr.bf16.mxu1 %v10840_v10 }
 0x5f9   : > { %v7341_v11 = vpop.eup %7340 }
 0x5fa   : > { %6461 = vmatmul.mubr.msk.bf16.gmra.mxu1 %vm1093_vm7, %v1533_v28  ;;  %v7343_v16 = vpop.eup %7342  ;;  %v1525_v14 = vmul.f32 %v7341_v11, %v10843_v18 }
 0x5fb   : > { %6511 = vmatpush3.bf16.msra.mxu1 %v10842_v35  ;;  %6464 = vmatprep.mubr.msk.bf16.mxu1 %vm7721_vm1, %v10840_v10  ;;  %v1523_v30 = vmul.f32 %v7343_v16, %v10844_v5 }
 0x5fc   : > { %6512 = vmatprep.subr.bf16.mxu1 %v10840_v10 }
 0x5fd   : > { %v1534_v54 = vpack.c.bf16 %v1525_v14, %v1523_v30  ;;  %v7345_v48 = vpop.eup %7344 }
 0x5fe   : > { %v1527_v45 = vmul.f32 %v7345_v48, %v10847_v29 }
 0x5ff   : > { %6513 = vmatpush3.bf16.msra.mxu1 %v10845_v7 }
 0x600   : > { %6514 = vmatprep.subr.bf16.mxu1 %v10840_v10 }
 0x602   : > { %6465 = vmatmul.mubr.msk.bf16.gmra.mxu1 %vm1093_vm7, %v1534_v54 }
 0x603   : > { %6515 = vmatpush3.bf16.msra.mxu1 %v10846_v36  ;;  %6468 = vmatprep.mubr.msk.bf16.mxu1 %vm7721_vm1, %v10840_v10 }
 0x604   : > { %6566 = vmatprep.subr.bf16.mxu1 %v10840_v10 }
 0x611   : > { %v1510_v62 = vpop.xlane.xlu0 %1509 }
 0x612   : > { %7346 = vrcp.f32 %v1510_v62 }
 0x615   : > { %v1513_v49 = vpop.xlane.xlu0 %1512 }
 0x616   : > { %7348 = vrcp.f32 %v1513_v49 }
 0x619   : > { %v1819_v47 = vpop.xlane.xlu0 %1818 }
 0x61d   : > { %v1822_v15 = vpop.xlane.xlu0 %1821 }
 0x61e   : > { %7350 = vrcp.f32 %v1822_v15 }
 0x61f   : > { %v7347_v8 = vpop.eup %7346  ;;  %7352 = vrcp.f32 %v1819_v47 }
 0x620   : > { %v1529_v44 = vmul.f32 %v7347_v8, %v8647_v38 }
 0x621   : > { %v1828_v27 = vpop.xlane.xlu0 %1827 }
 0x622   : > { %v1535_v12 = vpack.c.bf16 %v1529_v44, %v1527_v45 }
 0x623   : > { %v7349_v43 = vpop.eup %7348 }
 0x624   : > { %6469 = vmatmul.mubr.msk.bf16.gmra.mxu1 %vm1093_vm7, %v1535_v12  ;;  %v1825_v42 = vpop.xlane.xlu1 %1824  ;;  %v1531_v34 = vmul.f32 %v7349_v43, %v8657_v1 }
 0x625   : > { %6472 = vmatprep.mubr.msk.bf16.mxu1 %vm7721_vm1, %v10840_v10  ;;  %7354 = vrcp.f32 %v1825_v42  ;;  %v1831_v24 = vpop.xlane.xlu0 %1830 }
 0x626   : > { %7356 = vrcp.f32 %v1828_v27  ;;  %v1536_v53 = vpack.c.bf16 %v1531_v34, %v1531_v34 }
 0x628   : > { %v1834_v59 = vpop.xlane.xlu1 %1833 }
 0x629   : > { %7358 = vrcp.f32 %v1834_v59  ;;  %v1840_v52 = vpop.xlane.xlu0 %1839 }
 0x62a   : > { %7360 = vrcp.f32 %v1831_v24 }
 0x62b   : > { %v7351_v4 = vpop.eup %7350 }
 0x62c   : > { %6473 = vmatmul.mubr.msk.bf16.gmra.mxu1 %vm1093_vm7, %v1536_v53  ;;  %v1837_v38 = vpop.xlane.xlu1 %1836  ;;  %v7353_v57 = vpop.eup %7352  ;;  %v1847_v31 = vmul.f32 %v7351_v4, %v8674_v58 }
 0x62d   : > { %6516 = vmatprep.mubr.msk.bf16.mxu1 %vm7721_vm1, %v10840_v10  ;;  %v1845_v51 = vmul.f32 %v7353_v57, %v8667_v6  ;;  %v1843_v60 = vpop.xlane.xlu0 %1842  ;;  %7362 = vrcp.f32 %v1837_v38 }
 0x62e   : > { %7364 = vrcp.f32 %v1840_v52 }
 0x62f   : > { %v1862_v0 = vpack.c.bf16 %v1847_v31, %v1845_v51  ;;  %7366 = vrcp.f32 %v1843_v60 }
 0x630   : > { %v2149_v1 = vpop.xlane.xlu1 %2148 }
 0x631   : > { %v2164_v16 = vpop.xlane.xlu0 %2163 }
 0x632   : > { %v7355_v37 = vpop.eup %7354 }
 0x633   : > { %v7357_v28 = vpop.eup %7356  ;;  %v1849_v6 = vmul.f32 %v7355_v37, %v8684_v22 }
 0x634   : > { %6517 = vmatmul.mubr.msk.bf16.vlgmr.msra.gmra.mxu1 %vm1093_vm7, %v1862_v0  ;;  %v2152_v32 = vpop.xlane.xlu1 %2151  ;;  %v1851_v11 = vmul.f32 %v7357_v28, %v8680_v56 }
 0x635   : > { %6567 = vmatpush3.bf16.msra.mxu1 %v2227_v63  ;;  %6520 = vmatprep.mubr.msk.bf16.mxu1 %vm7721_vm1, %v10840_v10  ;;  %v2200_v56 = vpop.permute.xlu0 %2199  ;;  %7368 = vrcp.f32 %v2152_v32 }
 0x636   : > { %6568 = vmatprep.subr.bf16.mxu1 %v10840_v10  ;;  %v1863_v35 = vpack.c.bf16 %v1851_v11, %v1849_v6  ;;  %v7359_v18 = vpop.eup %7358  ;;  %7370 = vrcp.f32 %v2149_v1 }
 0x637   : > { %v7361_v5 = vpop.eup %7360  ;;  %v1855_v22 = vmul.f32 %v7359_v18, %v8690_v41 }
 0x638   : > { %v2155_v58 = vpop.xlane.xlu1 %2154  ;;  %v1853_v7 = vmul.f32 %v7361_v5, %v8688_v2 }
 0x639   : > { %6569 = vmatpush3.bf16.msra.mxu1 %v2204_v39 }
 0x63a   : > { %6570 = vmatprep.subr.bf16.mxu1 %v10840_v10  ;;  %v1864_v54 = vpack.c.bf16 %v1855_v22, %v1853_v7  ;;  %v7363_v36 = vpop.eup %7362 }
 0x63b   : > { %v7365_v13 = vpop.eup %7364  ;;  %v1857_v62 = vmul.f32 %v7363_v36, %v8706_v9 }
 0x63c   : > { %6521 = vmatmul.mubr.msk.bf16.gmra.mxu1 %vm1093_vm7, %v1863_v35  ;;  %v2158_v14 = vpop.xlane.xlu1 %2157  ;;  %v1859_v49 = vmul.f32 %v7365_v13, %v8696_v61  ;;  %v7367_v47 = vpop.eup %7366 }
 0x63d   : > { %6571 = vmatpush3.bf16.msra.mxu1 %v2202_v26  ;;  %6524 = vmatprep.mubr.msk.bf16.mxu1 %vm7721_vm1, %v10840_v10  ;;  %7372 = vrcp.f32 %v2158_v14  ;;  %v1861_v48 = vmul.f32 %v7367_v47, %v8710_v21 }
 0x63e   : > { %6572 = vmatprep.subr.bf16.mxu1 %v10840_v10  ;;  %v1865_v2 = vpack.c.bf16 %v1859_v49, %v1857_v62  ;;  %7374 = vrcp.f32 %v2155_v58 }
 0x63f   : > { %v1866_v15 = vpack.c.bf16 %v1861_v48, %v1861_v48 }
 0x640   : > { %v2161_v30 = vpop.xlane.xlu1 %2160 }
 0x641   : > { %6573 = vmatpush3.bf16.msra.mxu1 %v2200_v56  ;;  %7376 = vrcp.f32 %v2161_v30 }
 0x642   : > { %6574 = vmatprep.subr.bf16.mxu1 %v10840_v10  ;;  %v7369_v9 = vpop.eup %7368  ;;  %7378 = vrcp.f32 %v2164_v16 }
 0x643   : > { %v7371_v8 = vpop.eup %7370  ;;  %v2177_v61 = vmul.f32 %v7369_v9, %v8733_v25 }
 0x644   : > { %6525 = vmatmul.mubr.msk.bf16.gmra.mxu1 %vm1093_vm7, %v1864_v54  ;;  %v2167_v39 = vpop.xlane.xlu1 %2166  ;;  %v2175_v26 = vmul.f32 %v7371_v8, %v8714_v3 }
 0x645   : > { %6528 = vmatprep.mubr.msk.bf16.mxu1 %vm7721_vm1, %v10840_v10  ;;  %7380 = vrcp.f32 %v2167_v39 }
 0x646   : > { %v2192_v29 = vpack.c.bf16 %v2177_v61, %v2175_v26 }
 0x648   : > { %v2198_v41 = vpop.permute.xlu1 %2197 }
 0x649   : > { %6575 = vmatpush3.bf16.msra.mxu1 %v2198_v41 }
 0x64a   : > { %7020 = vmatprep.subr.bf16.mxu1 %v10840_v10  ;;  %v7373_v45 = vpop.eup %7372 }
 0x64b   : > { %v7375_v21 = vpop.eup %7374  ;;  %v2181_v44 = vmul.f32 %v7373_v45, %v8752_v33 }
 0x64c   : > { %6529 = vmatmul.mubr.msk.bf16.gmra.mxu1 %vm1093_vm7, %v1865_v2  ;;  %v2179_v27 = vmul.f32 %v7375_v21, %v8744_v40  ;;  %v7204_v21 = vld [vmem:[%s10849_s6 + $0x8] sm:$0xff]  }
 0x64d   : > { %6532 = vmatprep.mubr.msk.bf16.mxu1 %vm7721_vm1, %v10840_v10  ;;  %6597 = vmatpush3.bf16.msra.mxu0 %v7204_v21 }
 0x64e   : > { %v2193_v43 = vpack.c.bf16 %v2181_v44, %v2179_v27  ;;  %v7377_v25 = vpop.eup %7376  ;;  %v7205_v27 = vld [vmem:[%s10849_s6] sm:$0xff]   ;;  %6598 = vmatprep.subr.bf16.mxu0 %v10840_v10 }
 0x64f   : > { %v7379_v3 = vpop.eup %7378  ;;  %v2183_v59 = vmul.f32 %v7377_v25, %v8761_v23 }
 0x650   : > { %v2185_v40 = vmul.f32 %v7379_v3, %v8723_v20 }
 0x651   : > { %6599 = vmatpush3.bf16.msra.mxu0 %v7205_v27 }
 0x652   : > { %v2194_v38 = vpack.c.bf16 %v2185_v40, %v2183_v59  ;;  %v7381_v23 = vpop.eup %7380  ;;  %6644 = vmatprep.subr.bf16.mxu0 %v10840_v10 }
 0x653   : > { %v2187_v37 = vmul.f32 %v7381_v23, %v8768_v55 }
 0x654   : > { %6533 = vmatmul.mubr.msk.bf16.gmra.mxu1 %vm1093_vm7, %v1866_v15 }
 0x655   : > { %6576 = vmatprep.mubr.msk.bf16.mxu1 %vm7721_vm1, %v10840_v10 }
 0x65c   : > { %6577 = vmatmul.mubr.msk.bf16.vlgmr.msra.gmra.mxu1 %vm1093_vm7, %v2192_v29 }
 0x65d   : > { %6580 = vmatprep.mubr.msk.bf16.mxu1 %vm7721_vm1, %v10840_v10  ;;  %7022 = vmatpush3.bf16.msra.mxu1 %v7204_v21 }
 0x65e   : > { %7021 = vmatprep.subr.bf16.mxu1 %v10840_v10 }
 0x661   : > { %v8868_v12 = vpop.f32.mrf.mxu1  ;;  %7023 = vmatpush3.bf16.msra.mxu1 %v7205_v27 }
 0x662   : > { %6620 = vmatprep.subr.bf16.mxu1 %v10840_v10 }
 0x663   : > { %v6398_v42 = vpop.f32.mrf.mxu1 }
 0x664   : > { %6581 = vmatmul.mubr.msk.bf16.gmra.mxu1 %vm1093_vm7, %v2193_v43 }
 0x665   : > { %v8871_v34 = vpop.f32.mrf.mxu1  ;;  %6584 = vmatprep.mubr.msk.bf16.mxu1 %vm7721_vm1, %v10840_v10 }
 0x666   : > { %v2170_v24 = vpop.xlane.xlu0 %2169 }
 0x667   : > { %7382 = vrcp.f32 %v2170_v24  ;;  %v6399_v33 = vpop.f32.mrf.mxu1 }
 0x669   : > { %v8877_v53 = vpop.f32.mrf.mxu1 }
 0x66a   : > { %v2173_v4 = vpop.xlane.xlu0 %2172 }
 0x66b   : > { %7384 = vrcp.f32 %v2173_v4  ;;  %v6402_v57 = vpop.f32.mrf.mxu1 }
 0x66c   : > { %6585 = vmatmul.mubr.msk.bf16.gmra.mxu1 %vm1093_vm7, %v2194_v38 }
 0x66d   : > { %v8880_v31 = vpop.f32.mrf.mxu1  ;;  %6588 = vmatprep.mubr.msk.bf16.mxu1 %vm7721_vm1, %v10840_v10 }
 0x66f   : > { %v6403_v52 = vpop.f32.mrf.mxu1 }
 0x671   : > { %v8884_v51 = vpop.f32.mrf.mxu1 }
 0x673   : > { %v6406_v1 = vpop.f32.mrf.mxu1 }
 0x674   : > { %v7383_v0 = vpop.eup %7382 }
 0x675   : > { %v8886_v20 = vpop.f32.mrf.mxu1  ;;  %v2189_v50 = vmul.f32 %v7383_v0, %v8783_v46 }
 0x677   : > { %v6407_v63 = vpop.f32.mrf.mxu1  ;;  %v2195_v60 = vpack.c.bf16 %v2189_v50, %v2187_v37 }
 0x678   : > { %v7385_v32 = vpop.eup %7384 }
 0x679   : > { %6589 = vmatmul.mubr.msk.bf16.gmra.mxu1 %vm1093_vm7, %v2195_v60  ;;  %v8891_v28 = vpop.f32.mrf.mxu1  ;;  %v2191_v58 = vmul.f32 %v7385_v32, %v8787_v19 }
 0x67a   : > { %6592 = vmatprep.mubr.msk.bf16.mxu1 %vm7721_vm1, %v10840_v10 }
 0x67b   : > { %v6410_v6 = vpop.f32.mrf.mxu1  ;;  %v2196_v35 = vpack.c.bf16 %v2191_v58, %v2191_v58 }
 0x67d   : > { %v8896_v11 = vpop.f32.mrf.mxu1 }
 0x67f   : > { %v6411_v16 = vpop.f32.mrf.mxu1 }
 0x681   : > { %6593 = vmatmul.mubr.msk.bf16.gmra.mxu1 %vm1093_vm7, %v2196_v35 }
 0x682   : > { %6616 = vmatprep.mubr.msk.bf16.mxu1 %vm7721_vm1, %v10840_v10 }
 0x6aa   : > { %v8901_v55 = vpop.f32.mrf.mxu1 }
 0x6ac   : > { %v6414_v46 = vpop.f32.mrf.mxu1 }
 0x6ae   : > { %v1303_v18 = vpop.f32.mrf.mxu1 }
 0x6b0   : > { %v6415_v14 = vpop.f32.mrf.mxu1 }
 0x6b2   : > { %v1603_v5 = vpop.f32.mrf.mxu1 }
 0x6b4   : > { %v6458_v22 = vpop.f32.mrf.mxu1 }
 0x6b6   : > { %v1606_v56 = vpop.f32.mrf.mxu1 }
 0x6b7   : > { %v7081_v30 = vpack.i.bf16 %v1606_v56, %v1603_v5 }
 0x6b8   : > { %v6459_v7 = vpop.f32.mrf.mxu1 }
 0x6b9   : > { %7082 = vrot.lane.b32.xlu0 %v7081_v30, %s10788_s26 }
 0x6ba   : > { %v1611_v19 = vpop.f32.mrf.mxu1 }
 0x6bc   : > { %v6462_v54 = vpop.f32.mrf.mxu1 }
 0x6be   : > { %v1614_v36 = vpop.f32.mrf.mxu1 }
 0x6bf   : > { %v7086_v39 = vpack.i.bf16 %v1614_v36, %v1611_v19 }
 0x6c0   : > { %v6463_v13 = vpop.f32.mrf.mxu1 }
 0x6c1   : > { %7087 = vrot.lane.b32.xlu1 %v7086_v39, %s10788_s26 }
 0x6c2   : > { %v1619_v62 = vpop.f32.mrf.mxu1 }
 0x6c4   : > { %v6466_v41 = vpop.f32.mrf.mxu1 }
 0x6c6   : > { %v1622_v49 = vpop.f32.mrf.mxu1 }
 0x6c7   : > { %v7111_v2 = vpack.i.bf16 %v1622_v49, %v1619_v62 }
 0x6c8   : > { %v6467_v47 = vpop.f32.mrf.mxu1 }
 0x6c9   : > { %7112 = vrot.lane.b32.xlu0 %v7111_v2, %s10788_s26 }
 0x6e4   : > { %v8906_v48 = vpop.f32.mrf.mxu1 }
 0x6e6   : > { %v6470_v15 = vpop.f32.mrf.mxu1 }
 0x6e8   : > { %v1630_v9 = vpop.f32.mrf.mxu1 }
 0x6e9   : > { %v7126_v8 = vpack.i.bf16 %v1630_v9, %v8906_v48 }
 0x6ea   : > { %v6471_v61 = vpop.f32.mrf.mxu1 }
 0x6ec   : > { %v8909_v26 = vpop.f32.mrf.mxu1 }
 0x6ee   : > { %v6474_v29 = vpop.f32.mrf.mxu1 }
 0x6f0   : > { %v1638_v45 = vpop.f32.mrf.mxu1 }
 0x6f2   : > { %v6475_v44 = vpop.f32.mrf.mxu1 }
 0x6f4   : > { %v1933_v43 = vpop.f32.mrf.mxu1 }
 0x6f6   : > { %v6518_v25 = vpop.f32.mrf.mxu1 }
 0x6f8   : > { %v1936_v42 = vpop.f32.mrf.mxu1 }
 0x6f9   : > { %v7091_v3 = vpack.i.bf16 %v1936_v42, %v1933_v43 }
 0x6fa   : > { %v6519_v24 = vpop.f32.mrf.mxu1 }
 0x6fb   : > { %7092 = vrot.lane.b32.xlu1 %v7091_v3, %s10786_s25 }
 0x6fc   : > { %v1941_v59 = vpop.f32.mrf.mxu1 }
 0x6fe   : > { %v6522_v33 = vpop.f32.mrf.mxu1 }
 0x700   : > { %v1944_v40 = vpop.f32.mrf.mxu1 }
 0x701   : > { %v7101_v5 = vpack.i.bf16 %v1944_v40, %v1941_v59 }
 0x702   : > { %v6523_v4 = vpop.f32.mrf.mxu1 }
 0x704   : > { %v1949_v38 = vpop.f32.mrf.mxu1 }
 0x706   : > { %v6526_v57 = vpop.f32.mrf.mxu1 }
 0x708   : > { %v1952_v52 = vpop.f32.mrf.mxu1 }
 0x709   : > { %v7116_v54 = vpack.i.bf16 %v1952_v52, %v1949_v38 }
 0x70a   : > { %v6527_v23 = vpop.f32.mrf.mxu1 }
 0x70c   : > { %v1957_v1 = vpop.f32.mrf.mxu1 }
 0x70e   : > { %v6530_v0 = vpop.f32.mrf.mxu1 }
 0x710   : > { %v1960_v37 = vpop.f32.mrf.mxu1 }
 0x711   : > { %v7131_v41 = vpack.i.bf16 %v1960_v37, %v1957_v1 }
 0x712   : > { %v6531_v50 = vpop.f32.mrf.mxu1 }
 0x714   : > { %v1965_v63 = vpop.f32.mrf.mxu1 }
 0x716   : > { %v6534_v60 = vpop.f32.mrf.mxu1 }
 0x718   : > { %v1968_v32 = vpop.f32.mrf.mxu1 }
 0x71a   : > { %v6535_v6 = vpop.f32.mrf.mxu1 }
 0x71c   : > { %v2263_v58 = vpop.f32.mrf.mxu1 }
 0x71e   : > { %v6578_v16 = vpop.f32.mrf.mxu1 }
 0x720   : > { %v2266_v35 = vpop.f32.mrf.mxu1 }
 0x721   : > { %v7096_v46 = vpack.i.bf16 %v2266_v35, %v2263_v58 }
 0x722   : > { %v6579_v18 = vpop.f32.mrf.mxu1 }
 0x723   : > { %7097 = vrot.lane.b32.xlu1 %v7096_v46, %s10784_s21 }
 0x724   : > { %v2271_v14 = vpop.f32.mrf.mxu1 }
 0x726   : > { %v6582_v22 = vpop.f32.mrf.mxu1 }
 0x727   : > { %7102 = vrot.lane.b32.xlu1 %v7101_v5, %s10786_s25 }
 0x728   : > { %v2274_v56 = vpop.f32.mrf.mxu1 }
 0x729   : > { %v7106_v30 = vpack.i.bf16 %v2274_v56, %v2271_v14 }
 0x72a   : > { %v6583_v7 = vpop.f32.mrf.mxu1 }
 0x72b   : > { %7107 = vrot.lane.b32.xlu1 %v7106_v30, %s10784_s21  ;;  %v7083_v21 = vpop.permute.xlu0 %7082 }
 0x72c   : > { %v2279_v19 = vpop.f32.mrf.mxu1  ;;  %v7085_v27 = vunpack.i.h.bf16 %v7083_v21  ;;  %v7084_v43 = vunpack.i.l.bf16 %v7083_v21 }
 0x72e   : > { %v6586_v36 = vpop.f32.mrf.mxu1  ;;  %v2410_v3 = vsel %vm990_vm5, %v8871_v34, %v7085_v27  ;;  %v2409_v24 = vsel %vm990_vm5, %v8868_v12, %v7084_v43 }
 0x72f   : > { %7117 = vrot.lane.b32.xlu1 %v7116_v54, %s10786_s25 }
 0x730   : > { %v2282_v39 = vpop.f32.mrf.mxu1 }
 0x731   : > { %v7121_v13 = vpack.i.bf16 %v2282_v39, %v2279_v19 }
 0x732   : > { %v6587_v62 = vpop.f32.mrf.mxu1 }
 0x733   : > { %7127 = vrot.lane.b32.xlu1 %v7126_v8, %s10788_s26  ;;  %7122 = vrot.lane.b32.xlu0 %v7121_v13, %s10784_s21  ;;  %v7088_v45 = vpop.permute.xlu1 %7087 }
 0x734   : > { %v7090_v1 = vunpack.i.h.bf16 %v7088_v45  ;;  %v7089_v0 = vunpack.i.l.bf16 %v7088_v45 }
 0x736   : > { %v2412_v34 = vsel %vm990_vm5, %v8880_v31, %v7090_v1 }
 0x737   : > { %7132 = vrot.lane.b32.xlu0 %v7131_v41, %s10786_s25 }
 0x739   : > { %v2287_v49 = vpop.f32.mrf.mxu1 }
 0x73b   : > { %2326 = vrot.lane.b32.xlu0 %v8909_v26, %s10788_s26  ;;  %v6590_v2 = vpop.f32.mrf.mxu1  ;;  %v7113_v6 = vpop.permute.xlu0 %7112  ;;  %s10875_s26 = smov 104  }
 0x73c   : > { %v7115_v5 = vunpack.i.h.bf16 %v7113_v6  ;;  %v7114_v22 = vunpack.i.l.bf16 %v7113_v6 }
 0x73d   : > { %v2290_v47 = vpop.f32.mrf.mxu1 }
 0x73e   : > { %v7136_v48 = vpack.i.bf16 %v2290_v47, %v2287_v49  ;;  %v2414_v30 = vsel %vm990_vm5, %v8886_v20, %v7115_v5  ;;  %v2413_v7 = vsel %vm990_vm5, %v8884_v51, %v7114_v22  ;;  %v10854_v5 = vld [vmem:[#allocation10_spill] sm:$0xff] }
 0x73f   : > { %v6591_v15 = vpop.f32.mrf.mxu1 }
 0x740   : > { %7137 = vrot.lane.b32.xlu1 %v7136_v48, %s10784_s21 }
 0x741   : > { %v2295_v9 = vpop.f32.mrf.mxu1 }
 0x742   : > { %2398 = vrot.lane.b32.xlu0 %v2295_v9, %s10784_s21  ;;  %s10871_s21 = smov 120  }
 0x743   : > { %v6594_v61 = vpop.f32.mrf.mxu1 }
 0x744   : > { %2362 = vrot.lane.b32.xlu1 %v1965_v63, %s10786_s25  ;;  %v2411_v63 = vsel %vm990_vm5, %v8877_v53, %v7089_v0  ;;  %s10870_s25 = smov 88  }
 0x745   : > { %v2298_v8 = vpop.f32.mrf.mxu1 }
 0x747   : > { %v6595_v29 = vpop.f32.mrf.mxu1 }
 0x76d   : > { %v7093_v44 = vpop.permute.xlu1 %7092 }
 0x76e   : > { %v7095_v26 = vunpack.i.h.bf16 %v7093_v44  ;;  %v7094_v25 = vunpack.i.l.bf16 %v7093_v44 }
 0x770   : > { %v2419_v40 = vsel %vm2418_vm9, %v2409_v24, %v7094_v25  ;;  %v2420_v4 = vsel %vm2418_vm9, %v2410_v3, %v7095_v26 }
 0x795   : > { %v7098_v42 = vpop.permute.xlu1 %7097 }
 0x796   : > { %v7100_v59 = vunpack.i.h.bf16 %v7098_v42  ;;  %v7099_v33 = vunpack.i.l.bf16 %v7098_v42 }
 0x798   : > { %v2429_v38 = vsel %vm2428_vm10, %v2419_v40, %v7099_v33  ;;  %v2430_v57 = vsel %vm2428_vm10, %v2420_v4, %v7100_v59  ;;  %v10850_v33 = vld [vmem:[#allocation6_spill] sm:$0xff] }
 0x799   : > { %v2438_v52 = vpack.c.bf16 %v2430_v57, %v2429_v38  ;;  %v7103_v23 = vpop.permute.xlu1 %7102 }
 0x79a   : > { %v7105_v37 = vunpack.i.h.bf16 %v7103_v23  ;;  %v7104_v50 = vunpack.i.l.bf16 %v7103_v23 }
 0x79b   : > { %6601 = vmatmul.mubr.msk.bf16.vlgmr.msra.gmra.mxu0 %vm698_vm3, %v2438_v52  ;;  %v10851_v52 = vld [vmem:[#allocation7_spill] sm:$0xff] }
 0x79c   : > { %6604 = vmatprep.mubr.msk.bf16.mxu0 %vm7721_vm1, %v10840_v10  ;;  %v2422_v58 = vsel %vm2418_vm9, %v2412_v34, %v7105_v37  ;;  %v2421_v16 = vsel %vm2418_vm9, %v2411_v63, %v7104_v50 }
 0x79d   : > { %v7108_v12 = vpop.permute.xlu1 %7107 }
 0x79e   : > { %v7110_v60 = vunpack.i.h.bf16 %v7108_v12  ;;  %v7109_v32 = vunpack.i.l.bf16 %v7108_v12  ;;  %v10852_v12 = vld [vmem:[#allocation8_spill] sm:$0xff] }
 0x7a0   : > { %v2432_v35 = vsel %vm2428_vm10, %v2422_v58, %v7110_v60  ;;  %v2431_v46 = vsel %vm2428_vm10, %v2421_v16, %v7109_v32  ;;  %v10853_v58 = vld [vmem:[#allocation9_spill] sm:$0xff] }
 0x7a1   : > { %v7118_v18 = vpop.permute.xlu1 %7117  ;;  %v2439_v14 = vpack.c.bf16 %v2432_v35, %v2431_v46 }
 0x7a2   : > { %v7120_v56 = vunpack.i.h.bf16 %v7118_v18  ;;  %v7119_v31 = vunpack.i.l.bf16 %v7118_v18 }
 0x7a3   : > { %6605 = vmatmul.mubr.msk.bf16.gmra.mxu0 %vm698_vm3, %v2439_v14 }
 0x7a4   : > { %6608 = vmatprep.mubr.msk.bf16.mxu0 %vm7721_vm1, %v10840_v10  ;;  %v2423_v36 = vsel %vm2418_vm9, %v2413_v7, %v7119_v31  ;;  %v2424_v39 = vsel %vm2418_vm9, %v2414_v30, %v7120_v56  ;;  %v10855_v7 = vld [vmem:[#allocation11_spill] sm:$0xff] }
 0x7a5   : > { %v7123_v53 = vpop.permute.xlu0 %7122  ;;  %v7128_v49 = vpop.permute.xlu1 %7127 }
 0x7a6   : > { %v7125_v19 = vunpack.i.h.bf16 %v7123_v53  ;;  %v7124_v54 = vunpack.i.l.bf16 %v7123_v53  ;;  %v7130_v2 = vunpack.i.h.bf16 %v7128_v49  ;;  %v7129_v51 = vunpack.i.l.bf16 %v7128_v49 }
 0x7a8   : > { %v2433_v13 = vsel %vm2428_vm10, %v2423_v36, %v7124_v54  ;;  %v2434_v62 = vsel %vm2428_vm10, %v2424_v39, %v7125_v19  ;;  %v2416_v9 = vsel %vm990_vm5, %v8896_v11, %v7130_v2  ;;  %v2415_v61 = vsel %vm990_vm5, %v8891_v28, %v7129_v51 }
 0x7a9   : > { %v2440_v41 = vpack.c.bf16 %v2434_v62, %v2433_v13  ;;  %v7133_v20 = vpop.permute.xlu0 %7132 }
 0x7aa   : > { %v7135_v47 = vunpack.i.h.bf16 %v7133_v20  ;;  %v7134_v48 = vunpack.i.l.bf16 %v7133_v20 }
 0x7ab   : > { %6609 = vmatmul.mubr.msk.bf16.gmra.mxu0 %vm698_vm3, %v2440_v41  ;;  %v10856_v41 = vld [vmem:[#allocation12_spill] sm:$0xff] }
 0x7ac   : > { %6612 = vmatprep.mubr.msk.bf16.mxu0 %vm7721_vm1, %v10840_v10  ;;  %v2426_v21 = vsel %vm2418_vm9, %v2416_v9, %v7135_v47  ;;  %v2425_v44 = vsel %vm2418_vm9, %v2415_v61, %v7134_v48  ;;  %v10857_v47 = vld [vmem:[#allocation14_spill] sm:$0xff]  ;;  %v10858_v9 = vld [vmem:[#allocation13_spill] sm:$0xff] }
 0x7ad   : > { %v2327_v8 = vpop.permute.xlu0 %2326 }
 0x7ae   : > { %v2417_v26 = vsel %vm990_vm5, %v8901_v55, %v2327_v8  ;;  %v5950_v55 = vld [vmem:[%s10737_s7] ss:$0 sm:$0xff] }
 0x7b2   : > { %v7138_v15 = vpop.permute.xlu1 %7137 }
 0x7b3   : > { %v7140_v29 = vunpack.i.h.bf16 %v7138_v15  ;;  %v7139_v45 = vunpack.i.l.bf16 %v7138_v15 }
 0x7b4   : > { %v2399_v11 = vpop.permute.xlu0 %2398 }
 0x7b5   : > { %v2435_v27 = vsel %vm2428_vm10, %v2425_v44, %v7139_v45  ;;  %v2436_v43 = vsel %vm2428_vm10, %v2426_v21, %v7140_v29 }
 0x7b6   : > { %v2441_v25 = vpack.c.bf16 %v2436_v43, %v2435_v27  ;;  %v2363_v42 = vpop.permute.xlu1 %2362 }
 0x7b7   : > { %v2427_v3 = vsel %vm2418_vm9, %v2417_v26, %v2363_v42 }
 0x7b8   : > { %v2437_v28 = vsel %vm2428_vm10, %v2427_v3, %v2399_v11  ;;  %6613 = vmatmul.mubr.msk.bf16.gmra.mxu0 %vm698_vm3, %v2441_v25 }
 0x7b9   : > { %v2442_v24 = vpack.c.bf16 %v2437_v28, %v2437_v28  ;;  %6652 = vmatprep.mubr.msk.bf16.mxu0 %vm7721_vm1, %v10840_v10 }
 0x7bb   : > { %6617 = vmatmul.mubr.msk.bf16.vlgmr.msra.gmra.mxu1 %vm698_vm3, %v2442_v24 }
 0x7bc   : > { %6624 = vmatprep.mubr.msk.bf16.mxu1 %vm7721_vm1, %v10840_v10 }
 0x85b   : > { %v2508_v59 = vpop.f32.mrf.mxu0 }
 0x85c   : > { %v2546_v40 = vadd.f32 %v2508_v59, %v10850_v33 }
 0x85d   : > { %v6602_v4 = vpop.f32.mrf.mxu0 }
 0x85e   : > { %v8989_v38 = vadd.f32 %v5950_v55, %v2546_v40 }
 0x85f   : > { %v2511_v57 = vpop.f32.mrf.mxu0 }
 0x860   : > { %v2547_v23 = vadd.f32 %v2511_v57, %v10851_v52  ;;  %v2573_v1 = vsel %vm698_vm3, %v8989_v38, 0.0 }
 0x861   : > { %2574 = vadd.xlane.f32.xlu1 %v2573_v1  ;;  %v6603_v0 = vpop.f32.mrf.mxu0 }
 0x862   : > { %v8994_v37 = vadd.f32 %v5950_v55, %v2547_v23 }
 0x863   : > { %v2516_v50 = vpop.f32.mrf.mxu0 }
 0x864   : > { %v2548_v34 = vadd.f32 %v2516_v50, %v10852_v12  ;;  %v2576_v63 = vsel %vm698_vm3, %v8994_v37, 0.0 }
 0x865   : > { %2577 = vadd.xlane.f32.xlu0 %v2576_v63  ;;  %v6606_v60 = vpop.f32.mrf.mxu0 }
 0x866   : > { %v8999_v32 = vadd.f32 %v5950_v55, %v2548_v34 }
 0x867   : > { %v2519_v6 = vpop.f32.mrf.mxu0 }
 0x868   : > { %v2549_v16 = vadd.f32 %v2519_v6, %v10853_v58  ;;  %v2579_v35 = vsel %vm698_vm3, %v8999_v32, 0.0 }
 0x869   : > { %2580 = vadd.xlane.f32.xlu0 %v2579_v35  ;;  %v6607_v46 = vpop.f32.mrf.mxu0 }
 0x86a   : > { %v9004_v18 = vadd.f32 %v5950_v55, %v2549_v16 }
 0x86b   : > { %v2524_v14 = vpop.f32.mrf.mxu0 }
 0x86c   : > { %v2550_v22 = vadd.f32 %v2524_v14, %v10854_v5  ;;  %v2582_v56 = vsel %vm698_vm3, %v9004_v18, 0.0 }
 0x86d   : > { %2583 = vadd.xlane.f32.xlu1 %v2582_v56  ;;  %v6610_v31 = vpop.f32.mrf.mxu0 }
 0x86e   : > { %v9009_v53 = vadd.f32 %v5950_v55, %v2550_v22 }
 0x86f   : > { %v2527_v30 = vpop.f32.mrf.mxu0 }
 0x870   : > { %v2551_v19 = vadd.f32 %v2527_v30, %v10855_v7  ;;  %v2585_v54 = vsel %vm698_vm3, %v9009_v53, 0.0 }
 0x871   : > { %2586 = vadd.xlane.f32.xlu0 %v2585_v54  ;;  %v6611_v36 = vpop.f32.mrf.mxu0 }
 0x872   : > { %v9014_v39 = vadd.f32 %v5950_v55, %v2551_v19 }
 0x874   : > { %v2588_v13 = vsel %vm698_vm3, %v9014_v39, 0.0 }
 0x875   : > { %2589 = vadd.xlane.f32.xlu1 %v2588_v13 }
 0x878   : > { %v2532_v62 = vpop.f32.mrf.mxu0 }
 0x879   : > { %v2552_v49 = vadd.f32 %v2532_v62, %v10856_v41 }
 0x87a   : > { %v6614_v20 = vpop.f32.mrf.mxu0 }
 0x87b   : > { %v9019_v2 = vadd.f32 %v5950_v55, %v2552_v49  ;;  %v2540_v51 = vpop.f32.mrf.mxu1 }
 0x87c   : > { %v2554_v48 = vadd.f32 %v2540_v51, %v10857_v47  ;;  %v2535_v15 = vpop.f32.mrf.mxu0 }
 0x87d   : > { %v2553_v61 = vadd.f32 %v2535_v15, %v10858_v9  ;;  %v6618_v8 = vpop.f32.mrf.mxu1  ;;  %v2591_v29 = vsel %vm698_vm3, %v9019_v2, 0.0 }
 0x87e   : > { %v9025_v45 = vadd.f32 %v5950_v55, %v2554_v48  ;;  %2592 = vadd.xlane.f32.xlu0 %v2591_v29  ;;  %v6615_v21 = vpop.f32.mrf.mxu0  ;;  %v7207_v8 = vld [vmem:[%s10740_s10] sm:$0xff]  }
 0x87f   : > { %v9027_v44 = vadd.f32 %v5950_v55, %v2553_v61  ;;  %v2543_v27 = vpop.f32.mrf.mxu1  ;;  %v7206_v61 = vld [vmem:[%s10740_s10 + $0x8] sm:$0xff]  }
 0x880   : > { %v2597_v43 = vsel %vm723_vm4, %v9025_v45, 0.0  ;;  %6621 = vmatpush3.bf16.msra.mxu1 %v7206_v61 }
 0x881   : > { %v6619_v26 = vpop.f32.mrf.mxu1  ;;  %v2594_v25 = vsel %vm698_vm3, %v9027_v44, 0.0  ;;  %6622 = vmatprep.subr.bf16.mxu1 %v10840_v10 }
 0x882   : > { %2598 = vadd.xlane.f32.xlu0 %v2597_v43  ;;  %2595 = vadd.xlane.f32.xlu1 %v2594_v25 }
 0x884   : > { %6623 = vmatpush3.bf16.msra.mxu1 %v7207_v8 }
 0x885   : > { %6672 = vmatprep.subr.bf16.mxu1 %v10840_v10 }
 0x8ea   : > { %v2575_v42 = vpop.xlane.xlu1 %2574 }
 0x8eb   : > { %v2600_v11 = vmul.f32 0.03125, %v2575_v42 }
 0x8ed   : > { %v9034_v3 = vsub.f32 %v8989_v38, %v2600_v11 }
 0x8ee   : > { %v2578_v28 = vpop.xlane.xlu0 %2577 }
 0x8ef   : > { %v2601_v24 = vmul.f32 0.03125, %v2578_v28  ;;  %v2618_v59 = vmul.f32 %v9034_v3, %v9034_v3 }
 0x8f1   : > { %v9039_v55 = vsub.f32 %v8994_v37, %v2601_v24  ;;  %v2627_v33 = vsel %vm698_vm3, %v2618_v59, 0.0 }
 0x8f2   : > { %v2581_v40 = vpop.xlane.xlu0 %2580  ;;  %2628 = vadd.xlane.f32.xlu1 %v2627_v33 }
 0x8f3   : > { %v2602_v4 = vmul.f32 0.03125, %v2581_v40  ;;  %v2619_v57 = vmul.f32 %v9039_v55, %v9039_v55 }
 0x8f5   : > { %v9045_v52 = vsub.f32 %v8999_v32, %v2602_v4  ;;  %v2630_v23 = vsel %vm698_vm3, %v2619_v57, 0.0 }
 0x8f6   : > { %v2584_v1 = vpop.xlane.xlu1 %2583  ;;  %2631 = vadd.xlane.f32.xlu0 %v2630_v23 }
 0x8f7   : > { %v2603_v0 = vmul.f32 0.03125, %v2584_v1  ;;  %v2620_v50 = vmul.f32 %v9045_v52, %v9045_v52 }
 0x8f9   : > { %v9051_v12 = vsub.f32 %v9004_v18, %v2603_v0  ;;  %v2633_v34 = vsel %vm698_vm3, %v2620_v50, 0.0  ;;  %v5951_v50 = vld [vmem:[%s10738_s8] ss:$0 sm:$0xff] }
 0x8fa   : > { %v2587_v63 = vpop.xlane.xlu0 %2586  ;;  %2634 = vadd.xlane.f32.xlu1 %v2633_v34 }
 0x8fb   : > { %v2604_v60 = vmul.f32 0.03125, %v2587_v63  ;;  %v2621_v6 = vmul.f32 %v9051_v12, %v9051_v12 }
 0x8fd   : > { %v9057_v58 = vsub.f32 %v9009_v53, %v2604_v60  ;;  %v2636_v16 = vsel %vm698_vm3, %v2621_v6, 0.0 }
 0x8fe   : > { %v2590_v35 = vpop.xlane.xlu1 %2589  ;;  %2637 = vadd.xlane.f32.xlu0 %v2636_v16 }
 0x8ff   : > { %v2605_v46 = vmul.f32 0.03125, %v2590_v35  ;;  %v2622_v14 = vmul.f32 %v9057_v58, %v9057_v58  ;;  %v5952_v35 = vld [vmem:[%s10739_s9] ss:$0 sm:$0xff] }
 0x901   : > { %v9063_v5 = vsub.f32 %v9014_v39, %v2605_v46  ;;  %v2639_v22 = vsel %vm698_vm3, %v2622_v14, 0.0 }
 0x902   : > { %2640 = vadd.xlane.f32.xlu1 %v2639_v22 }
 0x903   : > { %v2623_v56 = vmul.f32 %v9063_v5, %v9063_v5 }
 0x905   : > { %v2642_v31 = vsel %vm698_vm3, %v2623_v56, 0.0 }
 0x906   : > { %2643 = vadd.xlane.f32.xlu0 %v2642_v31 }
 0x907   : > { %v2593_v30 = vpop.xlane.xlu0 %2592 }
 0x908   : > { %v2606_v7 = vmul.f32 0.03125, %v2593_v30 }
 0x90a   : > { %v9070_v19 = vsub.f32 %v9019_v2, %v2606_v7 }
 0x90b   : > { %v2599_v54 = vpop.xlane.xlu0 %2598  ;;  %v2596_v36 = vpop.xlane.xlu1 %2595 }
 0x90c   : > { %v2608_v13 = vmul.f32 0.03125, %v2599_v54  ;;  %v2607_v62 = vmul.f32 0.03125, %v2596_v36  ;;  %v2624_v41 = vmul.f32 %v9070_v19, %v9070_v19 }
 0x90e   : > { %v9075_v49 = vsub.f32 %v9025_v45, %v2608_v13  ;;  %v9078_v20 = vsub.f32 %v9027_v44, %v2607_v62  ;;  %v2645_v51 = vsel %vm698_vm3, %v2624_v41, 0.0 }
 0x90f   : > { %2646 = vadd.xlane.f32.xlu1 %v2645_v51 }
 0x910   : > { %v2626_v47 = vmul.f32 %v9075_v49, %v9075_v49  ;;  %v2625_v48 = vmul.f32 %v9078_v20, %v9078_v20 }
 0x912   : > { %v2651_v15 = vsel %vm723_vm4, %v2626_v47, 0.0  ;;  %v2648_v9 = vsel %vm698_vm3, %v2625_v48, 0.0 }
 0x913   : > { %2652 = vadd.xlane.f32.xlu1 %v2651_v15  ;;  %2649 = vadd.xlane.f32.xlu0 %v2648_v9 }
 0x97b   : > { %v2629_v29 = vpop.xlane.xlu1 %2628 }
 0x97c   : > { %v2654_v21 = vmul.f32 0.03125, %v2629_v29 }
 0x97e   : > { %v2663_v27 = vadd.f32 1e-05, %v2654_v21 }
 0x97f   : > { %v2632_v43 = vpop.xlane.xlu0 %2631 }
 0x980   : > { %7386 = vrsqrt.f32 %v2663_v27  ;;  %v2655_v26 = vmul.f32 0.03125, %v2632_v43 }
 0x982   : > { %v2664_v25 = vadd.f32 1e-05, %v2655_v26 }
 0x983   : > { %v2635_v42 = vpop.xlane.xlu1 %2634 }
 0x984   : > { %7388 = vrsqrt.f32 %v2664_v25  ;;  %v2656_v11 = vmul.f32 0.03125, %v2635_v42 }
 0x986   : > { %v2665_v28 = vadd.f32 1e-05, %v2656_v11 }
 0x987   : > { %v2638_v24 = vpop.xlane.xlu0 %2637 }
 0x988   : > { %7390 = vrsqrt.f32 %v2665_v28  ;;  %v2657_v59 = vmul.f32 0.03125, %v2638_v24 }
 0x98a   : > { %v2666_v33 = vadd.f32 1e-05, %v2657_v59 }
 0x98b   : > { %v2641_v40 = vpop.xlane.xlu1 %2640 }
 0x98c   : > { %7392 = vrsqrt.f32 %v2666_v33  ;;  %v2658_v4 = vmul.f32 0.03125, %v2641_v40 }
 0x98d   : > { %v7387_v57 = vpop.eup %7386 }
 0x98e   : > { %v2681_v23 = vmul.f32 %v7387_v57, %v9034_v3  ;;  %v2667_v1 = vadd.f32 1e-05, %v2658_v4 }
 0x98f   : > { %v2644_v0 = vpop.xlane.xlu0 %2643 }
 0x990   : > { %7394 = vrsqrt.f32 %v2667_v1  ;;  %v2659_v34 = vmul.f32 0.03125, %v2644_v0  ;;  %v2696_v16 = vmul.f32 %v5951_v50, %v2681_v23 }
 0x991   : > { %v7389_v63 = vpop.eup %7388 }
 0x992   : > { %v2682_v60 = vmul.f32 %v7389_v63, %v9039_v55  ;;  %v2668_v6 = vadd.f32 1e-05, %v2659_v34  ;;  %v2711_v14 = vadd.f32 %v5952_v35, %v2696_v16  ;;  %v7211_v63 = vld [vmem:[%s10742_s12] sm:$0xff]  }
 0x994   : > { %7396 = vrsqrt.f32 %v2668_v6  ;;  %v2697_v46 = vmul.f32 %v5951_v50, %v2682_v60  ;;  %v9144_v60 = vld [vmem:[%s10741_s11] ss:$0 sm:$0xff] }
 0x995   : > { %v7391_v3 = vpop.eup %7390 }
 0x996   : > { %v2712_v22 = vadd.f32 %v5952_v35, %v2697_v46  ;;  %v2683_v56 = vmul.f32 %v7391_v3, %v9045_v52 }
 0x998   : > { %v2647_v31 = vpop.xlane.xlu1 %2646  ;;  %v2720_v30 = vpack.c.bf16 %v2712_v22, %v2711_v14  ;;  %v2698_v36 = vmul.f32 %v5951_v50, %v2683_v56 }
 0x999   : > { %v7393_v7 = vpop.eup %7392  ;;  %v2660_v54 = vmul.f32 0.03125, %v2647_v31 }
 0x99a   : > { %6625 = vmatmul.mubr.msk.bf16.vlgmr.msra.gmra.mxu1 %vm698_vm3, %v2720_v30  ;;  %v2684_v55 = vmul.f32 %v7393_v7, %v9051_v12  ;;  %v2713_v9 = vadd.f32 %v5952_v35, %v2698_v36 }
 0x99b   : > { %v2669_v13 = vadd.f32 1e-05, %v2660_v54  ;;  %6628 = vmatprep.mubr.msk.bf16.mxu1 %vm7721_vm1, %v10840_v10 }
 0x99c   : > { %v2650_v62 = vpop.xlane.xlu0 %2649  ;;  %v2653_v41 = vpop.xlane.xlu1 %2652  ;;  %v2699_v51 = vmul.f32 %v5951_v50, %v2684_v55 }
 0x99d   : > { %v7395_v47 = vpop.eup %7394  ;;  %7398 = vrsqrt.f32 %v2669_v13  ;;  %v2661_v48 = vmul.f32 0.03125, %v2650_v62  ;;  %v2662_v52 = vmul.f32 0.03125, %v2653_v41 }
 0x99e   : > { %v2685_v15 = vmul.f32 %v7395_v47, %v9057_v58  ;;  %v2714_v61 = vadd.f32 %v5952_v35, %v2699_v51 }
 0x99f   : > { %v2670_v8 = vadd.f32 1e-05, %v2661_v48  ;;  %v2671_v29 = vadd.f32 1e-05, %v2662_v52 }
 0x9a0   : > { %v2721_v21 = vpack.c.bf16 %v2714_v61, %v2713_v9  ;;  %v2700_v43 = vmul.f32 %v5951_v50, %v2685_v15 }
 0x9a1   : > { %v7397_v12 = vpop.eup %7396  ;;  %7400 = vrsqrt.f32 %v2670_v8 }
 0x9a2   : > { %v2686_v27 = vmul.f32 %v7397_v12, %v9063_v5  ;;  %7402 = vrsqrt.f32 %v2671_v29  ;;  %6629 = vmatmul.mubr.msk.bf16.gmra.mxu1 %vm698_vm3, %v2721_v21  ;;  %v2715_v25 = vadd.f32 %v5952_v35, %v2700_v43 }
 0x9a3   : > { %6632 = vmatprep.mubr.msk.bf16.mxu1 %vm7721_vm1, %v10840_v10 }
 0x9a4   : > { %v2701_v26 = vmul.f32 %v5951_v50, %v2686_v27 }
 0x9a6   : > { %v2716_v42 = vadd.f32 %v5952_v35, %v2701_v26 }
 0x9a8   : > { %v2722_v58 = vpack.c.bf16 %v2716_v42, %v2715_v25 }
 0x9aa   : > { %v7399_v11 = vpop.eup %7398  ;;  %6633 = vmatmul.mubr.msk.bf16.gmra.mxu1 %vm698_vm3, %v2722_v58 }
 0x9ab   : > { %v2687_v28 = vmul.f32 %v7399_v11, %v9070_v19  ;;  %6636 = vmatprep.mubr.msk.bf16.mxu1 %vm7721_vm1, %v10840_v10 }
 0x9ad   : > { %v2702_v33 = vmul.f32 %v5951_v50, %v2687_v28 }
 0x9ae   : > { %v7401_v5 = vpop.eup %7400 }
 0x9af   : > { %v7403_v24 = vpop.eup %7402  ;;  %v2688_v59 = vmul.f32 %v7401_v5, %v9078_v20  ;;  %v2717_v57 = vadd.f32 %v5952_v35, %v2702_v33  ;;  %v7209_v20 = vld [vmem:[%s10742_s12 + $0x10] sm:$0xff]  }
 0x9b0   : > { %v2689_v4 = vmul.f32 %v7403_v24, %v9075_v49  ;;  %v7208_v49 = vld [vmem:[%s10742_s12 + $0x18] sm:$0xff]  }
 0x9b1   : > { %v2703_v40 = vmul.f32 %v5951_v50, %v2688_v59  ;;  %6645 = vmatpush3.bf16.msra.mxu0 %v7208_v49 }
 0x9b2   : > { %v2704_v0 = vmul.f32 %v5951_v50, %v2689_v4  ;;  %6646 = vmatprep.subr.bf16.mxu0 %v10840_v10  ;;  %v7210_v50 = vld [vmem:[%s10742_s12 + $0x8] sm:$0xff]  }
 0x9b3   : > { %v2718_v23 = vadd.f32 %v5952_v35, %v2703_v40 }
 0x9b4   : > { %v2719_v19 = vadd.f32 %v5952_v35, %v2704_v0 }
 0x9b5   : > { %v2723_v1 = vpack.c.bf16 %v2718_v23, %v2717_v57  ;;  %6647 = vmatpush3.bf16.msra.mxu0 %v7209_v20 }
 0x9b6   : > { %v2724_v34 = vpack.c.bf16 %v2719_v19, %v2719_v19  ;;  %6648 = vmatprep.subr.bf16.mxu0 %v10840_v10 }
 0x9b7   : > { %6637 = vmatmul.mubr.msk.bf16.gmra.mxu1 %vm698_vm3, %v2723_v1 }
 0x9b8   : > { %6640 = vmatprep.mubr.msk.bf16.mxu1 %vm7721_vm1, %v10840_v10 }
 0x9b9   : > { %6649 = vmatpush3.bf16.msra.mxu0 %v7210_v50 }
 0x9ba   : > { %6650 = vmatprep.subr.bf16.mxu0 %v10840_v10 }
 0x9bd   : > { %6651 = vmatpush3.bf16.msra.mxu0 %v7211_v63 }
 0x9be   : > { %6696 = vmatprep.subr.bf16.mxu0 %v10840_v10 }
 0x9bf   : > { %6641 = vmatmul.mubr.msk.bf16.gmra.mxu1 %vm698_vm3, %v2724_v34 }
 0x9c0   : > { %6676 = vmatprep.mubr.msk.bf16.mxu1 %vm7721_vm1, %v10840_v10 }
 0xa5a   : > { %v2797_v6 = vpop.f32.mrf.mxu1 }
 0xa5b   : > { %v9147_v16 = vadd.f32 %v9144_v60, %v2797_v6 }
 0xa5c   : > { %v6626_v35 = vpop.f32.mrf.mxu1 }
 0xa5d   : > { %v9150_v46 = vmul.f32 0.70710677, %v9147_v16 }
 0xa5e   : > { %v2800_v3 = vpop.f32.mrf.mxu1 }
 0xa5f   : > { %v2853_v14 = vand.u32 2147483647, %v9150_v46  ;;  %v9154_v22 = vadd.f32 %v9144_v60, %v2800_v3  ;;  %vm3033_vm11 = vcmp.ge.f32.partialorder %v9150_v46, 0.0 }
 0xa60   : > { %v6627_v56 = vpop.f32.mrf.mxu1 }
 0xa61   : > { %v2862_v31 = vmul.f32 0.3275911, %v2853_v14  ;;  %v9157_v30 = vmul.f32 0.70710677, %v9154_v22  ;;  %v2979_v61 = vsub.f32 0.0, %v2853_v14 }
 0xa62   : > { %v2805_v7 = vpop.f32.mrf.mxu1 }
 0xa63   : > { %v2871_v54 = vadd.f32 1.0, %v2862_v31  ;;  %v2854_v55 = vand.u32 2147483647, %v9157_v30  ;;  %v9161_v36 = vadd.f32 %v9144_v60, %v2805_v7  ;;  %v2988_v42 = vmul.f32 %v2979_v61, %v2853_v14 }
 0xa64   : > { %v6630_v13 = vpop.f32.mrf.mxu1  ;;  %vm3034_vm12 = vcmp.ge.f32.partialorder %v9157_v30, 0.0 }
 0xa65   : > { %7404 = vrcp.f32 %v2871_v54  ;;  %v2863_v62 = vmul.f32 0.3275911, %v2854_v55  ;;  %v9164_v41 = vmul.f32 0.70710677, %v9161_v36  ;;  %v2980_v11 = vsub.f32 0.0, %v2854_v55 }
 0xa66   : > { %v2808_v51 = vpop.f32.mrf.mxu1  ;;  %v2997_v4 = vmul.f32 1.442695, %v2988_v42 }
 0xa67   : > { %v2872_v47 = vadd.f32 1.0, %v2863_v62  ;;  %v9167_v48 = vadd.f32 %v9144_v60, %v2808_v51  ;;  %v2855_v52 = vand.u32 2147483647, %v9164_v41  ;;  %v2989_v0 = vmul.f32 %v2980_v11, %v2854_v55 }
 0xa68   : > { %v6631_v15 = vpop.f32.mrf.mxu1  ;;  %vm3035_vm13 = vcmp.ge.f32.partialorder %v9164_v41, 0.0 }
 0xa69   : > { %7406 = vrcp.f32 %v2872_v47  ;;  %v9171_v9 = vmul.f32 0.70710677, %v9167_v48  ;;  %v2864_v8 = vmul.f32 0.3275911, %v2855_v52  ;;  %v2981_v57 = vsub.f32 0.0, %v2855_v52 }
 0xa6a   : > { %v2813_v29 = vpop.f32.mrf.mxu1  ;;  %v2999_v14 = vmul.f32 1.442695, %v2989_v0 }
 0xa6b   : > { %v2856_v21 = vand.u32 2147483647, %v9171_v9  ;;  %v9175_v12 = vadd.f32 %v9144_v60, %v2813_v29  ;;  %v2873_v27 = vadd.f32 1.0, %v2864_v8  ;;  %v2990_v63 = vmul.f32 %v2981_v57, %v2855_v52 }
 0xa6c   : > { %v6634_v43 = vpop.f32.mrf.mxu1  ;;  %v9216_v57 = vmul.f32 0.5, %v9154_v22  ;;  %vm3036_vm15 = vcmp.ge.f32.partialorder %v9171_v9, 0.0 }
 0xa6d   : > { %v2865_v26 = vmul.f32 0.3275911, %v2856_v21  ;;  %v9178_v25 = vmul.f32 0.70710677, %v9175_v12  ;;  %7408 = vrcp.f32 %v2873_v27  ;;  %v2982_v19 = vsub.f32 0.0, %v2856_v21 }
 0xa6e   : > { %v2816_v58 = vpop.f32.mrf.mxu1  ;;  %v3001_v47 = vmul.f32 1.442695, %v2990_v63  ;;  %v9206_v27 = vmul.f32 0.5, %v9147_v16 }
 0xa6f   : > { %v2874_v28 = vadd.f32 1.0, %v2865_v26  ;;  %v2857_v5 = vand.u32 2147483647, %v9178_v25  ;;  %v9182_v24 = vadd.f32 %v9144_v60, %v2816_v58  ;;  %v2991_v56 = vmul.f32 %v2982_v19, %v2856_v21 }
 0xa70   : > { %v6635_v59 = vpop.f32.mrf.mxu1  ;;  %vm3037_vm0 = vcmp.ge.f32.partialorder %v9178_v25, 0.0 }
 0xa71   : > { %7410 = vrcp.f32 %v2874_v28  ;;  %v2866_v33 = vmul.f32 0.3275911, %v2857_v5  ;;  %v9187_v23 = vmul.f32 0.70710677, %v9182_v24  ;;  %v2983_v7 = vsub.f32 0.0, %v2857_v5 }
 0xa72   : > { %v9184_v40 = vpop.eup %7404  ;;  %v3003_v29 = vmul.f32 1.442695, %v2991_v56 }
 0xa73   : > { %v2898_v1 = vmul.f32 1.0614054, %v9184_v40  ;;  %v2875_v34 = vadd.f32 1.0, %v2866_v33  ;;  %v2858_v49 = vand.u32 2147483647, %v9187_v23  ;;  %v2992_v26 = vmul.f32 %v2983_v7, %v2857_v5 }
 0xa74   : > { %vm3038_vm2 = vcmp.ge.f32.partialorder %v9187_v23, 0.0 }
 0xa75   : > { %v2907_v20 = vadd.f32 -1.4531521, %v2898_v1  ;;  %7412 = vrcp.f32 %v2875_v34  ;;  %v2867_v6 = vmul.f32 0.3275911, %v2858_v49  ;;  %v2984_v28 = vsub.f32 0.0, %v2858_v49 }
 0xa76   : > { %v9191_v50 = vpop.eup %7406  ;;  %7414 = vpow2.f32 %v2997_v4  ;;  %v3005_v63 = vmul.f32 1.442695, %v2992_v26 }
 0xa77   : > { %v2916_v35 = vmul.f32 %v9184_v40, %v2907_v20  ;;  %v2899_v3 = vmul.f32 1.0614054, %v9191_v50  ;;  %v2821_v31 = vpop.f32.mrf.mxu1  ;;  %v2876_v54 = vadd.f32 1.0, %v2867_v6  ;;  %v2993_v56 = vmul.f32 %v2984_v28, %v2858_v49 }
 0xa78   : > { %v9196_v55 = vadd.f32 %v9144_v60, %v2821_v31 }
 0xa79   : > { %v2925_v13 = vadd.f32 1.4214138, %v2916_v35  ;;  %v2908_v62 = vadd.f32 -1.4531521, %v2899_v3  ;;  %v6638_v51 = vpop.f32.mrf.mxu1  ;;  %7416 = vrcp.f32 %v2876_v54 }
 0xa7a   : > { %v9199_v52 = vmul.f32 0.70710677, %v9196_v55  ;;  %v9201_v15 = vpop.eup %7408  ;;  %7418 = vpow2.f32 %v2999_v14 }
 0xa7b   : > { %v2934_v61 = vmul.f32 %v9184_v40, %v2925_v13  ;;  %v2917_v8 = vmul.f32 %v9191_v50, %v2908_v62  ;;  %v2824_v21 = vpop.f32.mrf.mxu1  ;;  %v2900_v43 = vmul.f32 1.0614054, %v9201_v15  ;;  %7420 = vpow2.f32 %v3001_v47 }
 0xa7c   : > { %v2859_v42 = vand.u32 2147483647, %v9199_v52  ;;  %v9211_v59 = vadd.f32 %v9144_v60, %v2824_v21  ;;  %7422 = vpow2.f32 %v3003_v29  ;;  %v9236_v21 = vmul.f32 0.5, %v9161_v36 }
 0xa7d   : > { %v2943_v58 = vadd.f32 -0.28449672, %v2934_v61  ;;  %v2926_v11 = vadd.f32 1.4214138, %v2917_v8  ;;  %v6639_v33 = vpop.f32.mrf.mxu1  ;;  %v2909_v1 = vadd.f32 -1.4531521, %v2900_v43 }
 0xa7e   : > { %v9213_v4 = vpop.eup %7410  ;;  %v2868_v16 = vmul.f32 0.3275911, %v2859_v42  ;;  %v9223_v35 = vmul.f32 0.70710677, %v9211_v59  ;;  %v2985_v13 = vsub.f32 0.0, %v2859_v42  ;;  %vm3039_vm6 = vcmp.ge.f32.partialorder %v9199_v52, 0.0 }
 0xa7f   : > { %v2952_v0 = vmul.f32 %v9184_v40, %v2943_v58  ;;  %v2935_v5 = vmul.f32 %v9191_v50, %v2926_v11  ;;  %v2901_v19 = vmul.f32 1.0614054, %v9213_v4  ;;  %v2829_v34 = vpop.f32.mrf.mxu1  ;;  %v2918_v20 = vmul.f32 %v9201_v15, %v2909_v1 }
 0xa80   : > { %v2877_v6 = vadd.f32 1.0, %v2868_v16  ;;  %v9229_v62 = vand.u32 2147483647, %v9223_v35  ;;  %v3007_v16 = vmul.f32 1.442695, %v2993_v56 }
 0xa81   : > { %v2961_v22 = vadd.f32 0.2548296, %v2952_v0  ;;  %v2944_v3 = vadd.f32 -0.28449672, %v2935_v5  ;;  %v2910_v14 = vadd.f32 -1.4531521, %v2901_v19  ;;  %v6642_v31 = vpop.f32.mrf.mxu1  ;;  %v2994_v0 = vmul.f32 %v2985_v13, %v2859_v42 }
 0xa82   : > { %v9225_v7 = vpop.eup %7412  ;;  %v2927_v54 = vadd.f32 1.4214138, %v2918_v20  ;;  %7424 = vrcp.f32 %v2877_v6  ;;  %v2869_v26 = vmul.f32 0.3275911, %v9229_v62  ;;  %v9249_v31 = vadd.f32 %v9144_v60, %v2829_v34 }
 0xa83   : > { %v7415_v51 = vpop.eup %7414  ;;  %v2970_v47 = vmul.f32 %v9184_v40, %v2961_v22  ;;  %v2953_v61 = vmul.f32 %v9191_v50, %v2944_v3  ;;  %v2919_v8 = vmul.f32 %v9213_v4, %v2910_v14  ;;  %v2902_v49 = vmul.f32 1.0614054, %v9225_v7  ;;  %v2832_v29 = vpop.f32.mrf.mxu1 }
 0xa84   : > { %v2936_v43 = vmul.f32 %v9201_v15, %v2927_v54  ;;  %7426 = vpow2.f32 %v3005_v63  ;;  %v2878_v5 = vadd.f32 1.0, %v2869_v26 }
 0xa85   : > { %v3015_v58 = vmul.f32 %v7415_v51, %v2970_v47  ;;  %v2962_v11 = vadd.f32 0.2548296, %v2953_v61  ;;  %v2928_v28 = vadd.f32 1.4214138, %v2919_v8  ;;  %v2911_v33 = vadd.f32 -1.4531521, %v2902_v49  ;;  %v6643_v40 = vpop.f32.mrf.mxu1 }
 0xa86   : > { %v2945_v1 = vadd.f32 -0.28449672, %v2936_v43  ;;  %v9241_v19 = vpop.eup %7416  ;;  %7428 = vrcp.f32 %v2878_v5 }
 0xa87   : > { %v3024_v36 = vsub.f32 1.0, %v3015_v58  ;;  %v2971_v20 = vmul.f32 %v9191_v50, %v2962_v11  ;;  %v2937_v63 = vmul.f32 %v9213_v4, %v2928_v28  ;;  %v2920_v6 = vmul.f32 %v9225_v7, %v2911_v33  ;;  %v7419_v22 = vpop.eup %7418 }
 0xa88   : > { %v2954_v3 = vmul.f32 %v9201_v15, %v2945_v1  ;;  %v2903_v14 = vmul.f32 1.0614054, %v9241_v19  ;;  %v3009_v50 = vmul.f32 1.442695, %v2994_v0  ;;  %v7421_v61 = vpop.eup %7420  ;;  %7430 = vpow2.f32 %v3007_v16 }
 0xa89   : > { %v3042_v42 = vsub.f32 0.0, %v3024_v36  ;;  %v3016_v56 = vmul.f32 %v7419_v22, %v2971_v20  ;;  %v2946_v54 = vadd.f32 -0.28449672, %v2937_v63  ;;  %v2929_v13 = vadd.f32 1.4214138, %v2920_v6  ;;  %v7423_v60 = vpop.eup %7422 }
 0xa8a   : > { %v2963_v51 = vadd.f32 0.2548296, %v2954_v3  ;;  %v2912_v47 = vadd.f32 -1.4531521, %v2903_v14  ;;  %v9259_v58 = vmul.f32 0.70710677, %v9249_v31  ;;  %7432 = vpow2.f32 %v3009_v50 }
 0xa8b   : > { %v3051_v8 = vsel %vm3033_vm11, %v3024_v36, %v3042_v42  ;;  %v3025_v49 = vsub.f32 1.0, %v3016_v56  ;;  %v2955_v29 = vmul.f32 %v9213_v4, %v2946_v54  ;;  %v2938_v43 = vmul.f32 %v9225_v7, %v2929_v13 }
 0xa8c   : > { %v2972_v34 = vmul.f32 %v9201_v15, %v2963_v51  ;;  %v2921_v26 = vmul.f32 %v9241_v19, %v2912_v47  ;;  %v3060_v11 = vadd.f32 1.0, %v3051_v8  ;;  %v9263_v0 = vand.u32 2147483647, %v9259_v58 }
 0xa8d   : > { %v3043_v46 = vsub.f32 0.0, %v3025_v49  ;;  %v2964_v28 = vadd.f32 0.2548296, %v2955_v29  ;;  %v2947_v33 = vadd.f32 -0.28449672, %v2938_v43  ;;  %v2986_v20 = vsub.f32 0.0, %v9229_v62 }
 0xa8e   : > { %v3017_v40 = vmul.f32 %v7421_v61, %v2972_v34  ;;  %v2930_v1 = vadd.f32 1.4214138, %v2921_v26  ;;  %v3069_v42 = vmul.f32 %v3060_v11, %v9206_v27  ;;  %v2870_v30 = vmul.f32 0.3275911, %v9263_v0 }
 0xa8f   : > { %v9265_v5 = vpop.eup %7424  ;;  %v3052_v15 = vsel %vm3034_vm12, %v3025_v49, %v3043_v46  ;;  %v2973_v16 = vmul.f32 %v9213_v4, %v2964_v28  ;;  %v2956_v36 = vmul.f32 %v9225_v7, %v2947_v33  ;;  %v2995_v8 = vmul.f32 %v2986_v20, %v9229_v62 }
 0xa90   : > { %v3061_v63 = vadd.f32 1.0, %v3052_v15  ;;  %v3026_v6 = vsub.f32 1.0, %v3017_v40  ;;  %v2939_v22 = vmul.f32 %v9241_v19, %v2930_v1  ;;  %v2904_v3 = vmul.f32 1.0614054, %v9265_v5 }
 0xa91   : > { %v7427_v14 = vpop.eup %7426  ;;  %v3018_v56 = vmul.f32 %v7423_v60, %v2973_v16  ;;  %v2965_v54 = vadd.f32 0.2548296, %v2956_v36  ;;  %v2879_v49 = vadd.f32 1.0, %v2870_v30  ;;  %v3011_v40 = vmul.f32 1.442695, %v2995_v8 }
 0xa92   : > { %v3070_v13 = vmul.f32 %v3061_v63, %v9216_v57  ;;  %v3044_v4 = vsub.f32 0.0, %v3026_v6  ;;  %v2948_v51 = vadd.f32 -0.28449672, %v2939_v22  ;;  %v2913_v47 = vadd.f32 -1.4531521, %v2904_v3 }
 0xa93   : > { %v3027_v50 = vsub.f32 1.0, %v3018_v56  ;;  %v2974_v61 = vmul.f32 %v9225_v7, %v2965_v54  ;;  %v7429_v34 = vpop.eup %7428  ;;  %7434 = vrcp.f32 %v2879_v49  ;;  %v2838_v7 = vmul.f32 0.5, %v9167_v48 }
 0xa94   : > { %v3078_v29 = vpack.c.bf16 %v3070_v13, %v3069_v42  ;;  %v3053_v43 = vsel %vm3035_vm13, %v3026_v6, %v3044_v4  ;;  %v2957_v27 = vmul.f32 %v9241_v19, %v2948_v51  ;;  %v2922_v60 = vmul.f32 %v9265_v5, %v2913_v47 }
 0xa95   : > { %v3062_v26 = vadd.f32 1.0, %v3053_v43  ;;  %v3045_v57 = vsub.f32 0.0, %v3027_v50  ;;  %v3019_v11 = vmul.f32 %v7427_v14, %v2974_v61  ;;  %v2905_v33 = vmul.f32 1.0614054, %v7429_v34  ;;  %v7431_v20 = vpop.eup %7430 }
 0xa96   : > { %v2966_v46 = vadd.f32 0.2548296, %v2957_v27  ;;  %v2931_v28 = vadd.f32 1.4214138, %v2922_v60  ;;  %6653 = vmatmul.mubr.msk.bf16.vlgmr.msra.gmra.mxu0 %vm3115_vm14, %v3078_v29  ;;  %v2987_v48 = vsub.f32 0.0, %v9263_v0  ;;  %7436 = vpow2.f32 %v3011_v40 }
 0xa97   : > { %v3054_v41 = vsel %vm3036_vm15, %v3027_v50, %v3045_v57  ;;  %v3028_v62 = vsub.f32 1.0, %v3019_v11  ;;  %6656 = vmatprep.mubr.msk.bf16.mxu0 %vm7721_vm1, %v10840_v10  ;;  %v2914_v36 = vadd.f32 -1.4531521, %v2905_v33  ;;  %v3071_v63 = vmul.f32 %v3062_v26, %v9236_v21  ;;  %v7433_v42 = vpop.eup %7432 }
 0xa98   : > { %v3063_v1 = vadd.f32 1.0, %v3054_v41  ;;  %v2975_v15 = vmul.f32 %v9241_v19, %v2966_v46  ;;  %v2940_v16 = vmul.f32 %v9265_v5, %v2931_v28  ;;  %v2996_v21 = vmul.f32 %v2987_v48, %v9263_v0 }
 0xa99   : > { %v3046_v6 = vsub.f32 0.0, %v3028_v62  ;;  %v2923_v14 = vmul.f32 %v7429_v34, %v2914_v36  ;;  %v2839_v8 = vmul.f32 0.5, %v9175_v12  ;;  %v2840_v49 = vmul.f32 0.5, %v9182_v24 }
 0xa9a   : > { %v3072_v22 = vmul.f32 %v3063_v1, %v2838_v7  ;;  %v3020_v9 = vmul.f32 %v7431_v20, %v2975_v15  ;;  %v2949_v3 = vadd.f32 -0.28449672, %v2940_v16  ;;  %v3013_v60 = vmul.f32 1.442695, %v2996_v21 }
 0xa9b   : > { %v3055_v54 = vsel %vm3037_vm0, %v3028_v62, %v3046_v6  ;;  %v2932_v13 = vadd.f32 1.4214138, %v2923_v14  ;;  %vm3040_vm11 = vcmp.ge.f32.partialorder %v9223_v35, 0.0  ;;  %v2841_v48 = vmul.f32 0.5, %v9196_v55 }
 0xa9c   : > { %v3079_v56 = vpack.c.bf16 %v3072_v22, %v3071_v63  ;;  %v3029_v19 = vsub.f32 1.0, %v3020_v9  ;;  %v2958_v30 = vmul.f32 %v9265_v5, %v2949_v3  ;;  %v3064_v47 = vadd.f32 1.0, %v3055_v54 }
 0xa9d   : > { %v2941_v50 = vmul.f32 %v7429_v34, %v2932_v13  ;;  %7438 = vpow2.f32 %v3013_v60  ;;  %v2842_v22 = vmul.f32 0.5, %v9211_v59  ;;  %vm3041_vm12 = vcmp.ge.f32.partialorder %v9259_v58, 0.0 }
 0xa9e   : > { %v3047_v4 = vsub.f32 0.0, %v3029_v19  ;;  %v2967_v51 = vadd.f32 0.2548296, %v2958_v30  ;;  %6657 = vmatmul.mubr.msk.bf16.gmra.mxu0 %vm3115_vm14, %v3079_v56  ;;  %v3073_v26 = vmul.f32 %v3064_v47, %v2839_v8  ;;  %v2843_v59 = vmul.f32 0.5, %v9249_v31  ;;  %v5970_v47 = vld [vmem:[%s10743_s13] ss:$0 sm:$0xff] }
 0xa9f   : > { %6660 = vmatprep.mubr.msk.bf16.mxu0 %vm7721_vm1, %v10840_v10  ;;  %v2950_v43 = vadd.f32 -0.28449672, %v2941_v50 }
 0xaa0   : > { %v3056_v25 = vsel %vm3038_vm2, %v3029_v19, %v3047_v4  ;;  %v2976_v61 = vmul.f32 %v9265_v5, %v2967_v51  ;;  %v7435_v27 = vpop.eup %7434 }
 0xaa1   : > { %v3065_v29 = vadd.f32 1.0, %v3056_v25  ;;  %v2959_v11 = vmul.f32 %v7429_v34, %v2950_v43  ;;  %v2906_v23 = vmul.f32 1.0614054, %v7435_v27 }
 0xaa2   : > { %v3021_v0 = vmul.f32 %v7433_v42, %v2976_v61 }
 0xaa3   : > { %v3074_v57 = vmul.f32 %v3065_v29, %v2840_v49  ;;  %v2968_v33 = vadd.f32 0.2548296, %v2959_v11  ;;  %v2915_v7 = vadd.f32 -1.4531521, %v2906_v23  ;;  %v7437_v12 = vpop.eup %7436 }
 0xaa4   : > { %v3030_v46 = vsub.f32 1.0, %v3021_v0 }
 0xaa5   : > { %v3080_v28 = vpack.c.bf16 %v3074_v57, %v3073_v26  ;;  %v2977_v62 = vmul.f32 %v7429_v34, %v2968_v33  ;;  %v2924_v5 = vmul.f32 %v7435_v27, %v2915_v7 }
 0xaa6   : > { %v3048_v41 = vsub.f32 0.0, %v3030_v46 }
 0xaa7   : > { %6661 = vmatmul.mubr.msk.bf16.gmra.mxu0 %vm3115_vm14, %v3080_v28  ;;  %v3022_v24 = vmul.f32 %v7437_v12, %v2977_v62  ;;  %v2933_v40 = vadd.f32 1.4214138, %v2924_v5 }
 0xaa8   : > { %6664 = vmatprep.mubr.msk.bf16.mxu0 %vm7721_vm1, %v10840_v10  ;;  %v3057_v1 = vsel %vm3039_vm6, %v3030_v46, %v3048_v41 }
 0xaa9   : > { %v3031_v15 = vsub.f32 1.0, %v3022_v24  ;;  %v2942_v16 = vmul.f32 %v7435_v27, %v2933_v40  ;;  %v3066_v63 = vadd.f32 1.0, %v3057_v1 }
 0xaaa   : > { %v7439_v52 = vpop.eup %7438 }
 0xaab   : > { %v3049_v36 = vsub.f32 0.0, %v3031_v15  ;;  %v2951_v20 = vadd.f32 -0.28449672, %v2942_v16  ;;  %v3075_v14 = vmul.f32 %v3066_v63, %v2841_v48 }
 0xaad   : > { %v3058_v34 = vsel %vm3040_vm11, %v3031_v15, %v3049_v36  ;;  %v2960_v6 = vmul.f32 %v7435_v27, %v2951_v20 }
 0xaae   : > { %v3067_v9 = vadd.f32 1.0, %v3058_v34 }
 0xaaf   : > { %v2969_v3 = vadd.f32 0.2548296, %v2960_v6 }
 0xab0   : > { %v3076_v42 = vmul.f32 %v3067_v9, %v2842_v22 }
 0xab1   : > { %v2978_v56 = vmul.f32 %v7435_v27, %v2969_v3 }
 0xab2   : > { %v3081_v54 = vpack.c.bf16 %v3076_v42, %v3075_v14  ;;  %v7212_v14 = vld [vmem:[%s10829_s5 + $0x18] sm:$0xff]  }
 0xab3   : > { %v3023_v19 = vmul.f32 %v7439_v52, %v2978_v56  ;;  %6673 = vmatpush3.bf16.msra.mxu1 %v7212_v14 }
 0xab4   : > { %6665 = vmatmul.mubr.msk.bf16.gmra.mxu0 %vm3115_vm14, %v3081_v54  ;;  %6674 = vmatprep.subr.bf16.mxu1 %v10840_v10 }
 0xab5   : > { %v3032_v30 = vsub.f32 1.0, %v3023_v19  ;;  %6668 = vmatprep.mubr.msk.bf16.mxu0 %vm7721_vm1, %v10840_v10 }
 0xab7   : > { %v3050_v35 = vsub.f32 0.0, %v3032_v30 }
 0xab9   : > { %v3059_v55 = vsel %vm3041_vm12, %v3032_v30, %v3050_v35 }
 0xaba   : > { %v3068_v13 = vadd.f32 1.0, %v3059_v55 }
 0xabc   : > { %v3077_v4 = vmul.f32 %v3068_v13, %v2843_v59 }
 0xabe   : > { %v3082_v51 = vpack.c.bf16 %v3077_v4, %v3077_v4 }
 0xac0   : > { %6669 = vmatmul.mubr.msk.bf16.gmra.mxu0 %vm3115_vm14, %v3082_v51 }
 0xac1   : > { %6706 = vmatprep.mubr.msk.bf16.mxu0 %vm7721_vm1, %v10840_v10 }
 0xb56   : > { %v3165_v21 = vpop.f32.mrf.mxu0 }
 0xb57   : > { %v3203_v50 = vadd.f32 %v3165_v21, %v8989_v38 }
 0xb58   : > { %v6654_v25 = vpop.f32.mrf.mxu0 }
 0xb59   : > { %v9322_v58 = vadd.f32 %v5970_v47, %v3203_v50 }
 0xb5a   : > { %v3168_v61 = vpop.f32.mrf.mxu0 }
 0xb5b   : > { %10859 = vst [vmem:[#allocation17_spill] sm:$0xff] %v9322_v58  ;;  %v3204_v31 = vadd.f32 %v3168_v61, %v8994_v37  ;;  %v3232_v8 = vsel %vm698_vm3, %v9322_v58, 0.0 }
 0xb5c   : > { %3233 = vadd.xlane.f32.xlu0 %v3232_v8  ;;  %v6655_v49 = vpop.f32.mrf.mxu0 }
 0xb5d   : > { %v9327_v29 = vadd.f32 %v5970_v47, %v3204_v31 }
 0xb5e   : > { %v3173_v43 = vpop.f32.mrf.mxu0 }
 0xb5f   : > { %10860 = vst [vmem:[#allocation15_spill] sm:$0xff] %v9327_v29  ;;  %v3205_v27 = vadd.f32 %v3173_v43, %v8999_v32  ;;  %v3235_v0 = vsel %vm698_vm3, %v9327_v29, 0.0 }
 0xb60   : > { %3236 = vadd.xlane.f32.xlu1 %v3235_v0  ;;  %v6658_v38 = vpop.f32.mrf.mxu0 }
 0xb61   : > { %v9332_v60 = vadd.f32 %v5970_v47, %v3205_v27 }
 0xb62   : > { %v3176_v26 = vpop.f32.mrf.mxu0 }
 0xb63   : > { %10861 = vst [vmem:[#allocation21_spill] sm:$0xff] %v9332_v60  ;;  %v3206_v37 = vadd.f32 %v3176_v26, %v9004_v18  ;;  %v3238_v57 = vsel %vm698_vm3, %v9332_v60, 0.0 }
 0xb64   : > { %3239 = vadd.xlane.f32.xlu0 %v3238_v57  ;;  %v6659_v11 = vpop.f32.mrf.mxu0 }
 0xb65   : > { %v9337_v23 = vadd.f32 %v5970_v47, %v3206_v37 }
 0xb67   : > { %10862 = vst [vmem:[#allocation20_spill] sm:$0xff] %v9337_v23  ;;  %v3181_v46 = vpop.f32.mrf.mxu0  ;;  %v3241_v32 = vsel %vm698_vm3, %v9337_v23, 0.0 }
 0xb68   : > { %v3207_v28 = vadd.f32 %v3181_v46, %v9009_v53  ;;  %3242 = vadd.xlane.f32.xlu1 %v3241_v32 }
 0xb69   : > { %v6662_v33 = vpop.f32.mrf.mxu0 }
 0xb6a   : > { %v9342_v7 = vadd.f32 %v5970_v47, %v3207_v28 }
 0xb6b   : > { %v3184_v41 = vpop.f32.mrf.mxu0 }
 0xb6c   : > { %10863 = vst [vmem:[#allocation16_spill] sm:$0xff] %v9342_v7  ;;  %v3208_v18 = vadd.f32 %v3184_v41, %v9014_v39  ;;  %v3244_v62 = vsel %vm698_vm3, %v9342_v7, 0.0 }
 0xb6d   : > { %3245 = vadd.xlane.f32.xlu0 %v3244_v62  ;;  %v6663_v5 = vpop.f32.mrf.mxu0 }
 0xb6e   : > { %v9347_v12 = vadd.f32 %v5970_v47, %v3208_v18 }
 0xb70   : > { %10864 = vst [vmem:[#allocation19_spill] sm:$0xff] %v9347_v12  ;;  %v3247_v24 = vsel %vm698_vm3, %v9347_v12, 0.0 }
 0xb71   : > { %3248 = vadd.xlane.f32.xlu1 %v3247_v24 }
 0xb74   : > { %v3189_v40 = vpop.f32.mrf.mxu0 }
 0xb75   : > { %v3209_v53 = vadd.f32 %v3189_v40, %v9019_v2 }
 0xb76   : > { %v6666_v1 = vpop.f32.mrf.mxu0 }
 0xb77   : > { %v9352_v15 = vadd.f32 %v5970_v47, %v3209_v53 }
 0xb78   : > { %v3192_v16 = vpop.f32.mrf.mxu0 }
 0xb79   : > { %10865 = vst [vmem:[#allocation22_spill] sm:$0xff] %v9352_v15  ;;  %v3210_v39 = vadd.f32 %v3192_v16, %v9027_v44  ;;  %v3250_v36 = vsel %vm698_vm3, %v9352_v15, 0.0 }
 0xb7a   : > { %3251 = vadd.xlane.f32.xlu0 %v3250_v36  ;;  %v6667_v20 = vpop.f32.mrf.mxu0 }
 0xb7b   : > { %v9357_v63 = vadd.f32 %v5970_v47, %v3210_v39 }
 0xb7d   : > { %10866 = vst [vmem:[#allocation18_spill] sm:$0xff] %v9357_v63  ;;  %v3253_v34 = vsel %vm698_vm3, %v9357_v63, 0.0 }
 0xb7e   : > { %3254 = vadd.xlane.f32.xlu1 %v3253_v34  ;;  %v7213_v34 = vld [vmem:[%s10829_s5 + $0x10] sm:$0xff]  }
 0xb7f   : > { %6675 = vmatpush3.bf16.msra.mxu1 %v7213_v34 }
 0xb80   : > { %v3197_v6 = vpop.f32.mrf.mxu0  ;;  %6726 = vmatprep.subr.bf16.mxu1 %v10840_v10 }
 0xb81   : > { %v3211_v2 = vadd.f32 %v3197_v6, %v9025_v45 }
 0xb82   : > { %v6670_v48 = vpop.f32.mrf.mxu0 }
 0xb83   : > { %v9362_v22 = vadd.f32 %v5970_v47, %v3211_v2 }
 0xb84   : > { %v3200_v9 = vpop.f32.mrf.mxu0 }
 0xb85   : > { %10867 = vst [vmem:[#allocation6_spill] sm:$0xff] %v9362_v22  ;;  %v3256_v44 = vsel %vm723_vm4, %v9362_v22, 0.0 }
 0xb86   : > { %3257 = vadd.xlane.f32.xlu0 %v3256_v44  ;;  %v6671_v3 = vpop.f32.mrf.mxu0 }
 0xbe5   : > { %v3234_v42 = vpop.xlane.xlu0 %3233 }
 0xbe6   : > { %v3259_v56 = vmul.f32 0.03125, %v3234_v42 }
 0xbe8   : > { %v9371_v45 = vsub.f32 %v9322_v58, %v3259_v56 }
 0xbe9   : > { %v3237_v52 = vpop.xlane.xlu1 %3236 }
 0xbea   : > { %v3260_v54 = vmul.f32 0.03125, %v3237_v52  ;;  %v3277_v19 = vmul.f32 %v9371_v45, %v9371_v45 }
 0xbec   : > { %v9376_v30 = vsub.f32 %v9327_v29, %v3260_v54  ;;  %v3286_v35 = vsel %vm698_vm3, %v3277_v19, 0.0 }
 0xbed   : > { %v3240_v55 = vpop.xlane.xlu0 %3239  ;;  %3287 = vadd.xlane.f32.xlu1 %v3286_v35 }
 0xbee   : > { %v3261_v59 = vmul.f32 0.03125, %v3240_v55  ;;  %v3278_v13 = vmul.f32 %v9376_v30, %v9376_v30 }
 0xbf0   : > { %v9382_v4 = vsub.f32 %v9332_v60, %v3261_v59  ;;  %v3289_v51 = vsel %vm698_vm3, %v3278_v13, 0.0 }
 0xbf1   : > { %v3243_v21 = vpop.xlane.xlu1 %3242  ;;  %3290 = vadd.xlane.f32.xlu0 %v3289_v51  ;;  %v9432_v51 = vld [vmem:[%s10830_s3 + $0x1] ss:$0 sm:$0xff] }
 0xbf2   : > { %v3262_v47 = vmul.f32 0.03125, %v3243_v21  ;;  %v3279_v50 = vmul.f32 %v9382_v4, %v9382_v4 }
 0xbf4   : > { %v9388_v25 = vsub.f32 %v9337_v23, %v3262_v47  ;;  %v3292_v61 = vsel %vm698_vm3, %v3279_v50, 0.0 }
 0xbf5   : > { %3293 = vadd.xlane.f32.xlu1 %v3292_v61 }
 0xbf6   : > { %v3246_v31 = vpop.xlane.xlu0 %3245  ;;  %v3280_v8 = vmul.f32 %v9388_v25, %v9388_v25 }
 0xbf7   : > { %v3263_v49 = vmul.f32 0.03125, %v3246_v31 }
 0xbf8   : > { %v3295_v43 = vsel %vm698_vm3, %v3280_v8, 0.0 }
 0xbf9   : > { %v9395_v27 = vsub.f32 %v9342_v7, %v3263_v49  ;;  %3296 = vadd.xlane.f32.xlu0 %v3295_v43  ;;  %v5974_v49 = vld [vmem:[%s10831_s4 + $0x1] ss:$0 sm:$0xff] }
 0xbfa   : > { %v3249_v0 = vpop.xlane.xlu1 %3248 }
 0xbfb   : > { %v3264_v38 = vmul.f32 0.03125, %v3249_v0  ;;  %v3281_v26 = vmul.f32 %v9395_v27, %v9395_v27 }
 0xbfd   : > { %v9400_v37 = vsub.f32 %v9347_v12, %v3264_v38  ;;  %v3298_v57 = vsel %vm698_vm3, %v3281_v26, 0.0 }
 0xbfe   : > { %3299 = vadd.xlane.f32.xlu1 %v3298_v57 }
 0xbff   : > { %v3282_v11 = vmul.f32 %v9400_v37, %v9400_v37 }
 0xc01   : > { %v3301_v46 = vsel %vm698_vm3, %v3282_v11, 0.0 }
 0xc02   : > { %3302 = vadd.xlane.f32.xlu0 %v3301_v46 }
 0xc03   : > { %v3252_v32 = vpop.xlane.xlu0 %3251 }
 0xc04   : > { %v3265_v28 = vmul.f32 0.03125, %v3252_v32 }
 0xc06   : > { %v9407_v33 = vsub.f32 %v9352_v15, %v3265_v28 }
 0xc07   : > { %v3255_v41 = vpop.xlane.xlu1 %3254 }
 0xc08   : > { %v3266_v18 = vmul.f32 0.03125, %v3255_v41  ;;  %v3283_v62 = vmul.f32 %v9407_v33, %v9407_v33 }
 0xc0a   : > { %v9412_v5 = vsub.f32 %v9357_v63, %v3266_v18  ;;  %v3304_v24 = vsel %vm698_vm3, %v3283_v62, 0.0 }
 0xc0b   : > { %3305 = vadd.xlane.f32.xlu1 %v3304_v24 }
 0xc0c   : > { %v3284_v40 = vmul.f32 %v9412_v5, %v9412_v5 }
 0xc0e   : > { %v3307_v53 = vsel %vm698_vm3, %v3284_v40, 0.0 }
 0xc0f   : > { %v3258_v1 = vpop.xlane.xlu0 %3257  ;;  %3308 = vadd.xlane.f32.xlu0 %v3307_v53 }
 0xc10   : > { %v3267_v16 = vmul.f32 0.03125, %v3258_v1 }
 0xc12   : > { %v9419_v39 = vsub.f32 %v9362_v22, %v3267_v16 }
 0xc14   : > { %v3285_v36 = vmul.f32 %v9419_v39, %v9419_v39 }
 0xc16   : > { %v3310_v20 = vsel %vm723_vm4, %v3285_v36, 0.0 }
 0xc17   : > { %3311 = vadd.xlane.f32.xlu1 %v3310_v20 }
 0xc76   : > { %v3288_v6 = vpop.xlane.xlu1 %3287 }
 0xc77   : > { %v3313_v2 = vmul.f32 0.03125, %v3288_v6 }
 0xc79   : > { %v3322_v48 = vadd.f32 1e-05, %v3313_v2 }
 0xc7a   : > { %v3291_v9 = vpop.xlane.xlu0 %3290 }
 0xc7b   : > { %7440 = vrsqrt.f32 %v3322_v48  ;;  %v3314_v44 = vmul.f32 0.03125, %v3291_v9 }
 0xc7d   : > { %v3323_v3 = vadd.f32 1e-05, %v3314_v44 }
 0xc7e   : > { %v3294_v14 = vpop.xlane.xlu1 %3293 }
 0xc7f   : > { %7442 = vrsqrt.f32 %v3323_v3  ;;  %v3315_v42 = vmul.f32 0.03125, %v3294_v14 }
 0xc81   : > { %v3324_v56 = vadd.f32 1e-05, %v3315_v42 }
 0xc82   : > { %v3297_v52 = vpop.xlane.xlu0 %3296 }
 0xc83   : > { %7444 = vrsqrt.f32 %v3324_v56  ;;  %v3316_v54 = vmul.f32 0.03125, %v3297_v52 }
 0xc85   : > { %v3325_v19 = vadd.f32 1e-05, %v3316_v54 }
 0xc87   : > { %7446 = vrsqrt.f32 %v3325_v19  ;;  %v3300_v35 = vpop.xlane.xlu1 %3299 }
 0xc88   : > { %v7441_v55 = vpop.eup %7440  ;;  %v3317_v59 = vmul.f32 0.03125, %v3300_v35 }
 0xc89   : > { %v3340_v13 = vmul.f32 %v7441_v55, %v9371_v45 }
 0xc8a   : > { %v3326_v21 = vadd.f32 1e-05, %v3317_v59 }
 0xc8b   : > { %v3303_v47 = vpop.xlane.xlu0 %3302  ;;  %v3355_v31 = vmul.f32 %v9432_v51, %v3340_v13 }
 0xc8c   : > { %v7443_v50 = vpop.eup %7442  ;;  %7448 = vrsqrt.f32 %v3326_v21  ;;  %v3318_v61 = vmul.f32 0.03125, %v3303_v47 }
 0xc8d   : > { %v3341_v8 = vmul.f32 %v7443_v50, %v9376_v30  ;;  %v3370_v38 = vadd.f32 %v5974_v49, %v3355_v31 }
 0xc8e   : > { %v3327_v43 = vadd.f32 1e-05, %v3318_v61 }
 0xc8f   : > { %v3356_v45 = vmul.f32 %v9432_v51, %v3341_v8 }
 0xc90   : > { %v7445_v0 = vpop.eup %7444  ;;  %7450 = vrsqrt.f32 %v3327_v43 }
 0xc91   : > { %v3371_v26 = vadd.f32 %v5974_v49, %v3356_v45  ;;  %v3342_v57 = vmul.f32 %v7445_v0, %v9382_v4 }
 0xc93   : > { %v3379_v11 = vpack.c.bf16 %v3371_v26, %v3370_v38  ;;  %v3357_v30 = vmul.f32 %v9432_v51, %v3342_v57 }
 0xc94   : > { %v7447_v46 = vpop.eup %7446  ;;  %v3306_v28 = vpop.xlane.xlu1 %3305 }
 0xc95   : > { %v3343_v32 = vmul.f32 %v7447_v46, %v9388_v25  ;;  %6677 = vmatmul.mubr.msk.bf16.vlgmr.msra.gmra.mxu1 %vm698_vm3, %v3379_v11  ;;  %v3319_v41 = vmul.f32 0.03125, %v3306_v28  ;;  %v3372_v40 = vadd.f32 %v5974_v49, %v3357_v30 }
 0xc96   : > { %6680 = vmatprep.mubr.msk.bf16.mxu1 %vm7721_vm1, %v10840_v10 }
 0xc97   : > { %v3358_v18 = vmul.f32 %v9432_v51, %v3343_v32  ;;  %v3328_v24 = vadd.f32 1e-05, %v3319_v41 }
 0xc98   : > { %v3309_v1 = vpop.xlane.xlu0 %3308 }
 0xc99   : > { %v7449_v62 = vpop.eup %7448  ;;  %v3373_v53 = vadd.f32 %v5974_v49, %v3358_v18  ;;  %7452 = vrsqrt.f32 %v3328_v24  ;;  %v3320_v25 = vmul.f32 0.03125, %v3309_v1 }
 0xc9a   : > { %v3344_v4 = vmul.f32 %v7449_v62, %v9395_v27 }
 0xc9b   : > { %v3380_v16 = vpack.c.bf16 %v3373_v53, %v3372_v40  ;;  %v3329_v20 = vadd.f32 1e-05, %v3320_v25 }
 0xc9c   : > { %v3359_v6 = vmul.f32 %v9432_v51, %v3344_v4 }
 0xc9d   : > { %v7451_v36 = vpop.eup %7450  ;;  %6681 = vmatmul.mubr.msk.bf16.gmra.mxu1 %vm698_vm3, %v3380_v16  ;;  %7454 = vrsqrt.f32 %v3329_v20 }
 0xc9e   : > { %v3345_v34 = vmul.f32 %v7451_v36, %v9400_v37  ;;  %6684 = vmatprep.mubr.msk.bf16.mxu1 %vm7721_vm1, %v10840_v10  ;;  %v3374_v27 = vadd.f32 %v5974_v49, %v3359_v6 }
 0xca0   : > { %v3360_v2 = vmul.f32 %v9432_v51, %v3345_v34  ;;  %v3312_v48 = vpop.xlane.xlu1 %3311 }
 0xca1   : > { %v3321_v44 = vmul.f32 0.03125, %v3312_v48 }
 0xca2   : > { %v3375_v9 = vadd.f32 %v5974_v49, %v3360_v2 }
 0xca3   : > { %v3330_v14 = vadd.f32 1e-05, %v3321_v44 }
 0xca4   : > { %v3381_v3 = vpack.c.bf16 %v3375_v9, %v3374_v27 }
 0xca5   : > { %7456 = vrsqrt.f32 %v3330_v14 }
 0xca6   : > { %6685 = vmatmul.mubr.msk.bf16.gmra.mxu1 %vm698_vm3, %v3381_v3  ;;  %v7453_v37 = vpop.eup %7452 }
 0xca7   : > { %6688 = vmatprep.mubr.msk.bf16.mxu1 %vm7721_vm1, %v10840_v10  ;;  %v3346_v42 = vmul.f32 %v7453_v37, %v9407_v33 }
 0xca9   : > { %v3361_v54 = vmul.f32 %v9432_v51, %v3346_v42 }
 0xcaa   : > { %v7455_v56 = vpop.eup %7454 }
 0xcab   : > { %v3347_v52 = vmul.f32 %v7455_v56, %v9412_v5  ;;  %v3376_v35 = vadd.f32 %v5974_v49, %v3361_v54 }
 0xcad   : > { %v3362_v19 = vmul.f32 %v9432_v51, %v3347_v52 }
 0xcaf   : > { %v3377_v55 = vadd.f32 %v5974_v49, %v3362_v19 }
 0xcb1   : > { %v3382_v59 = vpack.c.bf16 %v3377_v55, %v3376_v35 }
 0xcb2   : > { %v7457_v13 = vpop.eup %7456 }
 0xcb3   : > { %6689 = vmatmul.mubr.msk.bf16.gmra.mxu1 %vm698_vm3, %v3382_v59  ;;  %v3348_v21 = vmul.f32 %v7457_v13, %v9419_v39 }
 0xcb4   : > { %6692 = vmatprep.mubr.msk.bf16.mxu1 %vm7721_vm1, %v10840_v10 }
 0xcb5   : > { %v3363_v33 = vmul.f32 %v9432_v51, %v3348_v21 }
 0xcb7   : > { %v3378_v47 = vadd.f32 %v5974_v49, %v3363_v33 }
 0xcb9   : > { %v3383_v50 = vpack.c.bf16 %v3378_v47, %v3378_v47 }
 0xcbb   : > { %6693 = vmatmul.mubr.msk.bf16.gmra.mxu1 %vm698_vm3, %v3383_v50 }
 0xcbc   : > { %6736 = vmatprep.mubr.msk.bf16.mxu1 %vm7721_vm1, %v10840_v10 }
 0xd55   : > { %v3450_v5 = vpop.f32.mrf.mxu1 }
 0xd56   : > { %v3488_v25 = vmul.f32 0.17677669, %v3450_v5 }
 0xd57   : > { %v6678_v61 = vpop.f32.mrf.mxu1 }
 0xd59   : > { %v3453_v31 = vpop.f32.mrf.mxu1 }
 0xd5a   : > { %v9481_v40 = vpack.c.bf16 %v3453_v31, %v3450_v5  ;;  %v3489_v1 = vmul.f32 0.17677669, %v3453_v31 }
 0xd5b   : > { %v6679_v8 = vpop.f32.mrf.mxu1 }
 0xd5c   : > { %10869 = vst [vmem:[#allocation7_spill] sm:$0xff] %v9481_v40  ;;  %v9497_v16 = vpack.c.bf16 %v3489_v1, %v3488_v25 }
 0xd5d   : > { %v3458_v43 = vpop.f32.mrf.mxu1 }
 0xd5e   : > { %v3490_v20 = vmul.f32 0.17677669, %v3458_v43 }
 0xd5f   : > { %v6682_v45 = vpop.f32.mrf.mxu1 }
 0xd61   : > { %v3461_v0 = vpop.f32.mrf.mxu1 }
 0xd62   : > { %v9483_v53 = vpack.c.bf16 %v3461_v0, %v3458_v43  ;;  %v3491_v36 = vmul.f32 0.17677669, %v3461_v0 }
 0xd63   : > { %v6683_v39 = vpop.f32.mrf.mxu1 }
 0xd64   : > { %v9503_v34 = vpack.c.bf16 %v3491_v36, %v3490_v20 }
 0xd66   : > { %v3466_v38 = vpop.f32.mrf.mxu1 }
 0xd67   : > { %v3492_v2 = vmul.f32 0.17677669, %v3466_v38 }
 0xd68   : > { %v6686_v26 = vpop.f32.mrf.mxu1 }
 0xd6a   : > { %v3469_v57 = vpop.f32.mrf.mxu1 }
 0xd6b   : > { %v9473_v41 = vpack.c.bf16 %v3469_v57, %v3466_v38  ;;  %v3493_v6 = vmul.f32 0.17677669, %v3469_v57 }
 0xd6c   : > { %v6687_v11 = vpop.f32.mrf.mxu1 }
 0xd6d   : > { %v9509_v48 = vpack.c.bf16 %v3493_v6, %v3492_v2 }
 0xd73   : > { %v3474_v51 = vpop.f32.mrf.mxu1 }
 0xd74   : > { %v3494_v9 = vmul.f32 0.17677669, %v3474_v51 }
 0xd75   : > { %v6690_v49 = vpop.f32.mrf.mxu1 }
 0xd77   : > { %v3477_v46 = vpop.f32.mrf.mxu1 }
 0xd78   : > { %v9469_v32 = vpack.c.bf16 %v3477_v46, %v3474_v51  ;;  %v3495_v27 = vmul.f32 0.17677669, %v3477_v46 }
 0xd79   : > { %v6691_v30 = vpop.f32.mrf.mxu1 }
 0xd7a   : > { %3518 = vrot.lane.b32.xlu1 %v9469_v32, %s10868_s22  ;;  %v9515_v44 = vpack.c.bf16 %v3495_v27, %v3494_v9 }
 0xd7b   : > { %v3482_v28 = vpop.f32.mrf.mxu1 }
 0xd7c   : > { %v9475_v18 = vpack.c.bf16 %v3482_v28, %v3482_v28  ;;  %v3496_v3 = vmul.f32 0.17677669, %v3482_v28 }
 0xd7d   : > { %v6694_v62 = vpop.f32.mrf.mxu1 }
 0xd7e   : > { %3516 = vrot.lane.b32.xlu1 %v9473_v41, %s10868_s22  ;;  %3520 = vrot.lane.b32.xlu0 %v9475_v18, %s10868_s22  ;;  %v9521_v14 = vpack.c.bf16 %v3496_v3, %v3496_v3 }
 0xd7f   : > { %v3485_v24 = vpop.f32.mrf.mxu1 }
 0xd81   : > { %v6695_v4 = vpop.f32.mrf.mxu1 }
 0xd82   : > { %3512 = vrot.lane.b32.xlu1 %v9481_v40, %s10868_s22  ;;  %3514 = vrot.lane.b32.xlu0 %v9483_v53, %s10868_s22  ;;  %s10876_s22 = smov 64  }
 0xd86   : > { %3853 = vrot.lane.b32.xlu1 %v9469_v32, %s10870_s25  ;;  %3855 = vrot.lane.b32.xlu0 %v9475_v18, %s10870_s25 }
 0xd8a   : > { %3849 = vrot.lane.b32.xlu1 %v9483_v53, %s10870_s25  ;;  %3851 = vrot.lane.b32.xlu0 %v9473_v41, %s10870_s25 }
 0xd8e   : > { %3837 = vrot.lane.b32.xlu1 %v9497_v16, %s10871_s21  ;;  %3847 = vrot.lane.b32.xlu0 %v9481_v40, %s10870_s25  ;;  %s10877_s25 = smov 56  }
 0xd92   : > { %3839 = vrot.lane.b32.xlu1 %v9503_v34, %s10871_s21  ;;  %4185 = vrot.lane.b32.xlu0 %v9475_v18, %s10872_s24 }
 0xd96   : > { %3841 = vrot.lane.b32.xlu1 %v9509_v48, %s10871_s21  ;;  %4183 = vrot.lane.b32.xlu0 %v9469_v32, %s10872_s24 }
 0xd9a   : > { %3843 = vrot.lane.b32.xlu1 %v9515_v44, %s10871_s21  ;;  %4181 = vrot.lane.b32.xlu0 %v9473_v41, %s10872_s24 }
 0xd9e   : > { %4179 = vrot.lane.b32.xlu0 %v9483_v53, %s10872_s24  ;;  %3845 = vrot.lane.b32.xlu1 %v9521_v14, %s10871_s21  ;;  %s10878_s21 = smov 48  }
 0xda2   : > { %4177 = vrot.lane.b32.xlu0 %v9481_v40, %s10872_s24  ;;  %4167 = vrot.lane.b32.xlu1 %v9497_v16, %s10873_s19  ;;  %s10883_s24 = smov 40  }
 0xda6   : > { %4515 = vrot.lane.b32.xlu0 %v9475_v18, %s10874_s20  ;;  %4169 = vrot.lane.b32.xlu1 %v9503_v34, %s10873_s19 }
 0xdaa   : > { %4513 = vrot.lane.b32.xlu0 %v9469_v32, %s10874_s20  ;;  %4171 = vrot.lane.b32.xlu1 %v9509_v48, %s10873_s19 }
 0xdae   : > { %4511 = vrot.lane.b32.xlu0 %v9473_v41, %s10874_s20  ;;  %4173 = vrot.lane.b32.xlu1 %v9515_v44, %s10873_s19 }
 0xdb2   : > { %4509 = vrot.lane.b32.xlu0 %v9483_v53, %s10874_s20  ;;  %4175 = vrot.lane.b32.xlu1 %v9521_v14, %s10873_s19 }
 0xdb6   : > { %4507 = vrot.lane.b32.xlu0 %v9481_v40, %s10874_s20  ;;  %4497 = vrot.lane.b32.xlu1 %v9497_v16, %s10875_s26  ;;  %s7737_s20 = smov [#allocation2]  }
 0xdb7   : > { %s7662_s5 = sshll.u32 %s7737_s20, 4  ;;  %s7663_s5 = int_to_ptr.vmem [resolvable:$false] %s7662_s5 }
 0xdba   : > { %3734 = vrot.lane.b32.xlu0 %v9469_v32, %s10876_s22  ;;  %3736 = vrot.lane.b32.xlu1 %v9475_v18, %s10876_s22 }
 0xdbe   : > { %3730 = vrot.lane.b32.xlu0 %v9483_v53, %s10876_s22  ;;  %3732 = vrot.lane.b32.xlu1 %v9473_v41, %s10876_s22 }
 0xdc2   : > { %3728 = vrot.lane.b32.xlu0 %v9481_v40, %s10876_s22  ;;  %4071 = vrot.lane.b32.xlu1 %v9475_v18, %s10877_s25 }
 0xdc6   : > { %4067 = vrot.lane.b32.xlu0 %v9473_v41, %s10877_s25  ;;  %4069 = vrot.lane.b32.xlu1 %v9469_v32, %s10877_s25 }
 0xdca   : > { %4065 = vrot.lane.b32.xlu0 %v9483_v53, %s10877_s25  ;;  %4063 = vrot.lane.b32.xlu1 %v9481_v40, %s10877_s25  ;;  %s7664_s25 = scalar_lea.vmem %s7663_s5, 32 }
 0xdce   : > { %4401 = vrot.lane.b32.xlu0 %v9475_v18, %s10878_s21  ;;  %4399 = vrot.lane.b32.xlu1 %v9469_v32, %s10878_s21 }
 0xdd2   : > { %4397 = vrot.lane.b32.xlu0 %v9473_v41, %s10878_s21 }
 0xdec   : > { %v3519_v37 = vpop.permute.xlu1 %3518 }
 0xded   : > { %v3547_v59 = vsel %vm990_vm5, %v3519_v37, 0 }
 0xdf0   : > { %v3517_v42 = vpop.permute.xlu1 %3516  ;;  %v3521_v56 = vpop.permute.xlu0 %3520 }
 0xdf1   : > { %v3550_v52 = vsel %vm990_vm5, %v3521_v56, 0  ;;  %v3544_v50 = vsel %vm990_vm5, %v3517_v42, 0 }
 0xdf2   : > { %6697 = vmatpush3.bf16.xpose.msra.mxu0 %v3550_v52 }
 0xdf3   : > { %6698 = vmatprep.subr.bf16.mxu0 %v10840_v10 }
 0xdf4   : > { %v3513_v54 = vpop.permute.xlu1 %3512  ;;  %v3515_v19 = vpop.permute.xlu0 %3514 }
 0xdf5   : > { %v3541_v43 = vsel %vm990_vm5, %v3515_v19, 0  ;;  %v3538_v26 = vsel %vm990_vm5, %v3513_v54, 0 }
 0xdf8   : > { %v3854_v35 = vpop.permute.xlu1 %3853  ;;  %v3856_v55 = vpop.permute.xlu0 %3855 }
 0xdf9   : > { %v3885_v46 = vsel %vm990_vm5, %v3856_v55, 0  ;;  %v3882_v4 = vsel %vm990_vm5, %v3854_v35, 0 }
 0xdfa   : > { %6699 = vmatpush3.bf16.xpose.msra.mxu0 %v3547_v59 }
 0xdfb   : > { %6700 = vmatprep.subr.bf16.mxu0 %v10840_v10 }
 0xdfc   : > { %v3850_v13 = vpop.permute.xlu1 %3849  ;;  %v3852_v21 = vpop.permute.xlu0 %3851 }
 0xdfd   : > { %v3879_v36 = vsel %vm990_vm5, %v3852_v21, 0  ;;  %v3876_v27 = vsel %vm990_vm5, %v3850_v13, 0 }
 0xe00   : > { %v9581_v33 = vpop.permute.xlu1 %3837  ;;  %v3848_v47 = vpop.permute.xlu0 %3847 }
 0xe01   : > { %v3873_v42 = vsel %vm990_vm5, %v3848_v47, 0 }
 0xe02   : > { %6701 = vmatpush3.bf16.xpose.msra.mxu0 %v3544_v50 }
 0xe03   : > { %6702 = vmatprep.subr.bf16.mxu0 %v10840_v10 }
 0xe04   : > { %v9585_v5 = vpop.permute.xlu1 %3839  ;;  %v9587_v61 = vpop.permute.xlu0 %4185 }
 0xe05   : > { %v4215_v52 = vsel %vm990_vm5, %v9587_v61, 0 }
 0xe08   : > { %v9589_v31 = vpop.permute.xlu1 %3841  ;;  %v9591_v8 = vpop.permute.xlu0 %4183 }
 0xe09   : > { %v4212_v54 = vsel %vm990_vm5, %v9591_v8, 0 }
 0xe0a   : > { %6703 = vmatpush3.bf16.xpose.msra.mxu0 %v3541_v43 }
 0xe0b   : > { %6704 = vmatprep.subr.bf16.mxu0 %v10840_v10 }
 0xe0c   : > { %v9595_v45 = vpop.permute.xlu1 %3843  ;;  %v9597_v0 = vpop.permute.xlu0 %4181 }
 0xe0d   : > { %v4209_v19 = vsel %vm990_vm5, %v9597_v0, 0 }
 0xe10   : > { %v9599_v39 = vpop.permute.xlu0 %4179  ;;  %v9601_v38 = vpop.permute.xlu1 %3845 }
 0xe11   : > { %v4206_v35 = vsel %vm990_vm5, %v9599_v39, 0 }
 0xe12   : > { %6705 = vmatpush3.bf16.xpose.msra.mxu0 %v3538_v26 }
 0xe13   : > { %6756 = vmatprep.subr.bf16.mxu0 %v10840_v10 }
 0xe14   : > { %v9605_v57 = vpop.permute.xlu0 %4177  ;;  %v9607_v11 = vpop.permute.xlu1 %4167 }
 0xe15   : > { %v4203_v55 = vsel %vm990_vm5, %v9605_v57, 0 }
 0xe18   : > { %v9609_v51 = vpop.permute.xlu0 %4515  ;;  %v9611_v49 = vpop.permute.xlu1 %4169 }
 0xe19   : > { %6707 = vmatmul.mubr.msk.bf16.vlgmr.msra.gmra.mxu0 %vm990_vm5, %v9497_v16  ;;  %v4545_v59 = vsel %vm990_vm5, %v9609_v51, 0 }
 0xe1a   : > { %6757 = vmatpush3.bf16.xpose.msra.mxu0 %v3885_v46  ;;  %6710 = vmatprep.mubr.msk.bf16.mxu0 %vm7721_vm1, %v10840_v10 }
 0xe1b   : > { %6758 = vmatprep.subr.bf16.mxu0 %v10840_v10 }
 0xe1c   : > { %v9619_v30 = vpop.permute.xlu0 %4513  ;;  %v9621_v28 = vpop.permute.xlu1 %4171 }
 0xe1d   : > { %v4542_v13 = vsel %vm990_vm5, %v9619_v30, 0 }
 0xe20   : > { %v9623_v62 = vpop.permute.xlu0 %4511  ;;  %v9625_v24 = vpop.permute.xlu1 %4173 }
 0xe21   : > { %6711 = vmatmul.mubr.msk.bf16.gmra.mxu0 %vm990_vm5, %v9503_v34  ;;  %v4539_v21 = vsel %vm990_vm5, %v9623_v62, 0 }
 0xe22   : > { %6759 = vmatpush3.bf16.xpose.msra.mxu0 %v3882_v4  ;;  %6714 = vmatprep.mubr.msk.bf16.mxu0 %vm7721_vm1, %v10840_v10 }
 0xe23   : > { %6760 = vmatprep.subr.bf16.mxu0 %v10840_v10 }
 0xe24   : > { %v9633_v1 = vpop.permute.xlu1 %4175  ;;  %v9635_v25 = vpop.permute.xlu0 %4509 }
 0xe28   : > { %v9637_v16 = vpop.permute.xlu1 %4497  ;;  %v9645_v20 = vpop.permute.xlu0 %4507 }
 0xe29   : > { %6715 = vmatmul.mubr.msk.bf16.gmra.mxu0 %vm990_vm5, %v9509_v48  ;;  %v4533_v47 = vsel %vm990_vm5, %v9645_v20, 0 }
 0xe2a   : > { %6761 = vmatpush3.bf16.xpose.msra.mxu0 %v3879_v36  ;;  %6718 = vmatprep.mubr.msk.bf16.mxu0 %vm7721_vm1, %v10840_v10 }
 0xe2b   : > { %6762 = vmatprep.subr.bf16.mxu0 %v10840_v10 }
 0xe2c   : > { %v3737_v6 = vpop.permute.xlu1 %3736  ;;  %v3735_v9 = vpop.permute.xlu0 %3734 }
 0xe2d   : > { %v3758_v2 = vand.u32 %v3737_v6, %v8263_v17 }
 0xe2f   : > { %6727 = vmatpush3.bf16.msra.mxu1 %v3758_v2 }
 0xe30   : > { %6728 = vmatprep.subr.bf16.mxu1 %v10840_v10  ;;  %v3733_v3 = vpop.permute.xlu1 %3732  ;;  %v3731_v37 = vpop.permute.xlu0 %3730 }
 0xe31   : > { %6719 = vmatmul.mubr.msk.bf16.gmra.mxu0 %vm990_vm5, %v9515_v44 }
 0xe32   : > { %6763 = vmatpush3.bf16.xpose.msra.mxu0 %v3876_v27  ;;  %6722 = vmatprep.mubr.msk.bf16.mxu0 %vm7721_vm1, %v10840_v10 }
 0xe33   : > { %6729 = vmatpush3.bf16.msra.mxu1 %v3735_v9  ;;  %6764 = vmatprep.subr.bf16.mxu0 %v10840_v10 }
 0xe34   : > { %6730 = vmatprep.subr.bf16.mxu1 %v10840_v10  ;;  %v3729_v56 = vpop.permute.xlu0 %3728 }
 0xe37   : > { %6731 = vmatpush3.bf16.msra.mxu1 %v3733_v3 }
 0xe38   : > { %6732 = vmatprep.subr.bf16.mxu1 %v10840_v10 }
 0xe39   : > { %6723 = vmatmul.mubr.msk.bf16.gmra.mxu0 %vm990_vm5, %v9521_v14 }
 0xe3a   : > { %6765 = vmatpush3.bf16.xpose.msra.mxu0 %v3873_v42  ;;  %6766 = vmatprep.mubr.msk.bf16.mxu0 %vm7721_vm1, %v10840_v10 }
 0xe3b   : > { %6733 = vmatpush3.bf16.msra.mxu1 %v3731_v37  ;;  %6816 = vmatprep.subr.bf16.mxu0 %v10840_v10 }
 0xe3c   : > { %6734 = vmatprep.subr.bf16.mxu1 %v10840_v10 }
 0xe3f   : > { %6735 = vmatpush3.bf16.msra.mxu1 %v3729_v56 }
 0xe40   : > { %6786 = vmatprep.subr.bf16.mxu1 %v10840_v10 }
 0xe41   : > { %6767 = vmatmul.mubr.msk.bf16.vlgmr.msra.gmra.mxu0 %vm990_vm5, %v9581_v33  ;;  %v4536_v33 = vsel %vm990_vm5, %v9635_v25, 0 }
 0xe42   : > { %6817 = vmatpush3.bf16.xpose.msra.mxu0 %v4215_v52  ;;  %6770 = vmatprep.mubr.msk.bf16.mxu0 %vm7721_vm1, %v10840_v10 }
 0xe43   : > { %6818 = vmatprep.subr.bf16.mxu0 %v10840_v10 }
 0xe49   : > { %6771 = vmatmul.mubr.msk.bf16.gmra.mxu0 %vm990_vm5, %v9585_v5 }
 0xe4a   : > { %6819 = vmatpush3.bf16.xpose.msra.mxu0 %v4212_v54  ;;  %6774 = vmatprep.mubr.msk.bf16.mxu0 %vm7721_vm1, %v10840_v10 }
 0xe4b   : > { %6820 = vmatprep.subr.bf16.mxu0 %v10840_v10 }
 0xe51   : > { %6775 = vmatmul.mubr.msk.bf16.gmra.mxu0 %vm990_vm5, %v9589_v31 }
 0xe52   : > { %6821 = vmatpush3.bf16.xpose.msra.mxu0 %v4209_v19  ;;  %6778 = vmatprep.mubr.msk.bf16.mxu0 %vm7721_vm1, %v10840_v10 }
 0xe53   : > { %6822 = vmatprep.subr.bf16.mxu0 %v10840_v10 }
 0xe59   : > { %6779 = vmatmul.mubr.msk.bf16.gmra.mxu0 %vm990_vm5, %v9595_v45 }
 0xe5a   : > { %6823 = vmatpush3.bf16.xpose.msra.mxu0 %v4206_v35  ;;  %6782 = vmatprep.mubr.msk.bf16.mxu0 %vm7721_vm1, %v10840_v10 }
 0xe5b   : > { %6824 = vmatprep.subr.bf16.mxu0 %v10840_v10 }
 0xe61   : > { %6783 = vmatmul.mubr.msk.bf16.gmra.mxu0 %vm990_vm5, %v9601_v38 }
 0xe62   : > { %6825 = vmatpush3.bf16.xpose.msra.mxu0 %v4203_v55  ;;  %6826 = vmatprep.mubr.msk.bf16.mxu0 %vm7721_vm1, %v10840_v10 }
 0xe63   : > { %6876 = vmatprep.subr.bf16.mxu0 %v10840_v10 }
 0xe69   : > { %6827 = vmatmul.mubr.msk.bf16.vlgmr.msra.gmra.mxu0 %vm990_vm5, %v9607_v11 }
 0xe6a   : > { %6877 = vmatpush3.bf16.xpose.msra.mxu0 %v4545_v59  ;;  %6830 = vmatprep.mubr.msk.bf16.mxu0 %vm7721_vm1, %v10840_v10 }
 0xe6b   : > { %6878 = vmatprep.subr.bf16.mxu0 %v10840_v10 }
 0xe71   : > { %6831 = vmatmul.mubr.msk.bf16.gmra.mxu0 %vm990_vm5, %v9611_v49 }
 0xe72   : > { %6879 = vmatpush3.bf16.xpose.msra.mxu0 %v4542_v13  ;;  %6834 = vmatprep.mubr.msk.bf16.mxu0 %vm7721_vm1, %v10840_v10 }
 0xe73   : > { %6880 = vmatprep.subr.bf16.mxu0 %v10840_v10 }
 0xe79   : > { %6835 = vmatmul.mubr.msk.bf16.gmra.mxu0 %vm990_vm5, %v9621_v28 }
 0xe7a   : > { %6881 = vmatpush3.bf16.xpose.msra.mxu0 %v4539_v21  ;;  %6838 = vmatprep.mubr.msk.bf16.mxu0 %vm7721_vm1, %v10840_v10 }
 0xe7b   : > { %6882 = vmatprep.subr.bf16.mxu0 %v10840_v10 }
 0xe81   : > { %6839 = vmatmul.mubr.msk.bf16.gmra.mxu0 %vm990_vm5, %v9625_v24 }
 0xe82   : > { %6883 = vmatpush3.bf16.xpose.msra.mxu0 %v4536_v33  ;;  %6842 = vmatprep.mubr.msk.bf16.mxu0 %vm7721_vm1, %v10840_v10 }
 0xe83   : > { %6884 = vmatprep.subr.bf16.mxu0 %v10840_v10 }
 0xe89   : > { %6843 = vmatmul.mubr.msk.bf16.gmra.mxu0 %vm990_vm5, %v9633_v1 }
 0xe8a   : > { %6885 = vmatpush3.bf16.xpose.msra.mxu0 %v4533_v47  ;;  %6886 = vmatprep.mubr.msk.bf16.mxu0 %vm7721_vm1, %v10840_v10 }
 0xe8b   : > { %6936 = vmatprep.subr.bf16.mxu0 %v10840_v10 }
 0xe91   : > { %6887 = vmatmul.mubr.msk.bf16.vlgmr.msra.gmra.mxu0 %vm990_vm5, %v9637_v16 }
 0xe92   : > { %6890 = vmatprep.mubr.msk.bf16.mxu0 %vm7721_vm1, %v10840_v10 }
 0xed9   : > { %v9739_v50 = vpop.f32.mrf.mxu0 }
 0xeda   : > { %v3624_v5 = vsel %vm1093_vm7, %v9739_v50, -inf }
 0xedb   : > { %3625 = vmax.xlane.f32.xlu0 %v3624_v5  ;;  %v6708_v61 = vpop.f32.mrf.mxu0 }
 0xedd   : > { %v9743_v31 = vpop.f32.mrf.mxu0 }
 0xede   : > { %v3627_v8 = vsel %vm1093_vm7, %v9743_v31, -inf }
 0xedf   : > { %3628 = vmax.xlane.f32.xlu1 %v3627_v8  ;;  %v6709_v43 = vpop.f32.mrf.mxu0 }
 0xee1   : > { %v9747_v45 = vpop.f32.mrf.mxu0 }
 0xee2   : > { %v3630_v0 = vsel %vm1093_vm7, %v9747_v45, -inf }
 0xee3   : > { %3631 = vmax.xlane.f32.xlu0 %v3630_v0  ;;  %v6712_v39 = vpop.f32.mrf.mxu0 }
 0xee5   : > { %v9751_v38 = vpop.f32.mrf.mxu0 }
 0xee6   : > { %v3633_v26 = vsel %vm1093_vm7, %v9751_v38, -inf }
 0xee7   : > { %3634 = vmax.xlane.f32.xlu0 %v3633_v26  ;;  %v6713_v57 = vpop.f32.mrf.mxu0 }
 0xee9   : > { %v9755_v11 = vpop.f32.mrf.mxu0 }
 0xeea   : > { %v3636_v51 = vsel %vm1093_vm7, %v9755_v11, -inf }
 0xeeb   : > { %3637 = vmax.xlane.f32.xlu1 %v3636_v51  ;;  %v6716_v49 = vpop.f32.mrf.mxu0 }
 0xeed   : > { %v9759_v46 = vpop.f32.mrf.mxu0 }
 0xeee   : > { %v3639_v30 = vsel %vm1093_vm7, %v9759_v46, -inf }
 0xeef   : > { %3640 = vmax.xlane.f32.xlu0 %v3639_v30  ;;  %v6717_v28 = vpop.f32.mrf.mxu0 }
 0xef1   : > { %v9763_v62 = vpop.f32.mrf.mxu0 }
 0xef2   : > { %v3642_v24 = vsel %vm1093_vm7, %v9763_v62, -inf }
 0xef3   : > { %3643 = vmax.xlane.f32.xlu1 %v3642_v24  ;;  %v6720_v4 = vpop.f32.mrf.mxu0 }
 0xef5   : > { %v9767_v1 = vpop.f32.mrf.mxu0 }
 0xef6   : > { %v3645_v25 = vsel %vm1093_vm7, %v9767_v1, -inf }
 0xef7   : > { %3646 = vmax.xlane.f32.xlu0 %v3645_v25  ;;  %v6721_v16 = vpop.f32.mrf.mxu0 }
 0xef9   : > { %v9771_v36 = vpop.f32.mrf.mxu0 }
 0xefa   : > { %v3648_v20 = vsel %vm1118_vm8, %v9771_v36, -inf }
 0xefb   : > { %3649 = vmax.xlane.f32.xlu1 %v3648_v20  ;;  %v6724_v6 = vpop.f32.mrf.mxu0 }
 0xefd   : > { %v3621_v2 = vpop.f32.mrf.mxu0 }
 0xeff   : > { %v6725_v27 = vpop.f32.mrf.mxu0 }
 0xf01   : > { %v9775_v9 = vpop.f32.mrf.mxu0 }
 0xf02   : > { %v3959_v3 = vsel %vm1093_vm7, %v9775_v9, -inf }
 0xf03   : > { %3960 = vmax.xlane.f32.xlu0 %v3959_v3  ;;  %v6768_v37 = vpop.f32.mrf.mxu0 }
 0xf05   : > { %v9779_v42 = vpop.f32.mrf.mxu0 }
 0xf06   : > { %v3962_v56 = vsel %vm1093_vm7, %v9779_v42, -inf }
 0xf07   : > { %3963 = vmax.xlane.f32.xlu1 %v3962_v56  ;;  %v6769_v52 = vpop.f32.mrf.mxu0 }
 0xf09   : > { %v9783_v54 = vpop.f32.mrf.mxu0 }
 0xf0a   : > { %v3965_v20 = vsel %vm1093_vm7, %v9783_v54, -inf }
 0xf0b   : > { %v6772_v19 = vpop.f32.mrf.mxu0 }
 0xf0d   : > { %v9785_v35 = vpop.f32.mrf.mxu0 }
 0xf0e   : > { %v3968_v6 = vsel %vm1093_vm7, %v9785_v35, -inf }
 0xf0f   : > { %v6773_v55 = vpop.f32.mrf.mxu0 }
 0xf11   : > { %v9787_v59 = vpop.f32.mrf.mxu0 }
 0xf12   : > { %v3971_v3 = vsel %vm1093_vm7, %v9787_v59, -inf }
 0xf13   : > { %v6776_v13 = vpop.f32.mrf.mxu0 }
 0xf15   : > { %v9789_v21 = vpop.f32.mrf.mxu0 }
 0xf16   : > { %v3974_v37 = vsel %vm1093_vm7, %v9789_v21, -inf }
 0xf17   : > { %v6777_v33 = vpop.f32.mrf.mxu0 }
 0xf18   : > { %4395 = vrot.lane.b32.xlu1 %v9483_v53, %s10878_s21 }
 0xf19   : > { %4393 = vrot.lane.b32.xlu0 %v9481_v40, %s10878_s21  ;;  %v9795_v47 = vpop.f32.mrf.mxu0  ;;  %s10890_s21 = smov 16  }
 0xf1a   : > { %v3977_v19 = vsel %vm1093_vm7, %v9795_v47, -inf }
 0xf1b   : > { %v6780_v5 = vpop.f32.mrf.mxu0 }
 0xf1d   : > { %4499 = vrot.lane.b32.xlu0 %v9503_v34, %s10875_s26  ;;  %v9799_v61 = vpop.f32.mrf.mxu0 }
 0xf1e   : > { %v3980_v55 = vsel %vm1093_vm7, %v9799_v61, -inf }
 0xf1f   : > { %v6781_v8 = vpop.f32.mrf.mxu0 }
 0xf21   : > { %v9801_v43 = vpop.f32.mrf.mxu0 }
 0xf22   : > { %v3983_v5 = vsel %vm1118_vm8, %v9801_v43, -inf }
 0xf23   : > { %v6784_v0 = vpop.f32.mrf.mxu0 }
 0xf25   : > { %v3956_v39 = vpop.f32.mrf.mxu0 }
 0xf27   : > { %v6785_v26 = vpop.f32.mrf.mxu0 }
 0xf29   : > { %v9803_v57 = vpop.f32.mrf.mxu0 }
 0xf2a   : > { %v4289_v8 = vsel %vm1093_vm7, %v9803_v57, -inf }
 0xf2b   : > { %v6828_v51 = vpop.f32.mrf.mxu0 }
 0xf2d   : > { %v9805_v49 = vpop.f32.mrf.mxu0 }
 0xf2e   : > { %v4292_v26 = vsel %vm1093_vm7, %v9805_v49, -inf }
 0xf2f   : > { %v6829_v30 = vpop.f32.mrf.mxu0 }
 0xf31   : > { %v9807_v28 = vpop.f32.mrf.mxu0 }
 0xf32   : > { %v4295_v51 = vsel %vm1093_vm7, %v9807_v28, -inf }
 0xf33   : > { %v6832_v24 = vpop.f32.mrf.mxu0 }
 0xf34   : > { %v9841_v24 = vpop.permute.xlu0 %4067 }
 0xf35   : > { %v9809_v4 = vpop.f32.mrf.mxu0 }
 0xf37   : > { %v6833_v34 = vpop.f32.mrf.mxu0 }
 0xf39   : > { %v9811_v25 = vpop.f32.mrf.mxu0 }
 0xf3b   : > { %v6836_v16 = vpop.f32.mrf.mxu0 }
 0xf3c   : > { %3966 = vmax.xlane.f32.xlu0 %v3965_v20  ;;  %3969 = vmax.xlane.f32.xlu1 %v3968_v6  ;;  %v4298_v16 = vsel %vm1093_vm7, %v9809_v4, -inf  ;;  %v4301_v20 = vsel %vm1093_vm7, %v9811_v25, -inf }
 0xf3d   : > { %v9817_v2 = vpop.f32.mrf.mxu0 }
 0xf3f   : > { %v6837_v27 = vpop.f32.mrf.mxu0 }
 0xf40   : > { %3972 = vmax.xlane.f32.xlu0 %v3971_v3  ;;  %3975 = vmax.xlane.f32.xlu1 %v3974_v37  ;;  %v9849_v27 = vpop.permute.xlu1 %4071  ;;  %v4304_v37 = vsel %vm1093_vm7, %v9817_v2, -inf }
 0xf41   : > { %v9823_v56 = vpop.f32.mrf.mxu0 }
 0xf43   : > { %v6840_v52 = vpop.f32.mrf.mxu0 }
 0xf44   : > { %3978 = vmax.xlane.f32.xlu0 %v3977_v19  ;;  %3981 = vmax.xlane.f32.xlu1 %v3980_v55  ;;  %v4307_v52 = vsel %vm1093_vm7, %v9823_v56, -inf  ;;  %v9855_v19 = vpop.permute.xlu0 %4065 }
 0xf45   : > { %v9829_v13 = vpop.f32.mrf.mxu0 }
 0xf47   : > { %v6841_v33 = vpop.f32.mrf.mxu0 }
 0xf48   : > { %3984 = vmax.xlane.f32.xlu0 %v3983_v5  ;;  %4290 = vmax.xlane.f32.xlu1 %v4289_v8  ;;  %v4310_v5 = vsel %vm1093_vm7, %v9829_v13, -inf }
 0xf49   : > { %v9835_v0 = vpop.f32.mrf.mxu0 }
 0xf4a   : > { %v4313_v8 = vsel %vm1118_vm8, %v9835_v0, -inf }
 0xf4b   : > { %v6844_v39 = vpop.f32.mrf.mxu0 }
 0xf4c   : > { %4293 = vmax.xlane.f32.xlu0 %v4292_v26  ;;  %4296 = vmax.xlane.f32.xlu1 %v4295_v51  ;;  %v9863_v39 = vpop.permute.xlu1 %4069  ;;  %v9865_v26 = vpop.permute.xlu0 %4401 }
 0xf4d   : > { %v4286_v30 = vpop.f32.mrf.mxu0 }
 0xf4f   : > { %v6845_v34 = vpop.f32.mrf.mxu0 }
 0xf50   : > { %4299 = vmax.xlane.f32.xlu0 %v4298_v16  ;;  %4302 = vmax.xlane.f32.xlu1 %v4301_v20  ;;  %v9869_v30 = vpop.permute.xlu1 %4063  ;;  %v9873_v16 = vpop.permute.xlu0 %4397 }
 0xf51   : > { %v9847_v6 = vpop.f32.mrf.mxu0 }
 0xf52   : > { %v4619_v51 = vsel %vm1093_vm7, %v9847_v6, -inf }
 0xf53   : > { %v6888_v3 = vpop.f32.mrf.mxu0 }
 0xf54   : > { %4305 = vmax.xlane.f32.xlu0 %v4304_v37  ;;  %4308 = vmax.xlane.f32.xlu1 %v4307_v52  ;;  %v9875_v20 = vpop.permute.xlu1 %4399 }
 0xf55   : > { %v9857_v55 = vpop.f32.mrf.mxu0 }
 0xf56   : > { %v4622_v34 = vsel %vm1093_vm7, %v9857_v55, -inf }
 0xf57   : > { %v6889_v33 = vpop.f32.mrf.mxu0 }
 0xf58   : > { %4311 = vmax.xlane.f32.xlu0 %v4310_v5  ;;  %4314 = vmax.xlane.f32.xlu1 %v4313_v8 }
 0xf5c   : > { %4620 = vmax.xlane.f32.xlu1 %v4619_v51 }
 0xf60   : > { %4623 = vmax.xlane.f32.xlu1 %v4622_v34 }
 0xf64   : > { %v3626_v3 = vpop.xlane.xlu0 %3625 }
 0xf65   : > { %v3651_v37 = vsub.f32 %v9739_v50, %v3626_v3 }
 0xf67   : > { %v3660_v52 = vmul.f32 1.442695, %v3651_v37 }
 0xf68   : > { %v3629_v33 = vpop.xlane.xlu1 %3628 }
 0xf69   : > { %7458 = vpow2.f32 %v3660_v52  ;;  %v3652_v5 = vsub.f32 %v9743_v31, %v3629_v33 }
 0xf6b   : > { %v3662_v8 = vmul.f32 1.442695, %v3652_v5 }
 0xf6c   : > { %v3632_v51 = vpop.xlane.xlu0 %3631 }
 0xf6d   : > { %7460 = vpow2.f32 %v3662_v8  ;;  %v3653_v22 = vsub.f32 %v9747_v45, %v3632_v51 }
 0xf6f   : > { %v3664_v63 = vmul.f32 1.442695, %v3653_v22 }
 0xf70   : > { %v3635_v15 = vpop.xlane.xlu0 %3634 }
 0xf71   : > { %7462 = vpow2.f32 %v3664_v63  ;;  %v3654_v34 = vsub.f32 %v9751_v38, %v3635_v15 }
 0xf73   : > { %v3666_v12 = vmul.f32 1.442695, %v3654_v34 }
 0xf74   : > { %v3638_v7 = vpop.xlane.xlu1 %3637 }
 0xf75   : > { %7464 = vpow2.f32 %v3666_v12  ;;  %v3655_v50 = vsub.f32 %v9755_v11, %v3638_v7 }
 0xf76   : > { %v9882_v3 = vpop.eup %7458 }
 0xf77   : > { %v3668_v37 = vmul.f32 1.442695, %v3655_v50  ;;  %v3678_v31 = vsel %vm1093_vm7, %v9882_v3, 0.0 }
 0xf78   : > { %v3641_v52 = vpop.xlane.xlu0 %3640  ;;  %3679 = vadd.xlane.f32.xlu1 %v3678_v31 }
 0xf79   : > { %7466 = vpow2.f32 %v3668_v37  ;;  %v3656_v22 = vsub.f32 %v9759_v46, %v3641_v52 }
 0xf7a   : > { %v9887_v45 = vpop.eup %7460 }
 0xf7b   : > { %v3670_v63 = vmul.f32 1.442695, %v3656_v22  ;;  %v3681_v15 = vsel %vm1093_vm7, %v9887_v45, 0.0 }
 0xf7c   : > { %v3644_v12 = vpop.xlane.xlu1 %3643  ;;  %3682 = vadd.xlane.f32.xlu0 %v3681_v15 }
 0xf7d   : > { %7468 = vpow2.f32 %v3670_v63  ;;  %v3657_v7 = vsub.f32 %v9763_v62, %v3644_v12 }
 0xf7e   : > { %v9892_v38 = vpop.eup %7462 }
 0xf7f   : > { %v3672_v11 = vmul.f32 1.442695, %v3657_v7  ;;  %v3684_v33 = vsel %vm1093_vm7, %v9892_v38, 0.0 }
 0xf80   : > { %v3647_v5 = vpop.xlane.xlu0 %3646  ;;  %3685 = vadd.xlane.f32.xlu1 %v3684_v33 }
 0xf81   : > { %7470 = vpow2.f32 %v3672_v11  ;;  %v3658_v46 = vsub.f32 %v9767_v1, %v3647_v5 }
 0xf82   : > { %v9897_v8 = vpop.eup %7464 }
 0xf83   : > { %v3674_v51 = vmul.f32 1.442695, %v3658_v46  ;;  %v3687_v34 = vsel %vm1093_vm7, %v9897_v8, 0.0 }
 0xf84   : > { %v3650_v50 = vpop.xlane.xlu1 %3649  ;;  %3688 = vadd.xlane.f32.xlu0 %v3687_v34 }
 0xf85   : > { %7472 = vpow2.f32 %v3674_v51  ;;  %v3659_v62 = vsub.f32 %v9771_v36, %v3650_v50 }
 0xf86   : > { %v9902_v37 = vpop.eup %7466 }
 0xf87   : > { %v3676_v31 = vmul.f32 1.442695, %v3659_v62  ;;  %v3690_v52 = vsel %vm1093_vm7, %v9902_v37, 0.0 }
 0xf88   : > { %3691 = vadd.xlane.f32.xlu1 %v3690_v52 }
 0xf89   : > { %7474 = vpow2.f32 %v3676_v31 }
 0xf8a   : > { %v9906_v1 = vpop.eup %7468 }
 0xf8b   : > { %v3693_v22 = vsel %vm1093_vm7, %v9906_v1, 0.0 }
 0xf8c   : > { %v3961_v63 = vpop.xlane.xlu0 %3960  ;;  %3694 = vadd.xlane.f32.xlu0 %v3693_v22 }
 0xf8d   : > { %v3986_v15 = vsub.f32 %v9775_v9, %v3961_v63 }
 0xf8e   : > { %v9911_v12 = vpop.eup %7470 }
 0xf8f   : > { %v3995_v36 = vmul.f32 1.442695, %v3986_v15  ;;  %v3696_v7 = vsel %vm1093_vm7, %v9911_v12, 0.0 }
 0xf90   : > { %v9915_v11 = vpop.permute.xlu0 %4393  ;;  %v3964_v33 = vpop.xlane.xlu1 %3963  ;;  %3697 = vadd.xlane.f32.xlu0 %v3696_v7 }
 0xf91   : > { %7476 = vpow2.f32 %v3995_v36  ;;  %v3987_v5 = vsub.f32 %v9779_v42, %v3964_v33 }
 0xf92   : > { %v9918_v46 = vpop.eup %7472 }
 0xf93   : > { %v3997_v51 = vmul.f32 1.442695, %v3987_v5  ;;  %v3699_v34 = vsel %vm1093_vm7, %v9918_v46, 0.0 }
 0xf94   : > { %v4500_v9 = vpop.permute.xlu0 %4499  ;;  %3700 = vadd.xlane.f32.xlu1 %v3699_v34  ;;  %v9937_v63 = vpop.permute.xlu1 %4395 }
 0xf95   : > { %7478 = vpow2.f32 %v3997_v51  ;;  %6891 = vmatmul.mubr.msk.bf16.gmra.mxu0 %vm990_vm5, %v4500_v9 }
 0xf96   : > { %v9923_v50 = vpop.eup %7474  ;;  %6894 = vmatprep.mubr.msk.bf16.mxu0 %vm7721_vm1, %v10840_v10 }
 0xf97   : > { %v3702_v62 = vsel %vm1118_vm8, %v9923_v50, 0.0 }
 0xf98   : > { %3703 = vadd.xlane.f32.xlu1 %v3702_v62 }
 0xf9e   : > { %v9929_v42 = vpop.eup %7476 }
 0xf9f   : > { %v4013_v31 = vsel %vm1093_vm7, %v9929_v42, 0.0 }
 0xfa0   : > { %4014 = vadd.xlane.f32.xlu1 %v4013_v31 }
 0xfa2   : > { %v9933_v52 = vpop.eup %7478 }
 0xfa3   : > { %v4016_v22 = vsel %vm1093_vm7, %v9933_v52, 0.0 }
 0xfa4   : > { %4017 = vadd.xlane.f32.xlu1 %v4016_v22 }
 0xfc5   : > { %v3967_v15 = vpop.xlane.xlu0 %3966  ;;  %v3970_v36 = vpop.xlane.xlu1 %3969 }
 0xfc6   : > { %v3988_v7 = vsub.f32 %v9783_v54, %v3967_v15  ;;  %v3989_v33 = vsub.f32 %v9785_v35, %v3970_v36 }
 0xfc8   : > { %v3999_v5 = vmul.f32 1.442695, %v3988_v7  ;;  %v4001_v51 = vmul.f32 1.442695, %v3989_v33 }
 0xfc9   : > { %v3973_v34 = vpop.xlane.xlu0 %3972  ;;  %v3976_v9 = vpop.xlane.xlu1 %3975 }
 0xfca   : > { %7480 = vpow2.f32 %v3999_v5  ;;  %v3990_v62 = vsub.f32 %v9787_v59, %v3973_v34  ;;  %v3991_v31 = vsub.f32 %v9789_v21, %v3976_v9 }
 0xfcb   : > { %7482 = vpow2.f32 %v4001_v51 }
 0xfcc   : > { %v4003_v23 = vmul.f32 1.442695, %v3990_v62  ;;  %v4005_v22 = vmul.f32 1.442695, %v3991_v31 }
 0xfcd   : > { %v3979_v60 = vpop.xlane.xlu0 %3978  ;;  %v3982_v29 = vpop.xlane.xlu1 %3981 }
 0xfce   : > { %7484 = vpow2.f32 %v4003_v23  ;;  %v3992_v58 = vsub.f32 %v9795_v47, %v3979_v60  ;;  %v3993_v54 = vsub.f32 %v9799_v61, %v3982_v29 }
 0xfcf   : > { %7486 = vpow2.f32 %v4005_v22 }
 0xfd0   : > { %v4007_v35 = vmul.f32 1.442695, %v3992_v58  ;;  %v4009_v15 = vmul.f32 1.442695, %v3993_v54 }
 0xfd1   : > { %v3985_v36 = vpop.xlane.xlu0 %3984  ;;  %v4291_v60 = vpop.xlane.xlu1 %4290 }
 0xfd2   : > { %7488 = vpow2.f32 %v4007_v35  ;;  %v3994_v7 = vsub.f32 %v9801_v43, %v3985_v36 }
 0xfd3   : > { %7490 = vpow2.f32 %v4009_v15 }
 0xfd4   : > { %v4011_v59 = vmul.f32 1.442695, %v3994_v7 }
 0xfd5   : > { %v4297_v51 = vpop.xlane.xlu1 %4296  ;;  %v4294_v15 = vpop.xlane.xlu0 %4293 }
 0xfd6   : > { %7492 = vpow2.f32 %v4011_v59 }
 0xfd7   : > { %v9946_v21 = vpop.eup %7480 }
 0xfd8   : > { %v9948_v33 = vpop.eup %7482  ;;  %v4019_v23 = vsel %vm1093_vm7, %v9946_v21, 0.0 }
 0xfd9   : > { %4020 = vadd.xlane.f32.xlu0 %v4019_v23  ;;  %v4022_v58 = vsel %vm1093_vm7, %v9948_v33, 0.0  ;;  %v4303_v54 = vpop.xlane.xlu1 %4302  ;;  %v4300_v7 = vpop.xlane.xlu0 %4299 }
 0xfda   : > { %4023 = vadd.xlane.f32.xlu1 %v4022_v58  ;;  %v4316_v58 = vsub.f32 %v9803_v57, %v4291_v60  ;;  %v4319_v57 = vsub.f32 %v9809_v4, %v4300_v7 }
 0xfdb   : > { %v9954_v29 = vpop.eup %7484 }
 0xfdc   : > { %v9956_v47 = vpop.eup %7486  ;;  %v4025_v61 = vsel %vm1093_vm7, %v9954_v29, 0.0 }
 0xfdd   : > { %10879 = vst [vmem:[#allocation8_spill] sm:$0xff] %v9956_v47  ;;  %v4028_v43 = vsel %vm1093_vm7, %v9956_v47, 0.0  ;;  %v9974_v35 = vpop.xlane.xlu1 %4308  ;;  %v4306_v23 = vpop.xlane.xlu0 %4305 }
 0xfde   : > { %4029 = vadd.xlane.f32.xlu0 %v4028_v43  ;;  %4026 = vadd.xlane.f32.xlu1 %v4025_v61  ;;  %v4325_v43 = vmul.f32 1.442695, %v4316_v58 }
 0xfdf   : > { %v9962_v5 = vpop.eup %7488 }
 0xfe0   : > { %10880 = vst [vmem:[#allocation9_spill] sm:$0xff] %v9962_v5  ;;  %v9964_v34 = vpop.eup %7490  ;;  %v4031_v9 = vsel %vm1093_vm7, %v9962_v5, 0.0 }
 0xfe1   : > { %10881 = vst [vmem:[#allocation10_spill] sm:$0xff] %v9964_v34  ;;  %v4034_v62 = vsel %vm1093_vm7, %v9964_v34, 0.0  ;;  %v4315_v36 = vpop.xlane.xlu1 %4314  ;;  %v4318_v34 = vsub.f32 %v9807_v28, %v4297_v51  ;;  %v4320_v28 = vsub.f32 %v9811_v25, %v4303_v54 }
 0xfe2   : > { %4032 = vadd.xlane.f32.xlu0 %v4031_v9  ;;  %4035 = vadd.xlane.f32.xlu1 %v4034_v62  ;;  %v4317_v9 = vsub.f32 %v9805_v49, %v4294_v15  ;;  %v4312_v62 = vpop.xlane.xlu0 %4311  ;;  %v4324_v15 = vsub.f32 %v9835_v0, %v4315_v36 }
 0xfe3   : > { %v9970_v31 = vpop.eup %7492  ;;  %v4329_v47 = vmul.f32 1.442695, %v4318_v34 }
 0xfe4   : > { %10882 = vst [vmem:[#allocation11_spill] sm:$0xff] %v9970_v31  ;;  %v4037_v22 = vsel %vm1118_vm8, %v9970_v31, 0.0  ;;  %v4321_v31 = vsub.f32 %v9817_v2, %v4306_v23  ;;  %v4327_v5 = vmul.f32 1.442695, %v4317_v9  ;;  %v4331_v2 = vmul.f32 1.442695, %v4319_v57 }
 0xfe5   : > { %v4621_v59 = vpop.xlane.xlu1 %4620 }
 0xfe6   : > { %4038 = vadd.xlane.f32.xlu1 %v4037_v22 }
 0xfe9   : > { %v4624_v61 = vpop.xlane.xlu1 %4623 }
 0xfea   : > { %v4647_v0 = vsub.f32 %v9857_v55, %v4624_v61  ;;  %v4093_v55 = vand.u32 %v9849_v27, %v8263_v17 }
 0xff7   : > { %4731 = vrot.lane.b32.xlu1 %v9475_v18, %s10883_s24  ;;  %v4323_v18 = vsub.f32 %v9829_v13, %v4312_v62  ;;  %v4646_v13 = vsub.f32 %v9847_v6, %v4621_v59  ;;  %v4657_v59 = vmul.f32 1.442695, %v4647_v0 }
 0xff8   : > { %4501 = vrot.lane.b32.xlu0 %v9509_v48, %s10875_s26  ;;  %v4335_v48 = vmul.f32 1.442695, %v4321_v31  ;;  %v4341_v31 = vmul.f32 1.442695, %v4324_v15 }
 0xff9   : > { %v4339_v60 = vmul.f32 1.442695, %v4323_v18  ;;  %v4655_v4 = vmul.f32 1.442695, %v4646_v13 }
0x1001   : > { %v3680_v22 = vpop.xlane.xlu1 %3679 }
0x1002   : > { %7494 = vrcp.f32 %v3680_v22 }
0x1003   : > { %7496 = vpow2.f32 %v4325_v43 }
0x1005   : > { %v3683_v40 = vpop.xlane.xlu0 %3682 }
0x1006   : > { %7498 = vrcp.f32 %v3683_v40  ;;  %v4333_v40 = vmul.f32 1.442695, %v4320_v28 }
0x1007   : > { %7500 = vpow2.f32 %v4327_v5 }
0x1008   : > { %7502 = vpow2.f32 %v4335_v48 }
0x1009   : > { %v3686_v49 = vpop.xlane.xlu1 %3685  ;;  %7504 = vpow2.f32 %v4329_v47 }
0x100a   : > { %7506 = vrcp.f32 %v3686_v49 }
0x100b   : > { %7508 = vpow2.f32 %v4339_v60 }
0x100d   : > { %v3689_v51 = vpop.xlane.xlu0 %3688 }
0x100e   : > { %7510 = vrcp.f32 %v3689_v51 }
0x100f   : > { %v7495_v5 = vpop.eup %7494  ;;  %7512 = vpow2.f32 %v4331_v2 }
0x1010   : > { %v9989_v7 = vpop.eup %7496  ;;  %7514 = vpow2.f32 %v4341_v31  ;;  %v3706_v25 = vmul.f32 %v7495_v5, %v9882_v3 }
0x1011   : > { %v3692_v34 = vpop.xlane.xlu1 %3691  ;;  %7516 = vpow2.f32 %v4333_v40  ;;  %v4343_v58 = vsel %vm1093_vm7, %v9989_v7, 0.0 }
0x1012   : > { %7518 = vrcp.f32 %v3692_v34 }
0x1013   : > { %v7499_v47 = vpop.eup %7498  ;;  %7520 = vpow2.f32 %v4655_v4 }
0x1014   : > { %v3708_v54 = vmul.f32 %v7499_v47, %v9887_v45  ;;  %v9994_v36 = vpop.eup %7500 }
0x1015   : > { %v3695_v6 = vpop.xlane.xlu0 %3694  ;;  %v9998_v43 = vpop.eup %7502  ;;  %v4346_v62 = vsel %vm1093_vm7, %v9994_v36, 0.0 }
0x1016   : > { %v3723_v23 = vpack.c.bf16 %v3708_v54, %v3706_v25  ;;  %7522 = vrcp.f32 %v3695_v6  ;;  %v10002_v3 = vpop.eup %7504  ;;  %v4358_v27 = vsel %vm1093_vm7, %v9998_v43, 0.0 }
0x1017   : > { %4344 = vadd.xlane.f32.xlu0 %v4343_v58  ;;  %v7507_v45 = vpop.eup %7506  ;;  %7524 = vpow2.f32 %v4657_v59  ;;  %v4349_v49 = vsel %vm1093_vm7, %v10002_v3, 0.0 }
0x1018   : > { %6737 = vmatmul.mubr.msk.bf16.vlgmr.msra.gmra.mxu1 %vm1093_vm7, %v3723_v23  ;;  %v10007_v9 = vpop.eup %7508  ;;  %v3710_v18 = vmul.f32 %v7507_v45, %v9892_v38 }
0x1019   : > { %6787 = vmatpush3.bf16.msra.mxu1 %v4093_v55  ;;  %v3698_v61 = vpop.xlane.xlu0 %3697  ;;  %6740 = vmatprep.mubr.msk.bf16.mxu1 %vm7721_vm1, %v10840_v10  ;;  %v4364_v15 = vsel %vm1093_vm7, %v10007_v9, 0.0 }
0x101a   : > { %6788 = vmatprep.subr.bf16.mxu1 %v10840_v10  ;;  %7526 = vrcp.f32 %v3698_v61 }
0x101b   : > { %v7511_v22 = vpop.eup %7510  ;;  %4347 = vadd.xlane.f32.xlu0 %v4346_v62  ;;  %4359 = vadd.xlane.f32.xlu1 %v4358_v27 }
0x101c   : > { %v3712_v48 = vmul.f32 %v7511_v22, %v9897_v8  ;;  %v10017_v60 = vpop.eup %7512 }
0x101d   : > { %6789 = vmatpush3.bf16.msra.mxu1 %v9863_v39  ;;  %v3701_v57 = vpop.xlane.xlu1 %3700  ;;  %v10024_v2 = vpop.eup %7514  ;;  %v4352_v51 = vsel %vm1093_vm7, %v10017_v60, 0.0 }
0x101e   : > { %7528 = vrcp.f32 %v3701_v57  ;;  %6790 = vmatprep.subr.bf16.mxu1 %v10840_v10  ;;  %v3724_v28 = vpack.c.bf16 %v3712_v48, %v3710_v18  ;;  %v10026_v38 = vpop.eup %7516  ;;  %v4367_v31 = vsel %vm1118_vm8, %v10024_v2, 0.0 }
0x101f   : > { %4350 = vadd.xlane.f32.xlu0 %v4349_v49  ;;  %4365 = vadd.xlane.f32.xlu1 %v4364_v15  ;;  %v7519_v39 = vpop.eup %7518  ;;  %v4355_v4 = vsel %vm1093_vm7, %v10026_v38, 0.0 }
0x1020   : > { %6741 = vmatmul.mubr.msk.bf16.gmra.mxu1 %vm1093_vm7, %v3724_v28  ;;  %v10032_v13 = vpop.eup %7520 }
0x1021   : > { %6791 = vmatpush3.bf16.msra.mxu1 %v9841_v24  ;;  %v3704_v8 = vpop.xlane.xlu1 %3703  ;;  %6744 = vmatprep.mubr.msk.bf16.mxu1 %vm7721_vm1, %v10840_v10  ;;  %v3714_v24 = vmul.f32 %v7519_v39, %v9902_v37  ;;  %v4673_v34 = vsel %vm1093_vm7, %v10032_v13, 0.0 }
0x1022   : > { %7530 = vrcp.f32 %v3704_v8  ;;  %6792 = vmatprep.subr.bf16.mxu1 %v10840_v10 }
0x1023   : > { %v7523_v40 = vpop.eup %7522  ;;  %4353 = vadd.xlane.f32.xlu0 %v4352_v51  ;;  %4368 = vadd.xlane.f32.xlu1 %v4367_v31 }
0x1024   : > { %v3716_v5 = vmul.f32 %v7523_v40, %v9906_v1  ;;  %v10047_v47 = vpop.eup %7524  ;;  %v10884_v40 = vld [vmem:[#allocation8_spill] sm:$0xff] }
0x1025   : > { %6793 = vmatpush3.bf16.msra.mxu1 %v9855_v19  ;;  %v4676_v19 = vsel %vm1093_vm7, %v10047_v47, 0.0 }
0x1026   : > { %6794 = vmatprep.subr.bf16.mxu1 %v10840_v10  ;;  %v3725_v0 = vpack.c.bf16 %v3716_v5, %v3714_v24 }
0x1027   : > { %4356 = vadd.xlane.f32.xlu0 %v4355_v4  ;;  %4674 = vadd.xlane.f32.xlu1 %v4673_v34  ;;  %v7527_v37 = vpop.eup %7526 }
0x1028   : > { %6745 = vmatmul.mubr.msk.bf16.gmra.mxu1 %vm1093_vm7, %v3725_v0  ;;  %v3718_v54 = vmul.f32 %v7527_v37, %v9911_v12  ;;  %v10887_v0 = vld [vmem:[#allocation10_spill] sm:$0xff] }
0x1029   : > { %6795 = vmatpush3.bf16.msra.mxu1 %v9869_v30  ;;  %v4015_v1 = vpop.xlane.xlu1 %4014  ;;  %6748 = vmatprep.mubr.msk.bf16.mxu1 %vm7721_vm1, %v10840_v10 }
0x102a   : > { %6846 = vmatprep.subr.bf16.mxu1 %v10840_v10  ;;  %7532 = vrcp.f32 %v4015_v1 }
0x102b   : > { %v7529_v25 = vpop.eup %7528  ;;  %4677 = vadd.xlane.f32.xlu1 %v4676_v19 }
0x102c   : > { %v3720_v6 = vmul.f32 %v7529_v25, %v9918_v46 }
0x102d   : > { %v4018_v59 = vpop.xlane.xlu1 %4017 }
0x102e   : > { %7534 = vrcp.f32 %v4018_v59  ;;  %v3726_v23 = vpack.c.bf16 %v3720_v6, %v3718_v54 }
0x102f   : > { %v7531_v30 = vpop.eup %7530 }
0x1030   : > { %6749 = vmatmul.mubr.msk.bf16.gmra.mxu1 %vm1093_vm7, %v3726_v23  ;;  %v3722_v58 = vmul.f32 %v7531_v30, %v9923_v50  ;;  %v4423_v50 = vand.u32 %v9865_v26, %v8263_v17 }
0x1031   : > { %6752 = vmatprep.mubr.msk.bf16.mxu1 %vm7721_vm1, %v10840_v10 }
0x1032   : > { %v3727_v55 = vpack.c.bf16 %v3722_v58, %v3722_v58 }
0x1037   : > { %v7533_v45 = vpop.eup %7532 }
0x1038   : > { %6753 = vmatmul.mubr.msk.bf16.gmra.mxu1 %vm1093_vm7, %v3727_v55  ;;  %v4041_v46 = vmul.f32 %v7533_v45, %v9929_v42 }
0x1039   : > { %6796 = vmatprep.mubr.msk.bf16.mxu1 %vm7721_vm1, %v10840_v10 }
0x103b   : > { %v7535_v12 = vpop.eup %7534 }
0x103c   : > { %v4043_v61 = vmul.f32 %v7535_v12, %v9933_v52  ;;  %4725 = vrot.lane.b32.xlu1 %v9483_v53, %s10883_s24  ;;  %v4322_v53 = vsub.f32 %v9823_v56, %v9974_v35 }
0x103d   : > { %4729 = vrot.lane.b32.xlu0 %v9469_v32, %s10883_s24 }
0x103e   : > { %v4058_v62 = vpack.c.bf16 %v4043_v61, %v4041_v46  ;;  %v4337_v32 = vmul.f32 1.442695, %v4322_v53 }
0x1040   : > { %4505 = vrot.lane.b32.xlu1 %v9521_v14, %s10875_s26  ;;  %6797 = vmatmul.mubr.msk.bf16.vlgmr.msra.gmra.mxu1 %vm1093_vm7, %v4058_v62  ;;  %7536 = vpow2.f32 %v4337_v32 }
0x1041   : > { %6847 = vmatpush3.bf16.msra.mxu1 %v4423_v50  ;;  %6800 = vmatprep.mubr.msk.bf16.mxu1 %vm7721_vm1, %v10840_v10 }
0x1042   : > { %6848 = vmatprep.subr.bf16.mxu1 %v10840_v10 }
0x1045   : > { %6849 = vmatpush3.bf16.msra.mxu1 %v9875_v20 }
0x1046   : > { %6850 = vmatprep.subr.bf16.mxu1 %v10840_v10 }
0x1049   : > { %6851 = vmatpush3.bf16.msra.mxu1 %v9873_v16 }
0x104a   : > { %6852 = vmatprep.subr.bf16.mxu1 %v10840_v10 }
0x104d   : > { %6853 = vmatpush3.bf16.msra.mxu1 %v9937_v63  ;;  %v10091_v26 = vpop.eup %7536 }
0x104e   : > { %6854 = vmatprep.subr.bf16.mxu1 %v10840_v10  ;;  %v4361_v16 = vsel %vm1093_vm7, %v10091_v26, 0.0 }
0x1051   : > { %6855 = vmatpush3.bf16.msra.mxu1 %v9915_v11 }
0x1052   : > { %6906 = vmatprep.subr.bf16.mxu1 %v10840_v10 }
0x1055   : > { %v10089_v14 = vpop.f32.mrf.mxu0 }
0x1056   : > { %v4625_v6 = vsel %vm1093_vm7, %v10089_v14, -inf }
0x1057   : > { %v6892_v56 = vpop.f32.mrf.mxu0 }
0x1059   : > { %v10093_v20 = vpop.f32.mrf.mxu0 }
0x105a   : > { %v4628_v11 = vsel %vm1093_vm7, %v10093_v20, -inf }
0x105b   : > { %v6893_v42 = vpop.f32.mrf.mxu0 }
0x105c   : > { %4362 = vadd.xlane.f32.xlu0 %v4361_v16 }
0x1062   : > { %v4021_v52 = vpop.xlane.xlu0 %4020 }
0x1063   : > { %7538 = vrcp.f32 %v4021_v52  ;;  %v4024_v63 = vpop.xlane.xlu1 %4023 }
0x1064   : > { %7540 = vrcp.f32 %v4024_v63  ;;  %4629 = vmax.xlane.f32.xlu1 %v4628_v11 }
0x1067   : > { %v4030_v35 = vpop.xlane.xlu0 %4029  ;;  %v4027_v27 = vpop.xlane.xlu1 %4026 }
0x1068   : > { %7542 = vrcp.f32 %v4030_v35 }
0x1069   : > { %7544 = vrcp.f32 %v4027_v27 }
0x106b   : > { %v4033_v22 = vpop.xlane.xlu0 %4032  ;;  %v4036_v18 = vpop.xlane.xlu1 %4035 }
0x106c   : > { %7546 = vrcp.f32 %v4033_v22 }
0x106d   : > { %7548 = vrcp.f32 %v4036_v18 }
0x106f   : > { %v4502_v48 = vpop.permute.xlu0 %4501  ;;  %v4039_v51 = vpop.xlane.xlu1 %4038 }
0x1070   : > { %v7539_v57 = vpop.eup %7538  ;;  %6895 = vmatmul.mubr.msk.bf16.gmra.mxu0 %vm990_vm5, %v4502_v48  ;;  %7550 = vrcp.f32 %v4039_v51 }
0x1071   : > { %v7541_v49 = vpop.eup %7540  ;;  %v4045_v15 = vmul.f32 %v7539_v57, %v9946_v21  ;;  %6898 = vmatprep.mubr.msk.bf16.mxu0 %vm7721_vm1, %v10840_v10 }
0x1072   : > { %4503 = vrot.lane.b32.xlu0 %v9515_v44, %s10875_s26  ;;  %v4047_v28 = vmul.f32 %v7541_v49, %v9948_v33  ;;  %v10885_v44 = vld [vmem:[#allocation7_spill] sm:$0xff]  ;;  %s10889_s26 = smov 8  }
0x1073   : > { %v4732_v58 = vpop.permute.xlu1 %4731 }
0x1074   : > { %v4059_v39 = vpack.c.bf16 %v4047_v28, %v4045_v15  ;;  %v4753_v32 = vand.u32 %v4732_v58, %v8263_v17 }
0x1075   : > { %v7543_v8 = vpop.eup %7542 }
0x1076   : > { %v7545_v31 = vpop.eup %7544  ;;  %4727 = vrot.lane.b32.xlu0 %v9473_v41, %s10883_s24  ;;  %6801 = vmatmul.mubr.msk.bf16.gmra.mxu1 %vm1093_vm7, %v4059_v39  ;;  %v4051_v24 = vmul.f32 %v7543_v8, %v10884_v40  ;;  %v10886_v41 = vld [vmem:[#allocation9_spill] sm:$0xff] }
0x1077   : > { %6804 = vmatprep.mubr.msk.bf16.mxu1 %vm7721_vm1, %v10840_v10  ;;  %v4049_v21 = vmul.f32 %v7545_v31, %v9954_v29  ;;  %v10888_v29 = vld [vmem:[#allocation11_spill] sm:$0xff] }
0x1079   : > { %v7547_v33 = vpop.eup %7546  ;;  %v4060_v5 = vpack.c.bf16 %v4051_v24, %v4049_v21 }
0x107a   : > { %4723 = vrot.lane.b32.xlu0 %v10885_v44, %s10883_s24  ;;  %v7549_v4 = vpop.eup %7548  ;;  %v4053_v34 = vmul.f32 %v7547_v33, %v10886_v41  ;;  %s10891_s24 = smov 24  }
0x107b   : > { %v4055_v37 = vmul.f32 %v7549_v4, %v10887_v0 }
0x107d   : > { %v4061_v1 = vpack.c.bf16 %v4055_v37, %v4053_v34  ;;  %v7551_v19 = vpop.eup %7550 }
0x107e   : > { %6805 = vmatmul.mubr.msk.bf16.gmra.mxu1 %vm1093_vm7, %v4060_v5  ;;  %v4057_v25 = vmul.f32 %v7551_v19, %v10888_v29 }
0x107f   : > { %6808 = vmatprep.mubr.msk.bf16.mxu1 %vm7721_vm1, %v10840_v10 }
0x1080   : > { %v4062_v54 = vpack.c.bf16 %v4057_v25, %v4057_v25 }
0x1086   : > { %6809 = vmatmul.mubr.msk.bf16.gmra.mxu1 %vm1093_vm7, %v4061_v1 }
0x1087   : > { %6812 = vmatprep.mubr.msk.bf16.mxu1 %vm7721_vm1, %v10840_v10 }
0x108e   : > { %6813 = vmatmul.mubr.msk.bf16.gmra.mxu1 %vm1093_vm7, %v4062_v54 }
0x108f   : > { %6856 = vmatprep.mubr.msk.bf16.mxu1 %vm7721_vm1, %v10840_v10 }
0x1099   : > { %4626 = vmax.xlane.f32.xlu0 %v4625_v6 }
0x10a0   : > { %v4345_v59 = vpop.xlane.xlu0 %4344 }
0x10a1   : > { %7552 = vrcp.f32 %v4345_v59 }
0x10a4   : > { %v4348_v23 = vpop.xlane.xlu0 %4347  ;;  %v4360_v12 = vpop.xlane.xlu1 %4359 }
0x10a5   : > { %7554 = vrcp.f32 %v4348_v23 }
0x10a8   : > { %v4351_v30 = vpop.xlane.xlu0 %4350 }
0x10a9   : > { %7556 = vrcp.f32 %v4351_v30 }
0x10ac   : > { %v4354_v55 = vpop.xlane.xlu0 %4353 }
0x10ad   : > { %7558 = vrcp.f32 %v4354_v55 }
0x10ae   : > { %v7553_v45 = vpop.eup %7552 }
0x10af   : > { %v4371_v62 = vmul.f32 %v7553_v45, %v9989_v7 }
0x10b0   : > { %v4357_v46 = vpop.xlane.xlu0 %4356 }
0x10b1   : > { %7560 = vrcp.f32 %v4357_v46 }
0x10b2   : > { %v7555_v61 = vpop.eup %7554  ;;  %7562 = vrcp.f32 %v4360_v12 }
0x10b3   : > { %v4373_v50 = vmul.f32 %v7555_v61, %v9994_v36 }
0x10b4   : > { %v4730_v42 = vpop.permute.xlu0 %4729 }
0x10b5   : > { %v4388_v53 = vpack.c.bf16 %v4373_v50, %v4371_v62 }
0x10b6   : > { %v7557_v56 = vpop.eup %7556 }
0x10b7   : > { %6857 = vmatmul.mubr.msk.bf16.vlgmr.msra.gmra.mxu1 %vm1093_vm7, %v4388_v53  ;;  %v4375_v52 = vmul.f32 %v7557_v56, %v10002_v3  ;;  %v4366_v3 = vpop.xlane.xlu1 %4365 }
0x10b8   : > { %6907 = vmatpush3.bf16.msra.mxu1 %v4753_v32  ;;  %6860 = vmatprep.mubr.msk.bf16.mxu1 %vm7721_vm1, %v10840_v10  ;;  %7564 = vrcp.f32 %v4366_v3 }
0x10b9   : > { %6908 = vmatprep.subr.bf16.mxu1 %v10840_v10 }
0x10ba   : > { %v7559_v16 = vpop.eup %7558 }
0x10bb   : > { %v4377_v7 = vmul.f32 %v7559_v16, %v10017_v60  ;;  %v4369_v22 = vpop.xlane.xlu1 %4368 }
0x10bc   : > { %6909 = vmatpush3.bf16.msra.mxu1 %v4730_v42 }
0x10bd   : > { %v4389_v36 = vpack.c.bf16 %v4377_v7, %v4375_v52  ;;  %6910 = vmatprep.subr.bf16.mxu1 %v10840_v10 }
0x10be   : > { %v7561_v17 = vpop.eup %7560 }
0x10bf   : > { %6861 = vmatmul.mubr.msk.bf16.gmra.mxu1 %vm1093_vm7, %v4389_v36  ;;  %v7563_v63 = vpop.eup %7562  ;;  %v4379_v11 = vmul.f32 %v7561_v17, %v10026_v38  ;;  %v4675_v49 = vpop.xlane.xlu1 %4674 }
0x10c0   : > { %6864 = vmatprep.mubr.msk.bf16.mxu1 %vm7721_vm1, %v10840_v10  ;;  %v4381_v35 = vmul.f32 %v7563_v63, %v9998_v43 }
0x10c2   : > { %v4390_v27 = vpack.c.bf16 %v4381_v35, %v4379_v11 }
0x10c3   : > { %v4678_v28 = vpop.xlane.xlu1 %4677 }
0x10c5   : > { %v7565_v4 = vpop.eup %7564 }
0x10c6   : > { %v4385_v19 = vmul.f32 %v7565_v4, %v10007_v9 }
0x10c7   : > { %6865 = vmatmul.mubr.msk.bf16.gmra.mxu1 %vm1093_vm7, %v4390_v27  ;;  %v4726_v40 = vpop.permute.xlu1 %4725 }
0x10c8   : > { %6868 = vmatprep.mubr.msk.bf16.mxu1 %vm7721_vm1, %v10840_v10 }
0x10cb   : > { %v4506_v41 = vpop.permute.xlu1 %4505 }
0x10d8   : > { %v10147_v60 = vpop.f32.mrf.mxu1 }
0x10da   : > { %v6738_v18 = vpop.f32.mrf.mxu1 }
0x10dc   : > { %v10149_v48 = vpop.f32.mrf.mxu1 }
0x10de   : > { %v6739_v57 = vpop.f32.mrf.mxu1 }
0x10e0   : > { %v10151_v15 = vpop.f32.mrf.mxu1 }
0x10e2   : > { %v6742_v38 = vpop.f32.mrf.mxu1 }
0x10e4   : > { %v10153_v43 = vpop.f32.mrf.mxu1 }
0x10e5   : > { %v4363_v39 = vpop.xlane.xlu0 %4362 }
0x10e6   : > { %7566 = vrcp.f32 %v4363_v39  ;;  %v6743_v8 = vpop.f32.mrf.mxu1 }
0x10e7   : > { %7568 = vrcp.f32 %v4369_v22 }
0x10e8   : > { %v10155_v51 = vpop.f32.mrf.mxu1  ;;  %7570 = vrcp.f32 %v4678_v28 }
0x10e9   : > { %v4504_v31 = vpop.permute.xlu0 %4503  ;;  %7572 = vrcp.f32 %v4675_v49 }
0x10ea   : > { %6899 = vmatmul.mubr.msk.bf16.gmra.mxu0 %vm990_vm5, %v4504_v31  ;;  %v6746_v21 = vpop.f32.mrf.mxu1 }
0x10eb   : > { %6902 = vmatprep.mubr.msk.bf16.mxu0 %vm7721_vm1, %v10840_v10 }
0x10ec   : > { %v10160_v24 = vpop.f32.mrf.mxu1 }
0x10ed   : > { %v4728_v44 = vpop.permute.xlu0 %4727 }
0x10ee   : > { %6911 = vmatpush3.bf16.msra.mxu1 %v4728_v44  ;;  %v6747_v33 = vpop.f32.mrf.mxu1 }
0x10ef   : > { %6912 = vmatprep.subr.bf16.mxu1 %v10840_v10 }
0x10f0   : > { %v10163_v5 = vpop.f32.mrf.mxu1 }
0x10f1   : > { %v4724_v29 = vpop.permute.xlu0 %4723 }
0x10f2   : > { %6903 = vmatmul.mubr.msk.bf16.gmra.mxu0 %vm990_vm5, %v4506_v41  ;;  %6913 = vmatpush3.bf16.msra.mxu1 %v4726_v40  ;;  %v6750_v34 = vpop.f32.mrf.mxu1 }
0x10f3   : > { %v7567_v0 = vpop.eup %7566  ;;  %6914 = vmatprep.subr.bf16.mxu1 %v10840_v10  ;;  %6940 = vmatprep.mubr.msk.bf16.mxu0 %vm7721_vm1, %v10840_v10 }
0x10f4   : > { %v10169_v37 = vpop.f32.mrf.mxu1  ;;  %v4383_v1 = vmul.f32 %v7567_v0, %v10091_v26  ;;  %v7569_v6 = vpop.eup %7568 }
0x10f5   : > { %v4387_v30 = vmul.f32 %v7569_v6, %v10024_v2  ;;  %v7571_v55 = vpop.eup %7570 }
0x10f6   : > { %6915 = vmatpush3.bf16.msra.mxu1 %v4724_v29  ;;  %v6751_v25 = vpop.f32.mrf.mxu1  ;;  %v4391_v54 = vpack.c.bf16 %v4385_v19, %v4383_v1  ;;  %v7573_v12 = vpop.eup %7572  ;;  %v4703_v46 = vmul.f32 %v7571_v55, %v10047_v47 }
0x10f7   : > { %6960 = vmatprep.subr.bf16.mxu1 %v10840_v10  ;;  %v4392_v9 = vpack.c.bf16 %v4387_v30, %v4387_v30  ;;  %v4701_v62 = vmul.f32 %v7573_v12, %v10032_v13 }
0x10f8   : > { %6869 = vmatmul.mubr.msk.bf16.gmra.mxu1 %vm1093_vm7, %v4391_v54  ;;  %v10175_v59 = vpop.f32.mrf.mxu1 }
0x10f9   : > { %6872 = vmatprep.mubr.msk.bf16.mxu1 %vm7721_vm1, %v10840_v10  ;;  %v4718_v53 = vpack.c.bf16 %v4703_v46, %v4701_v62 }
0x10fa   : > { %v6754_v23 = vpop.f32.mrf.mxu1 }
0x10fc   : > { %v3829_v26 = vpop.f32.mrf.mxu1 }
0x10fe   : > { %v6755_v58 = vpop.f32.mrf.mxu1 }
0x1100   : > { %6873 = vmatmul.mubr.msk.bf16.gmra.mxu1 %vm1093_vm7, %v4392_v9  ;;  %v10181_v45 = vpop.f32.mrf.mxu1 }
0x1101   : > { %6916 = vmatprep.mubr.msk.bf16.mxu1 %vm7721_vm1, %v10840_v10 }
0x1102   : > { %v6798_v61 = vpop.f32.mrf.mxu1 }
0x1104   : > { %v10187_v50 = vpop.f32.mrf.mxu1 }
0x1105   : > { %v7141_v2 = vpack.i.bf16 %v10187_v50, %v10181_v45 }
0x1106   : > { %v6799_v32 = vpop.f32.mrf.mxu1 }
0x1108   : > { %6917 = vmatmul.mubr.msk.bf16.vlgmr.msra.gmra.mxu1 %vm1093_vm7, %v4718_v53 }
0x1109   : > { %6920 = vmatprep.mubr.msk.bf16.mxu1 %vm7721_vm1, %v10840_v10 }
0x1130   : > { %v10194_v56 = vpop.f32.mrf.mxu0 }
0x1131   : > { %v4631_v47 = vsel %vm1093_vm7, %v10194_v56, -inf }
0x1132   : > { %4632 = vmax.xlane.f32.xlu0 %v4631_v47  ;;  %v6896_v16 = vpop.f32.mrf.mxu0 }
0x1134   : > { %v10198_v13 = vpop.f32.mrf.mxu0 }
0x1135   : > { %v4634_v42 = vsel %vm1093_vm7, %v10198_v13, -inf }
0x1136   : > { %v10202_v52 = vpop.f32.mrf.mxu1  ;;  %4635 = vmax.xlane.f32.xlu0 %v4634_v42  ;;  %v6897_v7 = vpop.f32.mrf.mxu0 }
0x1137   : > { %v7214_v7 = vld [vmem:[%s10849_s6 + $0x18] sm:$0xff]  }
0x1138   : > { %v6802_v36 = vpop.f32.mrf.mxu1  ;;  %6937 = vmatpush3.bf16.msra.mxu0 %v7214_v7 }
0x1139   : > { %6938 = vmatprep.subr.bf16.mxu0 %v10840_v10 }
0x113a   : > { %v10204_v17 = vpop.f32.mrf.mxu1 }
0x113b   : > { %v7156_v63 = vpack.i.bf16 %v10204_v17, %v10202_v52 }
0x113c   : > { %v6803_v11 = vpop.f32.mrf.mxu1 }
0x113e   : > { %v10208_v35 = vpop.f32.mrf.mxu1 }
0x1140   : > { %v6806_v27 = vpop.f32.mrf.mxu1 }
0x1142   : > { %v10210_v3 = vpop.f32.mrf.mxu1 }
0x1143   : > { %v7171_v22 = vpack.i.bf16 %v10210_v3, %v10208_v35 }
0x1144   : > { %v6807_v18 = vpop.f32.mrf.mxu1 }
0x1146   : > { %v10214_v57 = vpop.f32.mrf.mxu1 }
0x1148   : > { %v6810_v49 = vpop.f32.mrf.mxu1 }
0x114a   : > { %v10216_v38 = vpop.f32.mrf.mxu1 }
0x114b   : > { %v7186_v28 = vpack.i.bf16 %v10216_v38, %v10214_v57 }
0x114c   : > { %v6811_v39 = vpop.f32.mrf.mxu1 }
0x114e   : > { %v10220_v8 = vpop.f32.mrf.mxu1 }
0x1150   : > { %v6814_v31 = vpop.f32.mrf.mxu1 }
0x1151   : > { %v7215_v31 = vld [vmem:[%s10849_s6 + $0x10] sm:$0xff]  }
0x1152   : > { %v4164_v21 = vpop.f32.mrf.mxu1  ;;  %6939 = vmatpush3.bf16.msra.mxu0 %v7215_v31 }
0x1153   : > { %6984 = vmatprep.subr.bf16.mxu0 %v10840_v10 }
0x1154   : > { %v6815_v40 = vpop.f32.mrf.mxu1 }
0x1155   : > { %v4627_v40 = vpop.xlane.xlu0 %4626 }
0x1177   : > { %v4459_v44 = vpop.f32.mrf.mxu1 }
0x1179   : > { %v6858_v33 = vpop.f32.mrf.mxu1 }
0x117b   : > { %v4462_v4 = vpop.f32.mrf.mxu1 }
0x117c   : > { %v7146_v41 = vpack.i.bf16 %v4462_v4, %v4459_v44  ;;  %v4630_v4 = vpop.xlane.xlu1 %4629 }
0x117d   : > { %v6859_v34 = vpop.f32.mrf.mxu1 }
0x117f   : > { %v10222_v0 = vpop.f32.mrf.mxu1 }
0x1181   : > { %v6862_v1 = vpop.f32.mrf.mxu1 }
0x1183   : > { %v10224_v19 = vpop.f32.mrf.mxu1 }
0x1184   : > { %v7161_v29 = vpack.i.bf16 %v10224_v19, %v10222_v0 }
0x1185   : > { %v6863_v25 = vpop.f32.mrf.mxu1 }
0x1186   : > { %v4649_v25 = vsub.f32 %v10093_v20, %v4630_v4 }
0x1187   : > { %v10228_v54 = vpop.f32.mrf.mxu1 }
0x1189   : > { %v6866_v6 = vpop.f32.mrf.mxu1 }
0x118b   : > { %v10230_v23 = vpop.f32.mrf.mxu1 }
0x118c   : > { %v7176_v30 = vpack.i.bf16 %v10230_v23, %v10228_v54 }
0x118d   : > { %v6867_v26 = vpop.f32.mrf.mxu1 }
0x11aa   : > { %v10234_v58 = vpop.f32.mrf.mxu0 }
0x11ab   : > { %v4637_v9 = vsel %vm1093_vm7, %v10234_v58, -inf }
0x11ac   : > { %4638 = vmax.xlane.f32.xlu1 %v4637_v9  ;;  %v6900_v55 = vpop.f32.mrf.mxu0 }
0x11ae   : > { %v10238_v12 = vpop.f32.mrf.mxu0 }
0x11af   : > { %v4640_v46 = vsel %vm1093_vm7, %v10238_v12, -inf }
0x11b0   : > { %4641 = vmax.xlane.f32.xlu0 %v4640_v46  ;;  %v6901_v61 = vpop.f32.mrf.mxu0 }
0x11b2   : > { %v10242_v62 = vpop.f32.mrf.mxu0 }
0x11b4   : > { %v6904_v53 = vpop.f32.mrf.mxu0 }
0x11b6   : > { %v4616_v32 = vpop.f32.mrf.mxu0 }
0x11b8   : > { %v10244_v47 = vpop.f32.mrf.mxu1  ;;  %v6905_v16 = vpop.f32.mrf.mxu0 }
0x11ba   : > { %v6870_v42 = vpop.f32.mrf.mxu1 }
0x11bb   : > { %v4633_v50 = vpop.xlane.xlu0 %4632  ;;  %v4643_v42 = vsel %vm1118_vm8, %v10242_v62, -inf }
0x11bc   : > { %v10249_v36 = vpop.f32.mrf.mxu1  ;;  %v4650_v46 = vsub.f32 %v10194_v56, %v4633_v50 }
0x11bd   : > { %v7191_v11 = vpack.i.bf16 %v10249_v36, %v10244_v47  ;;  %7142 = vrot.lane.b32.xlu1 %v7141_v2, %s10889_s26  ;;  %v4648_v2 = vsub.f32 %v10089_v14, %v4627_v40 }
0x11be   : > { %v6871_v27 = vpop.f32.mrf.mxu1  ;;  %v4663_v61 = vmul.f32 1.442695, %v4650_v46 }
0x11bf   : > { %v4659_v6 = vmul.f32 1.442695, %v4648_v2  ;;  %v4636_v26 = vpop.xlane.xlu0 %4635 }
0x11c0   : > { %v10258_v18 = vpop.f32.mrf.mxu1  ;;  %v4651_v9 = vsub.f32 %v10198_v13, %v4636_v26 }
0x11c1   : > { %7574 = vpow2.f32 %v4659_v6 }
0x11c2   : > { %v6874_v49 = vpop.f32.mrf.mxu1  ;;  %v4665_v55 = vmul.f32 1.442695, %v4651_v9 }
0x11c4   : > { %v4494_v39 = vpop.f32.mrf.mxu1 }
0x11c6   : > { %v6875_v21 = vpop.f32.mrf.mxu1  ;;  %7147 = vrot.lane.b32.xlu0 %v7146_v41, %s10890_s21  ;;  %v4661_v41 = vmul.f32 1.442695, %v4649_v25 }
0x11c8   : > { %v4789_v44 = vpop.f32.mrf.mxu1  ;;  %7576 = vpow2.f32 %v4661_v41 }
0x11c9   : > { %7578 = vpow2.f32 %v4665_v55 }
0x11ca   : > { %v6918_v45 = vpop.f32.mrf.mxu1  ;;  %7580 = vpow2.f32 %v4663_v61 }
0x11cc   : > { %v4792_v33 = vpop.f32.mrf.mxu1 }
0x11cd   : > { %v7151_v34 = vpack.i.bf16 %v4792_v33, %v4789_v44 }
0x11ce   : > { %v6919_v1 = vpop.f32.mrf.mxu1  ;;  %v7575_v14 = vpop.eup %7574 }
0x11cf   : > { %7152 = vrot.lane.b32.xlu1 %v7151_v34, %s10891_s24  ;;  %v4679_v53 = vsel %vm1093_vm7, %v7575_v14, 0.0 }
0x11d5   : > { %v7577_v32 = vpop.eup %7576 }
0x11d6   : > { %v4682_v20 = vsel %vm1093_vm7, %v7577_v32, 0.0  ;;  %v10272_v16 = vpop.eup %7578 }
0x11d7   : > { %v4688_v13 = vsel %vm1093_vm7, %v10272_v16, 0.0  ;;  %v7581_v56 = vpop.eup %7580 }
0x11d8   : > { %v4685_v7 = vsel %vm1093_vm7, %v7581_v56, 0.0 }
0x11e5   : > { %4680 = vadd.xlane.f32.xlu0 %v4679_v53 }
0x11e9   : > { %4683 = vadd.xlane.f32.xlu0 %v4682_v20 }
0x11ed   : > { %4689 = vadd.xlane.f32.xlu0 %v4688_v13 }
0x11f3   : > { %4644 = vmax.xlane.f32.xlu1 %v4643_v42 }
0x11f7   : > { %4686 = vadd.xlane.f32.xlu1 %v4685_v7 }
0x1235   : > { %v4639_v27 = vpop.xlane.xlu1 %4638 }
0x1236   : > { %v4652_v49 = vsub.f32 %v10234_v58, %v4639_v27 }
0x1238   : > { %v4667_v39 = vmul.f32 1.442695, %v4652_v49 }
0x1239   : > { %v4642_v31 = vpop.xlane.xlu0 %4641  ;;  %v7143_v40 = vpop.permute.xlu1 %7142 }
0x123a   : > { %7582 = vpow2.f32 %v4667_v39  ;;  %v4653_v21 = vsub.f32 %v10238_v12, %v4642_v31  ;;  %v7145_v50 = vunpack.i.h.bf16 %v7143_v40  ;;  %v7144_v2 = vunpack.i.l.bf16 %v7143_v40 }
0x123c   : > { %v4669_v44 = vmul.f32 1.442695, %v4653_v21  ;;  %v4936_v1 = vsel %vm990_vm5, %v10149_v48, %v7145_v50  ;;  %v4935_v58 = vsel %vm990_vm5, %v10147_v60, %v7144_v2 }
0x123d   : > { %v7148_v45 = vpop.permute.xlu0 %7147 }
0x123e   : > { %7584 = vpow2.f32 %v4669_v44  ;;  %v7150_v33 = vunpack.i.h.bf16 %v7148_v45  ;;  %v7149_v4 = vunpack.i.l.bf16 %v7148_v45 }
0x1240   : > { %v4945_v26 = vsel %vm2418_vm9, %v4936_v1, %v7150_v33  ;;  %v4944_v12 = vsel %vm2418_vm9, %v4935_v58, %v7149_v4 }
0x1241   : > { %v7153_v34 = vpop.permute.xlu1 %7152 }
0x1242   : > { %v7155_v25 = vunpack.i.h.bf16 %v7153_v34  ;;  %v7154_v6 = vunpack.i.l.bf16 %v7153_v34 }
0x1244   : > { %v4953_v41 = vsel %vm2428_vm10, %v4944_v12, %v7154_v6  ;;  %v4954_v9 = vsel %vm2428_vm10, %v4945_v26, %v7155_v25  ;;  %v10892_v12 = vld [vmem:[#allocation17_spill] sm:$0xff] }
0x1245   : > { %v4962_v55 = vpack.c.bf16 %v4954_v9, %v4953_v41 }
0x1247   : > { %v7583_v46 = vpop.eup %7582  ;;  %6941 = vmatmul.mubr.msk.bf16.vlgmr.msra.gmra.mxu0 %vm698_vm3, %v4962_v55 }
0x1248   : > { %v4691_v61 = vsel %vm1093_vm7, %v7583_v46, 0.0  ;;  %6944 = vmatprep.mubr.msk.bf16.mxu0 %vm7721_vm1, %v10840_v10 }
0x1249   : > { %4692 = vadd.xlane.f32.xlu1 %v4691_v61  ;;  %v10893_v61 = vld [vmem:[#allocation15_spill] sm:$0xff] }
0x124b   : > { %v7585_v60 = vpop.eup %7584 }
0x124c   : > { %v4694_v48 = vsel %vm1093_vm7, %v7585_v60, 0.0 }
0x124d   : > { %4695 = vadd.xlane.f32.xlu0 %v4694_v48 }
0x126e   : > { %v4681_v53 = vpop.xlane.xlu0 %4680 }
0x126f   : > { %7586 = vrcp.f32 %v4681_v53 }
0x1272   : > { %v4684_v20 = vpop.xlane.xlu0 %4683 }
0x1273   : > { %7588 = vrcp.f32 %v4684_v20 }
0x1276   : > { %v4690_v42 = vpop.xlane.xlu0 %4689 }
0x1277   : > { %7590 = vrcp.f32 %v4690_v42 }
0x127c   : > { %v4645_v13 = vpop.xlane.xlu1 %4644  ;;  %v7587_v27 = vpop.eup %7586 }
0x127d   : > { %v4654_v7 = vsub.f32 %v10242_v62, %v4645_v13  ;;  %v4705_v21 = vmul.f32 %v7587_v27, %v7575_v14 }
0x127f   : > { %v4671_v49 = vmul.f32 1.442695, %v4654_v7 }
0x1280   : > { %v7589_v39 = vpop.eup %7588  ;;  %v4687_v31 = vpop.xlane.xlu1 %4686 }
0x1281   : > { %7592 = vpow2.f32 %v4671_v49  ;;  %v4707_v40 = vmul.f32 %v7589_v39, %v7577_v32 }
0x1282   : > { %7594 = vrcp.f32 %v4687_v31 }
0x1283   : > { %v4719_v44 = vpack.c.bf16 %v4707_v40, %v4705_v21 }
0x1284   : > { %v7591_v45 = vpop.eup %7590 }
0x1285   : > { %6921 = vmatmul.mubr.msk.bf16.gmra.mxu1 %vm1093_vm7, %v4719_v44  ;;  %v4711_v4 = vmul.f32 %v7591_v45, %v10272_v16 }
0x1286   : > { %6924 = vmatprep.mubr.msk.bf16.mxu1 %vm7721_vm1, %v10840_v10 }
0x128e   : > { %v7593_v50 = vpop.eup %7592 }
0x128f   : > { %v7595_v2 = vpop.eup %7594  ;;  %v4697_v62 = vsel %vm1118_vm8, %v7593_v50, 0.0 }
0x1290   : > { %4698 = vadd.xlane.f32.xlu1 %v4697_v62  ;;  %v4709_v33 = vmul.f32 %v7595_v2, %v7581_v56  ;;  %v10309_v56 = vld [vmem:[%s10737_s7 + $0x1] ss:$0 sm:$0xff] }
0x1292   : > { %v4720_v34 = vpack.c.bf16 %v4711_v4, %v4709_v33 }
0x1294   : > { %6925 = vmatmul.mubr.msk.bf16.gmra.mxu1 %vm1093_vm7, %v4720_v34 }
0x1295   : > { %6928 = vmatprep.mubr.msk.bf16.mxu1 %vm7721_vm1, %v10840_v10 }
0x12d2   : > { %v4693_v14 = vpop.xlane.xlu1 %4692 }
0x12d3   : > { %7596 = vrcp.f32 %v4693_v14 }
0x12d6   : > { %v4696_v32 = vpop.xlane.xlu0 %4695 }
0x12d7   : > { %7598 = vrcp.f32 %v4696_v32 }
0x12e0   : > { %v7597_v1 = vpop.eup %7596 }
0x12e1   : > { %v4713_v25 = vmul.f32 %v7597_v1, %v7583_v46 }
0x12e4   : > { %v7599_v58 = vpop.eup %7598 }
0x12e5   : > { %v4715_v6 = vmul.f32 %v7599_v58, %v7585_v60 }
0x12e7   : > { %v4721_v26 = vpack.c.bf16 %v4715_v6, %v4713_v25 }
0x12e9   : > { %6929 = vmatmul.mubr.msk.bf16.gmra.mxu1 %vm1093_vm7, %v4721_v26 }
0x12ea   : > { %6932 = vmatprep.mubr.msk.bf16.mxu1 %vm7721_vm1, %v10840_v10 }
0x1307   : > { %v5033_v16 = vpop.f32.mrf.mxu0 }
0x1308   : > { %v5071_v41 = vadd.f32 %v5033_v16, %v10892_v12 }
0x1309   : > { %v6942_v9 = vpop.f32.mrf.mxu0 }
0x130a   : > { %v10313_v55 = vadd.f32 %v10309_v56, %v5071_v41  ;;  %v7217_v41 = vld [vmem:[%s10740_s10 + $0x10] sm:$0xff]  }
0x130b   : > { %v5036_v46 = vpop.f32.mrf.mxu0 }
0x130c   : > { %v5072_v60 = vadd.f32 %v5036_v46, %v10893_v61  ;;  %v5101_v48 = vsel %vm698_vm3, %v10313_v55, 0.0 }
0x130d   : > { %5102 = vadd.xlane.f32.xlu0 %v5101_v48  ;;  %v6943_v53 = vpop.f32.mrf.mxu0 }
0x130e   : > { %v5089_v20 = vadd.f32 %v10309_v56, %v5072_v60 }
0x1310   : > { %v5104_v13 = vsel %vm698_vm3, %v5089_v20, 0.0 }
0x1311   : > { %5105 = vadd.xlane.f32.xlu1 %v5104_v13 }
0x1319   : > { %v4699_v42 = vpop.xlane.xlu1 %4698 }
0x131a   : > { %7600 = vrcp.f32 %v4699_v42 }
0x1322   : > { %7162 = vrot.lane.b32.xlu1 %v7161_v29, %s10890_s21 }
0x1323   : > { %7157 = vrot.lane.b32.xlu0 %v7156_v63, %s10889_s26 }
0x1327   : > { %v7601_v7 = vpop.eup %7600  ;;  %7172 = vrot.lane.b32.xlu0 %v7171_v22, %s10889_s26 }
0x1328   : > { %v4717_v27 = vmul.f32 %v7601_v7, %v7593_v50 }
0x132a   : > { %v4722_v49 = vpack.c.bf16 %v4717_v27, %v4717_v27 }
0x132c   : > { %6933 = vmatmul.mubr.msk.bf16.gmra.mxu1 %vm1093_vm7, %v4722_v49 }
0x132d   : > { %6964 = vmatprep.mubr.msk.bf16.mxu1 %vm7721_vm1, %v10840_v10 }
0x1345   : > { %v4797_v0 = vpop.f32.mrf.mxu1 }
0x1347   : > { %v6922_v19 = vpop.f32.mrf.mxu1 }
0x1349   : > { %v4800_v29 = vpop.f32.mrf.mxu1 }
0x134a   : > { %v7166_v39 = vpack.i.bf16 %v4800_v29, %v4797_v0 }
0x134b   : > { %v6923_v31 = vpop.f32.mrf.mxu1 }
0x134c   : > { %7167 = vrot.lane.b32.xlu1 %v7166_v39, %s10891_s24 }
0x1350   : > { %7177 = vrot.lane.b32.xlu1 %v7176_v30, %s10890_s21 }
0x1354   : > { %v4805_v52 = vpop.f32.mrf.mxu1  ;;  %7187 = vrot.lane.b32.xlu1 %v7186_v28, %s10889_s26 }
0x1356   : > { %v6926_v17 = vpop.f32.mrf.mxu1 }
0x1358   : > { %v4808_v63 = vpop.f32.mrf.mxu1 }
0x1359   : > { %v7181_v35 = vpack.i.bf16 %v4808_v63, %v4805_v52 }
0x135a   : > { %v6927_v3 = vpop.f32.mrf.mxu1 }
0x135b   : > { %7182 = vrot.lane.b32.xlu0 %v7181_v35, %s10891_s24 }
0x1396   : > { %v5103_v22 = vpop.xlane.xlu0 %5102 }
0x1397   : > { %v5128_v21 = vmul.f32 0.03125, %v5103_v22 }
0x1399   : > { %v10346_v40 = vsub.f32 %v10313_v55, %v5128_v21 }
0x139a   : > { %v5106_v44 = vpop.xlane.xlu1 %5105  ;;  %v7158_v4 = vpop.permute.xlu0 %7157 }
0x139b   : > { %v5129_v54 = vmul.f32 0.03125, %v5106_v44  ;;  %v5146_v23 = vmul.f32 %v10346_v40, %v10346_v40  ;;  %v7160_v14 = vunpack.i.h.bf16 %v7158_v4  ;;  %v7159_v32 = vunpack.i.l.bf16 %v7158_v4 }
0x139d   : > { %v10350_v30 = vsub.f32 %v5089_v20, %v5129_v54  ;;  %v5155_v57 = vsel %vm698_vm3, %v5146_v23, 0.0  ;;  %v4938_v6 = vsel %vm990_vm5, %v10153_v43, %v7160_v14  ;;  %v4937_v47 = vsel %vm990_vm5, %v10151_v15, %v7159_v32  ;;  %v7216_v15 = vld [vmem:[%s10740_s10 + $0x18] sm:$0xff]  }
0x139e   : > { %5156 = vadd.xlane.f32.xlu0 %v5155_v57  ;;  %v7163_v34 = vpop.permute.xlu1 %7162  ;;  %v7173_v43 = vpop.permute.xlu0 %7172  ;;  %6961 = vmatpush3.bf16.msra.mxu1 %v7216_v15 }
0x139f   : > { %v5147_v38 = vmul.f32 %v10350_v30, %v10350_v30  ;;  %v7165_v1 = vunpack.i.h.bf16 %v7163_v34  ;;  %v7164_v58 = vunpack.i.l.bf16 %v7163_v34  ;;  %6962 = vmatprep.subr.bf16.mxu1 %v10840_v10  ;;  %v7175_v46 = vunpack.i.h.bf16 %v7173_v43 }
0x13a0   : > { %v7174_v61 = vunpack.i.l.bf16 %v7173_v43 }
0x13a1   : > { %v5158_v28 = vsel %vm698_vm3, %v5147_v38, 0.0  ;;  %v4947_v26 = vsel %vm2418_vm9, %v4938_v6, %v7165_v1  ;;  %v4940_v20 = vsel %vm990_vm5, %v10160_v24, %v7175_v46  ;;  %v10411_v1 = vld [vmem:[%s10738_s8 + $0x1] ss:$0 sm:$0xff] }
0x13a2   : > { %5159 = vadd.xlane.f32.xlu1 %v5158_v28  ;;  %6963 = vmatpush3.bf16.msra.mxu1 %v7217_v41  ;;  %v4939_v13 = vsel %vm990_vm5, %v10155_v51, %v7174_v61 }
0x13a3   : > { %7012 = vmatprep.subr.bf16.mxu1 %v10840_v10 }
0x13a9   : > { %v4813_v45 = vpop.f32.mrf.mxu1 }
0x13ab   : > { %v6930_v50 = vpop.f32.mrf.mxu1 }
0x13ad   : > { %v4816_v2 = vpop.f32.mrf.mxu1 }
0x13ae   : > { %v7196_v33 = vpack.i.bf16 %v4816_v2, %v4813_v45 }
0x13af   : > { %v6931_v62 = vpop.f32.mrf.mxu1 }
0x13b3   : > { %7197 = vrot.lane.b32.xlu1 %v7196_v33, %s10891_s24 }
0x13b4   : > { %7192 = vrot.lane.b32.xlu0 %v7191_v11, %s10890_s21 }
0x13b7   : > { %4888 = vrot.lane.b32.xlu1 %v10258_v18, %s10890_s21  ;;  %v4946_v18 = vsel %vm2418_vm9, %v4937_v47, %v7164_v58  ;;  %v10418_v47 = vld [vmem:[%s10739_s9 + $0x1] ss:$0 sm:$0xff] }
0x13b8   : > { %4852 = vrot.lane.b32.xlu0 %v10220_v8, %s10889_s26  ;;  %s6078_s26 = sshll.u32 %s7854_s0, 4 }
0x13b9   : > { %s10689_s4 = scalar_lea.hbm %s10748_s18, %s6078_s26 }
0x13be   : > { %v7168_v25 = vpop.permute.xlu1 %7167 }
0x13bf   : > { %v7170_v36 = vunpack.i.h.bf16 %v7168_v25  ;;  %v7169_v11 = vunpack.i.l.bf16 %v7168_v25 }
0x13c1   : > { %v4955_v8 = vsel %vm2428_vm10, %v4946_v18, %v7169_v11  ;;  %v4956_v16 = vsel %vm2428_vm10, %v4947_v26, %v7170_v36 }
0x13c2   : > { %v4963_v12 = vpack.c.bf16 %v4956_v16, %v4955_v8  ;;  %v7178_v9 = vpop.permute.xlu1 %7177 }
0x13c3   : > { %v7180_v60 = vunpack.i.h.bf16 %v7178_v9  ;;  %v7179_v48 = vunpack.i.l.bf16 %v7178_v9  ;;  %v10894_v9 = vld [vmem:[#allocation21_spill] sm:$0xff] }
0x13c4   : > { %6945 = vmatmul.mubr.msk.bf16.gmra.mxu0 %vm698_vm3, %v4963_v12 }
0x13c5   : > { %6948 = vmatprep.mubr.msk.bf16.mxu0 %vm7721_vm1, %v10840_v10  ;;  %v4949_v27 = vsel %vm2418_vm9, %v4940_v20, %v7180_v60  ;;  %v4948_v49 = vsel %vm2418_vm9, %v4939_v13, %v7179_v48 }
0x13c6   : > { %v7188_v17 = vpop.permute.xlu1 %7187 }
0x13c7   : > { %v7190_v22 = vunpack.i.h.bf16 %v7188_v17  ;;  %v7189_v44 = vunpack.i.l.bf16 %v7188_v17 }
0x13c9   : > { %v4942_v28 = vsel %vm990_vm5, %v10169_v37, %v7190_v22  ;;  %v4941_v50 = vsel %vm990_vm5, %v10163_v5, %v7189_v44  ;;  %v7220_v22 = vld [vmem:[%s10742_s12 + $0x28] sm:$0xff]  }
0x13cd   : > { %v7183_v53 = vpop.permute.xlu0 %7182 }
0x13ce   : > { %v7185_v42 = vunpack.i.h.bf16 %v7183_v53  ;;  %v7184_v7 = vunpack.i.l.bf16 %v7183_v53 }
0x13d0   : > { %v4957_v0 = vsel %vm2428_vm10, %v4948_v49, %v7184_v7  ;;  %v4958_v19 = vsel %vm2428_vm10, %v4949_v27, %v7185_v42  ;;  %v10896_v49 = vld [vmem:[#allocation16_spill] sm:$0xff] }
0x13d1   : > { %v4964_v29 = vpack.c.bf16 %v4958_v19, %v4957_v0 }
0x13d3   : > { %6949 = vmatmul.mubr.msk.bf16.gmra.mxu0 %vm698_vm3, %v4964_v29 }
0x13d4   : > { %6952 = vmatprep.mubr.msk.bf16.mxu0 %vm7721_vm1, %v10840_v10 }
0x13ec   : > { %v4821_v24 = vpop.f32.mrf.mxu1 }
0x13ed   : > { %4924 = vrot.lane.b32.xlu0 %v4821_v24, %s10891_s24  ;;  %s566_s24 = sand.u32 1, %s7710_s28  }
0x13ee   : > { %v6934_v51 = vpop.f32.mrf.mxu1  ;;  %s567_s3 = scalar_lea.vmem [#allocation2], %s566_s24  ;;  %s5816_s19 = scalar_lea.sflag [#allocation3], %s566_s24 }
0x13ef   : > { %v10897_v51 = vld [vmem:[#allocation19_spill] sm:$0xff]  ;;  %s5828_s22 = sshll.u32 %s567_s3, 4  ;;  %s10691_s22 = int_to_ptr.vmem [resolvable:$true] %s5828_s22 }
0x13f0   : > { %v4824_v39 = vpop.f32.mrf.mxu1  ;;  %s7658_s0 = scalar_lea.vmem %s10691_s22, 16  ;;  %p7665_p0 = scmp.lt.s32.totalorder %s10691_s22, %s7663_s5 }
0x13f1   : > { %p7659_p11 = scmp.ne.s32.totalorder %s10691_s22, %s7658_s0  ;;  %p7666_p1 = scmp.lt.s32.totalorder %s7664_s25, %s7658_s0 }
0x13f2   : > { %v6935_v31 = vpop.f32.mrf.mxu1 }
0x13f3   : > { %p7660_p12 = pnand %p7659_p11, %p7871_p5  ;;  %p7667_p2 = por %p7666_p1, %p7665_p0 }
0x13f5   : > { %p7661_p13 = pneg %p7660_p12 }
0x13f7   : > { %p7668_p3 = pnand %p7667_p2, %p7661_p13 }
0x1427   : > { %v5157_v52 = vpop.xlane.xlu0 %5156 }
0x1428   : > { %v5182_v63 = vmul.f32 0.03125, %v5157_v52 }
0x142a   : > { %v5191_v35 = vadd.f32 1e-05, %v5182_v63 }
0x142b   : > { %v7193_v3 = vpop.permute.xlu0 %7192  ;;  %v5160_v21 = vpop.xlane.xlu1 %5159 }
0x142c   : > { %7602 = vrsqrt.f32 %v5191_v35  ;;  %v5183_v54 = vmul.f32 0.03125, %v5160_v21  ;;  %v7195_v23 = vunpack.i.h.bf16 %v7193_v3  ;;  %v7194_v57 = vunpack.i.l.bf16 %v7193_v3  ;;  %v7218_v35 = vld [vmem:[%s10742_s12 + $0x38] sm:$0xff]   ;;  %v7219_v3 = vld [vmem:[%s10742_s12 + $0x30] sm:$0xff]   ;;  %v7221_v21 = vld [vmem:[%s10742_s12 + $0x20] sm:$0xff]  }
0x142d   : > { %6985 = vmatpush3.bf16.msra.mxu0 %v7218_v35 }
0x142e   : > { %v5192_v38 = vadd.f32 1e-05, %v5183_v54  ;;  %v4950_v33 = vsel %vm2418_vm9, %v4941_v50, %v7194_v57  ;;  %v4951_v4 = vsel %vm2418_vm9, %v4942_v28, %v7195_v23  ;;  %6986 = vmatprep.subr.bf16.mxu0 %v10840_v10  ;;  %v10898_v54 = vld [vmem:[#allocation22_spill] sm:$0xff] }
0x142f   : > { %v7198_v45 = vpop.permute.xlu1 %7197  ;;  %v4853_v18 = vpop.permute.xlu0 %4852 }
0x1430   : > { %7604 = vrsqrt.f32 %v5192_v38  ;;  %v7200_v2 = vunpack.i.h.bf16 %v7198_v45  ;;  %v7199_v62 = vunpack.i.l.bf16 %v7198_v45  ;;  %v10899_v45 = vld [vmem:[#allocation18_spill] sm:$0xff] }
0x1431   : > { %6987 = vmatpush3.bf16.msra.mxu0 %v7219_v3 }
0x1432   : > { %v4959_v34 = vsel %vm2428_vm10, %v4950_v33, %v7199_v62  ;;  %v4960_v14 = vsel %vm2428_vm10, %v4951_v4, %v7200_v2  ;;  %6988 = vmatprep.subr.bf16.mxu0 %v10840_v10 }
0x1433   : > { %v4965_v32 = vpack.c.bf16 %v4960_v14, %v4959_v34  ;;  %v4889_v8 = vpop.permute.xlu1 %4888  ;;  %v10487_v34 = vld [vmem:[%s10741_s11 + $0x1] ss:$0 sm:$0xff] }
0x1435   : > { %6953 = vmatmul.mubr.msk.bf16.gmra.mxu0 %vm698_vm3, %v4965_v32 }
0x1436   : > { %6956 = vmatprep.mubr.msk.bf16.mxu0 %vm7721_vm1, %v10840_v10  ;;  %6989 = vmatpush3.bf16.msra.mxu0 %v7220_v22 }
0x1437   : > { %6990 = vmatprep.subr.bf16.mxu0 %v10840_v10 }
0x1439   : > { %v7603_v37 = vpop.eup %7602 }
0x143a   : > { %v5209_v5 = vmul.f32 %v7603_v37, %v10346_v40  ;;  %6991 = vmatpush3.bf16.msra.mxu0 %v7221_v21 }
0x143c   : > { %v5224_v25 = vmul.f32 %v10411_v1, %v5209_v5 }
0x143d   : > { %v7605_v58 = vpop.eup %7604 }
0x143e   : > { %v5210_v6 = vmul.f32 %v7605_v58, %v10350_v30  ;;  %v5239_v11 = vadd.f32 %v10418_v47, %v5224_v25  ;;  %v4943_v30 = vsel %vm990_vm5, %v10175_v59, %v4853_v18  ;;  %v10895_v59 = vld [vmem:[#allocation20_spill] sm:$0xff] }
0x143f   : > { %v4952_v16 = vsel %vm2418_vm9, %v4943_v30, %v4889_v8 }
0x1440   : > { %v5225_v36 = vmul.f32 %v10411_v1, %v5210_v6 }
0x1442   : > { %v5240_v40 = vadd.f32 %v10418_v47, %v5225_v36 }
0x1444   : > { %v5248_v26 = vpack.c.bf16 %v5240_v40, %v5239_v11 }
0x1446   : > { %6965 = vmatmul.mubr.msk.bf16.vlgmr.msra.gmra.mxu1 %vm698_vm3, %v5248_v26 }
0x1447   : > { %6968 = vmatprep.mubr.msk.bf16.mxu1 %vm7721_vm1, %v10840_v10 }
0x145f   : > { %v4925_v12 = vpop.permute.xlu0 %4924 }
0x1460   : > { %v4961_v15 = vsel %vm2428_vm10, %v4952_v16, %v4925_v12 }
0x1461   : > { %v4966_v43 = vpack.c.bf16 %v4961_v15, %v4961_v15 }
0x1463   : > { %6957 = vmatmul.mubr.msk.bf16.gmra.mxu0 %vm698_vm3, %v4966_v43 }
0x1464   : > { %6992 = vmatprep.mubr.msk.bf16.mxu0 %vm7721_vm1, %v10840_v10 }
0x1484   : > { %v5041_v41 = vpop.f32.mrf.mxu0 }
0x1485   : > { %v5073_v46 = vadd.f32 %v5041_v41, %v10894_v9 }
0x1486   : > { %v6946_v61 = vpop.f32.mrf.mxu0 }
0x1487   : > { %v10435_v60 = vadd.f32 %v10309_v56, %v5073_v46 }
0x1488   : > { %v5044_v48 = vpop.f32.mrf.mxu0 }
0x1489   : > { %v5074_v53 = vadd.f32 %v5044_v48, %v10895_v59  ;;  %v5107_v20 = vsel %vm698_vm3, %v10435_v60, 0.0 }
0x148a   : > { %5108 = vadd.xlane.f32.xlu1 %v5107_v20  ;;  %v6947_v13 = vpop.f32.mrf.mxu0 }
0x148b   : > { %v10441_v42 = vadd.f32 %v10309_v56, %v5074_v53 }
0x148d   : > { %v5110_v7 = vsel %vm698_vm3, %v10441_v42, 0.0 }
0x148e   : > { %5111 = vadd.xlane.f32.xlu0 %v5110_v7 }
0x1493   : > { %v5049_v27 = vpop.f32.mrf.mxu0 }
0x1494   : > { %v5075_v0 = vadd.f32 %v5049_v27, %v10896_v49 }
0x1495   : > { %v6950_v19 = vpop.f32.mrf.mxu0 }
0x1496   : > { %v10447_v29 = vadd.f32 %v10309_v56, %v5075_v0 }
0x1497   : > { %v5052_v24 = vpop.f32.mrf.mxu0 }
0x1498   : > { %v5076_v39 = vadd.f32 %v5052_v24, %v10897_v51  ;;  %v5113_v31 = vsel %vm698_vm3, %v10447_v29, 0.0 }
0x1499   : > { %5114 = vadd.xlane.f32.xlu0 %v5113_v31  ;;  %v6951_v52 = vpop.f32.mrf.mxu0 }
0x149a   : > { %v10453_v17 = vadd.f32 %v10309_v56, %v5076_v39  ;;  %v10900_v52 = vld [vmem:[#allocation6_spill] sm:$0xff] }
0x149c   : > { %v5116_v63 = vsel %vm698_vm3, %v10453_v17, 0.0 }
0x149d   : > { %5117 = vadd.xlane.f32.xlu1 %v5116_v63 }
0x14f5   : > { %v5057_v44 = vpop.f32.mrf.mxu0 }
0x14f6   : > { %v5077_v23 = vadd.f32 %v5057_v44, %v10898_v54 }
0x14f7   : > { %v6954_v57 = vpop.f32.mrf.mxu0 }
0x14f8   : > { %v10474_v38 = vadd.f32 %v10309_v56, %v5077_v23 }
0x14f9   : > { %v5060_v28 = vpop.f32.mrf.mxu0 }
0x14fa   : > { %v5078_v50 = vadd.f32 %v5060_v28, %v10899_v45  ;;  %v5119_v2 = vsel %vm698_vm3, %v10474_v38, 0.0 }
0x14fb   : > { %5120 = vadd.xlane.f32.xlu0 %v5119_v2  ;;  %v6955_v62 = vpop.f32.mrf.mxu0 }
0x14fc   : > { %v10480_v33 = vadd.f32 %v10309_v56, %v5078_v50 }
0x14fe   : > { %v5122_v4 = vsel %vm698_vm3, %v10480_v33, 0.0 }
0x14ff   : > { %5123 = vadd.xlane.f32.xlu1 %v5122_v4 }
0x1506   : > { %v5327_v14 = vpop.f32.mrf.mxu1 }
0x1507   : > { %v10490_v32 = vadd.f32 %v10487_v34, %v5327_v14 }
0x1508   : > { %v6966_v37 = vpop.f32.mrf.mxu1 }
0x1509   : > { %v10493_v5 = vmul.f32 0.70710677, %v10490_v32 }
0x150a   : > { %v5330_v58 = vpop.f32.mrf.mxu1 }
0x150b   : > { %v5383_v25 = vand.u32 2147483647, %v10493_v5  ;;  %v10497_v6 = vadd.f32 %v10487_v34, %v5330_v58  ;;  %vm5563_vm5 = vcmp.ge.f32.partialorder %v10493_v5, 0.0 }
0x150c   : > { %v6967_v36 = vpop.f32.mrf.mxu1 }
0x150d   : > { %v5392_v11 = vmul.f32 0.3275911, %v5383_v25  ;;  %v10500_v40 = vmul.f32 0.70710677, %v10497_v6  ;;  %v5509_v43 = vsub.f32 0.0, %v5383_v25 }
0x150f   : > { %v5401_v26 = vadd.f32 1.0, %v5392_v11  ;;  %v5384_v18 = vand.u32 2147483647, %v10500_v40  ;;  %v5518_v46 = vmul.f32 %v5509_v43, %v5383_v25  ;;  %vm5564_vm7 = vcmp.ge.f32.partialorder %v10500_v40, 0.0 }
0x1511   : > { %7606 = vrcp.f32 %v5401_v26  ;;  %v5393_v8 = vmul.f32 0.3275911, %v5384_v18  ;;  %v5510_v61 = vsub.f32 0.0, %v5384_v18  ;;  %v5527_v53 = vmul.f32 1.442695, %v5518_v46 }
0x1513   : > { %v5109_v30 = vpop.xlane.xlu1 %5108  ;;  %v5402_v16 = vadd.f32 1.0, %v5393_v8  ;;  %v5519_v20 = vmul.f32 %v5510_v61, %v5384_v18 }
0x1514   : > { %v5130_v12 = vmul.f32 0.03125, %v5109_v30 }
0x1515   : > { %7608 = vrcp.f32 %v5402_v16 }
0x1516   : > { %v10504_v15 = vsub.f32 %v10435_v60, %v5130_v12  ;;  %7610 = vpow2.f32 %v5527_v53  ;;  %v5529_v60 = vmul.f32 1.442695, %v5519_v20 }
0x1517   : > { %v5112_v48 = vpop.xlane.xlu0 %5111 }
0x1518   : > { %v5148_v41 = vmul.f32 %v10504_v15, %v10504_v15  ;;  %v5131_v7 = vmul.f32 0.03125, %v5112_v48  ;;  %7612 = vpow2.f32 %v5529_v60 }
0x151a   : > { %v5161_v9 = vsel %vm698_vm3, %v5148_v41, 0.0  ;;  %v10510_v31 = vsub.f32 %v10441_v42, %v5131_v7  ;;  %v5365_v7 = vmul.f32 0.5, %v10490_v32 }
0x151b   : > { %5162 = vadd.xlane.f32.xlu1 %v5161_v9 }
0x151e   : > { %v7607_v59 = vpop.eup %7606 }
0x151f   : > { %v5428_v13 = vmul.f32 1.0614054, %v7607_v59 }
0x1521   : > { %v5437_v27 = vadd.f32 -1.4531521, %v5428_v13 }
0x1522   : > { %v5115_v49 = vpop.xlane.xlu0 %5114  ;;  %v7609_v0 = vpop.eup %7608 }
0x1523   : > { %v5132_v19 = vmul.f32 0.03125, %v5115_v49  ;;  %v5065_v24 = vpop.f32.mrf.mxu0  ;;  %v5446_v51 = vmul.f32 %v7607_v59, %v5437_v27  ;;  %v5429_v39 = vmul.f32 1.0614054, %v7609_v0  ;;  %v7611_v18 = vpop.eup %7610  ;;  %v5366_v27 = vmul.f32 0.5, %v10497_v6 }
0x1524   : > { %v5079_v63 = vadd.f32 %v5065_v24, %v10900_v52 }
0x1525   : > { %v10514_v35 = vsub.f32 %v10447_v29, %v5132_v19  ;;  %v6958_v3 = vpop.f32.mrf.mxu0  ;;  %v5455_v22 = vadd.f32 1.4214138, %v5446_v51  ;;  %v5438_v21 = vadd.f32 -1.4531521, %v5429_v39  ;;  %v5149_v29 = vmul.f32 %v10510_v31, %v10510_v31  ;;  %v7613_v43 = vpop.eup %7612 }
0x1526   : > { %v10517_v44 = vadd.f32 %v10309_v56, %v5079_v63  ;;  %v5118_v54 = vpop.xlane.xlu1 %5117 }
0x1527   : > { %v5133_v23 = vmul.f32 0.03125, %v5118_v54  ;;  %v5068_v57 = vpop.f32.mrf.mxu0  ;;  %v5150_v28 = vmul.f32 %v10514_v35, %v10514_v35  ;;  %v5464_v42 = vmul.f32 %v7607_v59, %v5455_v22  ;;  %v5447_v45 = vmul.f32 %v7609_v0, %v5438_v21 }
0x1528   : > { %v5125_v50 = vsel %vm723_vm4, %v10517_v44, 0.0  ;;  %v5164_v25 = vsel %vm698_vm3, %v5149_v29, 0.0 }
0x1529   : > { %v10526_v2 = vsub.f32 %v10453_v17, %v5133_v23  ;;  %v5167_v56 = vsel %vm698_vm3, %v5150_v28, 0.0  ;;  %5126 = vadd.xlane.f32.xlu0 %v5125_v50  ;;  %v6959_v62 = vpop.f32.mrf.mxu0  ;;  %v5473_v4 = vadd.f32 -0.28449672, %v5464_v42  ;;  %v5456_v14 = vadd.f32 1.4214138, %v5447_v45 }
0x152a   : > { %5168 = vadd.xlane.f32.xlu1 %v5167_v56 }
0x152b   : > { %v5482_v37 = vmul.f32 %v7607_v59, %v5473_v4  ;;  %v5465_v58 = vmul.f32 %v7609_v0, %v5456_v14  ;;  %v5151_v36 = vmul.f32 %v10526_v2, %v10526_v2 }
0x152d   : > { %5165 = vadd.xlane.f32.xlu0 %v5164_v25  ;;  %v5491_v11 = vadd.f32 0.2548296, %v5482_v37  ;;  %v5474_v26 = vadd.f32 -0.28449672, %v5465_v58  ;;  %v5170_v30 = vsel %vm698_vm3, %v5151_v36, 0.0 }
0x152f   : > { %v5500_v17 = vmul.f32 %v7607_v59, %v5491_v11  ;;  %v5483_v8 = vmul.f32 %v7609_v0, %v5474_v26 }
0x1531   : > { %5171 = vadd.xlane.f32.xlu0 %v5170_v30  ;;  %v5545_v16 = vmul.f32 %v7611_v18, %v5500_v17  ;;  %v5492_v12 = vadd.f32 0.2548296, %v5483_v8 }
0x1533   : > { %v5554_v41 = vsub.f32 1.0, %v5545_v16  ;;  %v5501_v9 = vmul.f32 %v7609_v0, %v5492_v12 }
0x1535   : > { %v5572_v46 = vsub.f32 0.0, %v5554_v41  ;;  %v5546_v61 = vmul.f32 %v7613_v43, %v5501_v9 }
0x1537   : > { %v5581_v48 = vsel %vm5563_vm5, %v5554_v41, %v5572_v46  ;;  %v5555_v53 = vsub.f32 1.0, %v5546_v61  ;;  %v6074_v46 = vld [vmem:[%s10743_s13 + $0x1] ss:$0 sm:$0xff] }
0x1538   : > { %v5590_v13 = vadd.f32 1.0, %v5581_v48 }
0x1539   : > { %v5573_v20 = vsub.f32 0.0, %v5555_v53 }
0x153a   : > { %v5599_v60 = vmul.f32 %v5590_v13, %v5365_v7 }
0x153b   : > { %v5582_v59 = vsel %vm5564_vm7, %v5555_v53, %v5573_v20 }
0x153c   : > { %v5591_v49 = vadd.f32 1.0, %v5582_v59 }
0x153e   : > { %v5600_v19 = vmul.f32 %v5591_v49, %v5366_v27 }
0x1540   : > { %v5608_v24 = vpack.c.bf16 %v5600_v19, %v5599_v60 }
0x1542   : > { %6993 = vmatmul.mubr.msk.bf16.vlgmr.msra.gmra.mxu0 %vm3115_vm14, %v5608_v24 }
0x1543   : > { %6996 = vmatprep.mubr.msk.bf16.mxu0 %vm7721_vm1, %v10840_v10 }
0x1584   : > { %v5121_v5 = vpop.xlane.xlu0 %5120 }
0x1585   : > { %v5134_v0 = vmul.f32 0.03125, %v5121_v5 }
0x1587   : > { %v10541_v51 = vsub.f32 %v10474_v38, %v5134_v0 }
0x1588   : > { %v5124_v40 = vpop.xlane.xlu1 %5123 }
0x1589   : > { %v5135_v39 = vmul.f32 0.03125, %v5124_v40  ;;  %v5152_v32 = vmul.f32 %v10541_v51, %v10541_v51 }
0x158b   : > { %v10546_v6 = vsub.f32 %v10480_v33, %v5135_v39  ;;  %v5173_v52 = vsel %vm698_vm3, %v5152_v32, 0.0 }
0x158c   : > { %5174 = vadd.xlane.f32.xlu1 %v5173_v52 }
0x158d   : > { %v5153_v63 = vmul.f32 %v10546_v6, %v10546_v6 }
0x158f   : > { %v5176_v3 = vsel %vm698_vm3, %v5153_v63, 0.0 }
0x1590   : > { %5177 = vadd.xlane.f32.xlu0 %v5176_v3 }
0x15a4   : > { %v5163_v22 = vpop.xlane.xlu1 %5162 }
0x15a5   : > { %v5184_v38 = vmul.f32 0.03125, %v5163_v22 }
0x15a7   : > { %v5193_v21 = vadd.f32 1e-05, %v5184_v38 }
0x15a9   : > { %7614 = vrsqrt.f32 %v5193_v21 }
0x15b2   : > { %v5127_v54 = vpop.xlane.xlu0 %5126 }
0x15b3   : > { %v5169_v23 = vpop.xlane.xlu1 %5168  ;;  %v5136_v57 = vmul.f32 0.03125, %v5127_v54 }
0x15b4   : > { %v5186_v28 = vmul.f32 0.03125, %v5169_v23 }
0x15b5   : > { %v10553_v33 = vsub.f32 %v10517_v44, %v5136_v57 }
0x15b6   : > { %v5166_v42 = vpop.xlane.xlu0 %5165  ;;  %v5195_v29 = vadd.f32 1e-05, %v5186_v28  ;;  %v7615_v58 = vpop.eup %7614 }
0x15b7   : > { %v5185_v45 = vmul.f32 0.03125, %v5166_v42  ;;  %v5154_v50 = vmul.f32 %v10553_v33, %v10553_v33  ;;  %v5211_v44 = vmul.f32 %v7615_v58, %v10504_v15 }
0x15b9   : > { %v5194_v56 = vadd.f32 1e-05, %v5185_v45  ;;  %v5179_v62 = vsel %vm723_vm4, %v5154_v50, 0.0  ;;  %v5226_v11 = vmul.f32 %v10411_v1, %v5211_v44 }
0x15ba   : > { %5180 = vadd.xlane.f32.xlu1 %v5179_v62  ;;  %v5172_v4 = vpop.xlane.xlu0 %5171 }
0x15bb   : > { %7616 = vrsqrt.f32 %v5194_v56  ;;  %v5187_v14 = vmul.f32 0.03125, %v5172_v4  ;;  %v5241_v16 = vadd.f32 %v10418_v47, %v5226_v11 }
0x15bc   : > { %7618 = vrsqrt.f32 %v5195_v29 }
0x15bd   : > { %v5196_v37 = vadd.f32 1e-05, %v5187_v14 }
0x15bf   : > { %7620 = vrsqrt.f32 %v5196_v37 }
0x15c8   : > { %v7617_v25 = vpop.eup %7616 }
0x15c9   : > { %v5212_v36 = vmul.f32 %v7617_v25, %v10510_v31  ;;  %v7619_v26 = vpop.eup %7618 }
0x15ca   : > { %v5213_v8 = vmul.f32 %v7619_v26, %v10514_v35 }
0x15cb   : > { %v5227_v18 = vmul.f32 %v10411_v1, %v5212_v36 }
0x15cc   : > { %v7621_v17 = vpop.eup %7620  ;;  %v5228_v31 = vmul.f32 %v10411_v1, %v5213_v8 }
0x15cd   : > { %v5214_v30 = vmul.f32 %v7621_v17, %v10526_v2  ;;  %v5242_v12 = vadd.f32 %v10418_v47, %v5227_v18 }
0x15ce   : > { %v5243_v35 = vadd.f32 %v10418_v47, %v5228_v31 }
0x15cf   : > { %v5249_v43 = vpack.c.bf16 %v5242_v12, %v5241_v16  ;;  %v5229_v15 = vmul.f32 %v10411_v1, %v5214_v30 }
0x15d1   : > { %6969 = vmatmul.mubr.msk.bf16.gmra.mxu1 %vm698_vm3, %v5249_v43  ;;  %v5244_v41 = vadd.f32 %v10418_v47, %v5229_v15 }
0x15d2   : > { %6972 = vmatprep.mubr.msk.bf16.mxu1 %vm7721_vm1, %v10840_v10 }
0x15d3   : > { %v5250_v9 = vpack.c.bf16 %v5244_v41, %v5243_v35 }
0x15d9   : > { %6973 = vmatmul.mubr.msk.bf16.gmra.mxu1 %vm698_vm3, %v5250_v9 }
0x15da   : > { %6976 = vmatprep.mubr.msk.bf16.mxu1 %vm7721_vm1, %v10840_v10 }
0x1602   : > { %v5695_v2 = vpop.f32.mrf.mxu0 }
0x1603   : > { %v5725_v61 = vadd.f32 %v5695_v2, %v10313_v55 }
0x1604   : > { %v6994_v48 = vpop.f32.mrf.mxu0 }
0x1605   : > { %v5734_v53 = vadd.f32 %v6074_v46, %v5725_v61 }
0x1606   : > { %v5698_v20 = vpop.f32.mrf.mxu0 }
0x1607   : > { %v5737_v13 = vsel %vm723_vm4, %v5734_v53, 0.0 }
0x1608   : > { %5738 = vadd.xlane.f32.xlu0 %v5737_v13  ;;  %v6995_v59 = vpop.f32.mrf.mxu0 }
0x1615   : > { %v5175_v7 = vpop.xlane.xlu1 %5174 }
0x1616   : > { %v5188_v27 = vmul.f32 0.03125, %v5175_v7 }
0x1618   : > { %v5197_v49 = vadd.f32 1e-05, %v5188_v27 }
0x1619   : > { %v5178_v60 = vpop.xlane.xlu0 %5177 }
0x161a   : > { %7622 = vrsqrt.f32 %v5197_v49  ;;  %v5189_v19 = vmul.f32 0.03125, %v5178_v60 }
0x161c   : > { %v5198_v24 = vadd.f32 1e-05, %v5189_v19 }
0x161e   : > { %7624 = vrsqrt.f32 %v5198_v24 }
0x1627   : > { %v7623_v5 = vpop.eup %7622 }
0x1628   : > { %v5215_v0 = vmul.f32 %v7623_v5, %v10541_v51 }
0x162a   : > { %v5230_v39 = vmul.f32 %v10411_v1, %v5215_v0 }
0x162b   : > { %v7625_v40 = vpop.eup %7624 }
0x162c   : > { %v5216_v55 = vmul.f32 %v7625_v40, %v10546_v6  ;;  %v5245_v52 = vadd.f32 %v10418_v47, %v5230_v39 }
0x162e   : > { %v5231_v32 = vmul.f32 %v10411_v1, %v5216_v55 }
0x1630   : > { %v5246_v63 = vadd.f32 %v10418_v47, %v5231_v32 }
0x1632   : > { %v5251_v3 = vpack.c.bf16 %v5246_v63, %v5245_v52 }
0x1634   : > { %6977 = vmatmul.mubr.msk.bf16.gmra.mxu1 %vm698_vm3, %v5251_v3 }
0x1635   : > { %6980 = vmatprep.mubr.msk.bf16.mxu1 %vm7721_vm1, %v10840_v10 }
0x1643   : > { %v5181_v22 = vpop.xlane.xlu1 %5180 }
0x1644   : > { %v5190_v38 = vmul.f32 0.03125, %v5181_v22 }
0x1646   : > { %v5199_v51 = vadd.f32 1e-05, %v5190_v38 }
0x1648   : > { %7626 = vrsqrt.f32 %v5199_v51 }
0x1655   : > { %v7627_v21 = vpop.eup %7626 }
0x1656   : > { %v5217_v6 = vmul.f32 %v7627_v21, %v10553_v33 }
0x1658   : > { %v5232_v54 = vmul.f32 %v10411_v1, %v5217_v6 }
0x165a   : > { %v5247_v23 = vadd.f32 %v10418_v47, %v5232_v54 }
0x165c   : > { %v5252_v57 = vpack.c.bf16 %v5247_v23, %v5247_v23 }
0x165e   : > { %6981 = vmatmul.mubr.msk.bf16.gmra.mxu1 %vm698_vm3, %v5252_v57 }
0x165f   : > { %7016 = vmatprep.mubr.msk.bf16.mxu1 %vm7721_vm1, %v10840_v10 }
0x1691   : > { %v5335_v28 = vpop.f32.mrf.mxu1  ;;  %v5739_v45 = vpop.xlane.xlu0 %5738 }
0x1692   : > { %v10597_v42 = vadd.f32 %v10487_v34, %v5335_v28  ;;  %v5740_v50 = vmul.f32 0.03125, %v5739_v45 }
0x1693   : > { %v6970_v29 = vpop.f32.mrf.mxu1 }
0x1694   : > { %v10600_v56 = vmul.f32 0.70710677, %v10597_v42  ;;  %v10602_v33 = vsub.f32 %v5734_v53, %v5740_v50 }
0x1695   : > { %v5338_v1 = vpop.f32.mrf.mxu1 }
0x1696   : > { %v5385_v47 = vand.u32 2147483647, %v10600_v56  ;;  %v10606_v62 = vadd.f32 %v10487_v34, %v5338_v1  ;;  %v5742_v14 = vmul.f32 %v10602_v33, %v10602_v33 }
0x1697   : > { %v6971_v4 = vpop.f32.mrf.mxu1 }
0x1698   : > { %v5394_v37 = vmul.f32 0.3275911, %v5385_v47  ;;  %v10611_v58 = vmul.f32 0.70710677, %v10606_v62  ;;  %v5743_v25 = vsel %vm723_vm4, %v5742_v14, 0.0  ;;  %v5511_v41 = vsub.f32 0.0, %v5385_v47 }
0x1699   : > { %v5343_v44 = vpop.f32.mrf.mxu1  ;;  %5744 = vadd.xlane.f32.xlu1 %v5743_v25  ;;  %vm5565_vm4 = vcmp.ge.f32.partialorder %v10600_v56, 0.0 }
0x169a   : > { %v5403_v36 = vadd.f32 1.0, %v5394_v37  ;;  %v5386_v11 = vand.u32 2147483647, %v10611_v58  ;;  %v10616_v26 = vadd.f32 %v10487_v34, %v5343_v44  ;;  %v5520_v61 = vmul.f32 %v5511_v41, %v5385_v47 }
0x169b   : > { %v6974_v18 = vpop.f32.mrf.mxu1  ;;  %vm5566_vm8 = vcmp.ge.f32.partialorder %v10611_v58, 0.0 }
0x169c   : > { %7628 = vrcp.f32 %v5403_v36  ;;  %v5395_v17 = vmul.f32 0.3275911, %v5386_v11  ;;  %v10619_v8 = vmul.f32 0.70710677, %v10616_v26  ;;  %v5512_v48 = vsub.f32 0.0, %v5386_v11 }
0x169d   : > { %v5346_v30 = vpop.f32.mrf.mxu1  ;;  %v5531_v13 = vmul.f32 1.442695, %v5520_v61 }
0x169e   : > { %v5404_v16 = vadd.f32 1.0, %v5395_v17  ;;  %v10622_v12 = vadd.f32 %v10487_v34, %v5346_v30  ;;  %v5387_v43 = vand.u32 2147483647, %v10619_v8  ;;  %v5521_v7 = vmul.f32 %v5512_v48, %v5386_v11 }
0x169f   : > { %v6975_v15 = vpop.f32.mrf.mxu1  ;;  %vm5567_vm9 = vcmp.ge.f32.partialorder %v10619_v8, 0.0 }
0x16a0   : > { %7630 = vrcp.f32 %v5404_v16  ;;  %v10626_v31 = vmul.f32 0.70710677, %v10622_v12  ;;  %v5396_v35 = vmul.f32 0.3275911, %v5387_v43  ;;  %v5513_v27 = vsub.f32 0.0, %v5387_v43  ;;  %v7222_v16 = vld [vmem:[%s10746_s16 + $0x8] sm:$0xff]  }
0x16a1   : > { %v5533_v5 = vmul.f32 1.442695, %v5521_v7  ;;  %7013 = vmatpush3.bf16.msra.mxu1 %v7222_v16 }
0x16a2   : > { %v5388_v9 = vand.u32 2147483647, %v10626_v31  ;;  %v5405_v2 = vadd.f32 1.0, %v5396_v35  ;;  %v5522_v40 = vmul.f32 %v5513_v27, %v5387_v43  ;;  %7014 = vmatprep.subr.bf16.mxu1 %v10840_v10  ;;  %vm5568_vm10 = vcmp.ge.f32.partialorder %v10626_v31, 0.0 }
0x16a4   : > { %v5397_v46 = vmul.f32 0.3275911, %v5388_v9  ;;  %7632 = vrcp.f32 %v5405_v2  ;;  %v5514_v0 = vsub.f32 0.0, %v5388_v9  ;;  %v5535_v38 = vmul.f32 1.442695, %v5522_v40 }
0x16a5   : > { %v5367_v40 = vmul.f32 0.5, %v10597_v42 }
0x16a6   : > { %v5406_v53 = vadd.f32 1.0, %v5397_v46  ;;  %v5523_v3 = vmul.f32 %v5514_v0, %v5388_v9 }
0x16a8   : > { %7634 = vrcp.f32 %v5406_v53  ;;  %v5537_v45 = vmul.f32 1.442695, %v5523_v3  ;;  %v7223_v53 = vld [vmem:[%s10746_s16] sm:$0xff]  }
0x16a9   : > { %v7629_v20 = vpop.eup %7628  ;;  %7636 = vpow2.f32 %v5531_v13  ;;  %7015 = vmatpush3.bf16.msra.mxu1 %v7223_v53 }
0x16aa   : > { %v5430_v59 = vmul.f32 1.0614054, %v7629_v20  ;;  %7638 = vpow2.f32 %v5533_v5 }
0x16ab   : > { %7640 = vpow2.f32 %v5535_v38 }
0x16ac   : > { %v5439_v49 = vadd.f32 -1.4531521, %v5430_v59  ;;  %7642 = vpow2.f32 %v5537_v45 }
0x16ad   : > { %v7631_v60 = vpop.eup %7630 }
0x16ae   : > { %v5448_v19 = vmul.f32 %v7629_v20, %v5439_v49  ;;  %v5431_v24 = vmul.f32 1.0614054, %v7631_v60 }
0x16b0   : > { %v5457_v55 = vadd.f32 1.4214138, %v5448_v19  ;;  %v5440_v39 = vadd.f32 -1.4531521, %v5431_v24 }
0x16b1   : > { %v7633_v32 = vpop.eup %7632 }
0x16b2   : > { %v5466_v52 = vmul.f32 %v7629_v20, %v5457_v55  ;;  %v5449_v63 = vmul.f32 %v7631_v60, %v5440_v39  ;;  %v5432_v22 = vmul.f32 1.0614054, %v7633_v32  ;;  %v5368_v55 = vmul.f32 0.5, %v10606_v62 }
0x16b3   : > { %v5369_v62 = vmul.f32 0.5, %v10616_v26 }
0x16b4   : > { %v5475_v51 = vadd.f32 -0.28449672, %v5466_v52  ;;  %v5458_v21 = vadd.f32 1.4214138, %v5449_v63  ;;  %v5441_v54 = vadd.f32 -1.4531521, %v5432_v22 }
0x16b5   : > { %v7635_v6 = vpop.eup %7634 }
0x16b6   : > { %v5484_v23 = vmul.f32 %v7629_v20, %v5475_v51  ;;  %v5467_v57 = vmul.f32 %v7631_v60, %v5458_v21  ;;  %v5433_v28 = vmul.f32 1.0614054, %v7635_v6  ;;  %v5450_v50 = vmul.f32 %v7633_v32, %v5441_v54  ;;  %v7637_v14 = vpop.eup %7636 }
0x16b7   : > { %v7639_v35 = vpop.eup %7638 }
0x16b8   : > { %v5493_v29 = vadd.f32 0.2548296, %v5484_v23  ;;  %v5476_v1 = vadd.f32 -0.28449672, %v5467_v57  ;;  %v5442_v47 = vadd.f32 -1.4531521, %v5433_v28  ;;  %v7641_v27 = vpop.eup %7640 }
0x16b9   : > { %v5459_v4 = vadd.f32 1.4214138, %v5450_v50  ;;  %v7643_v56 = vpop.eup %7642 }
0x16ba   : > { %v5502_v37 = vmul.f32 %v7629_v20, %v5493_v29  ;;  %v5485_v44 = vmul.f32 %v7631_v60, %v5476_v1  ;;  %v5451_v25 = vmul.f32 %v7635_v6, %v5442_v47 }
0x16bb   : > { %v5468_v36 = vmul.f32 %v7633_v32, %v5459_v4 }
0x16bc   : > { %v5547_v11 = vmul.f32 %v7637_v14, %v5502_v37  ;;  %v5494_v18 = vadd.f32 0.2548296, %v5485_v44  ;;  %v5460_v17 = vadd.f32 1.4214138, %v5451_v25 }
0x16bd   : > { %v5477_v30 = vadd.f32 -0.28449672, %v5468_v36 }
0x16be   : > { %v5556_v43 = vsub.f32 1.0, %v5547_v11  ;;  %v5503_v15 = vmul.f32 %v7631_v60, %v5494_v18  ;;  %v5469_v41 = vmul.f32 %v7635_v6, %v5460_v17 }
0x16bf   : > { %v5486_v9 = vmul.f32 %v7633_v32, %v5477_v30 }
0x16c0   : > { %v5574_v2 = vsub.f32 0.0, %v5556_v43  ;;  %v5548_v46 = vmul.f32 %v7639_v35, %v5503_v15  ;;  %v5478_v61 = vadd.f32 -0.28449672, %v5469_v41 }
0x16c1   : > { %v5495_v48 = vadd.f32 0.2548296, %v5486_v9 }
0x16c2   : > { %v5583_v20 = vsel %vm5565_vm4, %v5556_v43, %v5574_v2  ;;  %v5557_v13 = vsub.f32 1.0, %v5548_v46  ;;  %v5487_v59 = vmul.f32 %v7635_v6, %v5478_v61 }
0x16c3   : > { %v5504_v7 = vmul.f32 %v7633_v32, %v5495_v48  ;;  %v5592_v19 = vadd.f32 1.0, %v5583_v20 }
0x16c4   : > { %v5575_v49 = vsub.f32 0.0, %v5557_v13  ;;  %v5496_v60 = vadd.f32 0.2548296, %v5487_v59 }
0x16c5   : > { %v5549_v24 = vmul.f32 %v7641_v27, %v5504_v7  ;;  %v5601_v3 = vmul.f32 %v5592_v19, %v5367_v40 }
0x16c6   : > { %v5584_v5 = vsel %vm5566_vm8, %v5557_v13, %v5575_v49  ;;  %v5505_v0 = vmul.f32 %v7635_v6, %v5496_v60  ;;  %v5370_v6 = vmul.f32 0.5, %v10622_v12 }
0x16c7   : > { %v5593_v39 = vadd.f32 1.0, %v5584_v5  ;;  %v5558_v52 = vsub.f32 1.0, %v5549_v24 }
0x16c8   : > { %v5550_v63 = vmul.f32 %v7643_v56, %v5505_v0 }
0x16c9   : > { %v5602_v32 = vmul.f32 %v5593_v39, %v5368_v55  ;;  %v5576_v22 = vsub.f32 0.0, %v5558_v52 }
0x16ca   : > { %v5559_v38 = vsub.f32 1.0, %v5550_v63 }
0x16cb   : > { %v5609_v51 = vpack.c.bf16 %v5602_v32, %v5601_v3  ;;  %v5585_v21 = vsel %vm5567_vm9, %v5558_v52, %v5576_v22 }
0x16cc   : > { %v5577_v58 = vsub.f32 0.0, %v5559_v38  ;;  %v5594_v54 = vadd.f32 1.0, %v5585_v21 }
0x16cd   : > { %6997 = vmatmul.mubr.msk.bf16.gmra.mxu0 %vm3115_vm14, %v5609_v51 }
0x16ce   : > { %v5586_v42 = vsel %vm5568_vm10, %v5559_v38, %v5577_v58  ;;  %7000 = vmatprep.mubr.msk.bf16.mxu0 %vm7721_vm1, %v10840_v10  ;;  %v5603_v57 = vmul.f32 %v5594_v54, %v5369_v62 }
0x16cf   : > { %v5595_v23 = vadd.f32 1.0, %v5586_v42 }
0x16d1   : > { %v5604_v8 = vmul.f32 %v5595_v23, %v5370_v6 }
0x16d3   : > { %v5610_v28 = vpack.c.bf16 %v5604_v8, %v5603_v57 }
0x16d5   : > { %7001 = vmatmul.mubr.msk.bf16.gmra.mxu0 %vm3115_vm14, %v5610_v28 }
0x16d6   : > { %7004 = vmatprep.mubr.msk.bf16.mxu0 %vm7721_vm1, %v10840_v10 }
0x16f4   : > { %v5351_v31 = vpop.f32.mrf.mxu1 }
0x16f5   : > { %v10651_v45 = vadd.f32 %v10487_v34, %v5351_v31 }
0x16f6   : > { %v6978_v50 = vpop.f32.mrf.mxu1 }
0x16f7   : > { %v5380_v29 = vmul.f32 0.70710677, %v10651_v45  ;;  %v5371_v50 = vmul.f32 0.5, %v10651_v45 }
0x16f8   : > { %v5354_v1 = vpop.f32.mrf.mxu1 }
0x16f9   : > { %v5389_v26 = vand.u32 2147483647, %v5380_v29  ;;  %v10655_v12 = vadd.f32 %v10487_v34, %v5354_v1  ;;  %vm5569_vm13 = vcmp.ge.f32.partialorder %v5380_v29, 0.0 }
0x16fa   : > { %v6979_v47 = vpop.f32.mrf.mxu1 }
0x16fb   : > { %v5398_v4 = vmul.f32 0.3275911, %v5389_v26  ;;  %v10658_v14 = vmul.f32 0.70710677, %v10655_v12  ;;  %v5515_v11 = vsub.f32 0.0, %v5389_v26  ;;  %v5372_v1 = vmul.f32 0.5, %v10655_v12 }
0x16fd   : > { %v5407_v37 = vadd.f32 1.0, %v5398_v4  ;;  %v5390_v44 = vand.u32 2147483647, %v10658_v14  ;;  %v5524_v18 = vmul.f32 %v5515_v11, %v5389_v26  ;;  %vm5570_vm15 = vcmp.ge.f32.partialorder %v10658_v14, 0.0  ;;  %v5735_v14 = vld [vmem:[%s10744_s14] sm:$0x1] }
0x16ff   : > { %7644 = vrcp.f32 %v5407_v37  ;;  %v5399_v25 = vmul.f32 0.3275911, %v5390_v44  ;;  %v5516_v17 = vsub.f32 0.0, %v5390_v44  ;;  %v5539_v43 = vmul.f32 1.442695, %v5524_v18 }
0x1700   : > { %v5736_v18 = vld [vmem:[%s10745_s15] sm:$0x1] }
0x1701   : > { %v5408_v36 = vadd.f32 1.0, %v5399_v25  ;;  %v5525_v15 = vmul.f32 %v5516_v17, %v5390_v44 }
0x1703   : > { %7646 = vrcp.f32 %v5408_v36  ;;  %v5541_v46 = vmul.f32 1.442695, %v5525_v15 }
0x1704   : > { %7648 = vpow2.f32 %v5539_v43 }
0x1705   : > { %7650 = vpow2.f32 %v5541_v46 }
0x170c   : > { %v7645_v30 = vpop.eup %7644 }
0x170d   : > { %v5434_v16 = vmul.f32 1.0614054, %v7645_v30 }
0x170f   : > { %v5443_v41 = vadd.f32 -1.4531521, %v5434_v16 }
0x1710   : > { %v7647_v35 = vpop.eup %7646 }
0x1711   : > { %v5452_v9 = vmul.f32 %v7645_v30, %v5443_v41  ;;  %v5435_v2 = vmul.f32 1.0614054, %v7647_v35  ;;  %v7649_v0 = vpop.eup %7648 }
0x1712   : > { %v7651_v22 = vpop.eup %7650 }
0x1713   : > { %v5461_v61 = vadd.f32 1.4214138, %v5452_v9  ;;  %v5444_v48 = vadd.f32 -1.4531521, %v5435_v2 }
0x1715   : > { %v5470_v53 = vmul.f32 %v7645_v30, %v5461_v61  ;;  %v5453_v20 = vmul.f32 %v7647_v35, %v5444_v48 }
0x1717   : > { %v5479_v13 = vadd.f32 -0.28449672, %v5470_v53  ;;  %v5462_v59 = vadd.f32 1.4214138, %v5453_v20 }
0x1719   : > { %v5488_v7 = vmul.f32 %v7645_v30, %v5479_v13  ;;  %v5471_v27 = vmul.f32 %v7647_v35, %v5462_v59 }
0x171b   : > { %v5497_v49 = vadd.f32 0.2548296, %v5488_v7  ;;  %v5480_v60 = vadd.f32 -0.28449672, %v5471_v27 }
0x171d   : > { %v5506_v19 = vmul.f32 %v7645_v30, %v5497_v49  ;;  %v5489_v24 = vmul.f32 %v7647_v35, %v5480_v60 }
0x171e   : > { %v5359_v5 = vpop.f32.mrf.mxu1 }
0x171f   : > { %v10662_v56 = vadd.f32 %v10487_v34, %v5359_v5  ;;  %v5551_v40 = vmul.f32 %v7649_v0, %v5506_v19  ;;  %v5498_v55 = vadd.f32 0.2548296, %v5489_v24 }
0x1720   : > { %v6982_v39 = vpop.f32.mrf.mxu1 }
0x1721   : > { %v5382_v52 = vmul.f32 0.70710677, %v10662_v56  ;;  %v5560_v63 = vsub.f32 1.0, %v5551_v40  ;;  %v5507_v3 = vmul.f32 %v7647_v35, %v5498_v55  ;;  %v5373_v13 = vmul.f32 0.5, %v10662_v56  ;;  %v5757_v56 = vld [vmem:[%s10747_s17] sm:$0x1] }
0x1722   : > { %v5362_v32 = vpop.f32.mrf.mxu1  ;;  %v5745_v51 = vpop.xlane.xlu1 %5744 }
0x1723   : > { %v5391_v38 = vand.u32 2147483647, %v5382_v52  ;;  %v5578_v21 = vsub.f32 0.0, %v5560_v63  ;;  %v5552_v58 = vmul.f32 %v7651_v22, %v5507_v3  ;;  %v5746_v54 = vmul.f32 0.03125, %v5745_v51 }
0x1724   : > { %v6983_v42 = vpop.f32.mrf.mxu1 }
0x1725   : > { %v5400_v62 = vmul.f32 0.3275911, %v5391_v38  ;;  %v5587_v6 = vsel %vm5569_vm13, %v5560_v63, %v5578_v21  ;;  %v5561_v34 = vsub.f32 1.0, %v5552_v58  ;;  %v5747_v23 = vadd.f32 1e-05, %v5746_v54 }
0x1726   : > { %v5596_v28 = vadd.f32 1.0, %v5587_v6  ;;  %v5517_v37 = vsub.f32 0.0, %v5391_v38 }
0x1727   : > { %v5409_v57 = vadd.f32 1.0, %v5400_v62  ;;  %v5579_v8 = vsub.f32 0.0, %v5561_v34  ;;  %7652 = vrsqrt.f32 %v5747_v23 }
0x1728   : > { %v5605_v47 = vmul.f32 %v5596_v28, %v5371_v50  ;;  %v5526_v44 = vmul.f32 %v5517_v37, %v5391_v38 }
0x1729   : > { %7654 = vrcp.f32 %v5409_v57  ;;  %v5588_v31 = vsel %vm5570_vm15, %v5561_v34, %v5579_v8 }
0x172a   : > { %v5597_v26 = vadd.f32 1.0, %v5588_v31  ;;  %v5543_v11 = vmul.f32 1.442695, %v5526_v44 }
0x172c   : > { %v5606_v4 = vmul.f32 %v5597_v26, %v5372_v1  ;;  %7656 = vpow2.f32 %v5543_v11 }
0x172e   : > { %v5611_v29 = vpack.c.bf16 %v5606_v4, %v5605_v47 }
0x1730   : > { %7005 = vmatmul.mubr.msk.bf16.gmra.mxu0 %vm3115_vm14, %v5611_v29 }
0x1731   : > { %7008 = vmatprep.mubr.msk.bf16.mxu0 %vm7721_vm1, %v10840_v10  ;;  %vm5571_vm1 = vcmp.ge.f32.partialorder %v5382_v52, 0.0 }
0x1734   : > { %v7653_v25 = vpop.eup %7652 }
0x1735   : > { %v5749_v45 = vmul.f32 %v7653_v25, %v10602_v33 }
0x1736   : > { %v7655_v36 = vpop.eup %7654 }
0x1737   : > { %v5436_v12 = vmul.f32 1.0614054, %v7655_v36  ;;  %v5750_v17 = vmul.f32 %v5749_v45, %v5735_v14 }
0x1739   : > { %v5445_v30 = vadd.f32 -1.4531521, %v5436_v12  ;;  %v5751_v16 = vadd.f32 %v5750_v17, %v5736_v18  ;;  %v7657_v46 = vpop.eup %7656 }
0x173b   : > { %v5454_v43 = vmul.f32 %v7655_v36, %v5445_v30  ;;  %v5752_v10 = vpack.c.bf16 %v5751_v16, %v5751_v16 }
0x173d   : > { %v5463_v15 = vadd.f32 1.4214138, %v5454_v43  ;;  %7017 = vmatmul.mubr.msk.bf16.vlgmr.msra.gmra.mxu1 %vm698_vm3, %v5752_v10  ;;  %vm5813_vm3 = vcmask 8192  }
0x173f   : > { %v5472_v41 = vmul.f32 %v7655_v36, %v5463_v15 }
0x1741   : > { %v5481_v35 = vadd.f32 -0.28449672, %v5472_v41 }
0x1743   : > { %v5490_v9 = vmul.f32 %v7655_v36, %v5481_v35 }
0x1745   : > { %v5499_v2 = vadd.f32 0.2548296, %v5490_v9 }
0x1747   : > { %v5508_v33 = vmul.f32 %v7655_v36, %v5499_v2 }
0x1749   : > { %v5553_v61 = vmul.f32 %v7657_v46, %v5508_v33 }
0x174b   : > { %v5562_v48 = vsub.f32 1.0, %v5553_v61 }
0x174d   : > { %v5580_v53 = vsub.f32 0.0, %v5562_v48 }
0x174f   : > { %v5589_v20 = vsel %vm5571_vm1, %v5562_v48, %v5580_v53 }
0x1750   : > { %v5598_v59 = vadd.f32 1.0, %v5589_v20 }
0x1752   : > { %v5607_v7 = vmul.f32 %v5598_v59, %v5373_v13 }
0x1754   : > { %v5612_v27 = vpack.c.bf16 %v5607_v7, %v5607_v7 }
0x1756   : > { %7009 = vmatmul.mubr.msk.bf16.gmra.mxu0 %vm3115_vm14, %v5612_v27 }
0x178d   : > { %v5702_v49 = vpop.f32.mrf.mxu0 }
0x178f   : > { %v6998_v60 = vpop.f32.mrf.mxu0 }
0x1791   : > { %v5704_v19 = vpop.f32.mrf.mxu0 }
0x1793   : > { %v6999_v24 = vpop.f32.mrf.mxu0 }
0x1795   : > { %v5708_v5 = vpop.f32.mrf.mxu0 }
0x1797   : > { %v7002_v0 = vpop.f32.mrf.mxu0 }
0x1799   : > { %v5710_v40 = vpop.f32.mrf.mxu0 }
0x179b   : > { %v7003_v55 = vpop.f32.mrf.mxu0 }
0x17f0   : > { %v5714_v39 = vpop.f32.mrf.mxu0 }
0x17f2   : > { %v7006_v52 = vpop.f32.mrf.mxu0 }
0x17f4   : > { %v5716_v63 = vpop.f32.mrf.mxu0 }
0x17f6   : > { %v7007_v3 = vpop.f32.mrf.mxu0 }
0x17fd   : > { %v5807_v32 = vpop.f32.mrf.mxu1 }
0x17fe   : > { %v5808_v22 = vadd.f32 %v5807_v32, %v5757_v56 }
0x17ff   : > { %v7018_v38 = vpop.f32.mrf.mxu1 }
0x1800   : > { %5814 = vst.msk [vmem:[%s567_s3] sm:$0x1] %vm5813_vm3, %v5808_v22 }
0x1801   : > { %v5810_v51 = vpop.f32.mrf.mxu1 }
0x1802   : > { %7671 = shalt.err (!%p7668_p3)
}
0x1803   : > { %s7672_s26 = scalar_lea.hbm %s10689_s4, 16  ;;  %s7676_s21 = scalar_lea.hbm %s10748_s18, 32 }
0x1804   : > { %p7673_p4 = scmp.ne.s32.totalorder %s10689_s4, %s7672_s26  ;;  %p7677_p9 = scmp.lt.s32.totalorder %s10689_s4, %s10748_s18 }
0x1805   : > { %p7678_p10 = scmp.lt.s32.totalorder %s7676_s21, %s7672_s26 }
0x1806   : > { %p7674_p7 = pnand %p7673_p4, %p7871_p5 }
0x1807   : > { %p7679_p11 = por %p7678_p10, %p7677_p9 }
0x1808   : > { %p7675_p8 = pneg %p7674_p7 }
0x180a   : > { %p7680_p12 = pnand %p7679_p11, %p7675_p8 }
0x180c   : > { %7683 = shalt.err (!%p7680_p12)
}
0x180d   : > { %7025 = dma.vmem_to_hbm [thread:$0]  (%p7871_p5), %s10691_s22, 16, %s10689_s4, %s5816_s19   ;;  %v7019_v21 = vpop.f32.mrf.mxu1 }
0x1816   : > { %v5720_v58 = vpop.f32.mrf.mxu0 }
0x1818   : > { %v7010_v54 = vpop.f32.mrf.mxu0 }
0x181a   : > { %v5722_v42 = vpop.f32.mrf.mxu0 }
0x181c   : > { %v7011_v62 = vpop.f32.mrf.mxu0 }
0x181d PF: > { %p7031_p13 = scmp.ge.s32.totalorder %s7718_s30, 2  ;;  %s5840_s5 = sand.u32 1, %s7706_s27  }
0x181e   : > { %s5841_s6 = scalar_lea.sflag [#allocation3], %s5840_s5 }
0x181f   : > { %p7028_p0 = pnand %p7031_p13, %p7875_p6 }
0x1821   : > { %p7029_p1 = pneg %p7028_p0 }
0x1823   : > { %7701 = dma.done.wait (%p7029_p1), %s5841_s6, 16  }
0x1824   : > { %7703 = vsyncadd (%p7029_p1), %s5841_s6, 4294967280  ;;  %s10901_s4 = sld [smem:[#allocation5_spill]]  ;;  %p28_p5 = scmp.ge.s32.totalorder %s7858_s1, 4  }
0x1825   : > { %s10902_s27 = smov %s7710_s28  ;;  %s10903_s28 = smov %s7714_s29 }
0x1826   : > { %s10905_s30 = smov %s7858_s1  ;;  %30 = sbr.rel (!%p28_p5) target bundleno = 11 (0xb), region = 138 }
0x182a   : > { %s10904_s29 = smov %s10901_s4 }
0x182b   :  { %5845 = vsyncpa [#allocation3], 1 }
0x182c   :  { %5847 = vsyncpa [#allocation3 + $0x1], 1 }

</bundles_post_ra>
